<compile_context>
chip_gen: v7x
topology: tpu7x:2x2x1
jax: 0.10.0
libtpu: 0.0.40
codegen_flags: <defaults>
</compile_context>

<pallas_src>
import functools

import jax
import jax.numpy as jnp
from jax.experimental import pallas as pl
from jax.experimental.pallas import tpu as pltpu

_COMPUTE_DTYPE = jnp.bfloat16  # MXU-native operand dtype; accumulation stays f32.


# ----------------------------------------------------------------------------
# Kernel: Nb unpadded NHWC images -> conv output, per-tap MXU accumulation.
#   x_ref    : (Nb, H, W, Cin)        bf16, unpadded NHWC images
#   w_ref    : (KH*KW, Cout, Cin)     bf16, fused W_eff, per-tap layout
#   b_ref    : (Cout, 1)              f32 bias
#   o_ref    : (Nb, Cout, Hout*Wout)  f32, lane-dense flattened-NCHW output
#   xpad_ref : (Nb, Hp, Wp, Cin)      bf16 VMEM scratch (padding folded in)
# ----------------------------------------------------------------------------
def lora_conv2d_kernel(x_ref, w_ref, b_ref, o_ref, xpad_ref, *,
                       kh, kw, ph, pw, hout, wout):
    nb, xh, xw, cin = x_ref.shape
    hw = hout * wout

    # Fold the zero-pad into the kernel: zero the padded VMEM scratch, copy
    # the interior.  (Only the halo strips need zeroing in production; full
    # zeroing is used here because each grid step fully re-initializes it and
    # the cost at these block sizes is negligible.)
    xpad_ref[...] = jnp.zeros_like(xpad_ref)
    xpad_ref[:, ph:ph + xh, pw:pw + xw, :] = x_ref[...]

    # Static-unrolled per-tap contraction, accumulated in f32 "registers".
    # Each tap is ONE MXU matmul with the batch folded into the lane dim:
    #   (Cout, Cin) x (Nb*HW, Cin)^T -> (Cout, Nb*HW), f32 accumulate.
    acc = None
    for a in range(kh):                       # static unroll over kernel taps
        for b in range(kw):
            xs = xpad_ref[:, a:a + hout, b:b + wout, :]   # (Nb,Hout,Wout,Cin)
            xs = xs.reshape(nb * hw, cin)                 # (Nb*HW, Cin) bf16
            part = jax.lax.dot_general(
                w_ref[a * kw + b], xs,
                dimension_numbers=(((1,), (1,)), ((), ())),
                preferred_element_type=jnp.float32)       # (Cout, Nb*HW) f32
            acc = part if acc is None else acc + part

    res = acc + b_ref[...]                                # bias once, in f32
    for n in range(nb):                                   # lane-dense stores
        o_ref[n] = res[:, n * hw:(n + 1) * hw].astype(o_ref.dtype)


# ----------------------------------------------------------------------------
# Wrapper
# ----------------------------------------------------------------------------
def _vmem_limit_bytes():
    # ~75% of physical VMEM: ~96 MiB on v5e/v6e (128 MiB), ~48 MiB on v7x (64).
    try:
        cap = int(pltpu.get_tpu_info().vmem_capacity_bytes)
    except Exception:
        cap = 128 * 1024 * 1024
    return min(100 * 1024 * 1024, (cap * 3) // 4)


def _pick_batch_block(n, per_image_bytes, budget_bytes):
    # Largest divisor of n whose blocks (double-buffered) fit the VMEM budget.
    for nb in range(n, 0, -1):
        if n % nb == 0 and nb * per_image_bytes <= budget_bytes:
            return nb
    return 1


def lora_conv2d_forward(x_nchw, conv_w, conv_b, lora_A, lora_B, scaling, *,
                        padding, stride=(1, 1), dilation=(1, 1), groups=1):
    # Explicit guards: the kernel hard-codes these (see correctness review).
    assert tuple(stride) == (1, 1), "only stride=1 is implemented"
    assert tuple(dilation) == (1, 1), "only dilation=1 is implemented"
    assert groups == 1, "only groups=1 is implemented"

    N, Cin, H, W = x_nchw.shape
    Cout, _, KH, KW = conv_w.shape
    ph, pw = padding
    Hp, Wp = H + 2 * ph, W + 2 * pw
    Hout, Wout = Hp - KH + 1, Wp - KW + 1
    HW = Hout * Wout

    # ---- weight prep in plain JAX (tiny; fused once, not per tap) ----------
    # W_eff = conv.weight + (lora_B @ lora_A).view(weight.shape) * scaling
    delta = jnp.dot(lora_B, lora_A,
                    precision=jax.lax.Precision.HIGHEST).reshape(conv_w.shape)
    w_eff = conv_w + delta * scaling
    # per-tap layout: (KH*KW, Cout, Cin), tap index t = a*KW + b
    w_taps = jnp.transpose(w_eff, (2, 3, 0, 1)).reshape(KH * KW, Cout, Cin)
    w_taps = w_taps.astype(_COMPUTE_DTYPE)
    bias = conv_b.reshape(Cout, 1).astype(jnp.float32)

    # ---- activation prep: single fused XLA pass (cast to bf16 + NCHW->NHWC);
    # the zero-pad is NOT materialized in HBM — it is folded into the kernel.
    x_nhwc = jnp.transpose(x_nchw.astype(_COMPUTE_DTYPE), (0, 2, 3, 1))

    vmem_limit = _vmem_limit_bytes()
    per_image_bytes = (2 * H * W * Cin * 2        # double-buffered bf16 x block
                       + Hp * Wp * Cin * 2        # padded bf16 VMEM scratch
                       + 2 * Cout * HW * 4        # double-buffered f32 out block
                       + Cout * HW * 4)           # f32 accumulator
    Nb = _pick_batch_block(N, per_image_bytes, vmem_limit // 2)

    kernel = functools.partial(lora_conv2d_kernel, kh=KH, kw=KW, ph=ph, pw=pw,
                               hout=Hout, wout=Wout)
    out_flat = pl.pallas_call(
        kernel,
        grid=(N // Nb,),
        out_shape=jax.ShapeDtypeStruct((N, Cout, HW), jnp.float32),
        in_specs=[
            pl.BlockSpec((Nb, H, W, Cin), lambda g: (g, 0, 0, 0)),
            pl.BlockSpec((KH * KW, Cout, Cin), lambda g: (0, 0, 0)),
            pl.BlockSpec((Cout, 1), lambda g: (0, 0)),
        ],
        out_specs=pl.BlockSpec((Nb, Cout, HW), lambda g: (g, 0, 0)),
        scratch_shapes=[pltpu.VMEM((Nb, Hp, Wp, Cin), _COMPUTE_DTYPE)],
        compiler_params=pltpu.CompilerParams(
            dimension_semantics=("parallel",),
            vmem_limit_bytes=vmem_limit),
    )(x_nhwc, w_taps, bias)

    # free row-major reshape back to NCHW (no transpose / extra HBM pass)
    return out_flat.reshape(N, Cout, Hout, Wout)


if __name__ == "__main__":
    key = jax.random.PRNGKey(0)
    N, Cin, H, W = 2, 8, 16, 16
    Cout, K = 16, 3
    r, lora_alpha = 4, 8
    scaling = lora_alpha / r
    padding = (1, 1)                     # conv.padding of the wrapped layer

    k1, k2, k3, k4, k5 = jax.random.split(key, 5)
    conv_w = jax.random.normal(k1, (Cout, Cin, K, K), jnp.float32) * 0.1
    conv_b = jax.random.normal(k2, (Cout,), jnp.float32) * 0.1
    # lora_A: kaiming_uniform_(a=sqrt(5)) -> U(-1/sqrt(fan_in), 1/sqrt(fan_in))
    fan_in = Cin * K
    bound = 1.0 / (fan_in ** 0.5)
    lora_A = jax.random.uniform(k3, (r * K, Cin * K), jnp.float32, -bound, bound)
    # NOTE: reset_parameters() zeros lora_B; nonzero values used so the LoRA
    # path actually contributes in this synthetic test.
    lora_B = jax.random.normal(k4, (Cout * K, r * K), jnp.float32) * 0.1
    x = jax.random.normal(k5, (N, Cin, H, W), jnp.float32)

    fwd = jax.jit(lora_conv2d_forward,
                  static_argnames=("padding", "stride", "dilation", "groups"))
    out = jax.block_until_ready(
        fwd(x, conv_w, conv_b, lora_A, lora_B, scaling, padding=padding))

    # ---- references -------------------------------------------------------
    w_eff = conv_w + jnp.dot(lora_B, lora_A,
                             precision=jax.lax.Precision.HIGHEST
                             ).reshape(conv_w.shape) * scaling
    conv = functools.partial(
        jax.lax.conv_general_dilated,
        window_strides=(1, 1), padding=((1, 1), (1, 1)),
        dimension_numbers=("NCHW", "OIHW", "NCHW"),
        precision=jax.lax.Precision.HIGHEST)
    ref_f32 = conv(x, w_eff) + conv_b[None, :, None, None]
    # reference with the same bf16 operand rounding the kernel's MXU sees
    ref_bf16 = conv(x.astype(_COMPUTE_DTYPE).astype(jnp.float32),
                    w_eff.astype(_COMPUTE_DTYPE).astype(jnp.float32)
                    ) + conv_b[None, :, None, None]

    assert out.shape == (N, Cout, H, W)
    # kernel math is exact modulo f32 summation order vs the bf16-operand ref
    assert jnp.allclose(out, ref_bf16, atol=5e-3, rtol=5e-3), \
        float(jnp.max(jnp.abs(out - ref_bf16)))
    # bf16 MXU operands -> relaxed tolerance vs the pure-f32 PyTorch-equivalent
    assert jnp.allclose(out, ref_f32, atol=3e-2, rtol=3e-2), \
        float(jnp.max(jnp.abs(out - ref_f32)))
    print("KERNEL_OK")
</pallas_src>

<mosaic_0001>
module attributes {stable_mosaic.version = 11 : i64} {
  func.func @lora_conv2d_kernel(%arg0: i32, %arg1: memref<2x16x16x8xbf16, #tpu.memory_space<vmem>>, %arg2: memref<9x16x8xbf16, #tpu.memory_space<vmem>>, %arg3: memref<16x1xf32, #tpu.memory_space<vmem>>, %arg4: memref<2x16x256xf32, #tpu.memory_space<vmem>>, %arg5: memref<2x18x18x8xbf16, #tpu.memory_space<vmem>>) attributes {dimension_semantics = [#tpu.dimension_semantics<parallel>], iteration_bounds = array<i64: 1>, scalar_prefetch = 0 : i64, scratch_operands = 1 : i64, tpu.core_type = #tpu.core_type<tc>, window_params = [{transform_indices = @transform_0, window_bounds = array<i64: 2, 16, 16, 8>}, {pipeline_mode = #tpu.pipeline_mode<synchronous>, transform_indices = @transform_1, window_bounds = array<i64: 9, 16, 8>}, {pipeline_mode = #tpu.pipeline_mode<synchronous>, transform_indices = @transform_2, window_bounds = array<i64: 16, 1>}, {transform_indices = @transform_3, window_bounds = array<i64: 2, 16, 256>}]} {
    %cst = arith.constant 0.000000e+00 : bf16
    %0 = vector.broadcast %cst : bf16 to vector<2x18x18x8xbf16>
    %c0 = arith.constant 0 : index
    %c0_0 = arith.constant 0 : index
    %c0_1 = arith.constant 0 : index
    %c0_2 = arith.constant 0 : index
    %1 = vector.load %arg5[%c0, %c0_0, %c0_1, %c0_2] : memref<2x18x18x8xbf16, #tpu.memory_space<vmem>>, vector<2x18x18x8xbf16>
    tpu.vector_store %arg5[%c0, %c0_0, %c0_1, %c0_2], %0 {strides = array<i32>} : memref<2x18x18x8xbf16, #tpu.memory_space<vmem>>, vector<2x18x18x8xbf16>,
    %c0_3 = arith.constant 0 : index
    %c0_4 = arith.constant 0 : index
    %c0_5 = arith.constant 0 : index
    %c0_6 = arith.constant 0 : index
    %2 = vector.load %arg1[%c0_3, %c0_4, %c0_5, %c0_6] : memref<2x16x16x8xbf16, #tpu.memory_space<vmem>>, vector<2x16x16x8xbf16>
    %c0_7 = arith.constant 0 : index
    %c1 = arith.constant 1 : index
    %c1_8 = arith.constant 1 : index
    %c0_9 = arith.constant 0 : index
    %3 = vector.load %arg5[%c0_7, %c1, %c1_8, %c0_9] : memref<2x18x18x8xbf16, #tpu.memory_space<vmem>>, vector<2x16x16x8xbf16>
    tpu.vector_store %arg5[%c0_7, %c1, %c1_8, %c0_9], %2 {strides = array<i32>} : memref<2x18x18x8xbf16, #tpu.memory_space<vmem>>, vector<2x16x16x8xbf16>,
    %c0_10 = arith.constant 0 : index
    %c0_11 = arith.constant 0 : index
    %c0_12 = arith.constant 0 : index
    %c0_13 = arith.constant 0 : index
    %4 = vector.load %arg5[%c0_10, %c0_11, %c0_12, %c0_13] : memref<2x18x18x8xbf16, #tpu.memory_space<vmem>>, vector<2x16x16x8xbf16>
    %5 = vector.shape_cast %4 : vector<2x16x16x8xbf16> to vector<512x8xbf16>
    %c0_14 = arith.constant 0 : index
    %c0_15 = arith.constant 0 : index
    %c0_16 = arith.constant 0 : index
    %6 = vector.load %arg2[%c0_14, %c0_15, %c0_16] : memref<9x16x8xbf16, #tpu.memory_space<vmem>>, vector<1x16x8xbf16>
    %7 = vector.shape_cast %6 : vector<1x16x8xbf16> to vector<16x8xbf16>
    %cst_17 = arith.constant dense<0.000000e+00> : vector<16x512xf32>
    %8 = tpu.matmul %7, %5, %cst_17 {dimension_numbers = #tpu.dot_dimension_numbers<[1], [1], [0], [0], [0, 0, 1, 0], [], []>} : vector<16x8xbf16>, vector<512x8xbf16>, vector<16x512xf32> -> vector<16x512xf32>
    %c0_18 = arith.constant 0 : index
    %c0_19 = arith.constant 0 : index
    %c1_20 = arith.constant 1 : index
    %c0_21 = arith.constant 0 : index
    %9 = vector.load %arg5[%c0_18, %c0_19, %c1_20, %c0_21] : memref<2x18x18x8xbf16, #tpu.memory_space<vmem>>, vector<2x16x16x8xbf16>
    %10 = vector.shape_cast %9 : vector<2x16x16x8xbf16> to vector<512x8xbf16>
    %c1_22 = arith.constant 1 : index
    %c0_23 = arith.constant 0 : index
    %c0_24 = arith.constant 0 : index
    %11 = vector.load %arg2[%c1_22, %c0_23, %c0_24] : memref<9x16x8xbf16, #tpu.memory_space<vmem>>, vector<1x16x8xbf16>
    %12 = vector.shape_cast %11 : vector<1x16x8xbf16> to vector<16x8xbf16>
    %cst_25 = arith.constant dense<0.000000e+00> : vector<16x512xf32>
    %13 = tpu.matmul %12, %10, %cst_25 {dimension_numbers = #tpu.dot_dimension_numbers<[1], [1], [0], [0], [0, 0, 1, 0], [], []>} : vector<16x8xbf16>, vector<512x8xbf16>, vector<16x512xf32> -> vector<16x512xf32>
    %14 = arith.addf %8, %13 : vector<16x512xf32>
    %c0_26 = arith.constant 0 : index
    %c0_27 = arith.constant 0 : index
    %c2 = arith.constant 2 : index
    %c0_28 = arith.constant 0 : index
    %15 = vector.load %arg5[%c0_26, %c0_27, %c2, %c0_28] : memref<2x18x18x8xbf16, #tpu.memory_space<vmem>>, vector<2x16x16x8xbf16>
    %16 = vector.shape_cast %15 : vector<2x16x16x8xbf16> to vector<512x8xbf16>
    %c2_29 = arith.constant 2 : index
    %c0_30 = arith.constant 0 : index
    %c0_31 = arith.constant 0 : index
    %17 = vector.load %arg2[%c2_29, %c0_30, %c0_31] : memref<9x16x8xbf16, #tpu.memory_space<vmem>>, vector<1x16x8xbf16>
    %18 = vector.shape_cast %17 : vector<1x16x8xbf16> to vector<16x8xbf16>
    %cst_32 = arith.constant dense<0.000000e+00> : vector<16x512xf32>
    %19 = tpu.matmul %18, %16, %cst_32 {dimension_numbers = #tpu.dot_dimension_numbers<[1], [1], [0], [0], [0, 0, 1, 0], [], []>} : vector<16x8xbf16>, vector<512x8xbf16>, vector<16x512xf32> -> vector<16x512xf32>
    %20 = arith.addf %14, %19 : vector<16x512xf32>
    %c0_33 = arith.constant 0 : index
    %c1_34 = arith.constant 1 : index
    %c0_35 = arith.constant 0 : index
    %c0_36 = arith.constant 0 : index
    %21 = vector.load %arg5[%c0_33, %c1_34, %c0_35, %c0_36] : memref<2x18x18x8xbf16, #tpu.memory_space<vmem>>, vector<2x16x16x8xbf16>
    %22 = vector.shape_cast %21 : vector<2x16x16x8xbf16> to vector<512x8xbf16>
    %c3 = arith.constant 3 : index
    %c0_37 = arith.constant 0 : index
    %c0_38 = arith.constant 0 : index
    %23 = vector.load %arg2[%c3, %c0_37, %c0_38] : memref<9x16x8xbf16, #tpu.memory_space<vmem>>, vector<1x16x8xbf16>
    %24 = vector.shape_cast %23 : vector<1x16x8xbf16> to vector<16x8xbf16>
    %cst_39 = arith.constant dense<0.000000e+00> : vector<16x512xf32>
    %25 = tpu.matmul %24, %22, %cst_39 {dimension_numbers = #tpu.dot_dimension_numbers<[1], [1], [0], [0], [0, 0, 1, 0], [], []>} : vector<16x8xbf16>, vector<512x8xbf16>, vector<16x512xf32> -> vector<16x512xf32>
    %26 = arith.addf %20, %25 : vector<16x512xf32>
    %c0_40 = arith.constant 0 : index
    %c1_41 = arith.constant 1 : index
    %c1_42 = arith.constant 1 : index
    %c0_43 = arith.constant 0 : index
    %27 = vector.load %arg5[%c0_40, %c1_41, %c1_42, %c0_43] : memref<2x18x18x8xbf16, #tpu.memory_space<vmem>>, vector<2x16x16x8xbf16>
    %28 = vector.shape_cast %27 : vector<2x16x16x8xbf16> to vector<512x8xbf16>
    %c4 = arith.constant 4 : index
    %c0_44 = arith.constant 0 : index
    %c0_45 = arith.constant 0 : index
    %29 = vector.load %arg2[%c4, %c0_44, %c0_45] : memref<9x16x8xbf16, #tpu.memory_space<vmem>>, vector<1x16x8xbf16>
    %30 = vector.shape_cast %29 : vector<1x16x8xbf16> to vector<16x8xbf16>
    %cst_46 = arith.constant dense<0.000000e+00> : vector<16x512xf32>
    %31 = tpu.matmul %30, %28, %cst_46 {dimension_numbers = #tpu.dot_dimension_numbers<[1], [1], [0], [0], [0, 0, 1, 0], [], []>} : vector<16x8xbf16>, vector<512x8xbf16>, vector<16x512xf32> -> vector<16x512xf32>
    %32 = arith.addf %26, %31 : vector<16x512xf32>
    %c0_47 = arith.constant 0 : index
    %c1_48 = arith.constant 1 : index
    %c2_49 = arith.constant 2 : index
    %c0_50 = arith.constant 0 : index
    %33 = vector.load %arg5[%c0_47, %c1_48, %c2_49, %c0_50] : memref<2x18x18x8xbf16, #tpu.memory_space<vmem>>, vector<2x16x16x8xbf16>
    %34 = vector.shape_cast %33 : vector<2x16x16x8xbf16> to vector<512x8xbf16>
    %c5 = arith.constant 5 : index
    %c0_51 = arith.constant 0 : index
    %c0_52 = arith.constant 0 : index
    %35 = vector.load %arg2[%c5, %c0_51, %c0_52] : memref<9x16x8xbf16, #tpu.memory_space<vmem>>, vector<1x16x8xbf16>
    %36 = vector.shape_cast %35 : vector<1x16x8xbf16> to vector<16x8xbf16>
    %cst_53 = arith.constant dense<0.000000e+00> : vector<16x512xf32>
    %37 = tpu.matmul %36, %34, %cst_53 {dimension_numbers = #tpu.dot_dimension_numbers<[1], [1], [0], [0], [0, 0, 1, 0], [], []>} : vector<16x8xbf16>, vector<512x8xbf16>, vector<16x512xf32> -> vector<16x512xf32>
    %38 = arith.addf %32, %37 : vector<16x512xf32>
    %c0_54 = arith.constant 0 : index
    %c2_55 = arith.constant 2 : index
    %c0_56 = arith.constant 0 : index
    %c0_57 = arith.constant 0 : index
    %39 = vector.load %arg5[%c0_54, %c2_55, %c0_56, %c0_57] : memref<2x18x18x8xbf16, #tpu.memory_space<vmem>>, vector<2x16x16x8xbf16>
    %40 = vector.shape_cast %39 : vector<2x16x16x8xbf16> to vector<512x8xbf16>
    %c6 = arith.constant 6 : index
    %c0_58 = arith.constant 0 : index
    %c0_59 = arith.constant 0 : index
    %41 = vector.load %arg2[%c6, %c0_58, %c0_59] : memref<9x16x8xbf16, #tpu.memory_space<vmem>>, vector<1x16x8xbf16>
    %42 = vector.shape_cast %41 : vector<1x16x8xbf16> to vector<16x8xbf16>
    %cst_60 = arith.constant dense<0.000000e+00> : vector<16x512xf32>
    %43 = tpu.matmul %42, %40, %cst_60 {dimension_numbers = #tpu.dot_dimension_numbers<[1], [1], [0], [0], [0, 0, 1, 0], [], []>} : vector<16x8xbf16>, vector<512x8xbf16>, vector<16x512xf32> -> vector<16x512xf32>
    %44 = arith.addf %38, %43 : vector<16x512xf32>
    %c0_61 = arith.constant 0 : index
    %c2_62 = arith.constant 2 : index
    %c1_63 = arith.constant 1 : index
    %c0_64 = arith.constant 0 : index
    %45 = vector.load %arg5[%c0_61, %c2_62, %c1_63, %c0_64] : memref<2x18x18x8xbf16, #tpu.memory_space<vmem>>, vector<2x16x16x8xbf16>
    %46 = vector.shape_cast %45 : vector<2x16x16x8xbf16> to vector<512x8xbf16>
    %c7 = arith.constant 7 : index
    %c0_65 = arith.constant 0 : index
    %c0_66 = arith.constant 0 : index
    %47 = vector.load %arg2[%c7, %c0_65, %c0_66] : memref<9x16x8xbf16, #tpu.memory_space<vmem>>, vector<1x16x8xbf16>
    %48 = vector.shape_cast %47 : vector<1x16x8xbf16> to vector<16x8xbf16>
    %cst_67 = arith.constant dense<0.000000e+00> : vector<16x512xf32>
    %49 = tpu.matmul %48, %46, %cst_67 {dimension_numbers = #tpu.dot_dimension_numbers<[1], [1], [0], [0], [0, 0, 1, 0], [], []>} : vector<16x8xbf16>, vector<512x8xbf16>, vector<16x512xf32> -> vector<16x512xf32>
    %50 = arith.addf %44, %49 : vector<16x512xf32>
    %c0_68 = arith.constant 0 : index
    %c2_69 = arith.constant 2 : index
    %c2_70 = arith.constant 2 : index
    %c0_71 = arith.constant 0 : index
    %51 = vector.load %arg5[%c0_68, %c2_69, %c2_70, %c0_71] : memref<2x18x18x8xbf16, #tpu.memory_space<vmem>>, vector<2x16x16x8xbf16>
    %52 = vector.shape_cast %51 : vector<2x16x16x8xbf16> to vector<512x8xbf16>
    %c8 = arith.constant 8 : index
    %c0_72 = arith.constant 0 : index
    %c0_73 = arith.constant 0 : index
    %53 = vector.load %arg2[%c8, %c0_72, %c0_73] : memref<9x16x8xbf16, #tpu.memory_space<vmem>>, vector<1x16x8xbf16>
    %54 = vector.shape_cast %53 : vector<1x16x8xbf16> to vector<16x8xbf16>
    %cst_74 = arith.constant dense<0.000000e+00> : vector<16x512xf32>
    %55 = tpu.matmul %54, %52, %cst_74 {dimension_numbers = #tpu.dot_dimension_numbers<[1], [1], [0], [0], [0, 0, 1, 0], [], []>} : vector<16x8xbf16>, vector<512x8xbf16>, vector<16x512xf32> -> vector<16x512xf32>
    %56 = arith.addf %50, %55 : vector<16x512xf32>
    %c0_75 = arith.constant 0 : index
    %c0_76 = arith.constant 0 : index
    %57 = vector.load %arg3[%c0_75, %c0_76] : memref<16x1xf32, #tpu.memory_space<vmem>>, vector<16x1xf32>
    %58 = vector.broadcast %57 : vector<16x1xf32> to vector<16x512xf32>
    %59 = arith.addf %56, %58 : vector<16x512xf32>
    %60 = vector.extract_strided_slice %59 {offsets = [0, 0], sizes = [16, 256], strides = [1, 1]} : vector<16x512xf32> to vector<16x256xf32>
    %c0_77 = arith.constant 0 : index
    %c0_78 = arith.constant 0 : index
    %c0_79 = arith.constant 0 : index
    %61 = vector.load %arg4[%c0_77, %c0_78, %c0_79] : memref<2x16x256xf32, #tpu.memory_space<vmem>>, vector<1x16x256xf32>
    %62 = vector.shape_cast %61 : vector<1x16x256xf32> to vector<16x256xf32>
    %63 = vector.shape_cast %60 : vector<16x256xf32> to vector<1x16x256xf32>
    tpu.vector_store %arg4[%c0_77, %c0_78, %c0_79], %63 {strides = array<i32>} : memref<2x16x256xf32, #tpu.memory_space<vmem>>, vector<1x16x256xf32>,
    %64 = vector.extract_strided_slice %59 {offsets = [0, 256], sizes = [16, 256], strides = [1, 1]} : vector<16x512xf32> to vector<16x256xf32>
    %c1_80 = arith.constant 1 : index
    %c0_81 = arith.constant 0 : index
    %c0_82 = arith.constant 0 : index
    %65 = vector.load %arg4[%c1_80, %c0_81, %c0_82] : memref<2x16x256xf32, #tpu.memory_space<vmem>>, vector<1x16x256xf32>
    %66 = vector.shape_cast %65 : vector<1x16x256xf32> to vector<16x256xf32>
    %67 = vector.shape_cast %64 : vector<16x256xf32> to vector<1x16x256xf32>
    tpu.vector_store %arg4[%c1_80, %c0_81, %c0_82], %67 {strides = array<i32>} : memref<2x16x256xf32, #tpu.memory_space<vmem>>, vector<1x16x256xf32>,
    return
  }
  func.func @transform_0(%arg0: i32) -> (i32, i32, i32, i32) {
    %c0_i32 = arith.constant 0 : i32
    %c0_i32_0 = arith.constant 0 : i32
    %c0_i32_1 = arith.constant 0 : i32
    %c0_i32_2 = arith.constant 0 : i32
    return %arg0, %c0_i32, %c0_i32_0, %c0_i32_1 : i32, i32, i32, i32
  }
  func.func @transform_1(%arg0: i32) -> (i32, i32, i32) {
    %c0_i32 = arith.constant 0 : i32
    %c0_i32_0 = arith.constant 0 : i32
    %c0_i32_1 = arith.constant 0 : i32
    %c0_i32_2 = arith.constant 0 : i32
    return %c0_i32, %c0_i32_0, %c0_i32_1 : i32, i32, i32
  }
  func.func @transform_2(%arg0: i32) -> (i32, i32) {
    %c0_i32 = arith.constant 0 : i32
    %c0_i32_0 = arith.constant 0 : i32
    %c0_i32_1 = arith.constant 0 : i32
    return %c0_i32, %c0_i32_0 : i32, i32
  }
  func.func @transform_3(%arg0: i32) -> (i32, i32, i32) {
    %c0_i32 = arith.constant 0 : i32
    %c0_i32_0 = arith.constant 0 : i32
    %c0_i32_1 = arith.constant 0 : i32
    return %arg0, %c0_i32, %c0_i32_0 : i32, i32, i32
  }
}

</mosaic_0001>

<bundles_post_ra>
// kernel: lora_conv2d_forward.1
= control target key start
LH: loop header
LB: loop body
LE: loop exit
PB: predicated region body
PF: predicated region fallthrough
CT: control target
= control target key end

     0   :  { %8 = vsyncpa [#allocation4], 0  ;;  %s12619_s0 = inlined_call_operand.hbm [shape: bf16[2,16,16,8], index: 0, kind: input, shape index: {}]   ;;  %s12620_s1 = inlined_call_operand.hbm [shape: bf16[9,16,8], index: 1, kind: input, shape index: {}]   ;;  %s12621_s2 = inlined_call_operand.hbm [shape: f32[16,1], index: 2, kind: input, shape index: {}]   ;;  %s12622_s3 = inlined_call_operand.hbm [shape: f32[2,16,256], index: 3, kind: output, shape index: {}]  }
   0x1   :  { %9 = vsyncpa [#allocation7], 0 }
   0x2   :  { %10 = vsyncpa [#allocation5], 0  ;;  %s9033_s12 = smov [#allocation6]   ;;  %s9034_s14 = smov [#allocation3]  }
   0x3   :  { %s28_s13 = sshll.u32 %s9033_s12, 4  ;;  %s16_s15 = sshll.u32 %s9034_s14, 4  ;;  %s29_s13 = int_to_ptr.vmem [resolvable:$true] %s28_s13  ;;  %s9064_s15 = int_to_ptr.vmem [resolvable:$true] %s16_s15 }
   0x4   :  { %s8939_s18 = scalar_lea.hbm %s12620_s1, 1152 }
   0x5   :  { %p8940_p0 = scmp.ne.s32.totalorder %s12620_s1, %s8939_s18  ;;  %p8943_p1 = scmp.lt.u32.totalorder %s8939_s18, %s12620_s1 }
   0x7   :  { %p8945_p2 = pnand %p8943_p1, %p8940_p0 }
   0x9   :  { %8948 = shalt.err (!%p8945_p2)
}
   0xa   :  { %s8949_s23 = scalar_lea.vmem %s29_s13, 1152  ;;  %p8954_p4 = scmp.lt.s32.totalorder %s29_s13, %s29_s13 }
   0xb   :  { %p8950_p3 = scmp.ne.s32.totalorder %s29_s13, %s8949_s23  ;;  %p8955_p5 = scmp.lt.s32.totalorder %s8949_s23, %s8949_s23 }
   0xd   :  { %p8956_p6 = por %p8955_p5, %p8954_p4 }
   0xf   :  { %p8957_p7 = pnand %p8956_p6, %p8950_p3 }
  0x11   :  { %8960 = shalt.err (!%p8957_p7)
}
  0x12   :  { %s9035_s24 = smov 64   ;;  %s9036_s25 = smov 4  }
  0x13   :  { %34 = dma.hbm_to_vmem [thread:$0]  %s12620_s1, 1152, %s29_s13, [#allocation7], %s9035_s24, %s9035_s24, %s9036_s25  }
  0x14   :  { %s8961_s30 = scalar_lea.hbm %s12619_s0, 4096 }
  0x15   :  { %p8962_p8 = scmp.ne.s32.totalorder %s12619_s0, %s8961_s30  ;;  %p8965_p9 = scmp.lt.u32.totalorder %s8961_s30, %s12619_s0 }
  0x17   :  { %p8967_p10 = pnand %p8965_p9, %p8962_p8 }
  0x19   :  { %8970 = shalt.err (!%p8967_p10)
}
  0x1a   :  { %s8971_s8 = scalar_lea.vmem %s9064_s15, 4096  ;;  %p8976_p12 = scmp.lt.s32.totalorder %s9064_s15, %s9064_s15 }
  0x1b   :  { %p8972_p11 = scmp.ne.s32.totalorder %s9064_s15, %s8971_s8  ;;  %p8977_p13 = scmp.lt.s32.totalorder %s8971_s8, %s8971_s8 }
  0x1d   :  { %p8978_p0 = por %p8977_p13, %p8976_p12 }
  0x1f   :  { %p8979_p1 = pnand %p8978_p0, %p8972_p11 }
  0x21   :  { %8982 = shalt.err (!%p8979_p1)
}
  0x22   :  { %22 = dma.hbm_to_vmem [thread:$0]  %s12619_s0, 4096, %s9064_s15, [#allocation4], %s9035_s24, %s9035_s24, %s9036_s25  }
  0x23   :  { %s9037_s10 = smov [#allocation8]   ;;  %s8983_s14 = scalar_lea.hbm %s12621_s2, 256 }
  0x24   :  { %s40_s11 = sshll.u32 %s9037_s10, 4  ;;  %p8984_p2 = scmp.ne.s32.totalorder %s12621_s2, %s8983_s14  ;;  %s41_s11 = int_to_ptr.vmem [resolvable:$true] %s40_s11 }
  0x25   :  { %p8987_p3 = scmp.lt.u32.totalorder %s8983_s14, %s12621_s2 }
  0x27   :  { %p8989_p4 = pnand %p8987_p3, %p8984_p2 }
  0x29   :  { %8992 = shalt.err (!%p8989_p4)
}
  0x2a   :  { %s8993_s20 = scalar_lea.vmem %s41_s11, 256  ;;  %p8998_p6 = scmp.lt.s32.totalorder %s41_s11, %s41_s11 }
  0x2b   :  { %p8994_p5 = scmp.ne.s32.totalorder %s41_s11, %s8993_s20  ;;  %p8999_p7 = scmp.lt.s32.totalorder %s8993_s20, %s8993_s20 }
  0x2d   :  { %p9000_p8 = por %p8999_p7, %p8998_p6 }
  0x2f   :  { %p9001_p9 = pnand %p9000_p8, %p8994_p5 }
  0x31   :  { %9004 = shalt.err (!%p9001_p9)
}
  0x32   :  { %s9038_s0 = smov 128   ;;  %s9039_s15 = smov 8  }
  0x33   :  { %46 = dma.hbm_to_vmem [thread:$0]  %s12621_s2, 256, %s41_s11, [#allocation7], %s9038_s0, %s9038_s0, %s9039_s15  }
  0x34   :  { %9027 = dma.done.wait [#allocation4], 4096  }
  0x35   :  { %9028 = vsyncadd [#allocation4], 4294963200 }
  0x36   :  { %9029 = dma.done.wait [#allocation7], 1408  }
  0x37   :  { %9030 = vsyncadd [#allocation7], 4294965888  ;;  %vm57_vm0 = vcmask 60416   ;;  %vm60_vm1 = vcmask 57344   ;;  %v9040_v0 = vmov 0   ;;  %v12666_v8 = vmov 0 }
  0x38   :  { %83 = vst.msk [vmem:[#allocation2 + $0x60] sm:$0xf] %vm57_vm0, %v9040_v0  ;;  %84 = vst.msk [vmem:[#allocation2 + $0x64] sm:$0xf] %vm57_vm0, %v9040_v0  ;;  %8705 = vset.pattern.permute.xlu0 %v9040_v0  ;;  %vm231_vm2 = vsmask.f32 256 }
  0x39   :  { %85 = vst.msk [vmem:[#allocation2 + $0x68] sm:$0x1] %vm60_vm1, %v9040_v0  ;;  %61 = vst.msk [vmem:[#allocation2 + $0x8] sm:$0x1] %vm60_vm1, %v9040_v0  ;;  %vm232_vm3 = vsmask.f32 4368 }
  0x3a   :  { %58 = vst.msk [vmem:[#allocation2] sm:$0xf] %vm57_vm0, %v9040_v0  ;;  %59 = vst.msk [vmem:[#allocation2 + $0x4] sm:$0xf] %vm57_vm0, %v9040_v0  ;;  %vm876_vm4 = vsmask.f32 7938 }
  0x3b   :  { %62 = vst.msk [vmem:[#allocation2 + $0xc] sm:$0xf] %vm57_vm0, %v9040_v0  ;;  %63 = vst.msk [vmem:[#allocation2 + $0x10] sm:$0xf] %vm57_vm0, %v9040_v0  ;;  %v181_v1 = vld [vmem:[#allocation3 + $0x38] sm:$0xf] }
  0x3c   :  { %64 = vst.msk [vmem:[#allocation2 + $0x14] sm:$0x1] %vm60_vm1, %v9040_v0  ;;  %67 = vst.msk [vmem:[#allocation2 + $0x20] sm:$0x1] %vm60_vm1, %v9040_v0  ;;  %v182_v2 = vld [vmem:[#allocation3 + $0x3c] sm:$0xf] }
  0x3d   :  { %65 = vst.msk [vmem:[#allocation2 + $0x18] sm:$0xf] %vm57_vm0, %v9040_v0  ;;  %66 = vst.msk [vmem:[#allocation2 + $0x1c] sm:$0xf] %vm57_vm0, %v9040_v0  ;;  %v213_v3 = vld [vmem:[#allocation3 + $0xb8] sm:$0xf] }
  0x3e   :  { %68 = vst.msk [vmem:[#allocation2 + $0x24] sm:$0xf] %vm57_vm0, %v9040_v0  ;;  %69 = vst.msk [vmem:[#allocation2 + $0x28] sm:$0xf] %vm57_vm0, %v9040_v0  ;;  %v354_v4 = vshrl.u32 %v181_v1, 16  ;;  %v357_v5 = vshll.u32 %v181_v1, 16 }
  0x3f   :  { %70 = vst.msk [vmem:[#allocation2 + $0x2c] sm:$0x1] %vm60_vm1, %v9040_v0  ;;  %73 = vst.msk [vmem:[#allocation2 + $0x38] sm:$0x1] %vm60_vm1, %v9040_v0  ;;  %v362_v6 = vshrl.u32 %v182_v2, 16  ;;  %v365_v7 = vshll.u32 %v182_v2, 16 }
  0x40   :  { %71 = vst.msk [vmem:[#allocation2 + $0x30] sm:$0xf] %vm57_vm0, %v9040_v0  ;;  %72 = vst.msk [vmem:[#allocation2 + $0x34] sm:$0xf] %vm57_vm0, %v9040_v0  ;;  %v214_v9 = vld [vmem:[#allocation3 + $0xbc] sm:$0xf] }
  0x41   :  { %74 = vst.msk [vmem:[#allocation2 + $0x3c] sm:$0xf] %vm57_vm0, %v9040_v0  ;;  %75 = vst.msk [vmem:[#allocation2 + $0x40] sm:$0xf] %vm57_vm0, %v9040_v0  ;;  %v626_v10 = vshrl.u32 %v213_v3, 16  ;;  %v629_v11 = vshll.u32 %v213_v3, 16 }
  0x42   :  { %76 = vst.msk [vmem:[#allocation2 + $0x44] sm:$0x1] %vm60_vm1, %v9040_v0  ;;  %79 = vst.msk [vmem:[#allocation2 + $0x50] sm:$0x1] %vm60_vm1, %v9040_v0  ;;  %v356_v12 = vrot.slane %v354_v4, 7  ;;  %v364_v13 = vrot.slane %v362_v6, 7 }
  0x43   :  { %77 = vst.msk [vmem:[#allocation2 + $0x48] sm:$0xf] %vm57_vm0, %v9040_v0  ;;  %78 = vst.msk [vmem:[#allocation2 + $0x4c] sm:$0xf] %vm57_vm0, %v9040_v0  ;;  %v12669_v14 = vmov 0  ;;  %v634_v16 = vshrl.u32 %v214_v9, 16 }
  0x44   :  { %80 = vst.msk [vmem:[#allocation2 + $0x54] sm:$0xf] %vm57_vm0, %v9040_v0  ;;  %81 = vst.msk [vmem:[#allocation2 + $0x58] sm:$0xf] %vm57_vm0, %v9040_v0  ;;  %v929_v15 = vld [vmem:[#allocation2 + $0x60] sm:$0xf]  ;;  %v359_v22 = vor.u32 %v357_v5, %v356_v12  ;;  %v367_v24 = vor.u32 %v365_v7, %v364_v13 }
  0x45   :  { %82 = vst.msk [vmem:[#allocation2 + $0x5c] sm:$0x1] %vm60_vm1, %v9040_v0  ;;  %88 = vst.msk [vmem:[#allocation2 + $0x74] sm:$0x1] %vm60_vm1, %v9040_v0  ;;  %v12672_v17 = vmov 0  ;;  %v628_v19 = vrot.slane %v626_v10, 7 }
  0x46   :  { %86 = vst.msk [vmem:[#allocation2 + $0x6c] sm:$0xf] %vm57_vm0, %v9040_v0  ;;  %87 = vst.msk [vmem:[#allocation2 + $0x70] sm:$0xf] %vm57_vm0, %v9040_v0  ;;  %v933_v18 = vld [vmem:[#allocation2 + $0x68] sm:$0x1] }
  0x47   :  { %89 = vst.msk [vmem:[#allocation2 + $0x78] sm:$0xf] %vm57_vm0, %v9040_v0  ;;  %90 = vst.msk [vmem:[#allocation2 + $0x7c] sm:$0xf] %vm57_vm0, %v9040_v0  ;;  %v637_v20 = vshll.u32 %v214_v9, 16  ;;  %v360_v23 = vrot.slane %v356_v12, 4  ;;  %v631_v28 = vor.u32 %v629_v11, %v628_v19 }
  0x48   :  { %91 = vst.msk [vmem:[#allocation2 + $0x80] sm:$0x1] %vm60_vm1, %v9040_v0  ;;  %94 = vst.msk [vmem:[#allocation2 + $0x8c] sm:$0x1] %vm60_vm1, %v9040_v0  ;;  %v1104_v21 = vld [vmem:[#allocation2] sm:$0xf] }
  0x49   :  { %92 = vst.msk [vmem:[#allocation2 + $0x84] sm:$0xf] %vm57_vm0, %v9040_v0  ;;  %93 = vst.msk [vmem:[#allocation2 + $0x88] sm:$0xf] %vm57_vm0, %v9040_v0  ;;  %v369_v25 = vrot.slane %v364_v13, 4  ;;  %v632_v29 = vrot.slane %v628_v19, 4 }
  0x4a   :  { %95 = vst.msk [vmem:[#allocation2 + $0x90] sm:$0xf] %vm57_vm0, %v9040_v0  ;;  %96 = vst.msk [vmem:[#allocation2 + $0x94] sm:$0xf] %vm57_vm0, %v9040_v0  ;;  %v1105_v27 = vld [vmem:[#allocation2 + $0x4] sm:$0xf] }
  0x4b   :  { %97 = vst.msk [vmem:[#allocation2 + $0x98] sm:$0x1] %vm60_vm1, %v9040_v0  ;;  %100 = vst.msk [vmem:[#allocation2 + $0xa4] sm:$0x1] %vm60_vm1, %v9040_v0  ;;  %v636_v30 = vrot.slane %v634_v16, 7  ;;  %v1206_v32 = vshrl.u32 %v1104_v21, 16 }
  0x4c   :  { %98 = vst.msk [vmem:[#allocation2 + $0x9c] sm:$0xf] %vm57_vm0, %v9040_v0  ;;  %99 = vst.msk [vmem:[#allocation2 + $0xa0] sm:$0xf] %vm57_vm0, %v9040_v0  ;;  %v1170_v31 = vld [vmem:[#allocation2 + $0x8] sm:$0x1] }
  0x4d   :  { %101 = vst.msk [vmem:[#allocation2 + $0xa8] sm:$0xf] %vm57_vm0, %v9040_v0  ;;  %102 = vst.msk [vmem:[#allocation2 + $0xac] sm:$0xf] %vm57_vm0, %v9040_v0  ;;  %v1209_v37 = vshll.u32 %v1104_v21, 16  ;;  %v639_v39 = vor.u32 %v637_v20, %v636_v30  ;;  %v641_v40 = vrot.slane %v636_v30, 4 }
  0x4e   :  { %103 = vst.msk [vmem:[#allocation2 + $0xb0] sm:$0x1] %vm60_vm1, %v9040_v0  ;;  %106 = vst.msk [vmem:[#allocation2 + $0xbc] sm:$0x1] %vm60_vm1, %v9040_v0  ;;  %v1208_v42 = vrot.slane %v1206_v32, 4  ;;  %v1215_v44 = vshll.u32 %v1105_v27, 16 }
  0x4f   :  { %104 = vst.msk [vmem:[#allocation2 + $0xb4] sm:$0xf] %vm57_vm0, %v9040_v0  ;;  %105 = vst.msk [vmem:[#allocation2 + $0xb8] sm:$0xf] %vm57_vm0, %v9040_v0  ;;  %v1211_v43 = vrot.slane %v1209_v37, 5  ;;  %v1219_v45 = vshrl.u32 %v1105_v27, 16 }
  0x50   :  { %107 = vst.msk [vmem:[#allocation2 + $0xc0] sm:$0xf] %vm57_vm0, %v9040_v0  ;;  %108 = vst.msk [vmem:[#allocation2 + $0xc4] sm:$0xf] %vm57_vm0, %v9040_v0  ;;  %v1225_v46 = vshll.u32 %v1170_v31, 16  ;;  %v1217_v52 = vrot.slane %v1215_v44, 5 }
  0x51   :  { %109 = vst.msk [vmem:[#allocation2 + $0xc8] sm:$0x1] %vm60_vm1, %v9040_v0  ;;  %112 = vst.msk [vmem:[#allocation2 + $0xd4] sm:$0x1] %vm60_vm1, %v9040_v0  ;;  %v1212_v51 = vor.u32 %v1211_v43, %v1208_v42  ;;  %v1221_v53 = vrot.slane %v1219_v45, 4  ;;  %vm2077_vm10 = vcmask 64512  }
  0x52   :  { %110 = vst.msk [vmem:[#allocation2 + $0xcc] sm:$0xf] %vm57_vm0, %v9040_v0  ;;  %111 = vst.msk [vmem:[#allocation2 + $0xd0] sm:$0xf] %vm57_vm0, %v9040_v0  ;;  %vm1202_vm8 = vsmask.f32 3328 }
  0x53   :  { %113 = vst.msk [vmem:[#allocation2 + $0xd8] sm:$0xf] %vm57_vm0, %v9040_v0  ;;  %114 = vst.msk [vmem:[#allocation2 + $0xdc] sm:$0xf] %vm57_vm0, %v9040_v0  ;;  %vm1203_vm9 = vsmask.f32 7440  ;;  %v1222_v5 = vor.u32 %v1221_v53, %v1217_v52 }
  0x54   :  { %115 = vst.msk [vmem:[#allocation2 + $0xe0] sm:$0x1] %vm60_vm1, %v9040_v0  ;;  %118 = vst.msk [vmem:[#allocation2 + $0xec] sm:$0x1] %vm60_vm1, %v9040_v0  ;;  %v1213_v58 = vrot.slane %v1212_v51, 4  ;;  %v1227_v59 = vrot.slane %v1225_v46, 5 }
  0x55   :  { %116 = vst.msk [vmem:[#allocation2 + $0xe4] sm:$0xf] %vm57_vm0, %v9040_v0  ;;  %117 = vst.msk [vmem:[#allocation2 + $0xe8] sm:$0xf] %vm57_vm0, %v9040_v0  ;;  %v9359_v1 = vld [vmem:[#allocation3 + $0x40] sm:$0xf] }
  0x56   :  { %119 = vst.msk [vmem:[#allocation2 + $0xf0] sm:$0xf] %vm57_vm0, %v9040_v0  ;;  %120 = vst.msk [vmem:[#allocation2 + $0xf4] sm:$0xf] %vm57_vm0, %v9040_v0  ;;  %v371_v16 = vshrl.u32 %v9359_v1, 16  ;;  %vm2709_vm12 = vcmask 1042432  }
  0x57   :  { %121 = vst.msk [vmem:[#allocation2 + $0xf8] sm:$0x1] %vm60_vm1, %v9040_v0  ;;  %124 = vst.msk [vmem:[#allocation2 + $0x104] sm:$0x1] %vm60_vm1, %v9040_v0  ;;  %vm2710_vm13 = vcmask 1046532   ;;  %s9041_s2 = smov [#allocation9]  }
  0x58   :  { %122 = vst.msk [vmem:[#allocation2 + $0xfc] sm:$0xf] %vm57_vm0, %v9040_v0  ;;  %123 = vst.msk [vmem:[#allocation2 + $0x100] sm:$0xf] %vm57_vm0, %v9040_v0  ;;  %s7738_s23 = sshll.u32 %s9041_s2, 4  ;;  %s7739_s23 = int_to_ptr.vmem [resolvable:$true] %s7738_s23 }
  0x59   :  { %125 = vst.msk [vmem:[#allocation2 + $0x108] sm:$0xf] %vm57_vm0, %v9040_v0  ;;  %126 = vst.msk [vmem:[#allocation2 + $0x10c] sm:$0xf] %vm57_vm0, %v9040_v0  ;;  %s9005_s24 = scalar_lea.vmem %s7739_s23, 1024  ;;  %p9010_p11 = scmp.lt.s32.totalorder %s7739_s23, %s7739_s23 }
  0x5a   :  { %127 = vst.msk [vmem:[#allocation2 + $0x110] sm:$0x1] %vm60_vm1, %v9040_v0  ;;  %130 = vst.msk [vmem:[#allocation2 + $0x11c] sm:$0x1] %vm60_vm1, %v9040_v0  ;;  %v1136_v38 = vld [vmem:[#allocation2 + $0xd8] sm:$0xf]  ;;  %p9006_p10 = scmp.ne.s32.totalorder %s7739_s23, %s9005_s24  ;;  %p9011_p12 = scmp.lt.s32.totalorder %s9005_s24, %s9005_s24 }
  0x5b   :  { %128 = vst.msk [vmem:[#allocation2 + $0x114] sm:$0xf] %vm57_vm0, %v9040_v0  ;;  %129 = vst.msk [vmem:[#allocation2 + $0x118] sm:$0xf] %vm57_vm0, %v9040_v0  ;;  %v1137_v47 = vld [vmem:[#allocation2 + $0xdc] sm:$0xf] }
  0x5c   :  { %131 = vst.msk [vmem:[#allocation2 + $0x120] sm:$0xf] %vm57_vm0, %v9040_v0  ;;  %132 = vst.msk [vmem:[#allocation2 + $0x124] sm:$0xf] %vm57_vm0, %v9040_v0  ;;  %v1590_v50 = vshrl.u32 %v1136_v38, 16  ;;  %v1593_v55 = vshll.u32 %v1136_v38, 16  ;;  %p9012_p13 = por %p9011_p12, %p9010_p11 }
  0x5d   :  { %133 = vst.msk [vmem:[#allocation2 + $0x128] sm:$0x1] %vm60_vm1, %v9040_v0  ;;  %136 = vst.msk [vmem:[#allocation2 + $0x134] sm:$0x1] %vm60_vm1, %v9040_v0  ;;  %v9354_v54 = vld [vmem:[#allocation2 + $0xe0] sm:$0x1] }
  0x5e   :  { %134 = vst.msk [vmem:[#allocation2 + $0x12c] sm:$0xf] %vm57_vm0, %v9040_v0  ;;  %135 = vst.msk [vmem:[#allocation2 + $0x130] sm:$0xf] %vm57_vm0, %v9040_v0  ;;  %v1599_v56 = vshll.u32 %v1137_v47, 16  ;;  %v1603_v57 = vshrl.u32 %v1137_v47, 16  ;;  %p9013_p0 = pnand %p9012_p13, %p9006_p10 }
  0x5f   :  { %137 = vst.msk [vmem:[#allocation2 + $0x138] sm:$0xf] %vm57_vm0, %v9040_v0  ;;  %138 = vst.msk [vmem:[#allocation2 + $0x13c] sm:$0xf] %vm57_vm0, %v9040_v0  ;;  %v1592_v60 = vrot.slane %v1590_v50, 4  ;;  %v1595_v61 = vrot.slane %v1593_v55, 5 }
  0x60   :  { %139 = vst.msk [vmem:[#allocation2 + $0x140] sm:$0x1] %vm60_vm1, %v9040_v0  ;;  %142 = vst.msk [vmem:[#allocation2 + $0x14c] sm:$0x1] %vm60_vm1, %v9040_v0  ;;  %v9356_v62 = vrot.slane %v1599_v56, 5  ;;  %v1605_v63 = vrot.slane %v1603_v57, 4 }
  0x61   :  { %140 = vst.msk [vmem:[#allocation2 + $0x144] sm:$0xf] %vm57_vm0, %v9040_v0  ;;  %141 = vst.msk [vmem:[#allocation2 + $0x148] sm:$0xf] %vm57_vm0, %v9040_v0  ;;  %v1596_v43 = vor.u32 %v1595_v61, %v1592_v60  ;;  %v374_v60 = vshll.u32 %v9359_v1, 16 }
  0x62   :  { %143 = vst.msk [vmem:[#allocation2 + $0x150] sm:$0xf] %vm57_vm0, %v9040_v0  ;;  %144 = vst.msk [vmem:[#allocation2 + $0x154] sm:$0xf] %vm57_vm0, %v9040_v0  ;;  %v1606_v44 = vor.u32 %v1605_v63, %v9356_v62 }
  0x63   :  { %145 = vst.msk [vmem:[#allocation2 + $0x158] sm:$0x1] %vm60_vm1, %v9040_v0  ;;  %148 = vst.msk [vmem:[#allocation2 + $0x164] sm:$0x1] %vm60_vm1, %v9040_v0 }
  0x64   :  { %146 = vst.msk [vmem:[#allocation2 + $0x15c] sm:$0xf] %vm57_vm0, %v9040_v0  ;;  %147 = vst.msk [vmem:[#allocation2 + $0x160] sm:$0xf] %vm57_vm0, %v9040_v0  ;;  %v1607_v53 = vrot.slane %v1606_v44, 4 }
  0x65   :  { %149 = vst.msk [vmem:[#allocation2 + $0x168] sm:$0xf] %vm57_vm0, %v9040_v0  ;;  %150 = vst.msk [vmem:[#allocation2 + $0x16c] sm:$0xf] %vm57_vm0, %v9040_v0 }
  0x66   :  { %151 = vst.msk [vmem:[#allocation2 + $0x170] sm:$0x1] %vm60_vm1, %v9040_v0  ;;  %154 = vst.msk [vmem:[#allocation2 + $0x17c] sm:$0x1] %vm60_vm1, %v9040_v0  ;;  %v1041_v26 = vld [vmem:[#allocation2 + $0x138] sm:$0xf] }
  0x67   :  { %152 = vst.msk [vmem:[#allocation2 + $0x174] sm:$0xf] %vm57_vm0, %v9040_v0  ;;  %153 = vst.msk [vmem:[#allocation2 + $0x178] sm:$0xf] %vm57_vm0, %v9040_v0  ;;  %v1045_v36 = vld [vmem:[#allocation2 + $0x140] sm:$0x1] }
  0x68   :  { %155 = vst.msk [vmem:[#allocation2 + $0x180] sm:$0xf] %vm57_vm0, %v9040_v0  ;;  %156 = vst.msk [vmem:[#allocation2 + $0x184] sm:$0xf] %vm57_vm0, %v9040_v0 }
  0x69   :  { %157 = vst.msk [vmem:[#allocation2 + $0x188] sm:$0x1] %vm60_vm1, %v9040_v0  ;;  %160 = vst.msk [vmem:[#allocation2 + $0x194] sm:$0x1] %vm60_vm1, %v9040_v0 }
  0x6a   :  { %158 = vst.msk [vmem:[#allocation2 + $0x18c] sm:$0xf] %vm57_vm0, %v9040_v0  ;;  %159 = vst.msk [vmem:[#allocation2 + $0x190] sm:$0xf] %vm57_vm0, %v9040_v0 }
  0x6b   :  { %161 = vst.msk [vmem:[#allocation2 + $0x198] sm:$0xf] %vm57_vm0, %v9040_v0  ;;  %162 = vst.msk [vmem:[#allocation2 + $0x19c] sm:$0xf] %vm57_vm0, %v9040_v0 }
  0x6c   :  { %163 = vst.msk [vmem:[#allocation2 + $0x1a0] sm:$0x1] %vm60_vm1, %v9040_v0  ;;  %166 = vst.msk [vmem:[#allocation2 + $0x1ac] sm:$0x1] %vm60_vm1, %v9040_v0 }
  0x6d   :  { %164 = vst.msk [vmem:[#allocation2 + $0x1a4] sm:$0xf] %vm57_vm0, %v9040_v0  ;;  %165 = vst.msk [vmem:[#allocation2 + $0x1a8] sm:$0xf] %vm57_vm0, %v9040_v0  ;;  %v1609_v0 = vshll.u32 %v9354_v54, 16 }
  0x6e   :  { %vm9325_vm5 = vmor %vm231_vm2, %vm232_vm3  ;;  %v215_v54 = vld [vmem:[#allocation3 + $0xc0] sm:$0xf] }
  0x6f   :  { %v12667_v8 = vsel %vm9325_vm5, 4294967295, %v12666_v8  ;;  %vm9330_vm6 = vmand %vm57_vm0, %vm876_vm4  ;;  %v368_v33 = vsel %vm9325_vm5, %v360_v23, %v367_v24  ;;  %v640_v48 = vsel %vm9325_vm5, %v632_v29, %v639_v39  ;;  %v1611_v57 = vrot.slane %v1609_v0, 5 }
  0x70   :  { %12668 = vst [vmem:[#allocation13_spill] sm:$0xff] %v12667_v8  ;;  %v12670_v14 = vsel %vm9330_vm6, 4294967295, %v12669_v14  ;;  %vm9336_vm7 = vmand %vm60_vm1, %vm231_vm2  ;;  %v930_v34 = vsel %vm9330_vm6, %v359_v22, %v929_v15  ;;  %v1042_v41 = vsel %vm9330_vm6, %v631_v28, %v1041_v26 }
  0x71   :  { %12671 = vst [vmem:[#allocation14_spill] sm:$0xff] %v12670_v14  ;;  %v12673_v17 = vsel %vm9336_vm7, 4294967295, %v12672_v17  ;;  %v934_v35 = vsel %vm9336_vm7, %v369_v25, %v933_v18  ;;  %931 = vst [vmem:[#allocation2 + $0x60] sm:$0xf] %v930_v34  ;;  %v1046_v49 = vsel %vm9336_vm7, %v641_v40, %v1045_v36  ;;  %v12675_v18 = vmov 0 }
  0x72   :  { %12674 = vst [vmem:[#allocation15_spill] sm:$0xff] %v12673_v17  ;;  %932 = vst.msk [vmem:[#allocation2 + $0x64] sm:$0xf] %vm57_vm0, %v368_v33  ;;  %v1223_v36 = vrot.slane %v1222_v5, 4  ;;  %v936_v5 = vld [vmem:[#allocation2 + $0x6c] sm:$0xf] }
  0x73   :  { %935 = vst [vmem:[#allocation2 + $0x68] sm:$0x1] %v934_v35  ;;  %1043 = vst [vmem:[#allocation2 + $0x138] sm:$0xf] %v1042_v41 }
  0x74   :  { %1044 = vst.msk [vmem:[#allocation2 + $0x13c] sm:$0xf] %vm57_vm0, %v640_v48  ;;  %1047 = vst [vmem:[#allocation2 + $0x140] sm:$0x1] %v1046_v49  ;;  %v184_v49 = vld [vmem:[#allocation3 + $0x44] sm:$0xf] }
  0x75   :  { %vm9364_vm11 = vmor %vm1202_vm8, %vm1203_vm9  ;;  %v379_v61 = vshrl.u32 %v184_v49, 16  ;;  %v382_v63 = vshll.u32 %v184_v49, 16 }
  0x76   :  { %v12676_v18 = vsel %vm9364_vm11, 4294967295, %v12675_v18  ;;  %v1218_v35 = vsel %vm9364_vm11, %v1213_v58, %v1217_v52  ;;  %v1228_v42 = vsel %vm9364_vm11, %v1223_v36, %v1227_v59  ;;  %v1597_v52 = vrot.slane %v1596_v43, 4  ;;  %vm10053_vm14 = vmor %vm2709_vm12, %vm2710_vm13 }
  0x77   :  { %12677 = vst [vmem:[#allocation16_spill] sm:$0xff] %v12676_v18  ;;  %v7752_v48 = vcombine.low %v1218_v35, %v1228_v42  ;;  %v373_v58 = vrot.slane %v371_v16, 7 }
  0x78   :  { %v1120_v2 = vld [vmem:[#allocation2 + $0x60] sm:$0xf]  ;;  %v1602_v59 = vsel %vm9364_vm11, %v1597_v52, %v9356_v62  ;;  %v940_v62 = vld [vmem:[#allocation2 + $0x74] sm:$0x1] }
  0x79   :  { %v1121_v3 = vld [vmem:[#allocation2 + $0x64] sm:$0xf]  ;;  %v1398_v6 = vshrl.u32 %v1120_v2, 16  ;;  %v1401_v7 = vshll.u32 %v1120_v2, 16  ;;  %v2082_v56 = vsel %vm2077_vm10, %v7752_v48, 0  ;;  %v377_v0 = vrot.slane %v373_v58, 4 }
  0x7a   :  { %v1178_v4 = vld [vmem:[#allocation2 + $0x68] sm:$0x1]  ;;  %v1407_v9 = vshll.u32 %v1121_v3, 16  ;;  %v1411_v10 = vshrl.u32 %v1121_v3, 16  ;;  %v1152_v11 = vld [vmem:[#allocation2 + $0x138] sm:$0xf] }
  0x7b   :  { %v1417_v12 = vshll.u32 %v1178_v4, 16  ;;  %v1782_v13 = vshrl.u32 %v1152_v11, 16  ;;  %v1785_v15 = vshll.u32 %v1152_v11, 16  ;;  %v1400_v19 = vrot.slane %v1398_v6, 4  ;;  %v1153_v23 = vld [vmem:[#allocation2 + $0x13c] sm:$0xf] }
  0x7c   :  { %v1403_v20 = vrot.slane %v1401_v7, 5  ;;  %v1409_v21 = vrot.slane %v1407_v9, 5  ;;  %v1413_v22 = vrot.slane %v1411_v10, 4  ;;  %v1194_v25 = vld [vmem:[#allocation2 + $0x140] sm:$0x1]  ;;  %v1791_v28 = vshll.u32 %v1153_v23, 16 }
  0x7d   :  { %v1419_v24 = vrot.slane %v1417_v12, 5  ;;  %v1784_v26 = vrot.slane %v1782_v13, 4  ;;  %v1787_v27 = vrot.slane %v1785_v15, 5  ;;  %v1795_v31 = vshrl.u32 %v1153_v23, 16  ;;  %v216_v2 = vld [vmem:[#allocation3 + $0xc4] sm:$0xf] }
  0x7e   :  { %v1404_v29 = vor.u32 %v1403_v20, %v1400_v19  ;;  %v1414_v30 = vor.u32 %v1413_v22, %v1409_v21  ;;  %v1801_v32 = vshll.u32 %v1194_v25, 16  ;;  %v1793_v34 = vrot.slane %v1791_v28, 5  ;;  %v167_v12 = vld [vmem:[#allocation3] sm:$0xf]  ;;  %v168_v19 = vld [vmem:[#allocation3 + $0x4] sm:$0xf] }
  0x7f   :  { %v1788_v33 = vor.u32 %v1787_v27, %v1784_v26  ;;  %v1797_v39 = vrot.slane %v1795_v31, 4  ;;  %v1612_v4 = vsel %vm9364_vm11, %v1607_v53, %v1611_v57  ;;  %v643_v6 = vshrl.u32 %v215_v54, 16 }
  0x80   :  { %v1405_v37 = vrot.slane %v1404_v29, 4  ;;  %v1415_v38 = vrot.slane %v1414_v30, 4  ;;  %v1803_v40 = vrot.slane %v1801_v32, 5  ;;  %v7768_v9 = vcombine.low %v1602_v59, %v1612_v4  ;;  %v199_v29 = vld [vmem:[#allocation3 + $0x80] sm:$0xf] }
  0x81   :  { %v1789_v41 = vrot.slane %v1788_v33, 4  ;;  %v1798_v47 = vor.u32 %v1797_v39, %v1793_v34  ;;  %v376_v10 = vor.u32 %v374_v60, %v373_v58  ;;  %v381_v11 = vrot.slane %v379_v61, 7  ;;  %v1052_v32 = vld [vmem:[#allocation2 + $0x14c] sm:$0x1]  ;;  %v9407_v58 = vld [vmem:[#allocation3 + $0x4c] sm:$0xf] }
  0x82   :  { %v1410_v45 = vsel %vm9364_vm11, %v1405_v37, %v1409_v21  ;;  %v1420_v46 = vsel %vm9364_vm11, %v1415_v38, %v1419_v24  ;;  %v645_v1 = vrot.slane %v643_v6, 7  ;;  %v646_v13 = vshll.u32 %v215_v54, 16  ;;  %v1048_v24 = vld [vmem:[#allocation2 + $0x144] sm:$0xf]  ;;  %v878_v39 = vld [vmem:[#allocation2 + $0xc] sm:$0xf] }
  0x83   :  { %v7760_v50 = vcombine.low %v1410_v45, %v1420_v46  ;;  %v1794_v51 = vsel %vm9364_vm11, %v1789_v41, %v1793_v34  ;;  %v1799_v55 = vrot.slane %v1798_v47, 4  ;;  %v651_v15 = vshrl.u32 %v216_v2, 16  ;;  %v185_v45 = vld [vmem:[#allocation3 + $0x48] sm:$0xf] }
  0x84   :  { %v654_v16 = vshll.u32 %v216_v2, 16  ;;  %v2130_v20 = vsel %vm2077_vm10, %v7768_v9, 0  ;;  %v384_v21 = vor.u32 %v382_v63, %v381_v11  ;;  %v386_v22 = vrot.slane %v381_v11, 4 }
  0x85   :  { %8550 = vmatprep.subr.msk.bf16.mxu0 %vm2077_vm10, %v7760_v50  ;;  %v1804_v3 = vsel %vm9364_vm11, %v1799_v55, %v1803_v40  ;;  %v937_v23 = vsel %vm9330_vm6, %v376_v10, %v936_v5  ;;  %v648_v25 = vor.u32 %v646_v13, %v645_v1  ;;  %v649_v26 = vrot.slane %v645_v1, 4  ;;  %v200_v40 = vld [vmem:[#allocation3 + $0x84] sm:$0xf]  ;;  %v992_v55 = vld [vmem:[#allocation2 + $0xe4] sm:$0xf] }
  0x86   :  { %8163 = vmatpush3.bf16.xpose.msra.mxu0 %v2082_v56  ;;  %v7776_v7 = vcombine.low %v1794_v51, %v1804_v3  ;;  %938 = vst [vmem:[#allocation2 + $0x6c] sm:$0xf] %v937_v23  ;;  %v653_v27 = vrot.slane %v651_v15, 7  ;;  %v235_v28 = vshrl.u32 %v167_v12, 16  ;;  %v385_v30 = vsel %vm9325_vm5, %v377_v0, %v384_v21  ;;  %v884_v50 = vld [vmem:[#allocation2 + $0x14] sm:$0x1] }
  0x87   :  { %v941_v31 = vsel %vm9336_vm7, %v386_v22, %v940_v62  ;;  %v238_v33 = vshll.u32 %v167_v12, 16  ;;  %v243_v34 = vshrl.u32 %v168_v19, 16  ;;  %939 = vst.msk [vmem:[#allocation2 + $0x70] sm:$0xf] %vm57_vm0, %v385_v30  ;;  %v1049_v37 = vsel %vm9330_vm6, %v648_v25, %v1048_v24 }
  0x88   :  { %8558 = vmatprep.subr.msk.bf16.mxu1 %vm2077_vm10, %v7776_v7  ;;  %942 = vst [vmem:[#allocation2 + $0x74] sm:$0x1] %v941_v31  ;;  %v656_v35 = vor.u32 %v654_v16, %v653_v27  ;;  %v658_v36 = vrot.slane %v653_v27, 4  ;;  %v237_v38 = vrot.slane %v235_v28, 7  ;;  %1050 = vst [vmem:[#allocation2 + $0x144] sm:$0xf] %v1049_v37 }
  0x89   :  { %8181 = vmatpush3.bf16.xpose.msra.mxu1 %v2130_v20  ;;  %v245_v41 = vrot.slane %v243_v34, 7  ;;  %v246_v42 = vshll.u32 %v168_v19, 16  ;;  %v507_v43 = vshrl.u32 %v199_v29, 16  ;;  %v510_v44 = vshll.u32 %v199_v29, 16 }
  0x8a   :  { %v657_v46 = vsel %vm9325_vm5, %v649_v26, %v656_v35  ;;  %v1053_v47 = vsel %vm9336_vm7, %v658_v36, %v1052_v32  ;;  %v240_v48 = vor.u32 %v238_v33, %v237_v38  ;;  %v241_v49 = vrot.slane %v237_v38, 4 }
  0x8b   :  { %1051 = vst.msk [vmem:[#allocation2 + $0x148] sm:$0xf] %vm57_vm0, %v657_v46  ;;  %1054 = vst [vmem:[#allocation2 + $0x14c] sm:$0x1] %v1053_v47  ;;  %v248_v51 = vor.u32 %v246_v42, %v245_v41  ;;  %v250_v52 = vrot.slane %v245_v41, 4  ;;  %v509_v53 = vrot.slane %v507_v43, 7 }
  0x8c   :  { %v515_v54 = vshrl.u32 %v200_v40, 16  ;;  %v879_v56 = vsel %vm9330_vm6, %v240_v48, %v878_v39  ;;  %v518_v57 = vshll.u32 %v200_v40, 16  ;;  %v388_v59 = vshrl.u32 %v185_v45, 16 }
  0x8d   :  { %v391_v60 = vshll.u32 %v185_v45, 16  ;;  %v1122_v61 = vld [vmem:[#allocation2 + $0x6c] sm:$0xf]  ;;  %v249_v63 = vsel %vm9325_vm5, %v241_v49, %v248_v51  ;;  %880 = vst [vmem:[#allocation2 + $0xc] sm:$0xf] %v879_v56  ;;  %v885_v2 = vsel %vm9336_vm7, %v250_v52, %v884_v50  ;;  %v512_v3 = vor.u32 %v510_v44, %v509_v53 }
  0x8e   :  { %v513_v4 = vrot.slane %v509_v53, 4  ;;  %v1422_v0 = vshrl.u32 %v1122_v61, 16  ;;  %v1425_v5 = vshll.u32 %v1122_v61, 16  ;;  %881 = vst.msk [vmem:[#allocation2 + $0x10] sm:$0xf] %vm57_vm0, %v249_v63  ;;  %v9414_v6 = vrot.slane %v515_v54, 7 }
  0x8f   :  { %886 = vst [vmem:[#allocation2 + $0x14] sm:$0x1] %v885_v2  ;;  %v9416_v7 = vrot.slane %v388_v59, 7  ;;  %v1123_v9 = vld [vmem:[#allocation2 + $0x70] sm:$0xf]  ;;  %v993_v11 = vsel %vm9330_vm6, %v512_v3, %v992_v55  ;;  %v396_v62 = vshrl.u32 %v9407_v58, 16 }
  0x90   :  { %v1179_v10 = vld [vmem:[#allocation2 + $0x74] sm:$0x1]  ;;  %v399_v12 = vshll.u32 %v9407_v58, 16  ;;  %v1424_v1 = vrot.slane %v1422_v0, 4  ;;  %v1427_v13 = vrot.slane %v1425_v5, 5  ;;  %v1431_v15 = vshll.u32 %v1123_v9, 16 }
  0x91   :  { %v1435_v16 = vshrl.u32 %v1123_v9, 16  ;;  %v1154_v19 = vld [vmem:[#allocation2 + $0x144] sm:$0xf]  ;;  %994 = vst [vmem:[#allocation2 + $0xe4] sm:$0xf] %v993_v11  ;;  %v1441_v20 = vshll.u32 %v1179_v10, 16  ;;  %v520_v23 = vor.u32 %v518_v57, %v9414_v6  ;;  %v9424_v29 = vor.u32 %v391_v60, %v9416_v7 }
  0x92   :  { %v1806_v21 = vshrl.u32 %v1154_v19, 16  ;;  %v1809_v22 = vshll.u32 %v1154_v19, 16  ;;  %v1428_v24 = vor.u32 %v1427_v13, %v1424_v1  ;;  %v1433_v25 = vrot.slane %v1431_v15, 5  ;;  %v1155_v27 = vld [vmem:[#allocation2 + $0x148] sm:$0xf] }
  0x93   :  { %v1437_v26 = vrot.slane %v1435_v16, 4  ;;  %v1195_v28 = vld [vmem:[#allocation2 + $0x14c] sm:$0x1]  ;;  %v1443_v30 = vrot.slane %v1441_v20, 5  ;;  %v1815_v33 = vshll.u32 %v1155_v27, 16  ;;  %v1819_v36 = vshrl.u32 %v1155_v27, 16 }
  0x94   :  { %v1808_v31 = vrot.slane %v1806_v21, 4  ;;  %v1811_v32 = vrot.slane %v1809_v22, 5  ;;  %v1429_v34 = vrot.slane %v1428_v24, 4  ;;  %v1825_v37 = vshll.u32 %v1195_v28, 16  ;;  %v1106_v38 = vld [vmem:[#allocation2 + $0xc] sm:$0xf] }
  0x95   :  { %v1438_v35 = vor.u32 %v1437_v26, %v1433_v25  ;;  %v1817_v40 = vrot.slane %v1815_v33, 5  ;;  %v1107_v41 = vld [vmem:[#allocation2 + $0x10] sm:$0xf]  ;;  %v1230_v43 = vshrl.u32 %v1106_v38, 16  ;;  %v521_v44 = vsel %vm9325_vm5, %v513_v4, %v520_v23  ;;  %v996_v2 = vld [vmem:[#allocation2 + $0xec] sm:$0x1] }
  0x96   :  { %v1812_v39 = vor.u32 %v1811_v32, %v1808_v31  ;;  %v1171_v42 = vld [vmem:[#allocation2 + $0x14] sm:$0x1]  ;;  %v1434_v45 = vsel %vm9364_vm11, %v1429_v34, %v1433_v25  ;;  %v1821_v47 = vrot.slane %v1819_v36, 4  ;;  %v1827_v48 = vrot.slane %v1825_v37, 5  ;;  %995 = vst.msk [vmem:[#allocation2 + $0xe8] sm:$0xf] %vm57_vm0, %v521_v44 }
  0x97   :  { %v1439_v46 = vrot.slane %v1438_v35, 4  ;;  %v1232_v50 = vrot.slane %v1230_v43, 4  ;;  %v1233_v51 = vshll.u32 %v1106_v38, 16  ;;  %v1239_v52 = vshll.u32 %v1107_v41, 16  ;;  %v943_v20 = vld [vmem:[#allocation2 + $0x78] sm:$0xf] }
  0x98   :  { %v1813_v49 = vrot.slane %v1812_v39, 4  ;;  %v1822_v54 = vor.u32 %v1821_v47, %v1817_v40  ;;  %v1243_v55 = vshrl.u32 %v1107_v41, 16  ;;  %v1249_v56 = vshll.u32 %v1171_v42, 16  ;;  %v1138_v57 = vld [vmem:[#allocation2 + $0xe4] sm:$0xf] }
  0x99   :  { %v1444_v53 = vsel %vm9364_vm11, %v1439_v46, %v1443_v30  ;;  %v1235_v61 = vrot.slane %v1233_v51, 5  ;;  %v1241_v63 = vrot.slane %v1239_v52, 5  ;;  %v522_v5 = vrot.slane %v9414_v6, 4  ;;  %v947_v21 = vld [vmem:[#allocation2 + $0x80] sm:$0x1] }
  0x9a   :  { %v7761_v59 = vcombine.low %v1434_v45, %v1444_v53  ;;  %v1818_v60 = vsel %vm9364_vm11, %v1813_v49, %v1817_v40  ;;  %v1823_v3 = vrot.slane %v1822_v54, 4  ;;  %v1245_v4 = vrot.slane %v1243_v55, 4  ;;  %v217_v30 = vld [vmem:[#allocation3 + $0xc8] sm:$0xf]  ;;  %v218_v34 = vld [vmem:[#allocation3 + $0xcc] sm:$0xf] }
  0x9b   :  { %v1251_v0 = vrot.slane %v1249_v56, 5  ;;  %v1236_v9 = vor.u32 %v1235_v61, %v1232_v50  ;;  %v1614_v10 = vshrl.u32 %v1138_v57, 16  ;;  %v1617_v11 = vshll.u32 %v1138_v57, 16  ;;  %v1055_v49 = vld [vmem:[#allocation2 + $0x150] sm:$0xf] }
  0x9c   :  { %8551 = vmatprep.subr.msk.bf16.mxu0 %vm2077_vm10, %v7761_v59  ;;  %v394_v1 = vrot.slane %v9416_v7, 4  ;;  %v1828_v13 = vsel %vm9364_vm11, %v1823_v3, %v1827_v48  ;;  %v1246_v15 = vor.u32 %v1245_v4, %v1241_v63  ;;  %v997_v16 = vsel %vm9336_vm7, %v522_v5, %v996_v2 }
  0x9d   :  { %v398_v19 = vrot.slane %v396_v62, 7  ;;  %v7777_v6 = vcombine.low %v1818_v60, %v1828_v13  ;;  %v1237_v22 = vrot.slane %v1236_v9, 4  ;;  %998 = vst [vmem:[#allocation2 + $0xec] sm:$0x1] %v997_v16  ;;  %v1139_v23 = vld [vmem:[#allocation2 + $0xe8] sm:$0xf]  ;;  %v944_v33 = vsel %vm9330_vm6, %v9424_v29, %v943_v20 }
  0x9e   :  { %v1616_v24 = vrot.slane %v1614_v10, 4  ;;  %v1619_v25 = vrot.slane %v1617_v11, 5  ;;  %v1247_v26 = vrot.slane %v1246_v15, 4  ;;  %v1623_v7 = vshll.u32 %v1139_v23, 16  ;;  %945 = vst [vmem:[#allocation2 + $0x78] sm:$0xf] %v944_v33 }
  0x9f   :  { %v1627_v27 = vshrl.u32 %v1139_v23, 16  ;;  %v401_v28 = vor.u32 %v399_v12, %v398_v19  ;;  %8559 = vmatprep.subr.msk.bf16.mxu1 %vm2077_vm10, %v7777_v6  ;;  %v1242_v62 = vsel %vm9364_vm11, %v1237_v22, %v1241_v63  ;;  %v403_v32 = vrot.slane %v398_v19, 4  ;;  %v169_v12 = vld [vmem:[#allocation3 + $0x8] sm:$0xf]  ;;  %v170_v29 = vld [vmem:[#allocation3 + $0xc] sm:$0xf] }
  0xa0   :  { %v1620_v31 = vor.u32 %v1619_v25, %v1616_v24  ;;  %v1252_v35 = vsel %vm9364_vm11, %v1247_v26, %v1251_v0  ;;  %v1625_v36 = vrot.slane %v1623_v7, 5  ;;  %v660_v41 = vshrl.u32 %v217_v30, 16  ;;  %v1059_v60 = vld [vmem:[#allocation2 + $0x158] sm:$0x1] }
  0xa1   :  { %v1629_v37 = vrot.slane %v1627_v27, 4  ;;  %v402_v58 = vsel %vm9325_vm5, %v394_v1, %v401_v28  ;;  %v7753_v38 = vcombine.low %v1242_v62, %v1252_v35  ;;  %v948_v40 = vsel %vm9336_vm7, %v403_v32, %v947_v21  ;;  %v887_v1 = vld [vmem:[#allocation2 + $0x18] sm:$0xf]  ;;  %v891_v21 = vld [vmem:[#allocation2 + $0x20] sm:$0x1] }
  0xa2   :  { %v1621_v39 = vrot.slane %v1620_v31, 4  ;;  %946 = vst.msk [vmem:[#allocation2 + $0x7c] sm:$0xf] %vm57_vm0, %v402_v58  ;;  %949 = vst [vmem:[#allocation2 + $0x80] sm:$0x1] %v948_v40  ;;  %v663_v43 = vshll.u32 %v217_v30, 16 }
  0xa3   :  { %v1630_v42 = vor.u32 %v1629_v37, %v1625_v36  ;;  %v668_v44 = vshrl.u32 %v218_v34, 16  ;;  %v671_v45 = vshll.u32 %v218_v34, 16  ;;  %v2085_v46 = vsel %vm2077_vm10, %v7753_v38, 0  ;;  %v201_v26 = vld [vmem:[#allocation3 + $0x88] sm:$0xf] }
  0xa4   :  { %v1626_v47 = vsel %vm9364_vm11, %v1621_v39, %v1625_v36  ;;  %v662_v48 = vrot.slane %v660_v41, 7  ;;  %v252_v50 = vshrl.u32 %v169_v12, 16  ;;  %8165 = vmatpush3.bf16.xpose.msra.mxu0 %v2085_v46  ;;  %v1187_v51 = vld [vmem:[#allocation2 + $0xec] sm:$0x1]  ;;  %v255_v54 = vshll.u32 %v169_v12, 16 }
  0xa5   :  { %v1631_v52 = vrot.slane %v1630_v42, 4  ;;  %v670_v53 = vrot.slane %v668_v44, 7  ;;  %v260_v55 = vshrl.u32 %v170_v29, 16  ;;  %v1633_v56 = vshll.u32 %v1187_v51, 16  ;;  %v1124_v5 = vld [vmem:[#allocation2 + $0x78] sm:$0xf] }
  0xa6   :  { %v665_v57 = vor.u32 %v663_v43, %v662_v48  ;;  %v666_v59 = vrot.slane %v662_v48, 4  ;;  %v254_v61 = vrot.slane %v252_v50, 7  ;;  %v263_v4 = vshll.u32 %v170_v29, 16  ;;  %v9471_v62 = vld [vmem:[#allocation3 + $0x8c] sm:$0xf] }
  0xa7   :  { %v673_v63 = vor.u32 %v671_v45, %v670_v53  ;;  %v675_v2 = vrot.slane %v670_v53, 4  ;;  %v262_v3 = vrot.slane %v260_v55, 7  ;;  %v1635_v0 = vrot.slane %v1633_v56, 5  ;;  %v9475_v35 = vld [vmem:[#allocation3 + $0x50] sm:$0xf] }
  0xa8   :  { %v1056_v9 = vsel %vm9330_vm6, %v665_v57, %v1055_v49  ;;  %v257_v10 = vor.u32 %v255_v54, %v254_v61  ;;  %v258_v11 = vrot.slane %v254_v61, 4  ;;  %v1446_v15 = vshrl.u32 %v1124_v5, 16  ;;  %v9481_v38 = vld [vmem:[#allocation3 + $0x54] sm:$0xf] }
  0xa9   :  { %v1125_v13 = vld [vmem:[#allocation2 + $0x7c] sm:$0xf]  ;;  %v1449_v16 = vshll.u32 %v1124_v5, 16  ;;  %v674_v19 = vsel %vm9325_vm5, %v666_v59, %v673_v63  ;;  %1057 = vst [vmem:[#allocation2 + $0x150] sm:$0xf] %v1056_v9  ;;  %v1060_v20 = vsel %vm9336_vm7, %v675_v2, %v1059_v60  ;;  %v1636_v6 = vsel %vm9364_vm11, %v1631_v52, %v1635_v0 }
  0xaa   :  { %v1180_v22 = vld [vmem:[#allocation2 + $0x80] sm:$0x1]  ;;  %v1455_v23 = vshll.u32 %v1125_v13, 16  ;;  %v1459_v24 = vshrl.u32 %v1125_v13, 16  ;;  %1058 = vst.msk [vmem:[#allocation2 + $0x154] sm:$0xf] %vm57_vm0, %v674_v19  ;;  %v265_v25 = vor.u32 %v263_v4, %v262_v3  ;;  %v7769_v7 = vcombine.low %v1626_v47, %v1636_v6 }
  0xab   :  { %1061 = vst [vmem:[#allocation2 + $0x158] sm:$0x1] %v1060_v20  ;;  %v1448_v27 = vrot.slane %v1446_v15, 4  ;;  %v1451_v28 = vrot.slane %v1449_v16, 5  ;;  %v1465_v30 = vshll.u32 %v1180_v22, 16  ;;  %v267_v34 = vrot.slane %v262_v3, 4 }
  0xac   :  { %v1457_v31 = vrot.slane %v1455_v23, 5  ;;  %v1461_v32 = vrot.slane %v1459_v24, 4  ;;  %v266_v33 = vsel %vm9325_vm5, %v258_v11, %v265_v25  ;;  %v2133_v36 = vsel %vm2077_vm10, %v7769_v7, 0  ;;  %v999_v4 = vld [vmem:[#allocation2 + $0xf0] sm:$0xf] }
  0xad   :  { %v1452_v37 = vor.u32 %v1451_v28, %v1448_v27  ;;  %v1467_v58 = vrot.slane %v1465_v30, 5  ;;  %v888_v12 = vsel %vm9330_vm6, %v257_v10, %v887_v1  ;;  %890 = vst.msk [vmem:[#allocation2 + $0x1c] sm:$0xf] %vm57_vm0, %v266_v33  ;;  %8183 = vmatpush3.bf16.xpose.msra.mxu1 %v2133_v36  ;;  %v892_v40 = vsel %vm9336_vm7, %v267_v34, %v891_v21 }
  0xae   :  { %v1462_v39 = vor.u32 %v1461_v32, %v1457_v31  ;;  %889 = vst [vmem:[#allocation2 + $0x18] sm:$0xf] %v888_v12  ;;  %v524_v41 = vshrl.u32 %v201_v26, 16  ;;  %v527_v29 = vshll.u32 %v201_v26, 16  ;;  %893 = vst [vmem:[#allocation2 + $0x20] sm:$0x1] %v892_v40 }
  0xaf   :  { %v1453_v42 = vrot.slane %v1452_v37, 4  ;;  %v532_v43 = vshrl.u32 %v9471_v62, 16  ;;  %v535_v44 = vshll.u32 %v9471_v62, 16  ;;  %v405_v45 = vshrl.u32 %v9475_v35, 16 }
  0xb0   :  { %v1463_v46 = vrot.slane %v1462_v39, 4  ;;  %v1156_v47 = vld [vmem:[#allocation2 + $0x150] sm:$0xf]  ;;  %v526_v48 = vrot.slane %v524_v41, 7  ;;  %v408_v49 = vshll.u32 %v9475_v35, 16  ;;  %v413_v50 = vshrl.u32 %v9481_v38, 16 }
  0xb1   :  { %v1458_v51 = vsel %vm9364_vm11, %v1453_v42, %v1457_v31  ;;  %v1157_v52 = vld [vmem:[#allocation2 + $0x154] sm:$0xf]  ;;  %v1830_v54 = vshrl.u32 %v1156_v47, 16  ;;  %v1833_v55 = vshll.u32 %v1156_v47, 16  ;;  %v534_v19 = vrot.slane %v532_v43, 7 }
  0xb2   :  { %v1196_v53 = vld [vmem:[#allocation2 + $0x158] sm:$0x1]  ;;  %v1468_v56 = vsel %vm9364_vm11, %v1463_v46, %v1467_v58  ;;  %v1839_v57 = vshll.u32 %v1157_v52, 16  ;;  %v1843_v59 = vshrl.u32 %v1157_v52, 16  ;;  %v529_v3 = vor.u32 %v527_v29, %v526_v48  ;;  %v219_v39 = vld [vmem:[#allocation3 + $0xd0] sm:$0xf] }
  0xb3   :  { %v1849_v60 = vshll.u32 %v1196_v53, 16  ;;  %v7762_v61 = vcombine.low %v1458_v51, %v1468_v56  ;;  %v1832_v63 = vrot.slane %v1830_v54, 4  ;;  %v1835_v2 = vrot.slane %v1833_v55, 5  ;;  %v1003_v31 = vld [vmem:[#allocation2 + $0xf8] sm:$0x1] }
  0xb4   :  { %v1841_v0 = vrot.slane %v1839_v57, 5  ;;  %v1845_v5 = vrot.slane %v1843_v59, 4  ;;  %v1109_v10 = vld [vmem:[#allocation2 + $0x1c] sm:$0xf]  ;;  %v530_v11 = vrot.slane %v526_v48, 4  ;;  %v1000_v23 = vsel %vm9330_vm6, %v529_v3, %v999_v4 }
  0xb5   :  { %v1851_v9 = vrot.slane %v1849_v60, 5  ;;  %8552 = vmatprep.subr.msk.bf16.mxu0 %vm2077_vm10, %v7762_v61  ;;  %v1836_v1 = vor.u32 %v1835_v2, %v1832_v63  ;;  %v1108_v13 = vld [vmem:[#allocation2 + $0x18] sm:$0xf]  ;;  %v1263_v15 = vshll.u32 %v1109_v10, 16  ;;  %v1267_v16 = vshrl.u32 %v1109_v10, 16 }
  0xb6   :  { %v1846_v20 = vor.u32 %v1845_v5, %v1841_v0  ;;  %v1172_v21 = vld [vmem:[#allocation2 + $0x20] sm:$0x1]  ;;  %v1254_v6 = vshrl.u32 %v1108_v13, 16  ;;  %v1257_v22 = vshll.u32 %v1108_v13, 16  ;;  %1001 = vst [vmem:[#allocation2 + $0xf0] sm:$0xf] %v1000_v23  ;;  %v537_v62 = vor.u32 %v535_v44, %v534_v19 }
  0xb7   :  { %v1837_v24 = vrot.slane %v1836_v1, 4  ;;  %v1265_v25 = vrot.slane %v1263_v15, 5  ;;  %v1269_v26 = vrot.slane %v1267_v16, 4  ;;  %v1273_v7 = vshll.u32 %v1172_v21, 16  ;;  %v950_v43 = vld [vmem:[#allocation2 + $0x84] sm:$0xf] }
  0xb8   :  { %v1847_v27 = vrot.slane %v1846_v20, 4  ;;  %v1256_v28 = vrot.slane %v1254_v6, 4  ;;  %v1259_v30 = vrot.slane %v1257_v22, 5  ;;  %v539_v35 = vrot.slane %v534_v19, 4  ;;  %v220_v44 = vld [vmem:[#allocation3 + $0xd4] sm:$0xf] }
  0xb9   :  { %v1842_v32 = vsel %vm9364_vm11, %v1837_v24, %v1841_v0  ;;  %v1270_v33 = vor.u32 %v1269_v26, %v1265_v25  ;;  %v1275_v34 = vrot.slane %v1273_v7, 5  ;;  %v538_v58 = vsel %vm9325_vm5, %v530_v11, %v537_v62  ;;  %v954_v52 = vld [vmem:[#allocation2 + $0x8c] sm:$0x1]  ;;  %v171_v60 = vld [vmem:[#allocation3 + $0x10] sm:$0xf] }
  0xba   :  { %v1852_v36 = vsel %vm9364_vm11, %v1847_v27, %v1851_v9  ;;  %v1260_v37 = vor.u32 %v1259_v30, %v1256_v28  ;;  %v407_v12 = vrot.slane %v405_v45, 7  ;;  %1002 = vst.msk [vmem:[#allocation2 + $0xf4] sm:$0xf] %vm57_vm0, %v538_v58  ;;  %v1004_v29 = vsel %vm9336_vm7, %v539_v35, %v1003_v31  ;;  %v1062_v9 = vld [vmem:[#allocation2 + $0x15c] sm:$0xf] }
  0xbb   :  { %v7778_v40 = vcombine.low %v1842_v32, %v1852_v36  ;;  %v1271_v41 = vrot.slane %v1270_v33, 4  ;;  %v415_v42 = vrot.slane %v413_v50, 7  ;;  %1005 = vst [vmem:[#allocation2 + $0xf8] sm:$0x1] %v1004_v29  ;;  %v416_v51 = vshll.u32 %v9481_v38, 16 }
  0xbc   :  { %v1261_v46 = vrot.slane %v1260_v37, 4  ;;  %v410_v47 = vor.u32 %v408_v49, %v407_v12  ;;  %v411_v48 = vrot.slane %v407_v12, 4  ;;  %v677_v54 = vshrl.u32 %v219_v39, 16  ;;  %v1066_v13 = vld [vmem:[#allocation2 + $0x164] sm:$0x1] }
  0xbd   :  { %8560 = vmatprep.subr.msk.bf16.mxu1 %vm2077_vm10, %v7778_v40  ;;  %v1276_v45 = vsel %vm9364_vm11, %v1271_v41, %v1275_v34  ;;  %v420_v53 = vrot.slane %v415_v42, 4  ;;  %v680_v55 = vshll.u32 %v219_v39, 16  ;;  %v1140_v56 = vld [vmem:[#allocation2 + $0xf0] sm:$0xf]  ;;  %v418_v57 = vor.u32 %v416_v51, %v415_v42  ;;  %v172_v22 = vld [vmem:[#allocation3 + $0x14] sm:$0xf] }
  0xbe   :  { %v1266_v50 = vsel %vm9364_vm11, %v1261_v46, %v1265_v25  ;;  %v951_v49 = vsel %vm9330_vm6, %v410_v47, %v950_v43  ;;  %v685_v59 = vshrl.u32 %v220_v44, 16  ;;  %v1638_v61 = vshrl.u32 %v1140_v56, 16  ;;  %v9527_v35 = vld [vmem:[#allocation3 + $0x90] sm:$0xf] }
  0xbf   :  { %v7754_v38 = vcombine.low %v1266_v50, %v1276_v45  ;;  %v1641_v63 = vshll.u32 %v1140_v56, 16  ;;  %952 = vst [vmem:[#allocation2 + $0x84] sm:$0xf] %v951_v49  ;;  %v955_v2 = vsel %vm9336_vm7, %v420_v53, %v954_v52  ;;  %v419_v3 = vsel %vm9325_vm5, %v411_v48, %v418_v57  ;;  %v898_v50 = vld [vmem:[#allocation2 + $0x2c] sm:$0x1] }
  0xc0   :  { %956 = vst [vmem:[#allocation2 + $0x8c] sm:$0x1] %v955_v2  ;;  %v679_v4 = vrot.slane %v677_v54, 7  ;;  %v687_v0 = vrot.slane %v685_v59, 7  ;;  %v688_v5 = vshll.u32 %v220_v44, 16  ;;  %v1640_v11 = vrot.slane %v1638_v61, 4 }
  0xc1   :  { %v2088_v10 = vsel %vm2077_vm10, %v7754_v38, 0  ;;  %v1643_v1 = vrot.slane %v1641_v63, 5  ;;  %953 = vst.msk [vmem:[#allocation2 + $0x88] sm:$0xf] %vm57_vm0, %v419_v3  ;;  %v269_v15 = vshrl.u32 %v171_v60, 16  ;;  %v272_v34 = vshll.u32 %v171_v60, 16 }
  0xc2   :  { %8167 = vmatpush3.bf16.xpose.msra.mxu0 %v2088_v10  ;;  %v1141_v16 = vld [vmem:[#allocation2 + $0xf4] sm:$0xf]  ;;  %v682_v19 = vor.u32 %v680_v55, %v679_v4  ;;  %v683_v20 = vrot.slane %v679_v4, 4  ;;  %v690_v21 = vor.u32 %v688_v5, %v687_v0  ;;  %v692_v6 = vrot.slane %v687_v0, 4  ;;  %v1188_v23 = vld [vmem:[#allocation2 + $0xf8] sm:$0x1] }
  0xc3   :  { %v1644_v24 = vor.u32 %v1643_v1, %v1640_v11  ;;  %v1647_v25 = vshll.u32 %v1141_v16, 16  ;;  %v1651_v26 = vshrl.u32 %v1141_v16, 16  ;;  %v271_v7 = vrot.slane %v269_v15, 7  ;;  %v894_v44 = vld [vmem:[#allocation2 + $0x24] sm:$0xf] }
  0xc4   :  { %v1657_v27 = vshll.u32 %v1188_v23, 16  ;;  %v691_v28 = vsel %vm9325_vm5, %v683_v20, %v690_v21  ;;  %v1063_v30 = vsel %vm9330_vm6, %v682_v19, %v1062_v9  ;;  %v1067_v62 = vsel %vm9336_vm7, %v692_v6, %v1066_v13  ;;  %v204_v6 = vld [vmem:[#allocation3 + $0x94] sm:$0xf] }
  0xc5   :  { %v1645_v31 = vrot.slane %v1644_v24, 4  ;;  %v1649_v32 = vrot.slane %v1647_v25, 5  ;;  %v1653_v33 = vrot.slane %v1651_v26, 4  ;;  %1064 = vst [vmem:[#allocation2 + $0x15c] sm:$0xf] %v1063_v30  ;;  %v275_v58 = vrot.slane %v271_v7, 4 }
  0xc6   :  { %1065 = vst.msk [vmem:[#allocation2 + $0x160] sm:$0xf] %vm57_vm0, %v691_v28  ;;  %1068 = vst [vmem:[#allocation2 + $0x164] sm:$0x1] %v1067_v62  ;;  %v1659_v36 = vrot.slane %v1657_v27, 5  ;;  %v277_v12 = vshrl.u32 %v172_v22, 16  ;;  %v274_v48 = vor.u32 %v272_v34, %v271_v7 }
  0xc7   :  { %v1126_v37 = vld [vmem:[#allocation2 + $0x84] sm:$0xf]  ;;  %v280_v39 = vshll.u32 %v172_v22, 16  ;;  %v1650_v40 = vsel %vm9364_vm11, %v1645_v31, %v1649_v32  ;;  %v1654_v41 = vor.u32 %v1653_v33, %v1649_v32  ;;  %v1181_v29 = vld [vmem:[#allocation2 + $0x8c] sm:$0x1]  ;;  %v541_v52 = vshrl.u32 %v9527_v35, 16 }
  0xc8   :  { %v1470_v42 = vshrl.u32 %v1126_v37, 16  ;;  %v1473_v43 = vshll.u32 %v1126_v37, 16  ;;  %v1127_v46 = vld [vmem:[#allocation2 + $0x88] sm:$0xf]  ;;  %v1489_v47 = vshll.u32 %v1181_v29, 16  ;;  %v279_v51 = vrot.slane %v277_v12, 7 }
  0xc9   :  { %v1655_v45 = vrot.slane %v1654_v41, 4  ;;  %v1479_v55 = vshll.u32 %v1127_v46, 16  ;;  %v1483_v56 = vshrl.u32 %v1127_v46, 16  ;;  %v895_v63 = vsel %vm9330_vm6, %v274_v48, %v894_v44  ;;  %v189_v28 = vld [vmem:[#allocation3 + $0x58] sm:$0xf] }
  0xca   :  { %v1472_v53 = vrot.slane %v1470_v42, 4  ;;  %v1475_v54 = vrot.slane %v1473_v43, 5  ;;  %v1491_v57 = vrot.slane %v1489_v47, 5  ;;  %v282_v49 = vor.u32 %v280_v39, %v279_v51  ;;  %896 = vst [vmem:[#allocation2 + $0x24] sm:$0xf] %v895_v63 }
  0xcb   :  { %v284_v59 = vrot.slane %v279_v51, 4  ;;  %v1660_v60 = vsel %vm9364_vm11, %v1655_v45, %v1659_v36  ;;  %v1481_v61 = vrot.slane %v1479_v55, 5  ;;  %v1485_v3 = vrot.slane %v1483_v56, 4  ;;  %v1006_v41 = vld [vmem:[#allocation2 + $0xfc] sm:$0xf] }
  0xcc   :  { %v1476_v38 = vor.u32 %v1475_v54, %v1472_v53  ;;  %v7770_v2 = vcombine.low %v1650_v40, %v1660_v60  ;;  %v1158_v4 = vld [vmem:[#allocation2 + $0x15c] sm:$0xf]  ;;  %v283_v5 = vsel %vm9325_vm5, %v275_v58, %v282_v49  ;;  %v543_v27 = vrot.slane %v541_v52, 7  ;;  %v1010_v45 = vld [vmem:[#allocation2 + $0x104] sm:$0x1] }
  0xcd   :  { %v1159_v0 = vld [vmem:[#allocation2 + $0x160] sm:$0xf]  ;;  %v899_v9 = vsel %vm9336_vm7, %v284_v59, %v898_v50  ;;  %v1197_v11 = vld [vmem:[#allocation2 + $0x164] sm:$0x1]  ;;  %v1854_v1 = vshrl.u32 %v1158_v4, 16  ;;  %v1857_v13 = vshll.u32 %v1158_v4, 16  ;;  %v1486_v19 = vor.u32 %v1485_v3, %v1481_v61 }
  0xce   :  { %v1477_v10 = vrot.slane %v1476_v38, 4  ;;  %v1863_v15 = vshll.u32 %v1159_v0, 16  ;;  %897 = vst.msk [vmem:[#allocation2 + $0x28] sm:$0xf] %vm57_vm0, %v283_v5  ;;  %900 = vst [vmem:[#allocation2 + $0x2c] sm:$0x1] %v899_v9 }
  0xcf   :  { %v2136_v16 = vsel %vm2077_vm10, %v7770_v2, 0  ;;  %v1867_v20 = vshrl.u32 %v1159_v0, 16  ;;  %v1873_v21 = vshll.u32 %v1197_v11, 16  ;;  %v1856_v22 = vrot.slane %v1854_v1, 4  ;;  %v190_v53 = vld [vmem:[#allocation3 + $0x5c] sm:$0xf] }
  0xd0   :  { %8185 = vmatpush3.bf16.xpose.msra.mxu1 %v2136_v16  ;;  %v1859_v23 = vrot.slane %v1857_v13, 5  ;;  %v1865_v24 = vrot.slane %v1863_v15, 5  ;;  %v1482_v25 = vsel %vm9364_vm11, %v1477_v10, %v1481_v61  ;;  %v1487_v26 = vrot.slane %v1486_v19, 4  ;;  %v222_v61 = vld [vmem:[#allocation3 + $0xdc] sm:$0xf] }
  0xd1   :  { %v1869_v7 = vrot.slane %v1867_v20, 4  ;;  %v1875_v62 = vrot.slane %v1873_v21, 5  ;;  %v544_v31 = vshll.u32 %v9527_v35, 16  ;;  %v549_v32 = vshrl.u32 %v204_v6, 16  ;;  %v1110_v39 = vld [vmem:[#allocation2 + $0x24] sm:$0xf] }
  0xd2   :  { %v1860_v30 = vor.u32 %v1859_v23, %v1856_v22  ;;  %v1492_v33 = vsel %vm9364_vm11, %v1487_v26, %v1491_v57  ;;  %v547_v36 = vrot.slane %v543_v27, 4  ;;  %v552_v37 = vshll.u32 %v204_v6, 16  ;;  %v221_v57 = vld [vmem:[#allocation3 + $0xd8] sm:$0xf]  ;;  %v957_v0 = vld [vmem:[#allocation2 + $0x90] sm:$0xf] }
  0xd3   :  { %v1870_v34 = vor.u32 %v1869_v7, %v1865_v24  ;;  %v7763_v58 = vcombine.low %v1482_v25, %v1492_v33  ;;  %v551_v40 = vrot.slane %v549_v32, 7  ;;  %v422_v29 = vshrl.u32 %v189_v28, 16  ;;  %v173_v19 = vld [vmem:[#allocation3 + $0x18] sm:$0xf]  ;;  %v961_v23 = vld [vmem:[#allocation2 + $0x98] sm:$0x1] }
  0xd4   :  { %v1861_v12 = vrot.slane %v1860_v30, 4  ;;  %v1278_v46 = vshrl.u32 %v1110_v39, 16  ;;  %v546_v47 = vor.u32 %v544_v31, %v543_v27  ;;  %v1281_v48 = vshll.u32 %v1110_v39, 16  ;;  %v174_v32 = vld [vmem:[#allocation3 + $0x1c] sm:$0xf] }
  0xd5   :  { %v1871_v42 = vrot.slane %v1870_v34, 4  ;;  %v1111_v43 = vld [vmem:[#allocation2 + $0x28] sm:$0xf]  ;;  %v1173_v44 = vld [vmem:[#allocation2 + $0x2c] sm:$0x1]  ;;  %8553 = vmatprep.subr.msk.bf16.mxu0 %vm2077_vm10, %v7763_v58  ;;  %v554_v56 = vor.u32 %v552_v37, %v551_v40  ;;  %v556_v3 = vrot.slane %v551_v40, 4 }
  0xd6   :  { %v1866_v35 = vsel %vm9364_vm11, %v1861_v12, %v1865_v24  ;;  %v1287_v51 = vshll.u32 %v1111_v43, 16  ;;  %v1291_v52 = vshrl.u32 %v1111_v43, 16  ;;  %v1280_v55 = vrot.slane %v1278_v46, 4  ;;  %v1069_v24 = vld [vmem:[#allocation2 + $0x168] sm:$0xf] }
  0xd7   :  { %v1876_v54 = vsel %vm9364_vm11, %v1871_v42, %v1875_v62  ;;  %v1297_v50 = vshll.u32 %v1173_v44, 16  ;;  %v1283_v59 = vrot.slane %v1281_v48, 5  ;;  %v555_v2 = vsel %vm9325_vm5, %v547_v36, %v554_v56  ;;  %v1073_v39 = vld [vmem:[#allocation2 + $0x170] sm:$0x1] }
  0xd8   :  { %v7779_v49 = vcombine.low %v1866_v35, %v1876_v54  ;;  %v1289_v60 = vrot.slane %v1287_v51, 5  ;;  %v1293_v38 = vrot.slane %v1291_v52, 4  ;;  %v1007_v4 = vsel %vm9330_vm6, %v546_v47, %v1006_v41  ;;  %1009 = vst.msk [vmem:[#allocation2 + $0x100] sm:$0xf] %vm57_vm0, %v555_v2  ;;  %v901_v56 = vld [vmem:[#allocation2 + $0x30] sm:$0xf] }
  0xd9   :  { %v1299_v63 = vrot.slane %v1297_v50, 5  ;;  %v1284_v5 = vor.u32 %v1283_v59, %v1280_v55  ;;  %1008 = vst [vmem:[#allocation2 + $0xfc] sm:$0xf] %v1007_v4  ;;  %v424_v10 = vrot.slane %v422_v29, 7  ;;  %v425_v11 = vshll.u32 %v189_v28, 16 }
  0xda   :  { %8561 = vmatprep.subr.msk.bf16.mxu1 %vm2077_vm10, %v7779_v49  ;;  %v1294_v9 = vor.u32 %v1293_v38, %v1289_v60  ;;  %v1011_v1 = vsel %vm9336_vm7, %v556_v3, %v1010_v45  ;;  %v430_v13 = vshrl.u32 %v190_v53, 16  ;;  %v433_v15 = vshll.u32 %v190_v53, 16 }
  0xdb   :  { %v694_v16 = vshrl.u32 %v221_v57, 16  ;;  %v1285_v20 = vrot.slane %v1284_v5, 4  ;;  %1012 = vst [vmem:[#allocation2 + $0x104] sm:$0x1] %v1011_v1  ;;  %v427_v6 = vor.u32 %v425_v11, %v424_v10  ;;  %v428_v22 = vrot.slane %v424_v10, 4 }
  0xdc   :  { %v1295_v21 = vrot.slane %v1294_v9, 4  ;;  %v432_v25 = vrot.slane %v430_v13, 7  ;;  %v697_v7 = vshll.u32 %v221_v57, 16  ;;  %v702_v27 = vshrl.u32 %v222_v61, 16 }
  0xdd   :  { %v696_v26 = vrot.slane %v694_v16, 7  ;;  %v1290_v28 = vsel %vm9364_vm11, %v1285_v20, %v1289_v60  ;;  %v958_v62 = vsel %vm9330_vm6, %v427_v6, %v957_v0  ;;  %v705_v31 = vshll.u32 %v222_v61, 16 }
  0xde   :  { %v1300_v30 = vsel %vm9364_vm11, %v1295_v21, %v1299_v63  ;;  %v435_v34 = vor.u32 %v433_v15, %v432_v25  ;;  %v437_v36 = vrot.slane %v432_v25, 4  ;;  %959 = vst [vmem:[#allocation2 + $0x90] sm:$0xf] %v958_v62  ;;  %v704_v12 = vrot.slane %v702_v27, 7  ;;  %v205_v62 = vld [vmem:[#allocation3 + $0x98] sm:$0xf] }
  0xdf   :  { %v7755_v33 = vcombine.low %v1290_v28, %v1300_v30  ;;  %v699_v37 = vor.u32 %v697_v7, %v696_v26  ;;  %v700_v58 = vrot.slane %v696_v26, 4  ;;  %v286_v40 = vshrl.u32 %v173_v19, 16  ;;  %v1143_v43 = vld [vmem:[#allocation2 + $0x100] sm:$0xf]  ;;  %v905_v30 = vld [vmem:[#allocation2 + $0x38] sm:$0x1] }
  0xe0   :  { %v289_v41 = vshll.u32 %v173_v19, 16  ;;  %v1142_v42 = vld [vmem:[#allocation2 + $0xfc] sm:$0xf]  ;;  %v436_v44 = vsel %vm9325_vm5, %v428_v22, %v435_v34  ;;  %v962_v46 = vsel %vm9336_vm7, %v437_v36, %v961_v23  ;;  %v1671_v51 = vshll.u32 %v1143_v43, 16 }
  0xe1   :  { %v2091_v29 = vsel %vm2077_vm10, %v7755_v33, 0  ;;  %v1070_v47 = vsel %vm9330_vm6, %v699_v37, %v1069_v24  ;;  %v1662_v35 = vshrl.u32 %v1142_v42, 16  ;;  %v1665_v48 = vshll.u32 %v1142_v42, 16  ;;  %960 = vst.msk [vmem:[#allocation2 + $0x94] sm:$0xf] %vm57_vm0, %v436_v44 }
  0xe2   :  { %8169 = vmatpush3.bf16.xpose.msra.mxu0 %v2091_v29  ;;  %v1675_v52 = vshrl.u32 %v1143_v43, 16  ;;  %963 = vst [vmem:[#allocation2 + $0x98] sm:$0x1] %v962_v46  ;;  %1071 = vst [vmem:[#allocation2 + $0x168] sm:$0xf] %v1070_v47  ;;  %v707_v53 = vor.u32 %v705_v31, %v704_v12  ;;  %v709_v54 = vrot.slane %v704_v12, 4 }
  0xe3   :  { %v1189_v45 = vld [vmem:[#allocation2 + $0x104] sm:$0x1]  ;;  %v288_v55 = vrot.slane %v286_v40, 7  ;;  %v294_v50 = vshrl.u32 %v174_v32, 16  ;;  %v1664_v57 = vrot.slane %v1662_v35, 4  ;;  %v1667_v49 = vrot.slane %v1665_v48, 5 }
  0xe4   :  { %v1673_v59 = vrot.slane %v1671_v51, 5  ;;  %v1677_v60 = vrot.slane %v1675_v52, 4  ;;  %v1681_v38 = vshll.u32 %v1189_v45, 16  ;;  %v708_v61 = vsel %vm9325_vm5, %v700_v58, %v707_v53  ;;  %v8706_v31 = vld [vmem:[#allocation6 + $0x8] sm:$0xff]   ;;  %v206_v53 = vld [vmem:[#allocation3 + $0x9c] sm:$0xf] }
  0xe5   :  { %v1074_v63 = vsel %vm9336_vm7, %v709_v54, %v1073_v39  ;;  %v291_v2 = vor.u32 %v289_v41, %v288_v55  ;;  %v1668_v3 = vor.u32 %v1667_v49, %v1664_v57  ;;  %v1128_v0 = vld [vmem:[#allocation2 + $0x90] sm:$0xf]  ;;  %1072 = vst.msk [vmem:[#allocation2 + $0x16c] sm:$0xf] %vm57_vm0, %v708_v61  ;;  %v292_v5 = vrot.slane %v288_v55, 4  ;;  %8178 = vmatprep.mubr.msk.bf16.mxu0 %vm2077_vm10, %v8706_v31 }
  0xe6   :  { %v1678_v4 = vor.u32 %v1677_v60, %v1673_v59  ;;  %1075 = vst [vmem:[#allocation2 + $0x170] sm:$0x1] %v1074_v63  ;;  %v296_v9 = vrot.slane %v294_v50, 7  ;;  %v1683_v10 = vrot.slane %v1681_v38, 5  ;;  %v1494_v11 = vshrl.u32 %v1128_v0, 16  ;;  %8196 = vmatprep.mubr.msk.bf16.mxu1 %vm2077_vm10, %v8706_v31 }
  0xe7   :  { %v1497_v1 = vshll.u32 %v1128_v0, 16  ;;  %v297_v13 = vshll.u32 %v174_v32, 16  ;;  %v1669_v15 = vrot.slane %v1668_v3, 4  ;;  %v902_v20 = vsel %vm9330_vm6, %v291_v2, %v901_v56  ;;  %v1013_v63 = vld [vmem:[#allocation2 + $0x108] sm:$0xf] }
  0xe8   :  { %v1679_v16 = vrot.slane %v1678_v4, 4  ;;  %v301_v19 = vrot.slane %v296_v9, 4  ;;  %v1129_v21 = vld [vmem:[#allocation2 + $0x94] sm:$0xf]  ;;  %v1496_v22 = vrot.slane %v1494_v11, 4  ;;  %v558_v54 = vshrl.u32 %v205_v62, 16 }
  0xe9   :  { %v1182_v6 = vld [vmem:[#allocation2 + $0x98] sm:$0x1]  ;;  %v1499_v23 = vrot.slane %v1497_v1, 5  ;;  %v299_v24 = vor.u32 %v297_v13, %v296_v9  ;;  %903 = vst [vmem:[#allocation2 + $0x30] sm:$0xf] %v902_v20  ;;  %v1674_v25 = vsel %vm9364_vm11, %v1669_v15, %v1673_v59  ;;  %v1503_v7 = vshll.u32 %v1129_v21, 16 }
  0xea   :  { %v1684_v26 = vsel %vm9364_vm11, %v1679_v16, %v1683_v10  ;;  %v1507_v27 = vshrl.u32 %v1129_v21, 16  ;;  %v1160_v28 = vld [vmem:[#allocation2 + $0x168] sm:$0xf]  ;;  %v1513_v34 = vshll.u32 %v1182_v6, 16  ;;  %v906_v45 = vsel %vm9336_vm7, %v301_v19, %v905_v30  ;;  %v191_v2 = vld [vmem:[#allocation3 + $0x60] sm:$0xf] }
  0xeb   :  { %v7771_v32 = vcombine.low %v1674_v25, %v1684_v26  ;;  %v1500_v33 = vor.u32 %v1499_v23, %v1496_v22  ;;  %v1878_v36 = vshrl.u32 %v1160_v28, 16  ;;  %v1505_v37 = vrot.slane %v1503_v7, 5  ;;  %907 = vst [vmem:[#allocation2 + $0x38] sm:$0x1] %v906_v45  ;;  %v192_v21 = vld [vmem:[#allocation3 + $0x64] sm:$0xf] }
  0xec   :  { %v1509_v58 = vrot.slane %v1507_v27, 4  ;;  %v1881_v12 = vshll.u32 %v1160_v28, 16  ;;  %v300_v39 = vsel %vm9325_vm5, %v292_v5, %v299_v24  ;;  %v1515_v29 = vrot.slane %v1513_v34, 5  ;;  %v1161_v42 = vld [vmem:[#allocation2 + $0x16c] sm:$0xf] }
  0xed   :  { %v2139_v40 = vsel %vm2077_vm10, %v7771_v32, 0  ;;  %v1501_v41 = vrot.slane %v1500_v33, 4  ;;  %v1880_v43 = vrot.slane %v1878_v36, 4  ;;  %904 = vst.msk [vmem:[#allocation2 + $0x34] sm:$0xf] %vm57_vm0, %v300_v39  ;;  %v1887_v35 = vshll.u32 %v1161_v42, 16 }
  0xee   :  { %8187 = vmatpush3.bf16.xpose.msra.mxu1 %v2139_v40  ;;  %v1510_v44 = vor.u32 %v1509_v58, %v1505_v37  ;;  %v1198_v46 = vld [vmem:[#allocation2 + $0x170] sm:$0x1]  ;;  %v1883_v47 = vrot.slane %v1881_v12, 5  ;;  %v1891_v48 = vshrl.u32 %v1161_v42, 16  ;;  %v560_v61 = vrot.slane %v558_v54, 7 }
  0xef   :  { %v1506_v51 = vsel %vm9364_vm11, %v1501_v41, %v1505_v37  ;;  %v1897_v52 = vshll.u32 %v1198_v46, 16  ;;  %v1889_v56 = vrot.slane %v1887_v35, 5  ;;  %v561_v5 = vshll.u32 %v205_v62, 16  ;;  %v1017_v25 = vld [vmem:[#allocation2 + $0x110] sm:$0x1] }
  0xf0   :  { %v1511_v55 = vrot.slane %v1510_v44, 4  ;;  %v1884_v50 = vor.u32 %v1883_v47, %v1880_v43  ;;  %v1893_v57 = vrot.slane %v1891_v48, 4  ;;  %v1112_v49 = vld [vmem:[#allocation2 + $0x30] sm:$0xf]  ;;  %v564_v1 = vrot.slane %v560_v61, 4 }
  0xf1   :  { %v1899_v59 = vrot.slane %v1897_v52, 5  ;;  %v1302_v60 = vshrl.u32 %v1112_v49, 16  ;;  %v1305_v38 = vshll.u32 %v1112_v49, 16  ;;  %v563_v19 = vor.u32 %v561_v5, %v560_v61  ;;  %v223_v34 = vld [vmem:[#allocation3 + $0xe0] sm:$0xf] }
  0xf2   :  { %v1516_v3 = vsel %vm9364_vm11, %v1511_v55, %v1515_v29  ;;  %v1885_v4 = vrot.slane %v1884_v50, 4  ;;  %v1894_v0 = vor.u32 %v1893_v57, %v1889_v56  ;;  %v566_v20 = vshrl.u32 %v206_v53, 16  ;;  %v1174_v62 = vld [vmem:[#allocation2 + $0x38] sm:$0x1]  ;;  %v224_v36 = vld [vmem:[#allocation3 + $0xe4] sm:$0xf] }
  0xf3   :  { %v7764_v9 = vcombine.low %v1506_v51, %v1516_v3  ;;  %v1304_v10 = vrot.slane %v1302_v60, 4  ;;  %v1307_v11 = vrot.slane %v1305_v38, 5  ;;  %v569_v24 = vshll.u32 %v206_v53, 16  ;;  %v964_v40 = vld [vmem:[#allocation2 + $0x9c] sm:$0xf] }
  0xf4   :  { %v1890_v13 = vsel %vm9364_vm11, %v1885_v4, %v1889_v56  ;;  %v1895_v15 = vrot.slane %v1894_v0, 4  ;;  %v1113_v16 = vld [vmem:[#allocation2 + $0x34] sm:$0xf]  ;;  %v568_v7 = vrot.slane %v566_v20, 7  ;;  %v1014_v27 = vsel %vm9330_vm6, %v563_v19, %v1013_v63  ;;  %v175_v44 = vld [vmem:[#allocation3 + $0x20] sm:$0xf] }
  0xf5   :  { %8554 = vmatprep.subr.msk.bf16.mxu0 %vm2077_vm10, %v7764_v9  ;;  %v1308_v6 = vor.u32 %v1307_v11, %v1304_v10  ;;  %v1311_v22 = vshll.u32 %v1113_v16, 16  ;;  %v1315_v23 = vshrl.u32 %v1113_v16, 16  ;;  %v439_v28 = vshrl.u32 %v191_v2, 16  ;;  %1015 = vst [vmem:[#allocation2 + $0x108] sm:$0xf] %v1014_v27 }
  0xf6   :  { %v1900_v26 = vsel %vm9364_vm11, %v1895_v15, %v1899_v59  ;;  %v1321_v37 = vshll.u32 %v1174_v62, 16  ;;  %v571_v58 = vor.u32 %v569_v24, %v568_v7  ;;  %v573_v12 = vrot.slane %v568_v7, 4  ;;  %v968_v51 = vld [vmem:[#allocation2 + $0xa4] sm:$0x1]  ;;  %v1076_v61 = vld [vmem:[#allocation2 + $0x174] sm:$0xf] }
  0xf7   :  { %v7780_v30 = vcombine.low %v1890_v13, %v1900_v26  ;;  %v1309_v31 = vrot.slane %v1308_v6, 4  ;;  %v1313_v32 = vrot.slane %v1311_v22, 5  ;;  %v1317_v33 = vrot.slane %v1315_v23, 4  ;;  %v9616_v63 = vld [vmem:[#allocation3 + $0x24] sm:$0xf] }
  0xf8   :  { %v441_v39 = vrot.slane %v439_v28, 7  ;;  %v442_v42 = vshll.u32 %v191_v2, 16  ;;  %v447_v43 = vshrl.u32 %v192_v21, 16  ;;  %v1323_v46 = vrot.slane %v1321_v37, 5  ;;  %v1080_v13 = vld [vmem:[#allocation2 + $0x17c] sm:$0x1] }
  0xf9   :  { %8562 = vmatprep.subr.msk.bf16.mxu1 %vm2077_vm10, %v7780_v30  ;;  %v1314_v41 = vsel %vm9364_vm11, %v1309_v31, %v1313_v32  ;;  %v1318_v29 = vor.u32 %v1317_v33, %v1313_v32  ;;  %v572_v47 = vsel %vm9325_vm5, %v564_v1, %v571_v58  ;;  %v1018_v35 = vsel %vm9336_vm7, %v573_v12, %v1017_v25  ;;  %v908_v30 = vld [vmem:[#allocation2 + $0x3c] sm:$0xf]  ;;  %v9631_v62 = vld [vmem:[#allocation3 + $0xa0] sm:$0xf]  ;;  %v912_v12 = vld [vmem:[#allocation2 + $0x44] sm:$0x1] }
  0xfa   :  { %v445_v48 = vrot.slane %v441_v39, 4  ;;  %1016 = vst.msk [vmem:[#allocation2 + $0x10c] sm:$0xf] %vm57_vm0, %v572_v47  ;;  %1019 = vst [vmem:[#allocation2 + $0x110] sm:$0x1] %v1018_v35  ;;  %v444_v45 = vor.u32 %v442_v42, %v441_v39  ;;  %v449_v53 = vrot.slane %v447_v43, 7 }
  0xfb   :  { %v1319_v52 = vrot.slane %v1318_v29, 4  ;;  %v450_v54 = vshll.u32 %v192_v21, 16  ;;  %v711_v55 = vshrl.u32 %v223_v34, 16  ;;  %v714_v50 = vshll.u32 %v223_v34, 16  ;;  %v9991_v17 = vld [vmem:[#allocation2 + $0x90] sm:$0xf] }
  0xfc   :  { %v719_v56 = vshrl.u32 %v224_v36, 16  ;;  %v722_v57 = vshll.u32 %v224_v36, 16  ;;  %v454_v60 = vrot.slane %v449_v53, 4  ;;  %v965_v38 = vsel %vm9330_vm6, %v444_v45, %v964_v40  ;;  %v1144_v3 = vld [vmem:[#allocation2 + $0x108] sm:$0xf] }
  0xfd   :  { %v1324_v49 = vsel %vm9364_vm11, %v1319_v52, %v1323_v46  ;;  %v452_v59 = vor.u32 %v450_v54, %v449_v53  ;;  %966 = vst [vmem:[#allocation2 + $0x9c] sm:$0xf] %v965_v38  ;;  %v713_v4 = vrot.slane %v711_v55, 7  ;;  %v303_v5 = vshrl.u32 %v175_v44, 16  ;;  %v9997_v18 = vld [vmem:[#allocation2 + $0x168] sm:$0xf] }
  0xfe   :  { %v7756_v2 = vcombine.low %v1314_v41, %v1324_v49  ;;  %v721_v0 = vrot.slane %v719_v56, 7  ;;  %v1686_v9 = vshrl.u32 %v1144_v3, 16  ;;  %v1689_v10 = vshll.u32 %v1144_v3, 16 }
  0xff   :  { %v453_v11 = vsel %vm9325_vm5, %v445_v48, %v452_v59  ;;  %v969_v1 = vsel %vm9336_vm7, %v454_v60, %v968_v51  ;;  %v716_v16 = vor.u32 %v714_v50, %v713_v4  ;;  %v717_v19 = vrot.slane %v713_v4, 4 }
 0x100   :  { %v2094_v15 = vsel %vm2077_vm10, %v7756_v2, 0  ;;  %967 = vst.msk [vmem:[#allocation2 + $0xa0] sm:$0xf] %vm57_vm0, %v453_v11  ;;  %970 = vst [vmem:[#allocation2 + $0xa4] sm:$0x1] %v969_v1  ;;  %v724_v20 = vor.u32 %v722_v57, %v721_v0  ;;  %v1688_v21 = vrot.slane %v1686_v9, 4 }
 0x101   :  { %8171 = vmatpush3.bf16.xpose.msra.mxu0 %v2094_v15  ;;  %v1691_v6 = vrot.slane %v1689_v10, 5  ;;  %v726_v22 = vrot.slane %v721_v0, 4  ;;  %v9624_v23 = vrot.slane %v303_v5, 7  ;;  %v1145_v24 = vld [vmem:[#allocation2 + $0x10c] sm:$0xf]  ;;  %v1077_v7 = vsel %vm9330_vm6, %v716_v16, %v1076_v61 }
 0x102   :  { %v1190_v25 = vld [vmem:[#allocation2 + $0x110] sm:$0x1]  ;;  %v725_v26 = vsel %vm9325_vm5, %v717_v19, %v724_v20  ;;  %v306_v27 = vshll.u32 %v175_v44, 16  ;;  %v311_v28 = vshrl.u32 %v9616_v63, 16  ;;  %v1695_v32 = vshll.u32 %v1145_v24, 16 }
 0x103   :  { %v1692_v31 = vor.u32 %v1691_v6, %v1688_v21  ;;  %v1699_v33 = vshrl.u32 %v1145_v24, 16  ;;  %v1705_v34 = vshll.u32 %v1190_v25, 16  ;;  %1078 = vst [vmem:[#allocation2 + $0x174] sm:$0xf] %v1077_v7  ;;  %1079 = vst.msk [vmem:[#allocation2 + $0x178] sm:$0xf] %vm57_vm0, %v725_v26  ;;  %v1081_v36 = vsel %vm9336_vm7, %v726_v22, %v1080_v13 }
 0x104   :  { %v308_v37 = vor.u32 %v306_v27, %v9624_v23  ;;  %v313_v58 = vrot.slane %v311_v28, 7  ;;  %v1697_v40 = vrot.slane %v1695_v32, 5  ;;  %v1130_v29 = vld [vmem:[#allocation2 + $0x9c] sm:$0xf]  ;;  %1082 = vst [vmem:[#allocation2 + $0x17c] sm:$0x1] %v1081_v36 }
 0x105   :  { %v1693_v39 = vrot.slane %v1692_v31, 4  ;;  %v1701_v41 = vrot.slane %v1699_v33, 4  ;;  %v309_v42 = vrot.slane %v9624_v23, 4  ;;  %v1518_v43 = vshrl.u32 %v1130_v29, 16  ;;  %v208_v26 = vld [vmem:[#allocation3 + $0xa4] sm:$0xf] }
 0x106   :  { %v1521_v44 = vshll.u32 %v1130_v29, 16  ;;  %v314_v46 = vshll.u32 %v9616_v63, 16  ;;  %v318_v47 = vrot.slane %v313_v58, 4  ;;  %v1707_v48 = vrot.slane %v1705_v34, 5  ;;  %v193_v32 = vld [vmem:[#allocation3 + $0x68] sm:$0xf] }
 0x107   :  { %v1702_v35 = vor.u32 %v1701_v41, %v1697_v40  ;;  %v1131_v51 = vld [vmem:[#allocation2 + $0xa0] sm:$0xf]  ;;  %v1183_v52 = vld [vmem:[#allocation2 + $0xa4] sm:$0x1]  ;;  %v909_v45 = vsel %vm9330_vm6, %v308_v37, %v908_v30  ;;  %v575_v53 = vshrl.u32 %v9631_v62, 16  ;;  %v1520_v54 = vrot.slane %v1518_v43, 4 }
 0x108   :  { %v1523_v55 = vrot.slane %v1521_v44, 5  ;;  %v1527_v50 = vshll.u32 %v1131_v51, 16  ;;  %v1531_v56 = vshrl.u32 %v1131_v51, 16  ;;  %910 = vst [vmem:[#allocation2 + $0x3c] sm:$0xf] %v909_v45  ;;  %v1698_v57 = vsel %vm9364_vm11, %v1693_v39, %v1697_v40 }
 0x109   :  { %v1703_v49 = vrot.slane %v1702_v35, 4  ;;  %v1537_v59 = vshll.u32 %v1183_v52, 16  ;;  %v913_v60 = vsel %vm9336_vm7, %v318_v47, %v912_v12  ;;  %v316_v4 = vor.u32 %v314_v46, %v313_v58  ;;  %v1020_v58 = vld [vmem:[#allocation2 + $0x114] sm:$0xf]  ;;  %v194_v43 = vld [vmem:[#allocation3 + $0x6c] sm:$0xf] }
 0x10a   :  { %v1524_v38 = vor.u32 %v1523_v55, %v1520_v54  ;;  %v1529_v61 = vrot.slane %v1527_v50, 5  ;;  %v1533_v63 = vrot.slane %v1531_v56, 4  ;;  %v1162_v2 = vld [vmem:[#allocation2 + $0x174] sm:$0xf]  ;;  %v1163_v3 = vld [vmem:[#allocation2 + $0x178] sm:$0xf] }
 0x10b   :  { %914 = vst [vmem:[#allocation2 + $0x44] sm:$0x1] %v913_v60  ;;  %v1708_v0 = vsel %vm9364_vm11, %v1703_v49, %v1707_v48  ;;  %v1539_v5 = vrot.slane %v1537_v59, 5  ;;  %v1902_v9 = vshrl.u32 %v1162_v2, 16  ;;  %v1905_v10 = vshll.u32 %v1162_v2, 16 }
 0x10c   :  { %v7772_v11 = vcombine.low %v1698_v57, %v1708_v0  ;;  %v1525_v1 = vrot.slane %v1524_v38, 4  ;;  %v1534_v13 = vor.u32 %v1533_v63, %v1529_v61  ;;  %v1199_v15 = vld [vmem:[#allocation2 + $0x17c] sm:$0x1]  ;;  %v1911_v16 = vshll.u32 %v1163_v3, 16  ;;  %v225_v35 = vld [vmem:[#allocation3 + $0xe8] sm:$0xf] }
 0x10d   :  { %v1904_v19 = vrot.slane %v1902_v9, 4  ;;  %v1907_v20 = vrot.slane %v1905_v10, 5  ;;  %v1915_v21 = vshrl.u32 %v1163_v3, 16  ;;  %v1921_v6 = vshll.u32 %v1199_v15, 16  ;;  %v1024_v50 = vld [vmem:[#allocation2 + $0x11c] sm:$0x1] }
 0x10e   :  { %v2142_v22 = vsel %vm2077_vm10, %v7772_v11, 0  ;;  %v1530_v23 = vsel %vm9364_vm11, %v1525_v1, %v1529_v61  ;;  %v1535_v24 = vrot.slane %v1534_v13, 4  ;;  %v1913_v25 = vrot.slane %v1911_v16, 5  ;;  %v971_v60 = vld [vmem:[#allocation2 + $0xa8] sm:$0xf] }
 0x10f   :  { %8189 = vmatpush3.bf16.xpose.msra.mxu1 %v2142_v22  ;;  %v1908_v7 = vor.u32 %v1907_v20, %v1904_v19  ;;  %v1917_v27 = vrot.slane %v1915_v21, 4  ;;  %v1923_v28 = vrot.slane %v1921_v6, 5  ;;  %v317_v30 = vsel %vm9325_vm5, %v309_v42, %v316_v4  ;;  %v1114_v31 = vld [vmem:[#allocation2 + $0x3c] sm:$0xf]  ;;  %v975_v16 = vld [vmem:[#allocation2 + $0xb0] sm:$0x1] }
 0x110   :  { %v1540_v33 = vsel %vm9364_vm11, %v1535_v24, %v1539_v5  ;;  %911 = vst.msk [vmem:[#allocation2 + $0x40] sm:$0xf] %vm57_vm0, %v317_v30  ;;  %v1326_v34 = vshrl.u32 %v1114_v31, 16  ;;  %v1329_v36 = vshll.u32 %v1114_v31, 16  ;;  %v577_v37 = vrot.slane %v575_v53, 7 }
 0x111   :  { %v7765_v12 = vcombine.low %v1530_v23, %v1540_v33  ;;  %v1909_v39 = vrot.slane %v1908_v7, 4  ;;  %v1918_v40 = vor.u32 %v1917_v27, %v1913_v25  ;;  %v578_v29 = vshll.u32 %v9631_v62, 16  ;;  %v226_v3 = vld [vmem:[#allocation3 + $0xec] sm:$0xf]  ;;  %v177_v19 = vld [vmem:[#allocation3 + $0x28] sm:$0xf] }
 0x112   :  { %v1175_v41 = vld [vmem:[#allocation2 + $0x44] sm:$0x1]  ;;  %v1328_v44 = vrot.slane %v1326_v34, 4  ;;  %v1331_v42 = vrot.slane %v1329_v36, 5  ;;  %v581_v47 = vrot.slane %v577_v37, 4  ;;  %v583_v45 = vshrl.u32 %v208_v26, 16 }
 0x113   :  { %v1345_v46 = vshll.u32 %v1175_v41, 16  ;;  %8555 = vmatprep.subr.msk.bf16.mxu0 %vm2077_vm10, %v7765_v12  ;;  %v1914_v48 = vsel %vm9364_vm11, %v1909_v39, %v1913_v25  ;;  %v1919_v51 = vrot.slane %v1918_v40, 4  ;;  %v580_v52 = vor.u32 %v578_v29, %v577_v37  ;;  %v1083_v23 = vld [vmem:[#allocation2 + $0x180] sm:$0xf] }
 0x114   :  { %v1332_v53 = vor.u32 %v1331_v42, %v1328_v44  ;;  %v586_v55 = vshll.u32 %v208_v26, 16  ;;  %v456_v62 = vshrl.u32 %v193_v32, 16  ;;  %v585_v57 = vrot.slane %v583_v45, 7 }
 0x115   :  { %v9660_v54 = vrot.slane %v1345_v46, 5  ;;  %v1924_v56 = vsel %vm9364_vm11, %v1919_v51, %v1923_v28  ;;  %v1021_v49 = vsel %vm9330_vm6, %v580_v52, %v1020_v58  ;;  %v459_v59 = vshll.u32 %v193_v32, 16  ;;  %v9678_v32 = vld [vmem:[#allocation3 + $0x2c] sm:$0xf]  ;;  %v1087_v58 = vld [vmem:[#allocation2 + $0x188] sm:$0x1] }
 0x116   :  { %v7781_v38 = vcombine.low %v1914_v48, %v1924_v56  ;;  %v1333_v61 = vrot.slane %v1332_v53, 4  ;;  %1022 = vst [vmem:[#allocation2 + $0x114] sm:$0xf] %v1021_v49  ;;  %v458_v63 = vrot.slane %v456_v62, 7  ;;  %v464_v2 = vshrl.u32 %v194_v43, 16 }
 0x117   :  { %v9666_v4 = vld [vmem:[#allocation2 + $0x40] sm:$0xf]  ;;  %v588_v0 = vor.u32 %v586_v55, %v585_v57  ;;  %v590_v5 = vrot.slane %v585_v57, 4  ;;  %v467_v9 = vshll.u32 %v194_v43, 16  ;;  %v728_v10 = vshrl.u32 %v225_v35, 16 }
 0x118   :  { %8563 = vmatprep.subr.msk.bf16.mxu1 %vm2077_vm10, %v7781_v38  ;;  %v1335_v11 = vshll.u32 %v9666_v4, 16  ;;  %v1339_v1 = vshrl.u32 %v9666_v4, 16  ;;  %v461_v13 = vor.u32 %v459_v59, %v458_v63  ;;  %v462_v15 = vrot.slane %v458_v63, 4 }
 0x119   :  { %v589_v20 = vsel %vm9325_vm5, %v581_v47, %v588_v0  ;;  %v1025_v21 = vsel %vm9336_vm7, %v590_v5, %v1024_v50  ;;  %v466_v6 = vrot.slane %v464_v2, 7  ;;  %v730_v22 = vrot.slane %v728_v10, 7  ;;  %v915_v50 = vld [vmem:[#allocation2 + $0x48] sm:$0xf] }
 0x11a   :  { %v1337_v24 = vrot.slane %v1335_v11, 5  ;;  %v1341_v25 = vrot.slane %v1339_v1, 4  ;;  %1023 = vst.msk [vmem:[#allocation2 + $0x118] sm:$0xf] %vm57_vm0, %v589_v20  ;;  %1026 = vst [vmem:[#allocation2 + $0x11c] sm:$0x1] %v1025_v21  ;;  %v972_v26 = vsel %vm9330_vm6, %v461_v13, %v971_v60 }
 0x11b   :  { %v731_v7 = vshll.u32 %v225_v35, 16  ;;  %v469_v27 = vor.u32 %v467_v9, %v466_v6  ;;  %v471_v28 = vrot.slane %v466_v6, 4  ;;  %973 = vst [vmem:[#allocation2 + $0xa8] sm:$0xf] %v972_v26  ;;  %v734_v30 = vrot.slane %v730_v22, 4 }
 0x11c   :  { %v736_v31 = vshrl.u32 %v226_v3, 16  ;;  %v1338_v33 = vsel %vm9364_vm11, %v1333_v61, %v1337_v24  ;;  %v1342_v34 = vor.u32 %v1341_v25, %v1337_v24  ;;  %v739_v37 = vshll.u32 %v226_v3, 16 }
 0x11d   :  { %v733_v36 = vor.u32 %v731_v7, %v730_v22  ;;  %v9682_v12 = vld [vmem:[#allocation2 + $0x114] sm:$0xf]  ;;  %v470_v39 = vsel %vm9325_vm5, %v462_v15, %v469_v27  ;;  %v976_v40 = vsel %vm9336_vm7, %v471_v28, %v975_v16  ;;  %v320_v29 = vshrl.u32 %v177_v19, 16 }
 0x11e   :  { %v738_v41 = vrot.slane %v736_v31, 7  ;;  %v1343_v43 = vrot.slane %v1342_v34, 4  ;;  %v1710_v44 = vshrl.u32 %v9682_v12, 16  ;;  %v1713_v42 = vshll.u32 %v9682_v12, 16  ;;  %974 = vst.msk [vmem:[#allocation2 + $0xac] sm:$0xf] %vm57_vm0, %v470_v39 }
 0x11f   :  { %977 = vst [vmem:[#allocation2 + $0xb0] sm:$0x1] %v976_v40  ;;  %v1084_v46 = vsel %vm9330_vm6, %v733_v36, %v1083_v23  ;;  %v9693_v48 = vrot.slane %v320_v29, 7  ;;  %v323_v51 = vshll.u32 %v177_v19, 16  ;;  %v328_v55 = vshrl.u32 %v9678_v32, 16 }
 0x120   :  { %v741_v47 = vor.u32 %v739_v37, %v738_v41  ;;  %v743_v35 = vrot.slane %v738_v41, 4  ;;  %1085 = vst [vmem:[#allocation2 + $0x180] sm:$0xf] %v1084_v46  ;;  %v1348_v52 = vsel %vm9364_vm11, %v1343_v43, %v9660_v54  ;;  %v1712_v45 = vrot.slane %v1710_v44, 4 }
 0x121   :  { %v1715_v53 = vrot.slane %v1713_v42, 5  ;;  %v7757_v62 = vcombine.low %v1338_v33, %v1348_v52  ;;  %v9699_v56 = vld [vmem:[#allocation2 + $0x118] sm:$0xf]  ;;  %v1191_v57 = vld [vmem:[#allocation2 + $0x11c] sm:$0x1]  ;;  %v325_v60 = vor.u32 %v323_v51, %v9693_v48  ;;  %v326_v9 = vrot.slane %v9693_v48, 4 }
 0x122   :  { %v742_v49 = vsel %vm9325_vm5, %v734_v30, %v741_v47  ;;  %v1088_v59 = vsel %vm9336_vm7, %v743_v35, %v1087_v58  ;;  %v1719_v54 = vshll.u32 %v9699_v56, 16  ;;  %v1723_v61 = vshrl.u32 %v9699_v56, 16  ;;  %v9708_v2 = vld [vmem:[#allocation2 + $0xa8] sm:$0xf]  ;;  %v919_v35 = vld [vmem:[#allocation2 + $0x50] sm:$0x1] }
 0x123   :  { %v1716_v38 = vor.u32 %v1715_v53, %v1712_v45  ;;  %v1729_v63 = vshll.u32 %v1191_v57, 16  ;;  %1086 = vst.msk [vmem:[#allocation2 + $0x184] sm:$0xf] %vm57_vm0, %v742_v49  ;;  %1089 = vst [vmem:[#allocation2 + $0x188] sm:$0x1] %v1088_v59  ;;  %v2097_v3 = vsel %vm2077_vm10, %v7757_v62, 0  ;;  %v916_v21 = vsel %vm9330_vm6, %v325_v60, %v915_v50 }
 0x124   :  { %v1542_v0 = vshrl.u32 %v9708_v2, 16  ;;  %v1545_v5 = vshll.u32 %v9708_v2, 16  ;;  %8173 = vmatpush3.bf16.xpose.msra.mxu0 %v2097_v3  ;;  %v1721_v11 = vrot.slane %v1719_v54, 5  ;;  %v1725_v1 = vrot.slane %v1723_v61, 4  ;;  %917 = vst [vmem:[#allocation2 + $0x48] sm:$0xf] %v916_v21 }
 0x125   :  { %v1717_v10 = vrot.slane %v1716_v38, 4  ;;  %v1731_v13 = vrot.slane %v1729_v63, 5  ;;  %v9715_v15 = vld [vmem:[#allocation2 + $0xac] sm:$0xf]  ;;  %v330_v34 = vrot.slane %v328_v55, 7  ;;  %v331_v53 = vshll.u32 %v9678_v32, 16 }
 0x126   :  { %v1184_v16 = vld [vmem:[#allocation2 + $0xb0] sm:$0x1]  ;;  %v1544_v19 = vrot.slane %v1542_v0, 4  ;;  %v1547_v20 = vrot.slane %v1545_v5, 5  ;;  %v1726_v22 = vor.u32 %v1725_v1, %v1721_v11  ;;  %v1551_v23 = vshll.u32 %v9715_v15, 16 }
 0x127   :  { %v1722_v6 = vsel %vm9364_vm11, %v1717_v10, %v1721_v11  ;;  %v1555_v24 = vshrl.u32 %v9715_v15, 16  ;;  %v9723_v25 = vld [vmem:[#allocation2 + $0x180] sm:$0xf]  ;;  %v1561_v7 = vshll.u32 %v1184_v16, 16  ;;  %v209_v48 = vld [vmem:[#allocation3 + $0xa8] sm:$0xf]  ;;  %v333_v63 = vor.u32 %v331_v53, %v330_v34 }
 0x128   :  { %v1548_v26 = vor.u32 %v1547_v20, %v1544_v19  ;;  %v1926_v27 = vshrl.u32 %v9723_v25, 16  ;;  %v1929_v28 = vshll.u32 %v9723_v25, 16  ;;  %v1727_v30 = vrot.slane %v1726_v22, 4  ;;  %v210_v55 = vld [vmem:[#allocation3 + $0xac] sm:$0xf] }
 0x129   :  { %v1553_v31 = vrot.slane %v1551_v23, 5  ;;  %v1557_v33 = vrot.slane %v1555_v24, 4  ;;  %v1563_v37 = vrot.slane %v1561_v7, 5  ;;  %v335_v49 = vrot.slane %v330_v34, 4  ;;  %v195_v60 = vld [vmem:[#allocation3 + $0x70] sm:$0xf] }
 0x12a   :  { %v1549_v36 = vrot.slane %v1548_v26, 4  ;;  %v9727_v58 = vld [vmem:[#allocation2 + $0x184] sm:$0xf]  ;;  %v1200_v39 = vld [vmem:[#allocation2 + $0x188] sm:$0x1]  ;;  %v1732_v40 = vsel %vm9364_vm11, %v1727_v30, %v1731_v13  ;;  %v1928_v29 = vrot.slane %v1926_v27, 4  ;;  %v334_v1 = vsel %vm9325_vm5, %v326_v9, %v333_v63 }
 0x12b   :  { %v1558_v41 = vor.u32 %v1557_v33, %v1553_v31  ;;  %v1931_v43 = vrot.slane %v1929_v28, 5  ;;  %v7773_v44 = vcombine.low %v1722_v6, %v1732_v40  ;;  %v1935_v46 = vshll.u32 %v9727_v58, 16  ;;  %v9737_v59 = vld [vmem:[#allocation2 + $0x48] sm:$0xf]  ;;  %v196_v3 = vld [vmem:[#allocation3 + $0x74] sm:$0xf] }
 0x12c   :  { %v1554_v42 = vsel %vm9364_vm11, %v1549_v36, %v1553_v31  ;;  %v1939_v47 = vshrl.u32 %v9727_v58, 16  ;;  %v1945_v45 = vshll.u32 %v1200_v39, 16  ;;  %v920_v32 = vsel %vm9336_vm7, %v335_v49, %v919_v35  ;;  %918 = vst.msk [vmem:[#allocation2 + $0x4c] sm:$0xf] %vm57_vm0, %v334_v1  ;;  %v1027_v26 = vld [vmem:[#allocation2 + $0x120] sm:$0xf] }
 0x12d   :  { %v1559_v51 = vrot.slane %v1558_v41, 4  ;;  %v1932_v52 = vor.u32 %v1931_v43, %v1928_v29  ;;  %v2145_v50 = vsel %vm2077_vm10, %v7773_v44, 0  ;;  %v1937_v62 = vrot.slane %v1935_v46, 5  ;;  %921 = vst [vmem:[#allocation2 + $0x50] sm:$0x1] %v920_v32 }
 0x12e   :  { %v1941_v57 = vrot.slane %v1939_v47, 4  ;;  %8191 = vmatpush3.bf16.xpose.msra.mxu1 %v2145_v50  ;;  %v1947_v61 = vrot.slane %v1945_v45, 5  ;;  %v1350_v10 = vshrl.u32 %v9737_v59, 16  ;;  %v1353_v13 = vshll.u32 %v9737_v59, 16  ;;  %v227_v31 = vld [vmem:[#allocation3 + $0xf0] sm:$0xf] }
 0x12f   :  { %v1564_v38 = vsel %vm9364_vm11, %v1559_v51, %v1563_v37  ;;  %v1933_v54 = vrot.slane %v1932_v52, 4  ;;  %v592_v16 = vshrl.u32 %v209_v48, 16  ;;  %v595_v21 = vshll.u32 %v209_v48, 16  ;;  %v1031_v37 = vld [vmem:[#allocation2 + $0x128] sm:$0x1] }
 0x130   :  { %v7766_v0 = vcombine.low %v1554_v42, %v1564_v38  ;;  %v1942_v5 = vor.u32 %v1941_v57, %v1937_v62  ;;  %v1352_v20 = vrot.slane %v1350_v10, 4  ;;  %v600_v6 = vshrl.u32 %v210_v55, 16  ;;  %v978_v39 = vld [vmem:[#allocation2 + $0xb4] sm:$0xf]  ;;  %v982_v44 = vld [vmem:[#allocation2 + $0xbc] sm:$0x1] }
 0x131   :  { %v1938_v11 = vsel %vm9364_vm11, %v1933_v54, %v1937_v62  ;;  %v1355_v22 = vrot.slane %v1353_v13, 5  ;;  %v594_v23 = vrot.slane %v592_v16, 7  ;;  %v603_v24 = vshll.u32 %v210_v55, 16  ;;  %v228_v35 = vld [vmem:[#allocation3 + $0xf4] sm:$0xf] }
 0x132   :  { %8556 = vmatprep.subr.msk.bf16.mxu0 %vm2077_vm10, %v7766_v0  ;;  %v1943_v19 = vrot.slane %v1942_v5, 4  ;;  %v473_v7 = vshrl.u32 %v195_v60, 16  ;;  %v602_v27 = vrot.slane %v600_v6, 7  ;;  %v476_v28 = vshll.u32 %v195_v60, 16  ;;  %v9760_v50 = vld [vmem:[#allocation3 + $0x30] sm:$0xf] }
 0x133   :  { %v481_v30 = vshrl.u32 %v196_v3, 16  ;;  %v597_v34 = vor.u32 %v595_v21, %v594_v23  ;;  %v598_v36 = vrot.slane %v594_v23, 4  ;;  %v1356_v42 = vor.u32 %v1355_v22, %v1352_v20  ;;  %v9762_v62 = vld [vmem:[#allocation3 + $0x34] sm:$0xf]  ;;  %v9764_v57 = vld [vmem:[#allocation2 + $0x4c] sm:$0xf] }
 0x134   :  { %v1948_v9 = vsel %vm9364_vm11, %v1943_v19, %v1947_v61  ;;  %v605_v40 = vor.u32 %v603_v24, %v602_v27  ;;  %v607_v41 = vrot.slane %v602_v27, 4  ;;  %v475_v29 = vrot.slane %v473_v7, 7  ;;  %v1176_v51 = vld [vmem:[#allocation2 + $0x50] sm:$0x1]  ;;  %v1090_v1 = vld [vmem:[#allocation2 + $0x18c] sm:$0xf] }
 0x135   :  { %v7782_v33 = vcombine.low %v1938_v11, %v1948_v9  ;;  %v483_v43 = vrot.slane %v481_v30, 7  ;;  %v1028_v46 = vsel %vm9330_vm6, %v597_v34, %v1027_v26  ;;  %v484_v47 = vshll.u32 %v196_v3, 16  ;;  %v9776_v21 = vld [vmem:[#allocation3 + $0xb0] sm:$0xf] }
 0x136   :  { %v745_v48 = vshrl.u32 %v227_v31, 16  ;;  %v606_v52 = vsel %vm9325_vm5, %v598_v36, %v605_v40  ;;  %1029 = vst [vmem:[#allocation2 + $0x120] sm:$0xf] %v1028_v46  ;;  %v1032_v45 = vsel %vm9336_vm7, %v607_v41, %v1031_v37  ;;  %v478_v53 = vor.u32 %v476_v28, %v475_v29 }
 0x137   :  { %8564 = vmatprep.subr.msk.bf16.mxu1 %vm2077_vm10, %v7782_v33  ;;  %v479_v55 = vrot.slane %v475_v29, 4  ;;  %v1369_v49 = vshll.u32 %v1176_v51, 16  ;;  %1030 = vst.msk [vmem:[#allocation2 + $0x124] sm:$0xf] %vm57_vm0, %v606_v52  ;;  %1033 = vst [vmem:[#allocation2 + $0x128] sm:$0x1] %v1032_v45  ;;  %v486_v60 = vor.u32 %v484_v47, %v483_v43  ;;  %v7808_v8 = vcombine.low %v9682_v12, %v9699_v56 }
 0x138   :  { %v488_v38 = vrot.slane %v483_v43, 4  ;;  %v747_v54 = vrot.slane %v745_v48, 7  ;;  %v1359_v61 = vshll.u32 %v9764_v57, 16  ;;  %v1363_v63 = vshrl.u32 %v9764_v57, 16  ;;  %v1094_v45 = vld [vmem:[#allocation2 + $0x194] sm:$0x1] }
 0x139   :  { %v979_v3 = vsel %vm9330_vm6, %v478_v53, %v978_v39  ;;  %v748_v0 = vshll.u32 %v227_v31, 16  ;;  %v1357_v5 = vrot.slane %v1356_v42, 4  ;;  %v1371_v32 = vrot.slane %v1369_v49, 5  ;;  %v2613_v56 = vld [vmem:[#allocation2] sm:$0xe] }
 0x13a   :  { %v487_v10 = vsel %vm9325_vm5, %v479_v55, %v486_v60  ;;  %980 = vst [vmem:[#allocation2 + $0xb4] sm:$0xf] %v979_v3  ;;  %v983_v11 = vsel %vm9336_vm7, %v488_v38, %v982_v44  ;;  %v1361_v13 = vrot.slane %v1359_v61, 5  ;;  %v1365_v16 = vrot.slane %v1363_v63, 4 }
 0x13b   :  { %981 = vst.msk [vmem:[#allocation2 + $0xb8] sm:$0xf] %vm57_vm0, %v487_v10  ;;  %984 = vst [vmem:[#allocation2 + $0xbc] sm:$0x1] %v983_v11  ;;  %v750_v19 = vor.u32 %v748_v0, %v747_v54  ;;  %v753_v20 = vshrl.u32 %v228_v35, 16  ;;  %v751_v6 = vrot.slane %v747_v54, 4 }
 0x13c   :  { %v756_v22 = vshll.u32 %v228_v35, 16  ;;  %v337_v23 = vshrl.u32 %v9760_v50, 16  ;;  %v345_v24 = vshrl.u32 %v9762_v62, 16  ;;  %v1366_v26 = vor.u32 %v1365_v16, %v1361_v13 }
 0x13d   :  { %v755_v7 = vrot.slane %v753_v20, 7  ;;  %v1091_v9 = vsel %vm9330_vm6, %v750_v19, %v1090_v1  ;;  %v340_v27 = vshll.u32 %v9760_v50, 16  ;;  %v9783_v28 = vld [vmem:[#allocation2 + $0x120] sm:$0xf]  ;;  %v348_v33 = vshll.u32 %v9762_v62, 16 }
 0x13e   :  { %1092 = vst [vmem:[#allocation2 + $0x18c] sm:$0xf] %v1091_v9  ;;  %v9785_v30 = vrot.slane %v337_v23, 7  ;;  %v9787_v31 = vrot.slane %v345_v24, 7  ;;  %v609_v34 = vshrl.u32 %v9776_v21, 16  ;;  %v1362_v36 = vsel %vm9364_vm11, %v1357_v5, %v1361_v13 }
 0x13f   :  { %v1367_v37 = vrot.slane %v1366_v26, 4  ;;  %v9793_v39 = vld [vmem:[#allocation2 + $0x124] sm:$0xf]  ;;  %v1192_v40 = vld [vmem:[#allocation2 + $0x128] sm:$0x1]  ;;  %v1734_v41 = vshrl.u32 %v9783_v28, 16  ;;  %v758_v29 = vor.u32 %v756_v22, %v755_v7 }
 0x140   :  { %12678 = vst [vmem:[#allocation17_spill] sm:$0xff] %v9793_v39  ;;  %v1737_v43 = vshll.u32 %v9783_v28, 16  ;;  %v1743_v44 = vshll.u32 %v9793_v39, 16  ;;  %v1747_v42 = vshrl.u32 %v9793_v39, 16  ;;  %v1753_v46 = vshll.u32 %v1192_v40, 16 }
 0x141   :  { %v1372_v47 = vsel %vm9364_vm11, %v1367_v37, %v1371_v32  ;;  %v1736_v35 = vrot.slane %v1734_v41, 4  ;;  %v9801_v48 = vld [vmem:[#allocation2 + $0xb4] sm:$0xf]  ;;  %v759_v51 = vsel %vm9325_vm5, %v751_v6, %v758_v29  ;;  %v760_v52 = vrot.slane %v755_v7, 4  ;;  %v1034_v62 = vld [vmem:[#allocation2 + $0x12c] sm:$0xf] }
 0x142   :  { %12679 = vst [vmem:[#allocation18_spill] sm:$0xff] %v9801_v48  ;;  %v7758_v53 = vcombine.low %v1362_v36, %v1372_v47  ;;  %v1739_v55 = vrot.slane %v1737_v43, 5  ;;  %v1745_v50 = vrot.slane %v1743_v44, 5  ;;  %v1749_v49 = vrot.slane %v1747_v42, 4  ;;  %v9805_v60 = vld [vmem:[#allocation2 + $0xb8] sm:$0xf] }
 0x143   :  { %12680 = vst [vmem:[#allocation19_spill] sm:$0xff] %v9805_v60  ;;  %1093 = vst.msk [vmem:[#allocation2 + $0x190] sm:$0xf] %vm57_vm0, %v759_v51  ;;  %v1755_v38 = vrot.slane %v1753_v46, 5  ;;  %v1185_v54 = vld [vmem:[#allocation2 + $0xbc] sm:$0x1]  ;;  %v1095_v23 = vsel %vm9336_vm7, %v760_v52, %v1094_v45  ;;  %v342_v41 = vor.u32 %v340_v27, %v9785_v30 }
 0x144   :  { %v1566_v61 = vshrl.u32 %v9801_v48, 16  ;;  %v1569_v63 = vshll.u32 %v9801_v48, 16  ;;  %v1575_v3 = vshll.u32 %v9805_v60, 16  ;;  %v2100_v0 = vsel %vm2077_vm10, %v7758_v53, 0  ;;  %1096 = vst [vmem:[#allocation2 + $0x194] sm:$0x1] %v1095_v23 }
 0x145   :  { %v1740_v5 = vor.u32 %v1739_v55, %v1736_v35  ;;  %v1750_v32 = vor.u32 %v1749_v49, %v1745_v50  ;;  %v1579_v10 = vshrl.u32 %v9805_v60, 16  ;;  %8175 = vmatpush3.bf16.xpose.msra.mxu0 %v2100_v0  ;;  %v1585_v16 = vshll.u32 %v1185_v54, 16  ;;  %v9813_v19 = vld [vmem:[#allocation2 + $0x18c] sm:$0xf]  ;;  %v922_v45 = vld [vmem:[#allocation2 + $0x54] sm:$0xf] }
 0x146   :  { %v1568_v11 = vrot.slane %v1566_v61, 4  ;;  %v1571_v1 = vrot.slane %v1569_v63, 5  ;;  %v1577_v13 = vrot.slane %v1575_v3, 5  ;;  %v1950_v7 = vshrl.u32 %v9813_v19, 16  ;;  %v926_v49 = vld [vmem:[#allocation2 + $0x5c] sm:$0x1] }
 0x147   :  { %v1741_v20 = vrot.slane %v1740_v5, 4  ;;  %v1751_v6 = vrot.slane %v1750_v32, 4  ;;  %v1581_v22 = vrot.slane %v1579_v10, 4  ;;  %v1587_v26 = vrot.slane %v1585_v16, 5  ;;  %v212_v63 = vld [vmem:[#allocation3 + $0xb4] sm:$0xf] }
 0x148   :  { %v1572_v24 = vor.u32 %v1571_v1, %v1568_v11  ;;  %v1953_v9 = vshll.u32 %v9813_v19, 16  ;;  %v1952_v42 = vrot.slane %v1950_v7, 4  ;;  %v343_v52 = vrot.slane %v9785_v30, 4 }
 0x149   :  { %v1746_v36 = vsel %vm9364_vm11, %v1741_v20, %v1745_v50  ;;  %v1756_v37 = vsel %vm9364_vm11, %v1751_v6, %v1755_v38  ;;  %v1582_v40 = vor.u32 %v1581_v22, %v1577_v13  ;;  %v350_v50 = vor.u32 %v348_v33, %v9787_v31 }
 0x14a   :  { %v7774_v29 = vcombine.low %v1746_v36, %v1756_v37  ;;  %v1573_v43 = vrot.slane %v1572_v24, 4  ;;  %v9824_v44 = vld [vmem:[#allocation2 + $0x190] sm:$0xf]  ;;  %v1955_v46 = vrot.slane %v1953_v9, 5  ;;  %v352_v30 = vrot.slane %v9787_v31, 4 }
 0x14b   :  { %v1583_v47 = vrot.slane %v1582_v40, 4  ;;  %v1959_v35 = vshll.u32 %v9824_v44, 16  ;;  %v1963_v51 = vshrl.u32 %v9824_v44, 16  ;;  %v351_v5 = vsel %vm9325_vm5, %v343_v52, %v350_v50  ;;  %v9842_v33 = vld [vmem:[#allocation2 + $0x194] sm:$0x1] }
 0x14c   :  { %v2148_v53 = vsel %vm2077_vm10, %v7774_v29, 0  ;;  %v1578_v55 = vsel %vm9364_vm11, %v1573_v43, %v1577_v13  ;;  %v1956_v27 = vor.u32 %v1955_v46, %v1952_v42  ;;  %v923_v32 = vsel %vm9330_vm6, %v342_v41, %v922_v45  ;;  %12681 = vst [vmem:[#allocation20_spill] sm:$0xff] %v9842_v33  ;;  %925 = vst.msk [vmem:[#allocation2 + $0x58] sm:$0xf] %vm57_vm0, %v351_v5  ;;  %v1038_v9 = vld [vmem:[#allocation2 + $0x134] sm:$0x1] }
 0x14d   :  { %8193 = vmatpush3.bf16.xpose.msra.mxu1 %v2148_v53  ;;  %v1588_v38 = vsel %vm9364_vm11, %v1583_v47, %v1587_v26  ;;  %v1961_v54 = vrot.slane %v1959_v35, 5  ;;  %v1965_v61 = vrot.slane %v1963_v51, 4  ;;  %924 = vst [vmem:[#allocation2 + $0x54] sm:$0xf] %v923_v32  ;;  %v927_v11 = vsel %vm9336_vm7, %v352_v30, %v926_v49 }
 0x14e   :  { %v7767_v3 = vcombine.low %v1578_v55, %v1588_v38  ;;  %v1957_v0 = vrot.slane %v1956_v27, 4  ;;  %v611_v31 = vrot.slane %v609_v34, 7  ;;  %v612_v1 = vshll.u32 %v9776_v21, 16  ;;  %928 = vst [vmem:[#allocation2 + $0x5c] sm:$0x1] %v927_v11 }
 0x14f   :  { %v1966_v10 = vor.u32 %v1965_v61, %v1961_v54  ;;  %v1969_v13 = vshll.u32 %v9842_v33, 16  ;;  %v617_v16 = vshrl.u32 %v212_v63, 16  ;;  %v620_v20 = vshll.u32 %v212_v63, 16 }
 0x150   :  { %8557 = vmatprep.subr.msk.bf16.mxu0 %vm2077_vm10, %v7767_v3  ;;  %v614_v22 = vor.u32 %v612_v1, %v611_v31  ;;  %v1962_v23 = vsel %vm9364_vm11, %v1957_v0, %v1961_v54  ;;  %v615_v26 = vrot.slane %v611_v31, 4 }
 0x151   :  { %v1967_v6 = vrot.slane %v1966_v10, 4  ;;  %v1971_v24 = vrot.slane %v1969_v13, 5  ;;  %v619_v7 = vrot.slane %v617_v16, 7 }
 0x152   :  { %v1035_v34 = vsel %vm9330_vm6, %v614_v22, %v1034_v62  ;;  %v8780_v22 = vld [vmem:[#allocation2 + $0x60] sm:$0xf] }
 0x153   :  { %v1972_v21 = vsel %vm9364_vm11, %v1967_v6, %v1971_v24  ;;  %v622_v36 = vor.u32 %v620_v20, %v619_v7  ;;  %v624_v37 = vrot.slane %v619_v7, 4  ;;  %1036 = vst [vmem:[#allocation2 + $0x12c] sm:$0xf] %v1035_v34  ;;  %v9860_v29 = vld [vmem:[#allocation2 + $0x58] sm:$0xf] }
 0x154   :  { %v7783_v40 = vcombine.low %v1962_v23, %v1972_v21  ;;  %v9858_v41 = vld [vmem:[#allocation2 + $0x54] sm:$0xf]  ;;  %12682 = vst [vmem:[#allocation21_spill] sm:$0xff] %v9860_v29  ;;  %v1383_v51 = vshll.u32 %v9860_v29, 16  ;;  %v1387_v52 = vshrl.u32 %v9860_v29, 16 }
 0x155   :  { %v623_v43 = vsel %vm9325_vm5, %v615_v26, %v622_v36  ;;  %v1039_v42 = vsel %vm9336_vm7, %v624_v37, %v1038_v9  ;;  %v9867_v46 = vld [vmem:[#allocation2 + $0x5c] sm:$0x1]  ;;  %v1374_v47 = vshrl.u32 %v9858_v41, 16  ;;  %v1377_v35 = vshll.u32 %v9858_v41, 16  ;;  %v9890_v23 = vld [vmem:[#allocation2 + $0x64] sm:$0xf] }
 0x156   :  { %8565 = vmatprep.subr.msk.bf16.mxu1 %vm2077_vm10, %v7783_v40  ;;  %12683 = vst [vmem:[#allocation22_spill] sm:$0xff] %v9867_v46  ;;  %1037 = vst.msk [vmem:[#allocation2 + $0x130] sm:$0xf] %vm57_vm0, %v623_v43  ;;  %v1393_v45 = vshll.u32 %v9867_v46, 16  ;;  %v1385_v27 = vrot.slane %v1383_v51, 5  ;;  %v1389_v50 = vrot.slane %v1387_v52, 4  ;;  %v7795_v24 = vcombine.low %v8780_v22, %v9890_v23 }
 0x157   :  { %1040 = vst [vmem:[#allocation2 + $0x134] sm:$0x1] %v1039_v42  ;;  %v1376_v53 = vrot.slane %v1374_v47, 4  ;;  %v1379_v55 = vrot.slane %v1377_v35, 5  ;;  %v8782_v37 = vld [vmem:[#allocation2] sm:$0xf] }
 0x158   :  { %v1390_v38 = vor.u32 %v1389_v50, %v1385_v27  ;;  %v1395_v54 = vrot.slane %v1393_v45, 5  ;;  %v9895_v40 = vld [vmem:[#allocation2 + $0x4] sm:$0xf]  ;;  %v8784_v45 = vld [vmem:[#allocation2 + $0x138] sm:$0xf]  ;;  %v2770_v12 = vrot.slane %v9890_v23, 5  ;;  %v7809_v23 = vcombine.low %v9783_v28, %v9793_v39 }
 0x159   :  { %v1380_v49 = vor.u32 %v1379_v55, %v1376_v53  ;;  %v7787_v43 = vcombine.low %v8782_v37, %v9895_v40  ;;  %v9904_v53 = vld [vmem:[#allocation2 + $0x13c] sm:$0xf]  ;;  %v8786_v50 = vld [vmem:[#allocation2 + $0x6c] sm:$0xf]  ;;  %v8795_v22 = vld [vmem:[#allocation2 + $0x78] sm:$0xf] }
 0x15a   :  { %v9875_v61 = vld [vmem:[#allocation2 + $0x12c] sm:$0xf]  ;;  %v1391_v0 = vrot.slane %v1390_v38, 4  ;;  %v7811_v55 = vcombine.low %v8784_v45, %v9904_v53  ;;  %v8804_v45 = vld [vmem:[#allocation2 + $0x24] sm:$0xf]  ;;  %v12689_v28 = vmov 0 }
 0x15b   :  { %v1758_v30 = vshrl.u32 %v9875_v61, 16  ;;  %v1761_v63 = vshll.u32 %v9875_v61, 16  ;;  %v1381_v3 = vrot.slane %v1380_v49, 4  ;;  %v9908_v49 = vld [vmem:[#allocation2 + $0x70] sm:$0xf]  ;;  %v12690_v28 = vsel %vm10053_vm14, 4294967295, %v12689_v28 }
 0x15c   :  { %v1396_v31 = vsel %vm9364_vm11, %v1391_v0, %v1395_v54  ;;  %v7796_v38 = vcombine.low %v8786_v50, %v9908_v49  ;;  %v9911_v54 = vld [vmem:[#allocation6] sm:$0xff]   ;;  %v9916_v0 = vld [vmem:[#allocation2 + $0xdc] sm:$0xf]  ;;  %v9949_v50 = vld [vmem:[#allocation2 + $0x68] sm:$0x1]  ;;  %12691 = vst [vmem:[#allocation28_spill] sm:$0xff] %v12690_v28 }
 0x15d   :  { %v9879_v5 = vld [vmem:[#allocation2 + $0x130] sm:$0xf]  ;;  %v1760_v62 = vrot.slane %v1758_v30, 4  ;;  %v1763_v10 = vrot.slane %v1761_v63, 5  ;;  %v1386_v11 = vsel %vm9364_vm11, %v1381_v3, %v1385_v27  ;;  %v2432_v27 = vsel %vm2077_vm10, %v7787_v43, 0  ;;  %12685 = vst [vmem:[#allocation24_spill] sm:$0xff] %v9911_v54 }
 0x15e   :  { %v9881_v32 = vld [vmem:[#allocation2 + $0x134] sm:$0x1]  ;;  %v1767_v1 = vshll.u32 %v9879_v5, 16  ;;  %v1771_v13 = vshrl.u32 %v9879_v5, 16  ;;  %v7759_v16 = vcombine.low %v1386_v11, %v1396_v31  ;;  %v8788_v63 = vld [vmem:[#allocation6 + $0x8] sm:$0xff]   ;;  %v2777_v60 = vrot.slane %v9908_v49, 5 }
 0x15f   :  { %12684 = vst [vmem:[#allocation23_spill] sm:$0xff] %v9881_v32  ;;  %v1764_v20 = vor.u32 %v1763_v10, %v1760_v62  ;;  %v1777_v6 = vshll.u32 %v9881_v32, 16  ;;  %v8789_v3 = vld [vmem:[#allocation2 + $0xd8] sm:$0xf]  ;;  %v8791_v10 = vld [vmem:[#allocation2 + $0xc] sm:$0xf] }
 0x160   :  { %v1769_v26 = vrot.slane %v1767_v1, 5  ;;  %v1773_v7 = vrot.slane %v1771_v13, 4  ;;  %v2103_v34 = vsel %vm2077_vm10, %v7759_v16, 0  ;;  %v7803_v62 = vcombine.low %v8789_v3, %v9916_v0  ;;  %v9920_v11 = vld [vmem:[#allocation2 + $0x10] sm:$0xf] }
 0x161   :  { %v1765_v9 = vrot.slane %v1764_v20, 4  ;;  %8177 = vmatpush3.bf16.xpose.msra.mxu0 %v2103_v34  ;;  %v1779_v36 = vrot.slane %v1777_v6, 5  ;;  %v7788_v31 = vcombine.low %v8791_v10, %v9920_v11  ;;  %v8793_v13 = vld [vmem:[#allocation2 + $0x144] sm:$0xf]  ;;  %v9926_v16 = vld [vmem:[#allocation2 + $0x148] sm:$0xf] }
 0x162   :  { %v1774_v21 = vor.u32 %v1773_v7, %v1769_v26  ;;  %8566 = vmatprep.subr.msk.bf16.mxu0 %vm2077_vm10, %v7795_v24  ;;  %v2480_v1 = vsel %vm2077_vm10, %v7803_v62, 0  ;;  %v7812_v20 = vcombine.low %v8793_v13, %v9926_v16  ;;  %v9930_v24 = vld [vmem:[#allocation2 + $0x7c] sm:$0xf]  ;;  %v8797_v7 = vld [vmem:[#allocation2 + $0xe4] sm:$0xf] }
 0x163   :  { %v1770_v42 = vsel %vm9364_vm11, %v1765_v9, %v1769_v26  ;;  %v2435_v6 = vsel %vm2077_vm10, %v7788_v31, 0  ;;  %v7797_v26 = vcombine.low %v8795_v22, %v9930_v24  ;;  %v9933_v34 = vld [vmem:[#allocation2 + $0xe8] sm:$0xf]  ;;  %v8801_v43 = vld [vmem:[#allocation2 + $0xf0] sm:$0xf] }
 0x164   :  { %v1775_v47 = vrot.slane %v1774_v21, 4  ;;  %v7804_v9 = vcombine.low %v8797_v7, %v9933_v34  ;;  %v9937_v21 = vld [vmem:[#allocation2 + $0x1c] sm:$0xf]  ;;  %v9957_v62 = vld [vmem:[#allocation2 + $0x100] sm:$0xf] }
 0x165   :  { %v8808_v3 = vld [vmem:[#allocation2 + $0xfc] sm:$0xf]  ;;  %12686 = vst [vmem:[#allocation25_spill] sm:$0xff] %v9957_v62  ;;  %v8810_v31 = vld [vmem:[#allocation2 + $0x30] sm:$0xf] }
 0x166   :  { %v1780_v51 = vsel %vm9364_vm11, %v1775_v47, %v1779_v36  ;;  %v8800_v36 = vld [vmem:[#allocation2 + $0x18] sm:$0xf]  ;;  %v7806_v10 = vcombine.low %v8808_v3, %v9957_v62  ;;  %v2483_v7 = vsel %vm2077_vm10, %v7804_v9, 0  ;;  %v8817_v22 = vld [vmem:[#allocation2 + $0x84] sm:$0xf] }
 0x167   :  { %v7775_v52 = vcombine.low %v1770_v42, %v1780_v51  ;;  %v7789_v37 = vcombine.low %v8800_v36, %v9937_v21  ;;  %v9940_v42 = vld [vmem:[#allocation2 + $0xf4] sm:$0xf]  ;;  %v9943_v51 = vld [vmem:[#allocation2 + $0x8] sm:$0x1]  ;;  %v8813_v36 = vld [vmem:[#allocation2 + $0x150] sm:$0xf] }
 0x168   :  { %8179 = vmatmul.mubr.msk.bf16.vlgmr.msra.gmra.mrb[0].mxu0 %vm2077_vm10, %v8788_v63  ;;  %v7805_v47 = vcombine.low %v8801_v43, %v9940_v42  ;;  %v8815_v43 = vld [vmem:[#allocation2 + $0x108] sm:$0xf]  ;;  %v8825_v46 = vld [vmem:[#allocation2 + $0x3c] sm:$0xf]  ;;  %v10018_v32 = vld [vmem:[#allocation2 + $0xa0] sm:$0xf] }
 0x169   :  { %v2151_v30 = vsel %vm2077_vm10, %v7775_v52, 0  ;;  %8199 = vmatpush3.bf16.xpose.msra.mxu0 %v2432_v27  ;;  %8214 = vmatprep.mubr.msk.bf16.mxu0 %vm2077_vm10, %v9911_v54  ;;  %v9979_v9 = vld [vmem:[#allocation2 + $0x88] sm:$0xf]  ;;  %v9982_v52 = vld [vmem:[#allocation2 + $0x15c] sm:$0xf] }
 0x16a   :  { %8195 = vmatpush3.bf16.xpose.msra.mxu1 %v2151_v30  ;;  %8567 = vmatprep.subr.msk.bf16.mxu0 %vm2077_vm10, %v7796_v38  ;;  %v9952_v30 = vld [vmem:[#allocation2 + $0xe0] sm:$0x1]  ;;  %v7798_v38 = vcombine.low %v8817_v22, %v9979_v9  ;;  %v9999_v22 = vld [vmem:[#allocation2 + $0x16c] sm:$0xf]  ;;  %v2629_v62 = vld [vmem:[#allocation2 + $0xd8] sm:$0xe] }
 0x16b   :  { %8574 = vmatprep.subr.msk.bf16.mxu1 %vm2077_vm10, %v7811_v55  ;;  %v9946_v55 = vld [vmem:[#allocation2 + $0x28] sm:$0xf]  ;;  %v2622_v39 = vld [vmem:[#allocation2 + $0x6c] sm:$0xe] }
 0x16c   :  { %v7790_v27 = vcombine.low %v8804_v45, %v9946_v55  ;;  %v9970_v45 = vld [vmem:[#allocation2 + $0x10c] sm:$0xf] }
 0x16d   :  { %12688 = vst [vmem:[#allocation27_spill] sm:$0xff] %v9970_v45  ;;  %v7807_v3 = vcombine.low %v8815_v43, %v9970_v45  ;;  %v7792_v43 = vcombine.low %v8825_v46, %v9666_v4  ;;  %v10022_v46 = vld [vmem:[#allocation2 + $0x174] sm:$0xf]  ;;  %v2882_v45 = vrot.slane %v9904_v53, 5  ;;  %v10043_v53 = vsel %vm2077_vm10, %v7808_v8, 0 }
 0x16e   :  { %v9989_v35 = vsel %vm2077_vm10, %v7790_v27, 0  ;;  %v10005_v27 = vsel %vm2077_vm10, %v7806_v10, 0  ;;  %v10024_v10 = vld [vmem:[#allocation2 + $0x178] sm:$0xf]  ;;  %v2772_v8 = vrot.slane %v2770_v12, 4 }
 0x16f   :  { %v10014_v14 = vsel %vm2077_vm10, %v7807_v3, 0  ;;  %v2621_v3 = vld [vmem:[#allocation2 + $0x60] sm:$0xe]  ;;  %v10033_v4 = vsel %vm2077_vm10, %v7792_v43, 0 }
 0x171   :  { %8197 = vmatmul.mubr.msk.bf16.vlgmr.msra.gmra.mrb[0].mxu1 %vm2077_vm10, %v8788_v63  ;;  %8201 = vmatpush3.bf16.xpose.msra.mxu0 %v2435_v6  ;;  %v9963_v6 = vld [vmem:[#allocation2 + $0x140] sm:$0x1]  ;;  %v9977_v63 = vsel %vm2077_vm10, %v7805_v47, 0  ;;  %v2714_v47 = vrot.slane %v9895_v40, 5  ;;  %v2826_v40 = vrot.slane %v9916_v0, 5  ;;  %v7829_v0 = vrot.slane %v2621_v3, 9 }
 0x172   :  { %8217 = vmatpush3.bf16.xpose.msra.mxu1 %v2480_v1  ;;  %8568 = vmatprep.subr.msk.bf16.mxu0 %vm2077_vm10, %v7797_v26  ;;  %v9960_v1 = vld [vmem:[#allocation2 + $0x34] sm:$0xf]  ;;  %v12692_v3 = vcombine.low %v9875_v61, %v9879_v5 }
 0x173   :  { %8575 = vmatprep.subr.msk.bf16.mxu1 %vm2077_vm10, %v7812_v20  ;;  %12687 = vst [vmem:[#allocation26_spill] sm:$0xff] %v9960_v1  ;;  %v7791_v13 = vcombine.low %v8810_v31, %v9960_v1  ;;  %v9967_v20 = vld [vmem:[#allocation2 + $0x154] sm:$0xf]  ;;  %8232 = vmatprep.mubr.msk.bf16.mxu1 %vm2077_vm10, %v9911_v54  ;;  %v2438_v31 = vsel %vm2077_vm10, %v7789_v37, 0  ;;  %v10016_v54 = vld [vmem:[#allocation2 + $0x9c] sm:$0xf]  ;;  %v7793_v1 = vcombine.low %v9737_v59, %v9764_v57 }
 0x174   :  { %v7813_v26 = vcombine.low %v8813_v36, %v9967_v20  ;;  %v9984_v36 = vld [vmem:[#allocation2 + $0x160] sm:$0xf]  ;;  %v9993_v37 = vld [vmem:[#allocation2 + $0x94] sm:$0xf]  ;;  %v2716_v43 = vrot.slane %v2714_v47, 4  ;;  %v10063_v59 = vsel %vm2077_vm10, %v7809_v23, 0  ;;  %v10083_v49 = vsel %vm10053_vm14, %v7829_v0, %v2770_v12 }
 0x175   :  { %v10008_v33 = vsel %vm2077_vm10, %v7791_v13, 0  ;;  %v2637_v13 = vld [vmem:[#allocation2 + $0x138] sm:$0xe]  ;;  %v2828_v57 = vrot.slane %v2826_v40, 4  ;;  %v2614_v0 = vld [vmem:[#allocation2 + $0xc] sm:$0xe] }
 0x179   :  { %8203 = vmatpush3.bf16.xpose.msra.mxu0 %v2438_v31  ;;  %v7821_v31 = vrot.slane %v2613_v56, 9  ;;  %v7837_v56 = vrot.slane %v2629_v62, 9 }
 0x17a   :  { %8219 = vmatpush3.bf16.xpose.msra.mxu1 %v2483_v7  ;;  %8569 = vmatprep.subr.msk.bf16.mxu0 %vm2077_vm10, %v7798_v38  ;;  %v7794_v7 = vcombine.low %v9858_v41, %v9860_v29  ;;  %v7845_v41 = vrot.slane %v2637_v13, 9  ;;  %v10060_v29 = vsel %vm2077_vm10, %v7793_v1, 0  ;;  %v10073_v13 = vsel %vm2077_vm10, %v12692_v3, 0  ;;  %v2638_v3 = vld [vmem:[#allocation2 + $0x144] sm:$0xe] }
 0x17b   :  { %8576 = vmatprep.subr.msk.bf16.mxu1 %vm2077_vm10, %v7813_v26  ;;  %v2884_v26 = vrot.slane %v2882_v45, 4  ;;  %v2715_v62 = vsel %vm10053_vm14, %v7821_v31, %v2714_v47  ;;  %v12693_v1 = vrot.slane %v9943_v51, 5  ;;  %v2889_v38 = vrot.slane %v9926_v16, 5 }
 0x17c   :  { %v10067_v48 = vsel %vm2077_vm10, %v7794_v7, 0  ;;  %v12694_v7 = vrot.slane %v9949_v50, 5  ;;  %v2721_v47 = vrot.slane %v9920_v11, 5  ;;  %v10095_v51 = vsel %vm10053_vm14, %v7845_v41, %v2882_v45 }
 0x17d   :  { %v2718_v23 = vsel %vm10053_vm14, %v2716_v43, %v12693_v1  ;;  %v12695_v31 = vrot.slane %v9963_v6, 5  ;;  %v10105_v50 = vsel %vm10053_vm14, %v7837_v56, %v2826_v40  ;;  %v7830_v43 = vrot.slane %v2622_v39, 9 }
 0x17e   :  { %v10089_v61 = vsel %vm10053_vm14, %v2772_v8, %v12694_v7  ;;  %v7854_v11 = vcombine.low %v2715_v62, %v2718_v23  ;;  %v12696_v16 = vrot.slane %v9952_v30, 5  ;;  %v2779_v45 = vrot.slane %v2777_v60, 4  ;;  %v8830_v8 = vld [vmem:[#allocation2 + $0x74] sm:$0x1] }
 0x17f   :  { %v10101_v12 = vsel %vm10053_vm14, %v2884_v26, %v12695_v31  ;;  %v2780_v41 = vrot.slane %v8830_v8, 5  ;;  %v12697_v26 = vcombine.low %v9982_v52, %v9984_v36  ;;  %v12698_v39 = vcombine.low %v9991_v17, %v9993_v37  ;;  %v8832_v52 = vld [vmem:[#allocation2 + $0x14] sm:$0x1] }
 0x180   :  { %v2830_v6 = vsel %vm10053_vm14, %v2828_v57, %v12696_v16  ;;  %v7846_v30 = vrot.slane %v2638_v3, 9  ;;  %v2630_v57 = vld [vmem:[#allocation2 + $0xe4] sm:$0xe]  ;;  %v2833_v56 = vrot.slane %v9933_v34, 5  ;;  %v2891_v62 = vrot.slane %v2889_v38, 4 }
 0x181   :  { %8205 = vmatpush3.bf16.xpose.msra.mxu0 %v9989_v35  ;;  %v7822_v1 = vrot.slane %v2614_v0, 9  ;;  %v2723_v23 = vrot.slane %v2721_v47, 4  ;;  %v2724_v7 = vrot.slane %v8832_v52, 5  ;;  %v7870_v17 = vcombine.low %v10105_v50, %v2830_v6  ;;  %v2623_v3 = vld [vmem:[#allocation2 + $0x78] sm:$0xe] }
 0x182   :  { %8221 = vmatpush3.bf16.xpose.msra.mxu1 %v9977_v63  ;;  %8570 = vmatprep.subr.msk.bf16.mxu0 %vm2077_vm10, %v12698_v39  ;;  %v8831_v63 = vld [vmem:[#allocation2 + $0x14c] sm:$0x1]  ;;  %v10129_v16 = vsel %vm10053_vm14, %v7830_v43, %v2777_v60  ;;  %v2728_v8 = vrot.slane %v9937_v21, 5  ;;  %v10137_v34 = vsel %vm10053_vm14, %v2779_v45, %v2780_v41  ;;  %v7838_v0 = vrot.slane %v2630_v57, 9  ;;  %v2615_v39 = vld [vmem:[#allocation2 + $0x18] sm:$0xe] }
 0x183   :  { %8577 = vmatprep.subr.msk.bf16.mxu1 %vm2077_vm10, %v12697_v26  ;;  %v2892_v40 = vrot.slane %v8831_v63, 5  ;;  %v10133_v26 = vsel %vm2077_vm10, %v7854_v11, 0  ;;  %v2840_v63 = vrot.slane %v9940_v42, 5  ;;  %v10142_v50 = vsel %vm10053_vm14, %v7846_v30, %v2889_v38  ;;  %v8833_v43 = vld [vmem:[#allocation2 + $0xec] sm:$0x1] }
 0x184   :  { %v2835_v60 = vrot.slane %v2833_v56, 4  ;;  %v2836_v6 = vrot.slane %v8833_v43, 5  ;;  %v2784_v21 = vrot.slane %v9930_v24, 5  ;;  %v2631_v52 = vld [vmem:[#allocation2 + $0xf0] sm:$0xe]  ;;  %v2722_v45 = vsel %vm10053_vm14, %v7822_v1, %v2721_v47 }
 0x185   :  { %v10147_v11 = vsel %vm10053_vm14, %v2891_v62, %v2892_v40  ;;  %v2725_v42 = vsel %vm10053_vm14, %v2723_v23, %v2724_v7  ;;  %v2639_v41 = vld [vmem:[#allocation2 + $0x150] sm:$0xe]  ;;  %v2896_v38 = vrot.slane %v9967_v20, 5  ;;  %v7831_v30 = vrot.slane %v2623_v3, 9  ;;  %v8834_v43 = vld [vmem:[#allocation2 + $0x20] sm:$0x1] }
 0x186   :  { %v7823_v57 = vrot.slane %v2615_v39, 9  ;;  %v2730_v31 = vrot.slane %v2728_v8, 4  ;;  %v2731_v35 = vrot.slane %v8834_v43, 5  ;;  %v2834_v24 = vsel %vm10053_vm14, %v7838_v0, %v2833_v56  ;;  %v8835_v62 = vld [vmem:[#allocation2 + $0xf8] sm:$0x1] }
 0x187   :  { %v7839_v40 = vrot.slane %v2631_v52, 9  ;;  %v2842_v47 = vrot.slane %v2840_v63, 4  ;;  %v2843_v1 = vrot.slane %v8835_v62, 5  ;;  %v12699_v23 = vcombine.low %v9997_v18, %v9999_v22  ;;  %v8836_v7 = vld [vmem:[#allocation2 + $0x80] sm:$0x1] }
 0x188   :  { %v12700_v20 = vcombine.low %v10016_v54, %v10018_v32  ;;  %v2787_v56 = vrot.slane %v8836_v7, 5  ;;  %v7847_v3 = vrot.slane %v2639_v41, 9  ;;  %v10169_v0 = vsel %vm2077_vm10, %v7870_v17, 0  ;;  %v8837_v52 = vld [vmem:[#allocation2 + $0x158] sm:$0x1] }
 0x189   :  { %8207 = vmatpush3.bf16.xpose.msra.mxu0 %v10008_v33  ;;  %v2837_v33 = vsel %vm10053_vm14, %v2835_v60, %v2836_v6  ;;  %v2898_v39 = vrot.slane %v2896_v38, 4  ;;  %v2899_v43 = vrot.slane %v8837_v52, 5  ;;  %v2624_v62 = vld [vmem:[#allocation2 + $0x84] sm:$0xe]  ;;  %v7855_v54 = vcombine.low %v2722_v45, %v2725_v42  ;;  %v2640_v41 = vld [vmem:[#allocation2 + $0x15c] sm:$0xe] }
 0x18a   :  { %8223 = vmatpush3.bf16.xpose.msra.mxu1 %v10005_v27  ;;  %8571 = vmatprep.subr.msk.bf16.mxu0 %vm2077_vm10, %v12700_v20  ;;  %v2786_v27 = vrot.slane %v2784_v21, 4  ;;  %v2732_v60 = vsel %vm10053_vm14, %v2730_v31, %v2731_v35  ;;  %v2791_v6 = vrot.slane %v9979_v9, 5  ;;  %v7871_v20 = vcombine.low %v2834_v24, %v2837_v33  ;;  %v8842_v33 = vld [vmem:[#allocation2 + $0x38] sm:$0x1] }
 0x18b   :  { %8578 = vmatprep.subr.msk.bf16.mxu1 %vm2077_vm10, %v12699_v23  ;;  %v2729_v23 = vsel %vm10053_vm14, %v7823_v57, %v2728_v8  ;;  %v2841_v7 = vsel %vm10053_vm14, %v7839_v40, %v2840_v63  ;;  %v2844_v52 = vsel %vm10053_vm14, %v2842_v47, %v2843_v1  ;;  %v10186_v45 = vsel %vm10053_vm14, %v7831_v30, %v2784_v21  ;;  %v2616_v8 = vld [vmem:[#allocation2 + $0x24] sm:$0xe]  ;;  %v8838_v47 = vld [vmem:[#allocation2 + $0x8c] sm:$0x1] }
 0x18c   :  { %v10190_v35 = vsel %vm10053_vm14, %v2786_v27, %v2787_v56  ;;  %v10194_v9 = vsel %vm10053_vm14, %v7847_v3, %v2896_v38  ;;  %v7832_v31 = vrot.slane %v2624_v62, 9  ;;  %v10198_v63 = vsel %vm10053_vm14, %v2898_v39, %v2899_v43  ;;  %v10226_v39 = vld [vmem:[#allocation2 + $0x164] sm:$0x1]  ;;  %v2632_v43 = vld [vmem:[#allocation2 + $0xfc] sm:$0xe] }
 0x18d   :  { %12701 = vst [vmem:[#allocation29_spill] sm:$0xff] %v10198_v63  ;;  %v7856_v42 = vcombine.low %v2729_v23, %v2732_v60  ;;  %v7848_v57 = vrot.slane %v2640_v41, 9  ;;  %v2903_v24 = vrot.slane %v9984_v36, 5  ;;  %v10202_v21 = vsel %vm2077_vm10, %v7855_v54, 0  ;;  %v2617_v23 = vld [vmem:[#allocation2 + $0x30] sm:$0xe] }
 0x18e   :  { %v7872_v30 = vcombine.low %v2841_v7, %v2844_v52  ;;  %v2793_v40 = vrot.slane %v2791_v6, 4  ;;  %v2794_v1 = vrot.slane %v8838_v47, 5  ;;  %v10207_v38 = vsel %vm2077_vm10, %v7871_v20, 0  ;;  %v12705_v60 = vld [vmem:[#allocation26_spill] sm:$0xff]  ;;  %v8840_v7 = vld [vmem:[#allocation2 + $0x2c] sm:$0x1] }
 0x18f   :  { %v7824_v27 = vrot.slane %v2616_v8, 9  ;;  %v2735_v36 = vrot.slane %v9946_v55, 5  ;;  %v12702_v56 = vcombine.low %v10022_v46, %v10024_v10  ;;  %v12703_v3 = vcombine.low %v9708_v2, %v9715_v15  ;;  %v12704_v46 = vld [vmem:[#allocation25_spill] sm:$0xff]  ;;  %v12707_v8 = vld [vmem:[#allocation27_spill] sm:$0xff] }
 0x190   :  { %v2906_v55 = vrot.slane %v10226_v39, 5  ;;  %v2847_v62 = vrot.slane %v12704_v46, 5  ;;  %v10231_v54 = vsel %vm2077_vm10, %v7856_v42, 0  ;;  %v10235_v2 = vsel %vm10053_vm14, %v7848_v57, %v2903_v24  ;;  %v8841_v39 = vld [vmem:[#allocation2 + $0x104] sm:$0x1] }
 0x191   :  { %8209 = vmatpush3.bf16.xpose.msra.mxu0 %v10033_v4  ;;  %v10224_v4 = vsel %vm10053_vm14, %v7832_v31, %v2791_v6  ;;  %v2905_v15 = vrot.slane %v2903_v24, 4  ;;  %v2742_v41 = vrot.slane %v12705_v60, 5  ;;  %v10239_v6 = vsel %vm2077_vm10, %v7872_v30, 0  ;;  %v2625_v31 = vld [vmem:[#allocation2 + $0x90] sm:$0xe] }
 0x192   :  { %8225 = vmatpush3.bf16.xpose.msra.mxu1 %v10014_v14  ;;  %8572 = vmatprep.subr.msk.bf16.mxu0 %vm2077_vm10, %v12703_v3  ;;  %12706 = vst [vmem:[#allocation25_spill] sm:$0xff] %v10239_v6  ;;  %v10243_v20 = vsel %vm10053_vm14, %v2793_v40, %v2794_v1  ;;  %v2738_v52 = vrot.slane %v8840_v7, 5  ;;  %v2854_v42 = vrot.slane %v12707_v8, 5  ;;  %v10248_v57 = vsel %vm10053_vm14, %v7824_v27, %v2735_v36  ;;  %v2633_v3 = vld [vmem:[#allocation2 + $0x108] sm:$0xe] }
 0x193   :  { %8579 = vmatprep.subr.msk.bf16.mxu1 %vm2077_vm10, %v12702_v56  ;;  %v2737_v24 = vrot.slane %v2735_v36, 4  ;;  %v7840_v47 = vrot.slane %v2632_v43, 9  ;;  %v2798_v56 = vrot.slane %v9993_v37, 5  ;;  %v2849_v30 = vrot.slane %v2847_v62, 4  ;;  %v2641_v60 = vld [vmem:[#allocation2 + $0x168] sm:$0xe] }
 0x194   :  { %v2850_v46 = vrot.slane %v8841_v39, 5  ;;  %v2910_v40 = vrot.slane %v9999_v22, 5  ;;  %v7825_v1 = vrot.slane %v2617_v23, 9  ;;  %v7833_v7 = vrot.slane %v2625_v31, 9  ;;  %v8843_v27 = vld [vmem:[#allocation2 + $0x98] sm:$0x1] }
 0x195   :  { %v2744_v14 = vrot.slane %v2742_v41, 4  ;;  %v2745_v8 = vrot.slane %v8842_v33, 5  ;;  %v2805_v17 = vrot.slane %v10018_v32, 5  ;;  %v2801_v18 = vrot.slane %v8843_v27, 5  ;;  %v8844_v6 = vld [vmem:[#allocation2 + $0x110] sm:$0x1] }
 0x196   :  { %v7841_v36 = vrot.slane %v2633_v3, 9  ;;  %v2856_v43 = vrot.slane %v2854_v42, 4  ;;  %v2857_v37 = vrot.slane %v8844_v6, 5  ;;  %v2626_v63 = vld [vmem:[#allocation2 + $0x9c] sm:$0xe]  ;;  %v2739_v22 = vsel %vm10053_vm14, %v2737_v24, %v2738_v52  ;;  %v12709_v3 = vld [vmem:[#allocation18_spill] sm:$0xff] }
 0x197   :  { %v2848_v23 = vsel %vm10053_vm14, %v7840_v47, %v2847_v62  ;;  %v2800_v33 = vrot.slane %v2798_v56, 4  ;;  %v7849_v31 = vrot.slane %v2641_v60, 9  ;;  %v12708_v32 = vcombine.low %v9723_v25, %v9727_v58  ;;  %v12710_v6 = vld [vmem:[#allocation19_spill] sm:$0xff]  ;;  %v8845_v52 = vld [vmem:[#allocation2 + $0x170] sm:$0x1] }
 0x198   :  { %v12711_v39 = vcombine.low %v12709_v3, %v12710_v6  ;;  %v2913_v24 = vrot.slane %v8845_v52, 5  ;;  %v2743_v62 = vsel %vm10053_vm14, %v7825_v1, %v2742_v41  ;;  %v2746_v47 = vsel %vm10053_vm14, %v2744_v14, %v2745_v8  ;;  %v8846_v60 = vld [vmem:[#allocation2 + $0xa4] sm:$0x1]  ;;  %v2618_v8 = vld [vmem:[#allocation2 + $0x3c] sm:$0xe] }
 0x199   :  { %8211 = vmatpush3.bf16.xpose.msra.mxu0 %v10060_v29  ;;  %v2851_v29 = vsel %vm10053_vm14, %v2849_v30, %v2850_v46  ;;  %v7834_v25 = vrot.slane %v2626_v63, 9  ;;  %v2807_v58 = vrot.slane %v2805_v17, 4  ;;  %v2808_v27 = vrot.slane %v8846_v60, 5 }
 0x19a   :  { %8227 = vmatpush3.bf16.xpose.msra.mxu1 %v10043_v53  ;;  %8573 = vmatprep.subr.msk.bf16.mxu0 %vm2077_vm10, %v12711_v39  ;;  %v2912_v53 = vrot.slane %v2910_v40, 4  ;;  %v2855_v30 = vsel %vm10053_vm14, %v7841_v36, %v2854_v42  ;;  %v2858_v46 = vsel %vm10053_vm14, %v2856_v43, %v2857_v37  ;;  %v2917_v6 = vrot.slane %v10024_v10, 5 }
 0x19b   :  { %8580 = vmatprep.subr.msk.bf16.mxu1 %vm2077_vm10, %v12708_v32  ;;  %v2642_v32 = vld [vmem:[#allocation2 + $0x174] sm:$0xe]  ;;  %v10282_v41 = vsel %vm10053_vm14, %v2905_v15, %v2906_v55  ;;  %v7857_v63 = vcombine.low %v10248_v57, %v2739_v22  ;;  %v7873_v14 = vcombine.low %v2848_v23, %v2851_v29  ;;  %v10287_v1 = vsel %vm10053_vm14, %v7833_v7, %v2798_v56  ;;  %v8847_v7 = vld [vmem:[#allocation2 + $0x17c] sm:$0x1]  ;;  %v8848_v22 = vld [vmem:[#allocation2 + $0x40] sm:$0xf] }
 0x19c   :  { %v10291_v42 = vsel %vm10053_vm14, %v2800_v33, %v2801_v18  ;;  %v10295_v36 = vsel %vm10053_vm14, %v7849_v31, %v2910_v40  ;;  %v7858_v10 = vcombine.low %v2743_v62, %v2746_v47  ;;  %v7850_v43 = vrot.slane %v2642_v32, 9  ;;  %v10309_v33 = vld [vmem:[#allocation2 + $0x114] sm:$0xe]  ;;  %v12716_v62 = vld [vmem:[#allocation24_spill] sm:$0xff] }
 0x19d   :  { %v10299_v55 = vsel %vm10053_vm14, %v2912_v53, %v2913_v24  ;;  %v7874_v15 = vcombine.low %v2855_v30, %v2858_v46  ;;  %v10303_v57 = vsel %vm10053_vm14, %v7834_v25, %v2805_v17  ;;  %v10307_v56 = vsel %vm10053_vm14, %v2807_v58, %v2808_v27  ;;  %v197_v53 = vld [vmem:[#allocation3 + $0x78] sm:$0xf]  ;;  %v8850_v27 = vld [vmem:[#allocation2 + $0x118] sm:$0xf]  ;;  %v230_v30 = vld [vmem:[#allocation3 + $0xfc] sm:$0xf] }
 0x19e   :  { %v2919_v18 = vrot.slane %v2917_v6, 4  ;;  %v2920_v37 = vrot.slane %v8847_v7, 5  ;;  %v7826_v40 = vrot.slane %v2618_v8, 9  ;;  %v2749_v23 = vrot.slane %v8848_v22, 5  ;;  %v229_v25 = vld [vmem:[#allocation3 + $0xf8] sm:$0xf] }
 0x19f   :  { %v10316_v31 = vsel %vm2077_vm10, %v7857_v63, 0  ;;  %v10319_v39 = vsel %vm2077_vm10, %v7873_v14, 0  ;;  %v12712_v52 = vcombine.low %v9813_v19, %v9824_v44  ;;  %v10334_v24 = vsel %vm2077_vm10, %v7858_v10, 0  ;;  %v198_v19 = vld [vmem:[#allocation3 + $0x7c] sm:$0xf] }
 0x1a0   :  { %v10340_v47 = vsel %vm10053_vm14, %v7850_v43, %v2917_v6  ;;  %v10343_v58 = vsel %vm2077_vm10, %v7874_v15, 0  ;;  %v7842_v60 = vrot.slane %v10309_v33, 9  ;;  %v2861_v32 = vrot.slane %v8850_v27, 5 }
 0x1a1   :  { %8213 = vmatpush3.bf16.xpose.msra.mxu0 %v10067_v48  ;;  %v12713_v48 = vcombine.low %v10083_v49, %v10089_v61  ;;  %v8849_v49 = vld [vmem:[#allocation2 + $0x44] sm:$0x1]  ;;  %v10348_v46 = vsel %vm10053_vm14, %v2919_v18, %v2920_v37  ;;  %v10352_v6 = vsel %vm10053_vm14, %v7826_v40, %v2749_v23  ;;  %v2751_v63 = vrot.slane %v2749_v23, 4  ;;  %v985_v40 = vld [vmem:[#allocation2 + $0xc0] sm:$0xf] }
 0x1a2   :  { %8229 = vmatpush3.bf16.xpose.msra.mxu1 %v10063_v59  ;;  %v2752_v61 = vrot.slane %v8849_v49, 5  ;;  %12714 = vst [vmem:[#allocation26_spill] sm:$0xff] %v10348_v46  ;;  %v490_v14 = vshrl.u32 %v197_v53, 16  ;;  %v493_v8 = vshll.u32 %v197_v53, 16  ;;  %v498_v10 = vshrl.u32 %v198_v19, 16  ;;  %v10356_v37 = vld [vmem:[#allocation6 + $0x10] sm:$0xff]  }
 0x1a3   :  { %8581 = vmatprep.subr.msk.bf16.mxu1 %vm2077_vm10, %v12712_v52  ;;  %8582 = vmatprep.subr.msk.bf16.mxu0 %vm2077_vm10, %v12713_v48  ;;  %v501_v43 = vshll.u32 %v198_v19, 16  ;;  %v762_v15 = vshrl.u32 %v229_v25, 16  ;;  %v765_v22 = vshll.u32 %v229_v25, 16  ;;  %v770_v33 = vshrl.u32 %v230_v30, 16  ;;  %v8851_v49 = vld [vmem:[#allocation2 + $0x11c] sm:$0x1] }
 0x1a4   :  { %v492_v7 = vrot.slane %v490_v14, 7  ;;  %v773_v52 = vshll.u32 %v230_v30, 16  ;;  %v2864_v18 = vrot.slane %v8851_v49, 5  ;;  %v10358_v27 = vrot.slane %v498_v10, 7  ;;  %v8852_v53 = vld [vmem:[#allocation2 + $0x4c] sm:$0xf] }
 0x1a5   :  { %v764_v23 = vrot.slane %v762_v15, 7  ;;  %v2756_v19 = vrot.slane %v8852_v53, 5  ;;  %v10362_v59 = vrot.slane %v770_v33, 7  ;;  %v1097_v30 = vld [vmem:[#allocation2 + $0x198] sm:$0xf]  ;;  %v2863_v49 = vrot.slane %v2861_v32, 4 }
 0x1a6   :  { %12715 = vst [vmem:[#allocation27_spill] sm:$0xff] %v10358_v27  ;;  %v495_v14 = vor.u32 %v493_v8, %v492_v7  ;;  %v496_v25 = vrot.slane %v492_v7, 4  ;;  %v2619_v48 = vld [vmem:[#allocation2 + $0x48] sm:$0xe]  ;;  %v503_v10 = vor.u32 %v501_v43, %v10358_v27  ;;  %v12717_v17 = vcombine.low %v10095_v51, %v10101_v12  ;;  %v8854_v53 = vld [vmem:[#allocation2 + $0x184] sm:$0xf] }
 0x1a7   :  { %v767_v29 = vor.u32 %v765_v22, %v764_v23  ;;  %v768_v15 = vrot.slane %v764_v23, 4  ;;  %v12718_v8 = vcombine.low %v10129_v16, %v10137_v34  ;;  %v2627_v7 = vld [vmem:[#allocation2 + $0xa8] sm:$0xe]  ;;  %v2924_v3 = vrot.slane %v8854_v53, 5 }
 0x1a8   :  { %8215 = vmatmul.mubr.msk.bf16.vlgmr.msra.gmra.mrb[0].mxu0 %vm2077_vm10, %v12716_v62  ;;  %v986_v43 = vsel %vm9330_vm6, %v495_v14, %v985_v40  ;;  %v775_v22 = vor.u32 %v773_v52, %v10362_v59  ;;  %v10380_v51 = vsel %vm10053_vm14, %v2751_v63, %v2752_v61  ;;  %v12720_v12 = vld [vmem:[#allocation17_spill] sm:$0xff]  ;;  %v504_v34 = vsel %vm9325_vm5, %v496_v25, %v503_v10  ;;  %v8855_v14 = vld [vmem:[#allocation2 + $0x50] sm:$0x1] }
 0x1a9   :  { %8235 = vmatpush3.bf16.xpose.msra.mxu0 %v10133_v26  ;;  %v2643_v26 = vld [vmem:[#allocation2 + $0x180] sm:$0xe]  ;;  %8250 = vmatprep.mubr.msk.bf16.mxu0 %vm2077_vm10, %v10356_v37  ;;  %987 = vst [vmem:[#allocation2 + $0xc0] sm:$0xf] %v986_v43  ;;  %v1098_v23 = vsel %vm9330_vm6, %v767_v29, %v1097_v30  ;;  %v2758_v40 = vrot.slane %v2756_v19, 4  ;;  %v2759_v52 = vrot.slane %v8855_v14, 5  ;;  %v2862_v63 = vsel %vm10053_vm14, %v7842_v60, %v2861_v32 }
 0x1aa   :  { %8231 = vmatpush3.bf16.xpose.msra.mxu1 %v10073_v13  ;;  %8583 = vmatprep.subr.msk.bf16.mxu0 %vm2077_vm10, %v12718_v8  ;;  %v8853_v13 = vld [vmem:[#allocation2 + $0xac] sm:$0xf]  ;;  %v7827_v8 = vrot.slane %v2619_v48, 9  ;;  %988 = vst.msk [vmem:[#allocation2 + $0xc4] sm:$0xf] %vm57_vm0, %v504_v34  ;;  %v776_v61 = vsel %vm9325_vm5, %v768_v15, %v775_v22  ;;  %v7835_v53 = vrot.slane %v2627_v7, 9  ;;  %v2865_v29 = vsel %vm10053_vm14, %v2863_v49, %v2864_v18 }
 0x1ab   :  { %8590 = vmatprep.subr.msk.bf16.mxu1 %vm2077_vm10, %v12717_v17  ;;  %v2812_v33 = vrot.slane %v8853_v13, 5  ;;  %v2868_v17 = vrot.slane %v12720_v12, 5  ;;  %v2635_v13 = vld [vmem:[#allocation2 + $0x120] sm:$0xe]  ;;  %1099 = vst [vmem:[#allocation2 + $0x198] sm:$0xf] %v1098_v23  ;;  %v7859_v15 = vcombine.low %v10352_v6, %v10380_v51  ;;  %v2760_v18 = vsel %vm10053_vm14, %v2758_v40, %v2759_v52 }
 0x1ac   :  { %v8856_v25 = vld [vmem:[#allocation2 + $0xb0] sm:$0x1]  ;;  %v7851_v43 = vrot.slane %v2643_v26, 9  ;;  %1100 = vst.msk [vmem:[#allocation2 + $0x19c] sm:$0xf] %vm57_vm0, %v776_v61  ;;  %v2926_v48 = vrot.slane %v2924_v3, 4  ;;  %v2757_v7 = vsel %vm10053_vm14, %v7827_v8, %v2756_v19  ;;  %v7875_v6 = vcombine.low %v2862_v63, %v2865_v29 }
 0x1ad   :  { %v2815_v10 = vrot.slane %v8856_v25, 5  ;;  %v2814_v46 = vrot.slane %v2812_v33, 4  ;;  %v8857_v30 = vld [vmem:[#allocation2 + $0x188] sm:$0x1]  ;;  %v7843_v22 = vrot.slane %v2635_v13, 9  ;;  %v2870_v16 = vrot.slane %v2868_v17, 4 }
 0x1ae   :  { %v2927_v12 = vrot.slane %v8857_v30, 5  ;;  %v8858_v34 = vld [vmem:[#allocation2 + $0x128] sm:$0x1]  ;;  %v2628_v32 = vld [vmem:[#allocation2 + $0xb4] sm:$0xe]  ;;  %v2931_v14 = vrot.slane %v9824_v44, 5  ;;  %v10410_v51 = vsel %vm10053_vm14, %v7835_v53, %v2812_v33  ;;  %v12723_v52 = vcombine.low %v10142_v50, %v10147_v11 }
 0x1af   :  { %v2871_v60 = vrot.slane %v8858_v34, 5  ;;  %v8859_v49 = vld [vmem:[#allocation2 + $0xb8] sm:$0xf]  ;;  %v2644_v23 = vld [vmem:[#allocation2 + $0x18c] sm:$0xe]  ;;  %v12724_v44 = vcombine.low %v10186_v45, %v10190_v35  ;;  %v7860_v50 = vcombine.low %v2757_v7, %v2760_v18  ;;  %v2869_v11 = vsel %vm10053_vm14, %v7843_v22, %v2868_v17  ;;  %v12725_v25 = vld [vmem:[#allocation20_spill] sm:$0xff] }
 0x1b0   :  { %v2819_v26 = vrot.slane %v8859_v49, 5  ;;  %v2620_v19 = vld [vmem:[#allocation2 + $0x54] sm:$0xe]  ;;  %v12722_v8 = vld [vmem:[#allocation21_spill] sm:$0xff]  ;;  %v8860_v33 = vld [vmem:[#allocation2 + $0xbc] sm:$0x1] }
 0x1b1   :  { %8233 = vmatmul.mubr.msk.bf16.vlgmr.msra.gmra.mrb[0].mxu1 %vm2077_vm10, %v12716_v62  ;;  %8237 = vmatpush3.bf16.xpose.msra.mxu0 %v10202_v21  ;;  %v10414_v62 = vsel %vm10053_vm14, %v7851_v43, %v2924_v3  ;;  %v2763_v40 = vrot.slane %v12722_v8, 5  ;;  %v10431_v21 = vsel %vm10053_vm14, %v2926_v48, %v2927_v12  ;;  %v7836_v3 = vrot.slane %v2628_v32, 9  ;;  %v2636_v61 = vld [vmem:[#allocation2 + $0x12c] sm:$0xe]  ;;  %v12726_v30 = vld [vmem:[#allocation22_spill] sm:$0xff]  ;;  %v8713_v49 = vld [vmem:[#allocation2 + $0xe4] sm:$0xff]  }
 0x1b2   :  { %8253 = vmatpush3.bf16.xpose.msra.mxu1 %v10169_v0  ;;  %8584 = vmatprep.subr.msk.bf16.mxu0 %vm2077_vm10, %v12724_v44  ;;  %v10427_v0 = vsel %vm10053_vm14, %v2814_v46, %v2815_v10  ;;  %v2822_v13 = vrot.slane %v8860_v33, 5  ;;  %v2872_v45 = vsel %vm10053_vm14, %v2870_v16, %v2871_v60  ;;  %v7852_v35 = vrot.slane %v2644_v23, 9  ;;  %v3682_v60 = vld [vmem:[#allocation2 + $0x6c] sm:$0xf]  ;;  %v3683_v23 = vld [vmem:[#allocation2 + $0x70] sm:$0xf] }
 0x1b3   :  { %8591 = vmatprep.subr.msk.bf16.mxu1 %vm2077_vm10, %v12723_v52  ;;  %8268 = vmatprep.mubr.msk.bf16.mxu1 %vm2077_vm10, %v10356_v37  ;;  %v2821_v63 = vrot.slane %v2819_v26, 4  ;;  %v2933_v53 = vrot.slane %v2931_v14, 4  ;;  %v2934_v10 = vrot.slane %v12725_v25, 5  ;;  %v2875_v43 = vrot.slane %v9879_v5, 5  ;;  %v8712_v18 = vld [vmem:[#allocation2 + $0xc] sm:$0xff]   ;;  %v12727_v52 = vld [vmem:[#allocation23_spill] sm:$0xff] }
 0x1b4   :  { %v10442_v29 = vsel %vm2077_vm10, %v7859_v15, 0  ;;  %v7828_v46 = vrot.slane %v2620_v19, 9  ;;  %v2765_v48 = vrot.slane %v2763_v40, 4  ;;  %v2766_v17 = vrot.slane %v12726_v30, 5  ;;  %v3730_v33 = vld [vmem:[#allocation2 + $0x144] sm:$0xf] }
 0x1b5   :  { %v10446_v12 = vsel %vm2077_vm10, %v7875_v6, 0  ;;  %v7876_v16 = vcombine.low %v2869_v11, %v2872_v45  ;;  %v7844_v34 = vrot.slane %v2636_v61, 9  ;;  %v10453_v5 = vsel %vm2077_vm10, %v7860_v50, 0  ;;  %v8720_v61 = vld [vmem:[#allocation2 + $0x24] sm:$0xff]   ;;  %v8721_v50 = vld [vmem:[#allocation2 + $0xfc] sm:$0xff]  }
 0x1b6   :  { %v10457_v15 = vsel %vm10053_vm14, %v7836_v3, %v2819_v26  ;;  %v10461_v7 = vsel %vm10053_vm14, %v7852_v35, %v2931_v14  ;;  %v10465_v6 = vsel %vm10053_vm14, %v2821_v63, %v2822_v13  ;;  %v10469_v19 = vsel %vm10053_vm14, %v2933_v53, %v2934_v10  ;;  %v8716_v26 = vld [vmem:[#allocation2 + $0x18] sm:$0xff]   ;;  %v8717_v3 = vld [vmem:[#allocation2 + $0xf0] sm:$0xff]   ;;  %v12728_v35 = vld [vmem:[#allocation29_spill] sm:$0xff] }
 0x1b7   :  { %v2877_v8 = vrot.slane %v2875_v43, 4  ;;  %v2878_v44 = vrot.slane %v12727_v52, 5  ;;  %v2764_v14 = vsel %vm10053_vm14, %v7828_v46, %v2763_v40  ;;  %v2767_v13 = vsel %vm10053_vm14, %v2765_v48, %v2766_v17  ;;  %v8724_v53 = vld [vmem:[#allocation2 + $0x30] sm:$0xff]   ;;  %v3731_v48 = vld [vmem:[#allocation2 + $0x148] sm:$0xf] }
 0x1b8   :  { %v3947_v11 = vshrl.u32 %v3682_v60, 16  ;;  %v3950_v45 = vshll.u32 %v3682_v60, 16  ;;  %v12729_v63 = vcombine.low %v10194_v9, %v12728_v35  ;;  %v2876_v40 = vsel %vm10053_vm14, %v7844_v34, %v2875_v43  ;;  %v8725_v34 = vld [vmem:[#allocation2 + $0x108] sm:$0xff]   ;;  %v8728_v60 = vld [vmem:[#allocation2 + $0x3c] sm:$0xff]   ;;  %v8729_v52 = vld [vmem:[#allocation2 + $0x114] sm:$0xff]  }
 0x1b9   :  { %8239 = vmatpush3.bf16.xpose.msra.mxu0 %v10231_v54  ;;  %v10487_v54 = vsel %vm2077_vm10, %v7876_v16, 0  ;;  %v3956_v25 = vshll.u32 %v3683_v23, 16  ;;  %v3960_v10 = vshrl.u32 %v3683_v23, 16  ;;  %v10492_v46 = vsel %vm2077_vm10, %v8712_v18, 0  ;;  %v3658_v18 = vld [vmem:[#allocation2 + $0xc] sm:$0xf] }
 0x1ba   :  { %8255 = vmatpush3.bf16.xpose.msra.mxu1 %v10207_v38  ;;  %v12730_v38 = vcombine.low %v10224_v4, %v10243_v20  ;;  %12731 = vst [vmem:[#allocation18_spill] sm:$0xff] %v10492_v46  ;;  %v10495_v9 = vsel %vm2077_vm10, %v8713_v49, 0  ;;  %v4331_v30 = vshrl.u32 %v3730_v33, 16  ;;  %v4334_v4 = vshll.u32 %v3730_v33, 16  ;;  %v8732_v33 = vld [vmem:[#allocation2 + $0x48] sm:$0xff]  }
 0x1bb   :  { %8592 = vmatprep.subr.msk.bf16.mxu1 %vm2077_vm10, %v12729_v63  ;;  %12732 = vst [vmem:[#allocation19_spill] sm:$0xff] %v10495_v9  ;;  %v7861_v20 = vcombine.low %v2764_v14, %v2767_v13  ;;  %v2879_v17 = vsel %vm10053_vm14, %v2877_v8, %v2878_v44  ;;  %v10500_v16 = vsel %vm2077_vm10, %v8716_v26, 0  ;;  %v10503_v43 = vsel %vm2077_vm10, %v8717_v3, 0  ;;  %v3684_v8 = vld [vmem:[#allocation2 + $0x74] sm:$0x1]  ;;  %v8733_v63 = vld [vmem:[#allocation2 + $0x120] sm:$0xff]  }
 0x1bc   :  { %8585 = vmatprep.subr.msk.bf16.mxu0 %vm2077_vm10, %v12730_v38  ;;  %12733 = vst [vmem:[#allocation24_spill] sm:$0xff] %v10500_v16  ;;  %12734 = vst [vmem:[#allocation14_spill] sm:$0xff] %v10503_v43  ;;  %v10506_v23 = vsel %vm2077_vm10, %v8720_v61, 0  ;;  %v10509_v49 = vsel %vm2077_vm10, %v8721_v50, 0  ;;  %v3949_v14 = vrot.slane %v3947_v11, 4  ;;  %v3952_v13 = vrot.slane %v3950_v45, 5 }
 0x1bd   :  { %12735 = vst [vmem:[#allocation17_spill] sm:$0xff] %v10506_v23  ;;  %12736 = vst [vmem:[#allocation13_spill] sm:$0xff] %v10509_v49  ;;  %v10511_v44 = vrot.slane %v3956_v25, 5  ;;  %v3962_v26 = vrot.slane %v3960_v10, 4  ;;  %v4340_v35 = vshll.u32 %v3731_v48, 16  ;;  %v4344_v3 = vshrl.u32 %v3731_v48, 16 }
 0x1be   :  { %v4333_v38 = vrot.slane %v4331_v30, 4  ;;  %v4336_v32 = vrot.slane %v4334_v4, 5  ;;  %v3755_v22 = vshrl.u32 %v3658_v18, 16  ;;  %v3758_v28 = vshll.u32 %v3658_v18, 16  ;;  %v8736_v45 = vld [vmem:[#allocation2 + $0x54] sm:$0xff]   ;;  %v8737_v25 = vld [vmem:[#allocation2 + $0x12c] sm:$0xff]  }
 0x1bf   :  { %v7877_v61 = vcombine.low %v2876_v40, %v2879_v17  ;;  %v10514_v23 = vsel %vm2077_vm10, %v8724_v53, 0  ;;  %v10517_v50 = vsel %vm2077_vm10, %v8725_v34, 0  ;;  %v10520_v11 = vsel %vm2077_vm10, %v8728_v60, 0  ;;  %v12740_v10 = vld [vmem:[#allocation25_spill] sm:$0xff]  ;;  %v3659_v4 = vld [vmem:[#allocation2 + $0x10] sm:$0xf] }
 0x1c0   :  { %12737 = vst [vmem:[#allocation21_spill] sm:$0xff] %v10514_v23  ;;  %12738 = vst [vmem:[#allocation20_spill] sm:$0xff] %v10517_v50  ;;  %v10525_v48 = vsel %vm2077_vm10, %v7861_v20, 0  ;;  %v10528_v40 = vsel %vm2077_vm10, %v8729_v52, 0  ;;  %v10531_v53 = vsel %vm2077_vm10, %v8732_v33, 0  ;;  %v3966_v30 = vshll.u32 %v3684_v8, 16 }
 0x1c1   :  { %12739 = vst [vmem:[#allocation22_spill] sm:$0xff] %v10520_v11  ;;  %8241 = vmatpush3.bf16.xpose.msra.mxu0 %v10316_v31  ;;  %12741 = vst [vmem:[#allocation23_spill] sm:$0xff] %v10528_v40  ;;  %v12743_v17 = vcombine.low %v10235_v2, %v10282_v41  ;;  %v12744_v34 = vcombine.low %v10287_v1, %v10291_v42  ;;  %v3953_v31 = vor.u32 %v3952_v13, %v3949_v14  ;;  %v3732_v60 = vld [vmem:[#allocation2 + $0x14c] sm:$0x1]  ;;  %v8740_v8 = vld [vmem:[#allocation2 + $0x60] sm:$0xff]  }
 0x1c2   :  { %8257 = vmatpush3.bf16.xpose.msra.mxu1 %v12740_v10  ;;  %12742 = vst [vmem:[#allocation29_spill] sm:$0xff] %v10531_v53  ;;  %v3963_v20 = vor.u32 %v3962_v26, %v10511_v44  ;;  %v10542_v18 = vrot.slane %v4340_v35, 5  ;;  %v4346_v52 = vrot.slane %v4344_v3, 4  ;;  %v10545_v33 = vsel %vm2077_vm10, %v8733_v63, 0  ;;  %v8741_v10 = vld [vmem:[#allocation2 + $0x138] sm:$0xff]  }
 0x1c3   :  { %8593 = vmatprep.subr.msk.bf16.mxu1 %vm2077_vm10, %v12743_v17  ;;  %8586 = vmatprep.subr.msk.bf16.mxu0 %vm2077_vm10, %v12744_v34  ;;  %12745 = vst [vmem:[#allocation25_spill] sm:$0xff] %v10545_v33  ;;  %v4337_v2 = vor.u32 %v4336_v32, %v4333_v38  ;;  %v3757_v41 = vrot.slane %v3755_v22, 4  ;;  %v3760_v17 = vrot.slane %v3758_v28, 5  ;;  %v10548_v53 = vsel %vm2077_vm10, %v7877_v61, 0  ;;  %v3706_v13 = vld [vmem:[#allocation2 + $0xe4] sm:$0xf] }
 0x1c4   :  { %v10551_v1 = vsel %vm2077_vm10, %v8736_v45, 0  ;;  %v3764_v42 = vshll.u32 %v3659_v4, 16  ;;  %v3768_v14 = vshrl.u32 %v3659_v4, 16  ;;  %v10558_v3 = vsel %vm2077_vm10, %v8737_v25, 0  ;;  %v3660_v28 = vld [vmem:[#allocation2 + $0x14] sm:$0x1] }
 0x1c5   :  { %12746 = vst [vmem:[#allocation30_spill] sm:$0xff] %v10551_v1  ;;  %12747 = vst [vmem:[#allocation31_spill] sm:$0xff] %v10558_v3  ;;  %v4350_v22 = vshll.u32 %v3732_v60, 16  ;;  %v3707_v32 = vld [vmem:[#allocation2 + $0xe8] sm:$0xf]  ;;  %v10560_v63 = vrot.slane %v3953_v31, 4  ;;  %v4347_v45 = vor.u32 %v4346_v52, %v10542_v18  ;;  %v3761_v34 = vor.u32 %v3760_v17, %v3757_v41 }
 0x1c6   :  { %v10562_v38 = vrot.slane %v3963_v20, 4  ;;  %v10564_v61 = vrot.slane %v3966_v30, 5  ;;  %v10567_v4 = vrot.slane %v4337_v2, 4  ;;  %v4139_v26 = vshrl.u32 %v3706_v13, 16  ;;  %v3685_v2 = vld [vmem:[#allocation2 + $0x78] sm:$0xf] }
 0x1c7   :  { %v4142_v1 = vshll.u32 %v3706_v13, 16  ;;  %v10569_v35 = vrot.slane %v3764_v42, 5  ;;  %v3770_v25 = vrot.slane %v3768_v14, 4  ;;  %v3774_v3 = vshll.u32 %v3660_v28, 16  ;;  %v3661_v42 = vld [vmem:[#allocation2 + $0x18] sm:$0xf] }
 0x1c8   :  { %v4148_v60 = vshll.u32 %v3707_v32, 16  ;;  %v10575_v30 = vsel %vm2077_vm10, %v8740_v8, 0  ;;  %v10578_v20 = vsel %vm2077_vm10, %v8741_v10, 0  ;;  %v10580_v52 = vrot.slane %v4350_v22, 5  ;;  %v3662_v14 = vld [vmem:[#allocation2 + $0x1c] sm:$0xf] }
 0x1c9   :  { %8243 = vmatpush3.bf16.xpose.msra.mxu0 %v10334_v24  ;;  %12748 = vst [vmem:[#allocation32_spill] sm:$0xff] %v10575_v30  ;;  %12749 = vst [vmem:[#allocation33_spill] sm:$0xff] %v10578_v20  ;;  %v12750_v41 = vcombine.low %v10295_v36, %v10299_v55  ;;  %v10598_v17 = vrot.slane %v4347_v45, 4  ;;  %v3708_v36 = vld [vmem:[#allocation2 + $0xec] sm:$0x1]  ;;  %v4152_v55 = vshrl.u32 %v3707_v32, 16 }
 0x1ca   :  { %8259 = vmatpush3.bf16.xpose.msra.mxu1 %v10319_v39  ;;  %v12751_v39 = vcombine.low %v10303_v57, %v10307_v56  ;;  %v10604_v56 = vrot.slane %v3761_v34, 4  ;;  %v4141_v13 = vrot.slane %v4139_v26, 4  ;;  %v4144_v22 = vrot.slane %v4142_v1, 5  ;;  %v3686_v28 = vld [vmem:[#allocation2 + $0x7c] sm:$0xf] }
 0x1cb   :  { %8594 = vmatprep.subr.msk.bf16.mxu1 %vm2077_vm10, %v12750_v41  ;;  %v3771_v41 = vor.u32 %v3770_v25, %v10569_v35  ;;  %v10609_v45 = vrot.slane %v4148_v60, 5  ;;  %v3971_v31 = vshrl.u32 %v3685_v2, 16  ;;  %v3733_v32 = vld [vmem:[#allocation2 + $0x150] sm:$0xf]  ;;  %v3734_v8 = vld [vmem:[#allocation2 + $0x154] sm:$0xf] }
 0x1cc   :  { %8587 = vmatprep.subr.msk.bf16.mxu0 %vm2077_vm10, %v12751_v39  ;;  %v10607_v39 = vrot.slane %v3774_v3, 5  ;;  %v3779_v10 = vshrl.u32 %v3661_v42, 16  ;;  %v3782_v20 = vshll.u32 %v3661_v42, 16  ;;  %v3788_v27 = vshll.u32 %v3662_v14, 16  ;;  %v3709_v49 = vld [vmem:[#allocation2 + $0xf0] sm:$0xf] }
 0x1cd   :  { %v3792_v30 = vshrl.u32 %v3662_v14, 16  ;;  %v4154_v33 = vrot.slane %v4152_v55, 4  ;;  %v3974_v57 = vshll.u32 %v3685_v2, 16  ;;  %v3980_v34 = vshll.u32 %v3686_v28, 16  ;;  %v3663_v42 = vld [vmem:[#allocation2 + $0x20] sm:$0x1] }
 0x1ce   :  { %v3984_v40 = vshrl.u32 %v3686_v28, 16  ;;  %v4145_v26 = vor.u32 %v4144_v22, %v4141_v13  ;;  %v4158_v1 = vshll.u32 %v3708_v36, 16  ;;  %v4355_v11 = vshrl.u32 %v3733_v32, 16  ;;  %v12753_v36 = vld [vmem:[#allocation26_spill] sm:$0xff]  ;;  %v7080_v24 = vld [vmem:[#allocation2 + $0x15c] sm:$0xe] }
 0x1cf   :  { %v4358_v50 = vshll.u32 %v3733_v32, 16  ;;  %v10611_v25 = vrot.slane %v3771_v41, 4  ;;  %v3973_v3 = vrot.slane %v3971_v31, 4  ;;  %v4364_v60 = vshll.u32 %v3734_v8, 16 }
 0x1d0   :  { %v4368_v23 = vshrl.u32 %v3734_v8, 16  ;;  %v3781_v14 = vrot.slane %v3779_v10, 4  ;;  %v3784_v55 = vrot.slane %v3782_v20, 5  ;;  %v10615_v2 = vrot.slane %v3788_v27, 5  ;;  %v3710_v20 = vld [vmem:[#allocation2 + $0xf4] sm:$0xf] }
 0x1d1   :  { %8245 = vmatpush3.bf16.xpose.msra.mxu0 %v10442_v29  ;;  %v3794_v28 = vrot.slane %v3792_v30, 4  ;;  %v12754_v13 = vcombine.low %v10340_v47, %v12753_v36  ;;  %v12755_v31 = vcombine.low %v10410_v51, %v10427_v0  ;;  %v3976_v8 = vrot.slane %v3974_v57, 5  ;;  %v3687_v27 = vld [vmem:[#allocation2 + $0x80] sm:$0x1]  ;;  %v3735_v51 = vld [vmem:[#allocation2 + $0x158] sm:$0x1] }
 0x1d2   :  { %8261 = vmatpush3.bf16.xpose.msra.mxu1 %v10343_v58  ;;  %v4155_v58 = vor.u32 %v4154_v33, %v10609_v45  ;;  %v10626_v29 = vrot.slane %v3980_v34, 5  ;;  %v3986_v10 = vrot.slane %v3984_v40, 4  ;;  %v4357_v22 = vrot.slane %v4355_v11, 4 }
 0x1d3   :  { %8595 = vmatprep.subr.msk.bf16.mxu1 %vm2077_vm10, %v12754_v13  ;;  %8588 = vmatprep.subr.msk.bf16.mxu0 %vm2077_vm10, %v12755_v31  ;;  %v4360_v30 = vrot.slane %v4358_v50, 5  ;;  %v4163_v41 = vshrl.u32 %v3709_v49, 16  ;;  %v4166_v32 = vshll.u32 %v3709_v49, 16  ;;  %v4160_v47 = vrot.slane %v4158_v1, 5 }
 0x1d4   :  { %v10628_v36 = vrot.slane %v4364_v60, 5  ;;  %v4370_v13 = vrot.slane %v4368_v23, 4  ;;  %v3798_v43 = vshll.u32 %v3663_v42, 16  ;;  %v3785_v0 = vor.u32 %v3784_v55, %v3781_v14 }
 0x1d5   :  { %v3795_v31 = vor.u32 %v3794_v28, %v10615_v2  ;;  %v4172_v33 = vshll.u32 %v3710_v20, 16  ;;  %v4176_v57 = vshrl.u32 %v3710_v20, 16  ;;  %v4146_v34 = vrot.slane %v4145_v26, 4  ;;  %v3688_v28 = vld [vmem:[#allocation2 + $0x84] sm:$0xf] }
 0x1d6   :  { %v4156_v16 = vrot.slane %v4155_v58, 4  ;;  %v3977_v40 = vor.u32 %v3976_v8, %v3973_v3  ;;  %v3990_v9 = vshll.u32 %v3687_v27, 16  ;;  %v3987_v11 = vor.u32 %v3986_v10, %v10626_v29  ;;  %v3711_v8 = vld [vmem:[#allocation2 + $0xf8] sm:$0x1]  ;;  %v3689_v27 = vld [vmem:[#allocation2 + $0x88] sm:$0xf] }
 0x1d7   :  { %v4361_v50 = vor.u32 %v4360_v30, %v4357_v22  ;;  %v4165_v46 = vrot.slane %v4163_v41, 4  ;;  %v4168_v49 = vrot.slane %v4166_v32, 5  ;;  %v3767_v23 = vsel %vm9364_vm11, %v10604_v56, %v10569_v35  ;;  %v8710_v41 = vld [vmem:[#allocation2 + $0x6c] sm:$0xff]  }
 0x1d8   :  { %v4371_v1 = vor.u32 %v4370_v13, %v10628_v36  ;;  %v4374_v60 = vshll.u32 %v3735_v51, 16  ;;  %v3800_v42 = vrot.slane %v3798_v43, 5  ;;  %v3786_v26 = vrot.slane %v3785_v0, 4 }
 0x1d9   :  { %8247 = vmatpush3.bf16.xpose.msra.mxu0 %v10453_v5  ;;  %v3796_v3 = vrot.slane %v3795_v31, 4  ;;  %v10639_v14 = vrot.slane %v4172_v33, 5  ;;  %v4178_v55 = vrot.slane %v4176_v57, 4  ;;  %v12756_v58 = vcombine.low %v10414_v62, %v10431_v21 }
 0x1da   :  { %8263 = vmatpush3.bf16.xpose.msra.mxu1 %v10446_v12  ;;  %v12757_v35 = vcombine.low %v10457_v15, %v10465_v6  ;;  %v3777_v12 = vsel %vm9364_vm11, %v10611_v25, %v10607_v39  ;;  %v4151_v5 = vsel %vm9364_vm11, %v4146_v34, %v10609_v45  ;;  %v3978_v43 = vrot.slane %v3977_v40, 4 }
 0x1db   :  { %8596 = vmatprep.subr.msk.bf16.mxu1 %vm2077_vm10, %v12756_v58  ;;  %v3992_v56 = vrot.slane %v3990_v9, 5  ;;  %v4161_v62 = vsel %vm9364_vm11, %v4156_v16, %v4160_v47  ;;  %v3988_v21 = vrot.slane %v3987_v11, 4  ;;  %v4362_v10 = vrot.slane %v4361_v50, 4  ;;  %v3736_v11 = vld [vmem:[#allocation2 + $0x15c] sm:$0xf] }
 0x1dc   :  { %8589 = vmatprep.subr.msk.bf16.mxu0 %vm2077_vm10, %v12757_v35  ;;  %v4169_v15 = vor.u32 %v4168_v49, %v4165_v46  ;;  %v4372_v6 = vrot.slane %v4371_v1, 4  ;;  %v4376_v20 = vrot.slane %v4374_v60, 5  ;;  %v3995_v22 = vshrl.u32 %v3688_v28, 16  ;;  %v3713_v58 = vld [vmem:[#allocation2 + $0x100] sm:$0xf]  ;;  %v8711_v35 = vld [vmem:[#allocation2 + $0x144] sm:$0xff]  }
 0x1dd   :  { %v3998_v30 = vshll.u32 %v3688_v28, 16  ;;  %v3791_v39 = vsel %vm9364_vm11, %v3786_v26, %v10615_v2  ;;  %v3801_v45 = vsel %vm9364_vm11, %v3796_v3, %v3800_v42  ;;  %v4179_v9 = vor.u32 %v4178_v55, %v10639_v14  ;;  %v3712_v42 = vld [vmem:[#allocation2 + $0xfc] sm:$0xf] }
 0x1de   :  { %v4182_v25 = vshll.u32 %v3711_v8, 16  ;;  %v4353_v46 = vsel %vm9364_vm11, %v10598_v17, %v10580_v52  ;;  %v7924_v16 = vcombine.low %v3767_v23, %v3777_v12  ;;  %v7940_v32 = vcombine.low %v4151_v5, %v4161_v62  ;;  %v3690_v17 = vld [vmem:[#allocation2 + $0x8c] sm:$0x1]  ;;  %v8714_v12 = vld [vmem:[#allocation2 + $0x78] sm:$0xff]   ;;  %v3738_v8 = vld [vmem:[#allocation2 + $0x164] sm:$0x1] }
 0x1df   :  { %v3983_v47 = vsel %vm9364_vm11, %v3978_v43, %v10626_v29  ;;  %v3993_v2 = vsel %vm9364_vm11, %v3988_v21, %v3992_v56  ;;  %v4367_v13 = vsel %vm9364_vm11, %v4362_v10, %v10628_v36  ;;  %v10676_v51 = vrot.slane %v4169_v15, 4  ;;  %v12769_v29 = vld [vmem:[#allocation20_spill] sm:$0xff] }
 0x1e0   :  { %v4004_v0 = vshll.u32 %v3689_v27, 16  ;;  %v4377_v31 = vsel %vm9364_vm11, %v4372_v6, %v4376_v20  ;;  %v7925_v52 = vcombine.low %v3791_v39, %v3801_v45  ;;  %v3997_v33 = vrot.slane %v3995_v22, 4  ;;  %v10734_v6 = vld [vmem:[#allocation6 + $0x18] sm:$0xff]  }
 0x1e1   :  { %v4000_v57 = vrot.slane %v3998_v30, 5  ;;  %8249 = vmatpush3.bf16.xpose.msra.mxu0 %v10525_v48  ;;  %v10683_v34 = vrot.slane %v4179_v9, 4  ;;  %v10685_v40 = vrot.slane %v4182_v25, 5  ;;  %v4008_v36 = vshrl.u32 %v3689_v27, 16 }
 0x1e2   :  { %8265 = vmatpush3.bf16.xpose.msra.mxu1 %v10487_v54  ;;  %v12758_v50 = vcombine.low %v10461_v7, %v10469_v19  ;;  %8598 = vmatprep.subr.msk.bf16.mxu0 %vm2077_vm10, %v8710_v41  ;;  %v12759_v54 = vsel %vm9364_vm11, %v10562_v38, %v10564_v61  ;;  %v12760_v48 = vsel %vm9364_vm11, %v10560_v63, %v10511_v44  ;;  %v10712_v23 = vsel %vm2077_vm10, %v7924_v16, 0  ;;  %v3737_v38 = vld [vmem:[#allocation2 + $0x160] sm:$0xf]  ;;  %v3664_v61 = vld [vmem:[#allocation2 + $0x24] sm:$0xf] }
 0x1e3   :  { %v10702_v49 = vcombine.low %v12760_v48, %v12759_v54  ;;  %v12761_v7 = vsel %vm9364_vm11, %v10567_v4, %v10542_v18  ;;  %v10715_v1 = vsel %vm2077_vm10, %v7940_v32, 0  ;;  %v10717_v60 = vcombine.low %v3983_v47, %v3993_v2  ;;  %v3665_v4 = vld [vmem:[#allocation2 + $0x28] sm:$0xf]  ;;  %v3691_v41 = vld [vmem:[#allocation2 + $0x90] sm:$0xf] }
 0x1e4   :  { %8597 = vmatprep.subr.msk.bf16.mxu1 %vm2077_vm10, %v12758_v50  ;;  %v10709_v19 = vcombine.low %v12761_v7, %v4353_v46  ;;  %v10719_v44 = vcombine.low %v4367_v13, %v4377_v31  ;;  %v4175_v63 = vsel %vm9364_vm11, %v10676_v51, %v10639_v14  ;;  %v10725_v18 = vrot.slane %v4004_v0, 5  ;;  %v12762_v46 = vld [vmem:[#allocation18_spill] sm:$0xff]  ;;  %v8718_v7 = vld [vmem:[#allocation2 + $0x84] sm:$0xff]  }
 0x1e5   :  { %v10728_v26 = vsel %vm2077_vm10, %v7925_v52, 0  ;;  %v4001_v3 = vor.u32 %v4000_v57, %v3997_v33  ;;  %v4014_v55 = vshll.u32 %v3690_v17, 16  ;;  %v4379_v28 = vshrl.u32 %v3736_v11, 16  ;;  %v3692_v13 = vld [vmem:[#allocation2 + $0x94] sm:$0xf] }
 0x1e6   :  { %v4185_v5 = vsel %vm9364_vm11, %v10683_v34, %v10685_v40  ;;  %v4010_v43 = vrot.slane %v4008_v36, 4  ;;  %v4382_v14 = vshll.u32 %v3736_v11, 16  ;;  %v4388_v56 = vshll.u32 %v3737_v38, 16  ;;  %v3714_v40 = vld [vmem:[#allocation2 + $0x104] sm:$0x1]  ;;  %v8715_v48 = vld [vmem:[#allocation2 + $0x150] sm:$0xff]  }
 0x1e7   :  { %v4392_v62 = vshrl.u32 %v3737_v38, 16  ;;  %v3803_v21 = vshrl.u32 %v3664_v61, 16  ;;  %v3806_v10 = vshll.u32 %v3664_v61, 16  ;;  %v3812_v15 = vshll.u32 %v3665_v4, 16 }
 0x1e8   :  { %v3816_v20 = vshrl.u32 %v3665_v4, 16  ;;  %v4187_v27 = vshrl.u32 %v3712_v42, 16  ;;  %v4190_v22 = vshll.u32 %v3712_v42, 16  ;;  %v4196_v30 = vshll.u32 %v3713_v58, 16  ;;  %8251 = vmatmul.mubr.msk.bf16.vlgmr.msra.gmra.mrb[0].mxu0 %vm2077_vm10, %v10356_v37 }
 0x1e9   :  { %v10738_v39 = vrot.slane %v4001_v3, 4  ;;  %v10740_v45 = vrot.slane %v4014_v55, 5  ;;  %v4381_v9 = vrot.slane %v4379_v28, 4  ;;  %v4200_v25 = vshrl.u32 %v3713_v58, 16  ;;  %8271 = vmatpush3.bf16.xpose.msra.mxu0 %v12762_v46  ;;  %8286 = vmatprep.mubr.msk.bf16.mxu0 %vm2077_vm10, %v10734_v6 }
 0x1ea   :  { %8267 = vmatpush3.bf16.xpose.msra.mxu1 %v10548_v53  ;;  %v4011_v16 = vor.u32 %v4010_v43, %v10725_v18  ;;  %v4384_v32 = vrot.slane %v4382_v14, 5  ;;  %v10745_v47 = vrot.slane %v4388_v56, 5  ;;  %v4398_v2 = vshll.u32 %v3738_v8, 16  ;;  %8599 = vmatprep.subr.msk.bf16.mxu0 %vm2077_vm10, %v8714_v12  ;;  %v3666_v53 = vld [vmem:[#allocation2 + $0x2c] sm:$0x1] }
 0x1eb   :  { %8606 = vmatprep.subr.msk.bf16.mxu1 %vm2077_vm10, %v8711_v35  ;;  %v4394_v51 = vrot.slane %v4392_v62, 4  ;;  %v3805_v0 = vrot.slane %v3803_v21, 4  ;;  %v3808_v31 = vrot.slane %v3806_v10, 5  ;;  %v10749_v52 = vrot.slane %v3812_v15, 5  ;;  %v3739_v35 = vld [vmem:[#allocation2 + $0x168] sm:$0xf] }
 0x1ec   :  { %v3818_v17 = vrot.slane %v3816_v20, 4  ;;  %v4189_v33 = vrot.slane %v4187_v27, 4  ;;  %v4192_v57 = vrot.slane %v4190_v22, 5  ;;  %v10753_v34 = vrot.slane %v4196_v30, 5  ;;  %v3740_v12 = vld [vmem:[#allocation2 + $0x16c] sm:$0xf] }
 0x1ed   :  { %v4202_v36 = vrot.slane %v4200_v25, 4  ;;  %v4019_v11 = vshrl.u32 %v3691_v41, 16  ;;  %v4022_v50 = vshll.u32 %v3691_v41, 16  ;;  %v4028_v54 = vshll.u32 %v3692_v13, 16  ;;  %v12763_v10 = vld [vmem:[#allocation19_spill] sm:$0xff]  ;;  %v12764_v15 = vld [vmem:[#allocation24_spill] sm:$0xff] }
 0x1ee   :  { %v10755_v38 = vcombine.low %v4175_v63, %v4185_v5  ;;  %v4007_v61 = vsel %vm9364_vm11, %v10738_v39, %v10725_v18  ;;  %v10761_v4 = vrot.slane %v4011_v16, 4  ;;  %v4032_v42 = vshrl.u32 %v3692_v13, 16  ;;  %v3693_v20 = vld [vmem:[#allocation2 + $0x98] sm:$0x1]  ;;  %v3667_v16 = vld [vmem:[#allocation2 + $0x30] sm:$0xf] }
 0x1ef   :  { %v4385_v3 = vor.u32 %v4384_v32, %v4381_v9  ;;  %v4395_v55 = vor.u32 %v4394_v51, %v10745_v47  ;;  %v10764_v28 = vrot.slane %v4398_v2, 5  ;;  %v3822_v58 = vshll.u32 %v3666_v53, 16  ;;  %v3743_v18 = vld [vmem:[#allocation2 + $0x178] sm:$0xf] }
 0x1f0   :  { %v3809_v43 = vor.u32 %v3808_v31, %v3805_v0  ;;  %v3819_v63 = vor.u32 %v3818_v17, %v10749_v52  ;;  %v4193_v5 = vor.u32 %v4192_v57, %v4189_v33  ;;  %v4206_v14 = vshll.u32 %v3714_v40, 16  ;;  %v3668_v0 = vld [vmem:[#allocation2 + $0x34] sm:$0xf]  ;;  %v8719_v57 = vld [vmem:[#allocation2 + $0x15c] sm:$0xff]  }
 0x1f1   :  { %8269 = vmatmul.mubr.msk.bf16.vlgmr.msra.gmra.mrb[0].mxu1 %vm2077_vm10, %v10356_v37  ;;  %v4203_v56 = vor.u32 %v4202_v36, %v10753_v34  ;;  %v4021_v8 = vrot.slane %v4019_v11, 4  ;;  %v4024_v62 = vrot.slane %v4022_v50, 5  ;;  %v10770_v21 = vrot.slane %v4028_v54, 5  ;;  %8273 = vmatpush3.bf16.xpose.msra.mxu0 %v12764_v15  ;;  %v8722_v40 = vld [vmem:[#allocation2 + $0x90] sm:$0xff]   ;;  %v3716_v15 = vld [vmem:[#allocation2 + $0x10c] sm:$0xf] }
 0x1f2   :  { %8289 = vmatpush3.bf16.xpose.msra.mxu1 %v12763_v10  ;;  %v4034_v27 = vrot.slane %v4032_v42, 4  ;;  %v4403_v22 = vshrl.u32 %v3739_v35, 16  ;;  %v4406_v30 = vshll.u32 %v3739_v35, 16  ;;  %v4412_v9 = vshll.u32 %v3740_v12, 16  ;;  %8600 = vmatprep.subr.msk.bf16.mxu0 %vm2077_vm10, %v8718_v7  ;;  %v3741_v54 = vld [vmem:[#allocation2 + $0x170] sm:$0x1] }
 0x1f3   :  { %8607 = vmatprep.subr.msk.bf16.mxu1 %vm2077_vm10, %v8715_v48  ;;  %v4017_v37 = vsel %vm9364_vm11, %v10761_v4, %v10740_v45  ;;  %v4386_v25 = vrot.slane %v4385_v3, 4  ;;  %v4396_v41 = vrot.slane %v4395_v55, 4  ;;  %v4416_v46 = vshrl.u32 %v3740_v12, 16  ;;  %8304 = vmatprep.mubr.msk.bf16.mxu1 %vm2077_vm10, %v10734_v6 }
 0x1f4   :  { %v3810_v32 = vrot.slane %v3809_v43, 4  ;;  %v3820_v2 = vrot.slane %v3819_v63, 4  ;;  %v3824_v13 = vrot.slane %v3822_v58, 5  ;;  %v4208_v51 = vrot.slane %v4206_v14, 5  ;;  %v3715_v14 = vld [vmem:[#allocation2 + $0x108] sm:$0xf] }
 0x1f5   :  { %v4194_v31 = vrot.slane %v4193_v5, 4  ;;  %v4204_v53 = vrot.slane %v4203_v56, 4  ;;  %v4025_v17 = vor.u32 %v4024_v62, %v4021_v8  ;;  %v4038_v33 = vshll.u32 %v3693_v20, 16  ;;  %v3669_v5 = vld [vmem:[#allocation2 + $0x38] sm:$0x1]  ;;  %v12766_v56 = vld [vmem:[#allocation17_spill] sm:$0xff] }
 0x1f6   :  { %v4035_v45 = vor.u32 %v4034_v27, %v10770_v21  ;;  %v4405_v36 = vrot.slane %v4403_v22, 4  ;;  %v4408_v11 = vrot.slane %v4406_v30, 5  ;;  %v10783_v50 = vrot.slane %v4412_v9, 5 }
 0x1f7   :  { %v4418_v48 = vrot.slane %v4416_v46, 4  ;;  %v3827_v7 = vshrl.u32 %v3667_v16, 16  ;;  %v3830_v4 = vshll.u32 %v3667_v16, 16  ;;  %v3836_v42 = vshll.u32 %v3668_v0, 16  ;;  %v3694_v46 = vld [vmem:[#allocation2 + $0x9c] sm:$0xf] }
 0x1f8   :  { %v4391_v3 = vsel %vm9364_vm11, %v4386_v25, %v10745_v47  ;;  %v4401_v55 = vsel %vm9364_vm11, %v4396_v41, %v10764_v28  ;;  %v3815_v58 = vsel %vm9364_vm11, %v3810_v32, %v10749_v52  ;;  %v3840_v35 = vshrl.u32 %v3668_v0, 16  ;;  %v12765_v28 = vld [vmem:[#allocation14_spill] sm:$0xff]  ;;  %v8723_v16 = vld [vmem:[#allocation2 + $0x168] sm:$0xff]   ;;  %v3695_v0 = vld [vmem:[#allocation2 + $0xa0] sm:$0xf] }
 0x1f9   :  { %v3825_v12 = vsel %vm9364_vm11, %v3820_v2, %v3824_v13  ;;  %v4199_v43 = vsel %vm9364_vm11, %v4194_v31, %v10753_v34  ;;  %v4209_v63 = vsel %vm9364_vm11, %v4204_v53, %v4208_v51  ;;  %v10801_v47 = vrot.slane %v4038_v33, 5  ;;  %8275 = vmatpush3.bf16.xpose.msra.mxu0 %v12766_v56  ;;  %v3742_v31 = vld [vmem:[#allocation2 + $0x174] sm:$0xf]  ;;  %v8726_v53 = vld [vmem:[#allocation2 + $0x9c] sm:$0xff]  }
 0x1fa   :  { %8291 = vmatpush3.bf16.xpose.msra.mxu1 %v12765_v28  ;;  %v10805_v52 = vrot.slane %v4025_v17, 4  ;;  %v10807_v8 = vrot.slane %v4035_v45, 4  ;;  %v4409_v62 = vor.u32 %v4408_v11, %v4405_v36  ;;  %v4422_v10 = vshll.u32 %v3741_v54, 16  ;;  %8601 = vmatprep.subr.msk.bf16.mxu0 %vm2077_vm10, %v8722_v40  ;;  %v3717_v36 = vld [vmem:[#allocation2 + $0x110] sm:$0x1] }
 0x1fb   :  { %8608 = vmatprep.subr.msk.bf16.mxu1 %vm2077_vm10, %v8719_v57  ;;  %v4419_v34 = vor.u32 %v4418_v48, %v10783_v50  ;;  %v3829_v20 = vrot.slane %v3827_v7, 4  ;;  %v3832_v27 = vrot.slane %v3830_v4, 5  ;;  %v10812_v22 = vrot.slane %v3836_v42, 5  ;;  %v3670_v11 = vld [vmem:[#allocation2 + $0x3c] sm:$0xf] }
 0x1fc   :  { %v10814_v30 = vrot.slane %v3840_v35, 4  ;;  %v3846_v9 = vshll.u32 %v3669_v5, 16  ;;  %v4211_v25 = vshrl.u32 %v3715_v14, 16  ;;  %v4214_v41 = vshll.u32 %v3715_v14, 16  ;;  %v3671_v35 = vld [vmem:[#allocation2 + $0x40] sm:$0xf] }
 0x1fd   :  { %v10821_v32 = vcombine.low %v4007_v61, %v4017_v37  ;;  %v10823_v2 = vcombine.low %v4391_v3, %v4401_v55  ;;  %v4220_v13 = vshll.u32 %v3716_v15, 16  ;;  %v4224_v51 = vshrl.u32 %v3716_v15, 16 }
 0x1fe   :  { %v10825_v17 = vcombine.low %v3815_v58, %v3825_v12  ;;  %v10827_v33 = vcombine.low %v4199_v43, %v4209_v63  ;;  %v10833_v40 = vrot.slane %v4422_v10, 5  ;;  %v10839_v61 = vrot.slane %v4409_v62, 4  ;;  %v12767_v12 = vld [vmem:[#allocation13_spill] sm:$0xff] }
 0x1ff   :  { %v10841_v37 = vrot.slane %v4419_v34, 4  ;;  %v3833_v45 = vor.u32 %v3832_v27, %v3829_v20  ;;  %v3843_v54 = vor.u32 %v10814_v30, %v10812_v22  ;;  %v10845_v48 = vrot.slane %v3846_v9, 5  ;;  %v12768_v43 = vld [vmem:[#allocation21_spill] sm:$0xff]  ;;  %v8727_v9 = vld [vmem:[#allocation2 + $0x174] sm:$0xff]  }
 0x200   :  { %v4213_v7 = vrot.slane %v4211_v25, 4  ;;  %v4216_v4 = vrot.slane %v4214_v41, 5  ;;  %v10847_v42 = vrot.slane %v4220_v13, 5  ;;  %v4226_v3 = vrot.slane %v4224_v51, 4  ;;  %v8730_v25 = vld [vmem:[#allocation2 + $0xa8] sm:$0xff]  }
 0x201   :  { %v4043_v55 = vshrl.u32 %v3694_v46, 16  ;;  %v4046_v58 = vshll.u32 %v3694_v46, 16  ;;  %8277 = vmatpush3.bf16.xpose.msra.mxu0 %v12768_v43  ;;  %v4052_v63 = vshll.u32 %v3695_v0, 16  ;;  %v4056_v5 = vshrl.u32 %v3695_v0, 16  ;;  %v3696_v13 = vld [vmem:[#allocation2 + $0xa4] sm:$0x1] }
 0x202   :  { %8293 = vmatpush3.bf16.xpose.msra.mxu1 %v12767_v12  ;;  %v4427_v14 = vshrl.u32 %v3742_v31, 16  ;;  %v4430_v28 = vshll.u32 %v3742_v31, 16  ;;  %8602 = vmatprep.subr.msk.bf16.mxu0 %vm2077_vm10, %v8726_v53  ;;  %v4436_v56 = vshll.u32 %v3743_v18, 16  ;;  %v4440_v62 = vshrl.u32 %v3743_v18, 16  ;;  %v3744_v53 = vld [vmem:[#allocation2 + $0x17c] sm:$0x1] }
 0x203   :  { %8609 = vmatprep.subr.msk.bf16.mxu1 %vm2077_vm10, %v8723_v16  ;;  %v3851_v10 = vshrl.u32 %v3670_v11, 16  ;;  %v3854_v15 = vshll.u32 %v3670_v11, 16  ;;  %v10853_v34 = vrot.slane %v3833_v45, 4  ;;  %v4230_v20 = vshll.u32 %v3717_v36, 16  ;;  %v3672_v36 = vld [vmem:[#allocation2 + $0x44] sm:$0x1] }
 0x204   :  { %v3860_v27 = vshll.u32 %v3671_v35, 16  ;;  %v3864_v30 = vshrl.u32 %v3671_v35, 16  ;;  %v4217_v41 = vor.u32 %v4216_v4, %v4213_v7  ;;  %v4227_v46 = vor.u32 %v4226_v3, %v10847_v42 }
 0x205   :  { %v4045_v51 = vrot.slane %v4043_v55, 4  ;;  %v4048_v0 = vrot.slane %v4046_v58, 5  ;;  %v10856_v16 = vrot.slane %v4052_v63, 5  ;;  %v4058_v31 = vrot.slane %v4056_v5, 4  ;;  %v3718_v58 = vld [vmem:[#allocation2 + $0x114] sm:$0xf] }
 0x206   :  { %v4429_v18 = vrot.slane %v4427_v14, 4  ;;  %v4432_v12 = vrot.slane %v4430_v28, 5  ;;  %v10858_v11 = vrot.slane %v4436_v56, 5  ;;  %v4442_v45 = vrot.slane %v4440_v62, 4  ;;  %v3719_v56 = vld [vmem:[#allocation2 + $0x118] sm:$0xf] }
 0x207   :  { %v3853_v43 = vrot.slane %v3851_v10, 4  ;;  %v3856_v35 = vrot.slane %v3854_v15, 5  ;;  %v3839_v7 = vsel %vm9364_vm11, %v10853_v34, %v10812_v22  ;;  %v3844_v4 = vrot.slane %v3843_v54, 4  ;;  %v12770_v62 = vld [vmem:[#allocation22_spill] sm:$0xff] }
 0x208   :  { %v10864_v3 = vrot.slane %v3860_v27, 5  ;;  %v3866_v55 = vrot.slane %v3864_v30, 4  ;;  %v4218_v63 = vrot.slane %v4217_v41, 4  ;;  %v4228_v5 = vrot.slane %v4227_v46, 4 }
 0x209   :  { %v4232_v14 = vrot.slane %v4230_v20, 5  ;;  %v4062_v28 = vshll.u32 %v3696_v13, 16  ;;  %8279 = vmatpush3.bf16.xpose.msra.mxu0 %v12770_v62  ;;  %v4049_v10 = vor.u32 %v4048_v0, %v4045_v51  ;;  %v4059_v15 = vor.u32 %v4058_v31, %v10856_v16 }
 0x20a   :  { %8295 = vmatpush3.bf16.xpose.msra.mxu1 %v12769_v29  ;;  %v4433_v57 = vor.u32 %v4432_v12, %v4429_v18  ;;  %v4446_v39 = vshll.u32 %v3744_v53, 16  ;;  %8603 = vmatprep.subr.msk.bf16.mxu0 %vm2077_vm10, %v8730_v25  ;;  %v4443_v22 = vor.u32 %v4442_v45, %v10858_v11  ;;  %v3857_v54 = vor.u32 %v3856_v35, %v3853_v43  ;;  %v8731_v18 = vld [vmem:[#allocation2 + $0x180] sm:$0xff]   ;;  %v8734_v12 = vld [vmem:[#allocation2 + $0xb4] sm:$0xff]  }
 0x20b   :  { %8610 = vmatprep.subr.msk.bf16.mxu1 %vm2077_vm10, %v8727_v9  ;;  %v4235_v34 = vshrl.u32 %v3718_v58, 16  ;;  %v4238_v20 = vshll.u32 %v3718_v58, 16  ;;  %v3867_v27 = vor.u32 %v3866_v55, %v10864_v3  ;;  %v3870_v30 = vshll.u32 %v3672_v36, 16 }
 0x20c   :  { %v4244_v29 = vshll.u32 %v3719_v56, 16  ;;  %v4248_v41 = vshrl.u32 %v3719_v56, 16  ;;  %v3849_v46 = vsel %vm9364_vm11, %v3844_v4, %v10845_v48  ;;  %v4223_v9 = vsel %vm9364_vm11, %v4218_v63, %v10847_v42  ;;  %v10881_v4 = vld [vmem:[#allocation2 + $0x11c] sm:$0x1]  ;;  %v12772_v56 = vld [vmem:[#allocation29_spill] sm:$0xff] }
 0x20d   :  { %v4233_v25 = vsel %vm9364_vm11, %v4228_v5, %v4232_v14  ;;  %v4064_v13 = vrot.slane %v4062_v28, 5  ;;  %v4050_v51 = vrot.slane %v4049_v10, 4  ;;  %v4060_v0 = vrot.slane %v4059_v15, 4  ;;  %v3697_v14 = vld [vmem:[#allocation2 + $0xa8] sm:$0xf]  ;;  %v12771_v28 = vld [vmem:[#allocation23_spill] sm:$0xff] }
 0x20e   :  { %v4434_v31 = vrot.slane %v4433_v57, 4  ;;  %v4448_v53 = vrot.slane %v4446_v39, 5  ;;  %v4444_v45 = vrot.slane %v4443_v22, 4  ;;  %v3858_v36 = vrot.slane %v3857_v54, 4  ;;  %v10915_v10 = vld [vmem:[#allocation2 + $0xac] sm:$0xf] }
 0x20f   :  { %v4237_v43 = vrot.slane %v4235_v34, 4  ;;  %v4240_v35 = vrot.slane %v4238_v20, 5  ;;  %v3868_v55 = vrot.slane %v3867_v27, 4  ;;  %v3872_v48 = vrot.slane %v3870_v30, 5  ;;  %v8735_v34 = vld [vmem:[#allocation2 + $0x18c] sm:$0xff]  }
 0x210   :  { %v10883_v58 = vrot.slane %v4244_v29, 5  ;;  %v4250_v42 = vrot.slane %v4248_v41, 4  ;;  %v4415_v63 = vsel %vm9364_vm11, %v10839_v61, %v10783_v50  ;;  %v4425_v57 = vsel %vm9364_vm11, %v10841_v37, %v10833_v40 }
 0x211   :  { %v7927_v39 = vcombine.low %v3839_v7, %v3849_v46  ;;  %v7943_v5 = vcombine.low %v4223_v9, %v4233_v25  ;;  %8281 = vmatpush3.bf16.xpose.msra.mxu0 %v12772_v56  ;;  %v10897_v62 = vsel %vm2077_vm10, %v10755_v38, 0  ;;  %v4055_v50 = vsel %vm9364_vm11, %v4050_v51, %v10856_v16  ;;  %v3673_v46 = vld [vmem:[#allocation2 + $0x48] sm:$0xf]  ;;  %v8738_v9 = vld [vmem:[#allocation2 + $0xc0] sm:$0xff]  }
 0x212   :  { %8297 = vmatpush3.bf16.xpose.msra.mxu1 %v12771_v28  ;;  %v4065_v61 = vsel %vm9364_vm11, %v4060_v0, %v4064_v13  ;;  %v4439_v40 = vsel %vm9364_vm11, %v4434_v31, %v10858_v11  ;;  %8604 = vmatprep.subr.msk.bf16.mxu0 %vm2077_vm10, %v8734_v12  ;;  %v4449_v37 = vsel %vm9364_vm11, %v4444_v45, %v4448_v53  ;;  %v4254_v16 = vshll.u32 %v10881_v4, 16  ;;  %v10953_v13 = vld [vmem:[#allocation2 + $0x4c] sm:$0xf]  ;;  %v3745_v31 = vld [vmem:[#allocation2 + $0x180] sm:$0xf] }
 0x213   :  { %8611 = vmatprep.subr.msk.bf16.mxu1 %vm2077_vm10, %v8731_v18  ;;  %v3863_v38 = vsel %vm9364_vm11, %v3858_v36, %v10864_v3  ;;  %v4241_v7 = vor.u32 %v4240_v35, %v4237_v43  ;;  %v3873_v15 = vsel %vm9364_vm11, %v3868_v55, %v3872_v48  ;;  %v4251_v11 = vor.u32 %v4250_v42, %v10883_v58  ;;  %v3721_v53 = vld [vmem:[#allocation2 + $0x120] sm:$0xf]  ;;  %v10964_v43 = vld [vmem:[#allocation2 + $0x124] sm:$0xf] }
 0x214   :  { %v4067_v22 = vshrl.u32 %v3697_v14, 16  ;;  %v4070_v54 = vshll.u32 %v3697_v14, 16  ;;  %v10922_v20 = vsel %vm2077_vm10, %v10825_v17, 0  ;;  %v10926_v3 = vsel %vm2077_vm10, %v10827_v33, 0  ;;  %v10942_v17 = vld [vmem:[#allocation2 + $0xb0] sm:$0x1] }
 0x215   :  { %v12773_v27 = vsel %vm9364_vm11, %v10807_v8, %v10801_v47  ;;  %v12774_v30 = vsel %vm9364_vm11, %v10805_v52, %v10770_v21  ;;  %v10940_v41 = vcombine.low %v4415_v63, %v4425_v57  ;;  %12775 = vst [vmem:[#allocation16_spill] sm:$0xff] %v10942_v17  ;;  %v10945_v33 = vsel %vm2077_vm10, %v7927_v39, 0  ;;  %12776 = vst [vmem:[#allocation26_spill] sm:$0xff] %v10953_v13  ;;  %v10966_v35 = vld [vmem:[#allocation2 + $0x184] sm:$0xf]  ;;  %v12778_v57 = vld [vmem:[#allocation25_spill] sm:$0xff] }
 0x216   :  { %v10938_v29 = vcombine.low %v12774_v30, %v12773_v27  ;;  %v10948_v25 = vsel %vm2077_vm10, %v7943_v5, 0  ;;  %v10950_v47 = vcombine.low %v4055_v50, %v4065_v61  ;;  %v4076_v8 = vshll.u32 %v10915_v10, 16  ;;  %12777 = vst [vmem:[#allocation18_spill] sm:$0xff] %v10964_v43  ;;  %v12779_v39 = vld [vmem:[#allocation30_spill] sm:$0xff] }
 0x217   :  { %v10955_v21 = vcombine.low %v4439_v40, %v4449_v37  ;;  %v7928_v52 = vcombine.low %v3863_v38, %v3873_v15  ;;  %v10957_v51 = vrot.slane %v4254_v16, 5  ;;  %v4080_v0 = vshrl.u32 %v10915_v10, 16 }
 0x218   :  { %v10960_v18 = vrot.slane %v4241_v7, 4  ;;  %v10962_v12 = vrot.slane %v4251_v11, 4  ;;  %v4069_v45 = vrot.slane %v4067_v22, 4  ;;  %v4072_v36 = vrot.slane %v4070_v54, 5 }
 0x219   :  { %v3875_v55 = vshrl.u32 %v3673_v46, 16  ;;  %v3878_v48 = vshll.u32 %v3673_v46, 16  ;;  %v3884_v42 = vshll.u32 %v10953_v13, 16  ;;  %v3888_v63 = vshrl.u32 %v10953_v13, 16  ;;  %8283 = vmatpush3.bf16.xpose.msra.mxu0 %v12779_v39  ;;  %v10994_v46 = vld [vmem:[#allocation2 + $0x50] sm:$0x1] }
 0x21a   :  { %8299 = vmatpush3.bf16.xpose.msra.mxu1 %v12778_v57  ;;  %v10972_v5 = vrot.slane %v4076_v8, 5  ;;  %v4086_v14 = vshll.u32 %v10942_v17, 16  ;;  %v4259_v28 = vshrl.u32 %v3721_v53, 16  ;;  %v4262_v56 = vshll.u32 %v3721_v53, 16  ;;  %8605 = vmatprep.subr.msk.bf16.mxu0 %vm2077_vm10, %v8738_v9  ;;  %12780 = vst [vmem:[#allocation19_spill] sm:$0xff] %v10994_v46 }
 0x21b   :  { %8612 = vmatprep.subr.msk.bf16.mxu1 %vm2077_vm10, %v8735_v34  ;;  %v10978_v50 = vsel %vm2077_vm10, %v7928_v52, 0  ;;  %v4082_v61 = vrot.slane %v4080_v0, 4  ;;  %v4268_v40 = vshll.u32 %v10964_v43, 16  ;;  %v4272_v37 = vshrl.u32 %v10964_v43, 16  ;;  %v10996_v9 = vld [vmem:[#allocation2 + $0x128] sm:$0x1] }
 0x21c   :  { %v4451_v38 = vshrl.u32 %v3745_v31, 16  ;;  %v4454_v7 = vshll.u32 %v3745_v31, 16  ;;  %v4460_v16 = vshll.u32 %v10966_v35, 16  ;;  %v4464_v15 = vshrl.u32 %v10966_v35, 16  ;;  %12781 = vst [vmem:[#allocation24_spill] sm:$0xff] %v10996_v9  ;;  %v8739_v0 = vld [vmem:[#allocation2 + $0x198] sm:$0xff]  }
 0x21d   :  { %v3877_v11 = vrot.slane %v3875_v55, 4  ;;  %v3880_v22 = vrot.slane %v3878_v48, 5  ;;  %v10984_v54 = vrot.slane %v3884_v42, 5  ;;  %v3890_v34 = vrot.slane %v3888_v63, 4  ;;  %v3700_v42 = vld [vmem:[#allocation2 + $0xb4] sm:$0xf] }
 0x21e   :  { %v4247_v27 = vsel %vm9364_vm11, %v10960_v18, %v10883_v58  ;;  %v4257_v30 = vsel %vm9364_vm11, %v10962_v12, %v10957_v51  ;;  %v4261_v8 = vrot.slane %v4259_v28, 4  ;;  %v4264_v52 = vrot.slane %v4262_v56, 5  ;;  %v11005_v51 = vld [vmem:[#allocation2 + $0xb8] sm:$0xf]  ;;  %v11007_v12 = vld [vmem:[#allocation2 + $0x188] sm:$0x1] }
 0x21f   :  { %v4073_v31 = vor.u32 %v4072_v36, %v4069_v45  ;;  %v10998_v53 = vrot.slane %v4086_v14, 5  ;;  %v11000_v55 = vrot.slane %v4268_v40, 5  ;;  %v4274_v48 = vrot.slane %v4272_v37, 4  ;;  %12782 = vst [vmem:[#allocation14_spill] sm:$0xff] %v11005_v51  ;;  %12783 = vst [vmem:[#allocation17_spill] sm:$0xff] %v11007_v12  ;;  %v12784_v56 = vld [vmem:[#allocation31_spill] sm:$0xff] }
 0x220   :  { %v4083_v58 = vor.u32 %v4082_v61, %v10972_v5  ;;  %v4453_v18 = vrot.slane %v4451_v38, 4  ;;  %v4456_v63 = vrot.slane %v4454_v7, 5  ;;  %v11003_v57 = vrot.slane %v4460_v16, 5  ;;  %v989_v14 = vld [vmem:[#allocation2 + $0xc8] sm:$0x1]  ;;  %v12785_v40 = vld [vmem:[#allocation32_spill] sm:$0xff] }
 0x221   :  { %v4466_v39 = vrot.slane %v4464_v15, 4  ;;  %v3881_v28 = vor.u32 %v3880_v22, %v3877_v11  ;;  %v3891_v45 = vor.u32 %v3890_v34, %v10984_v54  ;;  %v3894_v36 = vshll.u32 %v10994_v46, 16  ;;  %8285 = vmatpush3.bf16.xpose.msra.mxu0 %v12785_v40 }
 0x222   :  { %8301 = vmatpush3.bf16.xpose.msra.mxu1 %v12784_v56  ;;  %v4265_v61 = vor.u32 %v4264_v52, %v4261_v8  ;;  %v4278_v37 = vshll.u32 %v10996_v9, 16  ;;  %v4091_v38 = vshrl.u32 %v3700_v42, 16  ;;  %v4094_v7 = vshll.u32 %v3700_v42, 16  ;;  %8614 = vmatprep.subr.msk.bf16.mxu0 %vm2077_vm10, %v10702_v49  ;;  %v12786_v52 = vld [vmem:[#allocation27_spill] sm:$0xff] }
 0x223   :  { %8613 = vmatprep.subr.msk.bf16.mxu1 %vm2077_vm10, %v8739_v0  ;;  %v4074_v16 = vrot.slane %v4073_v31, 4  ;;  %v4275_v15 = vor.u32 %v4274_v48, %v11000_v55  ;;  %v4100_v11 = vshll.u32 %v11005_v51, 16  ;;  %v4104_v22 = vshrl.u32 %v11005_v51, 16  ;;  %v1101_v0 = vld [vmem:[#allocation2 + $0x1a0] sm:$0x1] }
 0x224   :  { %v4084_v34 = vrot.slane %v4083_v58, 4  ;;  %v4457_v56 = vor.u32 %v4456_v63, %v4453_v18  ;;  %v4470_v8 = vshll.u32 %v11007_v12, 16  ;;  %v12787_v40 = vrot.slane %v12786_v52, 4  ;;  %v11026_v48 = vld [vmem:[#allocation2 + $0xbc] sm:$0x1] }
 0x225   :  { %v4467_v46 = vor.u32 %v4466_v39, %v11003_v57  ;;  %v3882_v49 = vrot.slane %v3881_v28, 4  ;;  %v3892_v31 = vrot.slane %v3891_v45, 4  ;;  %v3896_v43 = vrot.slane %v3894_v36, 5  ;;  %12789 = vst [vmem:[#allocation13_spill] sm:$0xff] %v11026_v48  ;;  %v3748_v63 = vld [vmem:[#allocation2 + $0x18c] sm:$0xf] }
 0x226   :  { %v990_v42 = vsel %vm9336_vm7, %v12787_v40, %v989_v14  ;;  %v4266_v13 = vrot.slane %v4265_v61, 4  ;;  %v4280_v51 = vrot.slane %v4278_v37, 5  ;;  %v4093_v58 = vrot.slane %v4091_v38, 4  ;;  %v3676_v37 = vld [vmem:[#allocation2 + $0x54] sm:$0xf] }
 0x227   :  { %991 = vst [vmem:[#allocation2 + $0xc8] sm:$0x1] %v990_v42  ;;  %v4096_v18 = vrot.slane %v4094_v7, 5  ;;  %v4276_v12 = vrot.slane %v4275_v15, 4  ;;  %v11028_v17 = vrot.slane %v4100_v11, 5  ;;  %v4106_v52 = vrot.slane %v4104_v22, 4 }
 0x228   :  { %v12790_v14 = vrot.slane %v10362_v59, 4  ;;  %v7944_v28 = vcombine.low %v4247_v27, %v4257_v30  ;;  %v4079_v45 = vsel %vm9364_vm11, %v4074_v16, %v10972_v5  ;;  %v4458_v36 = vrot.slane %v4457_v56, 4  ;;  %v11037_v38 = vld [vmem:[#allocation6 + $0x20] sm:$0xff]   ;;  %8287 = vmatmul.mubr.msk.bf16.vlgmr.msra.gmra.mrb[0].mxu0 %vm2077_vm10, %v10734_v6  ;;  %v12791_v7 = vld [vmem:[#allocation33_spill] sm:$0xff] }
 0x229   :  { %v4472_v61 = vrot.slane %v4470_v8, 5  ;;  %v4089_v59 = vsel %vm9364_vm11, %v4084_v34, %v10998_v53  ;;  %v4468_v9 = vrot.slane %v4467_v46, 4  ;;  %v4110_v27 = vshll.u32 %v11026_v48, 16  ;;  %8307 = vmatpush3.bf16.xpose.msra.mxu0 %v10712_v23  ;;  %v11062_v53 = vld [vmem:[#allocation2 + $0x190] sm:$0xf]  ;;  %8322 = vmatprep.mubr.msk.bf16.mxu0 %vm2077_vm10, %v11037_v38 }
 0x22a   :  { %v1102_v39 = vsel %vm9336_vm7, %v12790_v14, %v1101_v0  ;;  %v4475_v30 = vshrl.u32 %v3748_v63, 16  ;;  %8303 = vmatpush3.bf16.xpose.msra.mxu1 %v12791_v7  ;;  %v3887_v5 = vsel %vm9364_vm11, %v3882_v49, %v10984_v54  ;;  %v3897_v16 = vsel %vm9364_vm11, %v3892_v31, %v3896_v43  ;;  %8615 = vmatprep.subr.msk.bf16.mxu0 %vm2077_vm10, %v10717_v60  ;;  %v11072_v60 = vld [vmem:[#allocation2 + $0x194] sm:$0x1]  ;;  %v11080_v8 = vld [vmem:[#allocation2 + $0x58] sm:$0xf] }
 0x22b   :  { %1103 = vst [vmem:[#allocation2 + $0x1a0] sm:$0x1] %v1102_v39  ;;  %v4097_v15 = vor.u32 %v4096_v18, %v4093_v58  ;;  %v4478_v11 = vshll.u32 %v3748_v63, 16  ;;  %8622 = vmatprep.subr.msk.bf16.mxu1 %vm2077_vm10, %v10709_v19  ;;  %v4271_v46 = vsel %vm9364_vm11, %v4266_v13, %v11000_v55  ;;  %v4281_v23 = vsel %vm9364_vm11, %v4276_v12, %v4280_v51  ;;  %v3724_v40 = vld [vmem:[#allocation2 + $0x12c] sm:$0xf] }
 0x22c   :  { %v4107_v54 = vor.u32 %v4106_v52, %v11028_v17  ;;  %v3899_v43 = vshrl.u32 %v3676_v37, 16  ;;  %v11065_v22 = vsel %vm2077_vm10, %v7944_v28, 0  ;;  %v11067_v34 = vcombine.low %v4079_v45, %v4089_v59  ;;  %12792 = vst [vmem:[#allocation21_spill] sm:$0xff] %v11072_v60  ;;  %v11085_v31 = vld [vmem:[#allocation2 + $0x130] sm:$0xf] }
 0x22d   :  { %v4463_v19 = vsel %vm9364_vm11, %v4458_v36, %v11003_v57  ;;  %v3902_v13 = vshll.u32 %v3676_v37, 16  ;;  %v4473_v55 = vsel %vm9364_vm11, %v4468_v9, %v4472_v61  ;;  %v7929_v51 = vcombine.low %v3887_v5, %v3897_v16  ;;  %v3703_v7 = vld [vmem:[#allocation2 + $0xc0] sm:$0xf] }
 0x22e   :  { %v11078_v12 = vrot.slane %v4110_v27, 5  ;;  %v4477_v56 = vrot.slane %v4475_v30, 4  ;;  %v7945_v42 = vcombine.low %v4271_v46, %v4281_v23  ;;  %v11082_v0 = vrot.slane %v4097_v15, 4  ;;  %v11123_v15 = vld [vmem:[#allocation2 + $0xc4] sm:$0xf] }
 0x22f   :  { %v4480_v57 = vrot.slane %v4478_v11, 5  ;;  %v4484_v49 = vshll.u32 %v11062_v53, 16  ;;  %v11087_v58 = vrot.slane %v4107_v54, 4  ;;  %v4488_v18 = vshrl.u32 %v11062_v53, 16  ;;  %12793 = vst [vmem:[#allocation20_spill] sm:$0xff] %v11123_v15 }
 0x230   :  { %v4494_v63 = vshll.u32 %v11072_v60, 16  ;;  %v3901_v52 = vrot.slane %v3899_v43, 4  ;;  %v3904_v14 = vrot.slane %v3902_v13, 5  ;;  %v3908_v39 = vshll.u32 %v11080_v8, 16  ;;  %v3751_v11 = vld [vmem:[#allocation2 + $0x198] sm:$0xf] }
 0x231   :  { %v3912_v28 = vshrl.u32 %v11080_v8, 16  ;;  %v4283_v45 = vshrl.u32 %v3724_v40, 16  ;;  %8305 = vmatmul.mubr.msk.bf16.vlgmr.msra.gmra.mrb[0].mxu1 %vm2077_vm10, %v10734_v6  ;;  %v11095_v36 = vcombine.low %v4463_v19, %v4473_v55  ;;  %v4286_v61 = vshll.u32 %v3724_v40, 16  ;;  %8309 = vmatpush3.bf16.xpose.msra.mxu0 %v10728_v26  ;;  %v11127_v43 = vld [vmem:[#allocation2 + $0x19c] sm:$0xf] }
 0x232   :  { %v4292_v37 = vshll.u32 %v11085_v31, 16  ;;  %v4296_v59 = vshrl.u32 %v11085_v31, 16  ;;  %8325 = vmatpush3.bf16.xpose.msra.mxu1 %v10715_v1  ;;  %v11102_v9 = vsel %vm2077_vm10, %v7929_v51, 0  ;;  %v11105_v27 = vsel %vm2077_vm10, %v7945_v42, 0  ;;  %8616 = vmatprep.subr.msk.bf16.mxu0 %vm2077_vm10, %v10821_v32  ;;  %12794 = vst [vmem:[#allocation22_spill] sm:$0xff] %v11127_v43 }
 0x233   :  { %v11111_v30 = vrot.slane %v4484_v49, 5  ;;  %8623 = vmatprep.subr.msk.bf16.mxu1 %vm2077_vm10, %v10719_v44  ;;  %v4481_v26 = vor.u32 %v4480_v57, %v4477_v56  ;;  %v4490_v5 = vrot.slane %v4488_v18, 4  ;;  %v11121_v16 = vrot.slane %v4494_v63, 5  ;;  %8340 = vmatprep.mubr.msk.bf16.mxu1 %vm2077_vm10, %v11037_v38  ;;  %v11131_v32 = vld [vmem:[#allocation2 + $0x5c] sm:$0x1] }
 0x234   :  { %v3905_v46 = vor.u32 %v3904_v14, %v3901_v52  ;;  %v11125_v23 = vrot.slane %v3908_v39, 5  ;;  %v3914_v54 = vrot.slane %v3912_v28, 4  ;;  %v4285_v44 = vrot.slane %v4283_v45, 4  ;;  %12795 = vst [vmem:[#allocation23_spill] sm:$0xff] %v11131_v32  ;;  %v11135_v56 = vld [vmem:[#allocation2 + $0x134] sm:$0x1] }
 0x235   :  { %v4288_v19 = vrot.slane %v4286_v61, 5  ;;  %v11133_v13 = vrot.slane %v4292_v37, 5  ;;  %v4298_v55 = vrot.slane %v4296_v59, 4  ;;  %v4115_v51 = vshrl.u32 %v3703_v7, 16  ;;  %12796 = vst [vmem:[#allocation29_spill] sm:$0xff] %v11135_v56 }
 0x236   :  { %v4118_v40 = vshll.u32 %v3703_v7, 16  ;;  %v4124_v42 = vshll.u32 %v11123_v15, 16  ;;  %v4128_v57 = vshrl.u32 %v11123_v15, 16  ;;  %v4499_v49 = vshrl.u32 %v3751_v11, 16  ;;  %v3679_v37 = vld [vmem:[#allocation2 + $0x60] sm:$0xf] }
 0x237   :  { %v11139_v18 = vrot.slane %v4481_v26, 4  ;;  %v4502_v63 = vshll.u32 %v3751_v11, 16  ;;  %v4508_v52 = vshll.u32 %v11127_v43, 16  ;;  %v4512_v14 = vshrl.u32 %v11127_v43, 16  ;;  %v11150_v11 = vld [vmem:[#allocation2 + $0x64] sm:$0xf] }
 0x238   :  { %v4491_v39 = vor.u32 %v4490_v5, %v11111_v30  ;;  %v11144_v28 = vrot.slane %v3905_v46, 4  ;;  %v3915_v45 = vor.u32 %v3914_v54, %v11125_v23  ;;  %v3918_v61 = vshll.u32 %v11131_v32, 16  ;;  %v3727_v60 = vld [vmem:[#allocation2 + $0x138] sm:$0xf] }
 0x239   :  { %v4289_v59 = vor.u32 %v4288_v19, %v4285_v44  ;;  %v4299_v7 = vor.u32 %v4298_v55, %v11133_v13  ;;  %v4302_v26 = vshll.u32 %v11135_v56, 16  ;;  %v4117_v6 = vrot.slane %v4115_v51, 4  ;;  %8311 = vmatpush3.bf16.xpose.msra.mxu0 %v10922_v20  ;;  %v11175_v56 = vld [vmem:[#allocation2 + $0x13c] sm:$0xf] }
 0x23a   :  { %8327 = vmatpush3.bf16.xpose.msra.mxu1 %v10897_v62  ;;  %v4120_v5 = vrot.slane %v4118_v40, 5  ;;  %v11154_v46 = vrot.slane %v4124_v42, 5  ;;  %v4130_v1 = vrot.slane %v4128_v57, 4  ;;  %v4501_v54 = vrot.slane %v4499_v49, 4  ;;  %8617 = vmatprep.subr.msk.bf16.mxu0 %vm2077_vm10, %v10938_v29  ;;  %v11164_v40 = vld [vmem:[#allocation2 + $0xc8] sm:$0x1] }
 0x23b   :  { %8624 = vmatprep.subr.msk.bf16.mxu1 %vm2077_vm10, %v10823_v2  ;;  %v4504_v44 = vrot.slane %v4502_v63, 5  ;;  %v11160_v19 = vrot.slane %v4508_v52, 5  ;;  %v4514_v55 = vrot.slane %v4512_v14, 4  ;;  %v3923_v51 = vshrl.u32 %v3679_v37, 16  ;;  %v11171_v63 = vld [vmem:[#allocation2 + $0x1a0] sm:$0x1] }
 0x23c   :  { %v11162_v62 = vrot.slane %v4491_v39, 4  ;;  %v3920_v20 = vrot.slane %v3918_v61, 5  ;;  %v3926_v42 = vshll.u32 %v3679_v37, 16  ;;  %v3932_v57 = vshll.u32 %v11150_v11, 16 }
 0x23d   :  { %v3911_v2 = vsel %vm9364_vm11, %v11144_v28, %v11125_v23  ;;  %v3916_v29 = vrot.slane %v3915_v45, 4  ;;  %v4304_v49 = vrot.slane %v4302_v26, 5  ;;  %v3936_v52 = vshrl.u32 %v11150_v11, 16  ;;  %v11180_v28 = vld [vmem:[#allocation2 + $0x68] sm:$0x1] }
 0x23e   :  { %v4290_v14 = vrot.slane %v4289_v59, 4  ;;  %v4300_v39 = vrot.slane %v4299_v7, 4  ;;  %v4121_v43 = vor.u32 %v4120_v5, %v4117_v6  ;;  %v4131_v61 = vor.u32 %v4130_v1, %v11154_v46 }
 0x23f   :  { %v4134_v37 = vshll.u32 %v11164_v40, 16  ;;  %v4505_v15 = vor.u32 %v4504_v44, %v4501_v54  ;;  %v4515_v48 = vor.u32 %v4514_v55, %v11160_v19  ;;  %v3925_v32 = vrot.slane %v3923_v51, 4 }
 0x240   :  { %v4518_v23 = vshll.u32 %v11171_v63, 16  ;;  %v3928_v45 = vrot.slane %v3926_v42, 5  ;;  %v11182_v26 = vrot.slane %v3932_v57, 5  ;;  %v4307_v59 = vshrl.u32 %v3727_v60, 16 }
 0x241   :  { %v3938_v7 = vrot.slane %v3936_v52, 4  ;;  %v4310_v6 = vshll.u32 %v3727_v60, 16  ;;  %v4316_v1 = vshll.u32 %v11175_v56, 16  ;;  %v4320_v5 = vshrl.u32 %v11175_v56, 16  ;;  %8313 = vmatpush3.bf16.xpose.msra.mxu0 %v10945_v33 }
 0x242   :  { %8329 = vmatpush3.bf16.xpose.msra.mxu1 %v10926_v3  ;;  %v3921_v54 = vsel %vm9364_vm11, %v3916_v29, %v3920_v20  ;;  %v4295_v44 = vsel %vm9364_vm11, %v4290_v14, %v11133_v13  ;;  %v4305_v55 = vsel %vm9364_vm11, %v4300_v39, %v4304_v49  ;;  %v4122_v51 = vrot.slane %v4121_v43, 4  ;;  %8618 = vmatprep.subr.msk.bf16.mxu0 %vm2077_vm10, %v10950_v47  ;;  %v11201_v14 = vld [vmem:[#allocation2 + $0x140] sm:$0x1] }
 0x243   :  { %8625 = vmatprep.subr.msk.bf16.mxu1 %vm2077_vm10, %v10940_v41  ;;  %v4132_v3 = vrot.slane %v4131_v61, 4  ;;  %v4136_v60 = vrot.slane %v4134_v37, 5  ;;  %v4506_v33 = vrot.slane %v4505_v15, 4  ;;  %v3942_v42 = vshll.u32 %v11180_v28, 16 }
 0x244   :  { %v4516_v20 = vrot.slane %v4515_v48, 4  ;;  %v4520_v57 = vrot.slane %v4518_v23, 5  ;;  %v3929_v29 = vor.u32 %v3928_v45, %v3925_v32  ;;  %v4309_v52 = vrot.slane %v4307_v59, 4  ;;  %v8861_v23 = vld [vmem:[#allocation2 + $0x70] sm:$0xf] }
 0x245   :  { %v3939_v13 = vor.u32 %v3938_v7, %v11182_v26  ;;  %v4312_v43 = vrot.slane %v4310_v6, 5  ;;  %v11203_v49 = vrot.slane %v4316_v1, 5  ;;  %v4322_v41 = vrot.slane %v4320_v5, 4  ;;  %v8862_v1 = vld [vmem:[#allocation2 + $0x10] sm:$0xf] }
 0x246   :  { %v12797_v47 = vsel %vm9364_vm11, %v11087_v58, %v11078_v12  ;;  %v12798_v48 = vsel %vm9364_vm11, %v11082_v0, %v11028_v17  ;;  %v4487_v32 = vsel %vm9364_vm11, %v11139_v18, %v11111_v30  ;;  %v7930_v39 = vcombine.low %v3911_v2, %v3921_v54  ;;  %v4827_v2 = vld [vmem:[#allocation2 + $0x6c] sm:$0xe] }
 0x247   :  { %v11215_v15 = vcombine.low %v12798_v48, %v12797_v47  ;;  %v7946_v61 = vcombine.low %v4295_v44, %v4305_v55  ;;  %v4497_v37 = vsel %vm9364_vm11, %v11162_v62, %v11121_v16  ;;  %v4127_v12 = vsel %vm9364_vm11, %v4122_v51, %v11154_v46  ;;  %v4819_v44 = vld [vmem:[#allocation2 + $0xc] sm:$0xe]  ;;  %v4835_v55 = vld [vmem:[#allocation2 + $0xe4] sm:$0xe]  ;;  %v8863_v51 = vld [vmem:[#allocation2 + $0xe8] sm:$0xf] }
 0x248   :  { %v4137_v17 = vsel %vm9364_vm11, %v4132_v3, %v4136_v60  ;;  %v4511_v0 = vsel %vm9364_vm11, %v4506_v33, %v11160_v19  ;;  %v4521_v58 = vsel %vm9364_vm11, %v4516_v20, %v4520_v57  ;;  %v3930_v30 = vrot.slane %v3929_v29, 4  ;;  %v8864_v20 = vld [vmem:[#allocation2 + $0x74] sm:$0x1]  ;;  %v4843_v57 = vld [vmem:[#allocation2 + $0x144] sm:$0xe] }
 0x249   :  { %v4326_v18 = vshll.u32 %v11201_v14, 16  ;;  %v5005_v16 = vrot.slane %v8861_v23, 5  ;;  %v3940_v62 = vrot.slane %v3939_v13, 4  ;;  %v3944_v45 = vrot.slane %v3942_v42, 5  ;;  %8315 = vmatpush3.bf16.xpose.msra.mxu0 %v10978_v50  ;;  %v8865_v13 = vld [vmem:[#allocation2 + $0x148] sm:$0xf] }
 0x24a   :  { %v4313_v59 = vor.u32 %v4312_v43, %v4309_v52  ;;  %v4323_v46 = vor.u32 %v4322_v41, %v11203_v49  ;;  %8331 = vmatpush3.bf16.xpose.msra.mxu1 %v10948_v25  ;;  %v11239_v7 = vcombine.low %v4487_v32, %v4497_v37  ;;  %v11242_v19 = vsel %vm2077_vm10, %v7930_v39, 0  ;;  %8619 = vmatprep.subr.msk.bf16.mxu0 %vm2077_vm10, %v11067_v34  ;;  %v8866_v48 = vld [vmem:[#allocation2 + $0x14] sm:$0x1] }
 0x24b   :  { %v11245_v6 = vsel %vm2077_vm10, %v7946_v61, 0  ;;  %v4949_v5 = vrot.slane %v8862_v1, 5  ;;  %8626 = vmatprep.subr.msk.bf16.mxu1 %vm2077_vm10, %v10955_v21  ;;  %v11251_v54 = vcombine.low %v4127_v12, %v4137_v17  ;;  %v11253_v25 = vcombine.low %v4511_v0, %v4521_v58  ;;  %v4828_v17 = vld [vmem:[#allocation2 + $0x78] sm:$0xe]  ;;  %v8868_v0 = vld [vmem:[#allocation2 + $0x7c] sm:$0xf] }
 0x24c   :  { %v7966_v50 = vrot.slane %v4827_v2, 9  ;;  %v5061_v3 = vrot.slane %v8863_v51, 5  ;;  %v3935_v60 = vsel %vm9364_vm11, %v3930_v30, %v11182_v26  ;;  %v4328_v33 = vrot.slane %v4326_v18, 5  ;;  %v8867_v26 = vld [vmem:[#allocation2 + $0xec] sm:$0x1] }
 0x24d   :  { %v5007_v42 = vrot.slane %v5005_v16, 4  ;;  %v5008_v21 = vrot.slane %v8864_v20, 5  ;;  %v3945_v34 = vsel %vm9364_vm11, %v3940_v62, %v3944_v45  ;;  %v4314_v29 = vrot.slane %v4313_v59, 4  ;;  %v8869_v62 = vld [vmem:[#allocation2 + $0x14c] sm:$0x1] }
 0x24e   :  { %v4324_v52 = vrot.slane %v4323_v46, 4  ;;  %v5117_v43 = vrot.slane %v8865_v13, 5  ;;  %v7958_v41 = vrot.slane %v4819_v44, 9  ;;  %v4951_v47 = vrot.slane %v4949_v5, 4  ;;  %v8870_v44 = vld [vmem:[#allocation2 + $0x154] sm:$0xf] }
 0x24f   :  { %v4952_v32 = vrot.slane %v8866_v48, 5  ;;  %v7974_v39 = vrot.slane %v4835_v55, 9  ;;  %v7982_v61 = vrot.slane %v4843_v57, 9  ;;  %v5063_v37 = vrot.slane %v5061_v3, 4  ;;  %v8872_v20 = vld [vmem:[#allocation2 + $0x1c] sm:$0xf] }
 0x250   :  { %v5064_v12 = vrot.slane %v8867_v26, 5  ;;  %v5012_v58 = vrot.slane %v8868_v0, 5  ;;  %v7931_v30 = vcombine.low %v3935_v60, %v3945_v34  ;;  %v11262_v2 = vsel %vm10053_vm14, %v7966_v50, %v5005_v16  ;;  %v4844_v60 = vld [vmem:[#allocation2 + $0x150] sm:$0xe] }
 0x251   :  { %v11266_v23 = vsel %vm10053_vm14, %v5007_v42, %v5008_v21  ;;  %v5120_v45 = vrot.slane %v8869_v62, 5  ;;  %v4319_v59 = vsel %vm9364_vm11, %v4314_v29, %v11203_v49  ;;  %v4329_v46 = vsel %vm9364_vm11, %v4324_v52, %v4328_v33  ;;  %8317 = vmatpush3.bf16.xpose.msra.mxu0 %v11102_v9  ;;  %v8871_v33 = vld [vmem:[#allocation2 + $0x80] sm:$0x1]  ;;  %v4820_v42 = vld [vmem:[#allocation2 + $0x18] sm:$0xe] }
 0x252   :  { %v5119_v1 = vrot.slane %v5117_v43, 4  ;;  %v5124_v55 = vrot.slane %v8870_v44, 5  ;;  %8333 = vmatpush3.bf16.xpose.msra.mxu1 %v11065_v22  ;;  %v4950_v16 = vsel %vm10053_vm14, %v7958_v41, %v4949_v5  ;;  %v4953_v50 = vsel %vm10053_vm14, %v4951_v47, %v4952_v32  ;;  %8620 = vmatprep.subr.msk.bf16.mxu0 %vm2077_vm10, %v11215_v15  ;;  %v8874_v41 = vld [vmem:[#allocation2 + $0x158] sm:$0x1]  ;;  %v4836_v48 = vld [vmem:[#allocation2 + $0xf0] sm:$0xe] }
 0x253   :  { %v5062_v51 = vsel %vm10053_vm14, %v7974_v39, %v5061_v3  ;;  %v7967_v49 = vrot.slane %v4828_v17, 9  ;;  %8627 = vmatprep.subr.msk.bf16.mxu1 %vm2077_vm10, %v11095_v36  ;;  %v5065_v22 = vsel %vm10053_vm14, %v5063_v37, %v5064_v12  ;;  %v5014_v9 = vrot.slane %v5012_v58, 4  ;;  %v8873_v36 = vld [vmem:[#allocation2 + $0xf4] sm:$0xf]  ;;  %v8875_v17 = vld [vmem:[#allocation2 + $0x20] sm:$0x1] }
 0x254   :  { %v5015_v5 = vrot.slane %v8871_v33, 5  ;;  %v4956_v21 = vrot.slane %v8872_v20, 5  ;;  %v11288_v57 = vsel %vm2077_vm10, %v7931_v30, 0  ;;  %v7947_v3 = vcombine.low %v4319_v59, %v4329_v46  ;;  %v8876_v59 = vld [vmem:[#allocation2 + $0xf8] sm:$0x1] }
 0x255   :  { %v11292_v34 = vsel %vm10053_vm14, %v7982_v61, %v5117_v43  ;;  %v5068_v29 = vrot.slane %v8873_v36, 5  ;;  %v11296_v15 = vsel %vm10053_vm14, %v5119_v1, %v5120_v45  ;;  %v7983_v52 = vrot.slane %v4844_v60, 9  ;;  %v4829_v1 = vld [vmem:[#allocation2 + $0x84] sm:$0xe]  ;;  %v8878_v33 = vld [vmem:[#allocation2 + $0x88] sm:$0xf] }
 0x256   :  { %v5126_v13 = vrot.slane %v5124_v55, 4  ;;  %v5127_v47 = vrot.slane %v8874_v41, 5  ;;  %v7999_v32 = vcombine.low %v11262_v2, %v11266_v23  ;;  %v7991_v39 = vcombine.low %v4950_v16, %v4953_v50  ;;  %v4821_v50 = vld [vmem:[#allocation2 + $0x24] sm:$0xe]  ;;  %v8879_v20 = vld [vmem:[#allocation2 + $0x160] sm:$0xf] }
 0x257   :  { %v8007_v37 = vcombine.low %v5062_v51, %v5065_v22  ;;  %v7959_v26 = vrot.slane %v4820_v42, 9  ;;  %v11302_v43 = vsel %vm10053_vm14, %v7967_v49, %v5012_v58  ;;  %v11306_v61 = vsel %vm10053_vm14, %v5014_v9, %v5015_v5  ;;  %v8877_v51 = vld [vmem:[#allocation2 + $0x28] sm:$0xf]  ;;  %v4845_v42 = vld [vmem:[#allocation2 + $0x15c] sm:$0xe] }
 0x258   :  { %v4958_v12 = vrot.slane %v4956_v21, 4  ;;  %v4959_v0 = vrot.slane %v8875_v17, 5  ;;  %v8015_v30 = vcombine.low %v11292_v34, %v11296_v15  ;;  %v7975_v62 = vrot.slane %v4836_v48, 9  ;;  %v8880_v41 = vld [vmem:[#allocation2 + $0x2c] sm:$0x1] }
 0x259   :  { %v5070_v45 = vrot.slane %v5068_v29, 4  ;;  %v5071_v46 = vrot.slane %v8876_v59, 5  ;;  %v11311_v44 = vsel %vm2077_vm10, %v7947_v3, 0  ;;  %v11315_v58 = vsel %vm10053_vm14, %v7983_v52, %v5124_v55  ;;  %8319 = vmatpush3.bf16.xpose.msra.mxu0 %v11242_v19  ;;  %v8881_v48 = vld [vmem:[#allocation2 + $0x100] sm:$0xf] }
 0x25a   :  { %v11319_v16 = vsel %vm10053_vm14, %v5126_v13, %v5127_v47  ;;  %v4963_v49 = vrot.slane %v8877_v51, 5  ;;  %8335 = vmatpush3.bf16.xpose.msra.mxu1 %v11105_v27  ;;  %v11324_v60 = vsel %vm2077_vm10, %v7991_v39, 0  ;;  %v11327_v22 = vsel %vm2077_vm10, %v8007_v37, 0  ;;  %8621 = vmatprep.subr.msk.bf16.mxu0 %vm2077_vm10, %v11251_v54  ;;  %v4837_v54 = vld [vmem:[#allocation2 + $0xfc] sm:$0xe] }
 0x25b   :  { %v8000_v55 = vcombine.low %v11302_v43, %v11306_v61  ;;  %v4957_v9 = vsel %vm10053_vm14, %v7959_v26, %v4956_v21  ;;  %8628 = vmatprep.subr.msk.bf16.mxu1 %vm2077_vm10, %v11239_v7  ;;  %v4960_v27 = vsel %vm10053_vm14, %v4958_v12, %v4959_v0  ;;  %v7968_v19 = vrot.slane %v4829_v1, 9  ;;  %v4830_v37 = vld [vmem:[#allocation2 + $0x90] sm:$0xe]  ;;  %v8882_v26 = vld [vmem:[#allocation2 + $0x94] sm:$0xf] }
 0x25c   :  { %v5019_v5 = vrot.slane %v8878_v33, 5  ;;  %v5131_v3 = vrot.slane %v8879_v20, 5  ;;  %v8016_v36 = vcombine.low %v11315_v58, %v11319_v16  ;;  %v5069_v21 = vsel %vm10053_vm14, %v7975_v62, %v5068_v29  ;;  %v8883_v0 = vld [vmem:[#allocation2 + $0x8c] sm:$0x1]  ;;  %v8884_v51 = vld [vmem:[#allocation2 + $0x164] sm:$0x1] }
 0x25d   :  { %v5072_v7 = vsel %vm10053_vm14, %v5070_v45, %v5071_v46  ;;  %v7960_v52 = vrot.slane %v4821_v50, 9  ;;  %v4965_v13 = vrot.slane %v4963_v49, 4  ;;  %v4966_v47 = vrot.slane %v8880_v41, 5  ;;  %v8885_v41 = vld [vmem:[#allocation2 + $0x104] sm:$0x1] }
 0x25e   :  { %v5075_v39 = vrot.slane %v8881_v48, 5  ;;  %v5026_v12 = vrot.slane %v8882_v26, 5  ;;  %v7992_v17 = vcombine.low %v4957_v9, %v4960_v27  ;;  %v5022_v59 = vrot.slane %v8883_v0, 5  ;;  %v4846_v9 = vld [vmem:[#allocation2 + $0x168] sm:$0xe] }
 0x25f   :  { %v7984_v1 = vrot.slane %v4845_v42, 9  ;;  %v5134_v33 = vrot.slane %v8884_v51, 5  ;;  %v8008_v29 = vcombine.low %v5069_v21, %v5072_v7  ;;  %v11347_v62 = vsel %vm10053_vm14, %v7968_v19, %v5019_v5  ;;  %v8886_v21 = vld [vmem:[#allocation2 + $0x98] sm:$0x1]  ;;  %v4822_v51 = vld [vmem:[#allocation2 + $0x30] sm:$0xe] }
 0x260   :  { %v5021_v45 = vrot.slane %v5019_v5, 4  ;;  %v5133_v46 = vrot.slane %v5131_v3, 4  ;;  %v4964_v50 = vsel %vm10053_vm14, %v7960_v52, %v4963_v49  ;;  %v7976_v20 = vrot.slane %v4837_v54, 9  ;;  %v8887_v5 = vld [vmem:[#allocation2 + $0x34] sm:$0xf] }
 0x261   :  { %v5078_v48 = vrot.slane %v8885_v41, 5  ;;  %v7969_v26 = vrot.slane %v4830_v37, 9  ;;  %v4967_v27 = vsel %vm10053_vm14, %v4965_v13, %v4966_v47  ;;  %v5077_v42 = vrot.slane %v5075_v39, 4  ;;  %8321 = vmatpush3.bf16.xpose.msra.mxu0 %v11288_v57  ;;  %v4838_v54 = vld [vmem:[#allocation2 + $0x108] sm:$0xe] }
 0x262   :  { %v5028_v0 = vrot.slane %v5026_v12, 4  ;;  %v5029_v7 = vrot.slane %v8886_v21, 5  ;;  %8337 = vmatpush3.bf16.xpose.msra.mxu1 %v11245_v6  ;;  %v11356_v19 = vsel %vm2077_vm10, %v7992_v17, 0  ;;  %v11360_v49 = vsel %vm10053_vm14, %v7984_v1, %v5131_v3  ;;  %v8888_v13 = vld [vmem:[#allocation2 + $0x10c] sm:$0xf]  ;;  %8630 = vmatprep.subr.msk.bf16.mxu0 %vm2077_vm10, %v7999_v32 }
 0x263   :  { %v4970_v52 = vrot.slane %v8887_v5, 5  ;;  %v5082_v47 = vrot.slane %v8888_v13, 5  ;;  %8629 = vmatprep.subr.msk.bf16.mxu1 %vm2077_vm10, %v11253_v25  ;;  %v11369_v6 = vsel %vm2077_vm10, %v8008_v29, 0  ;;  %v11373_v57 = vsel %vm10053_vm14, %v5021_v45, %v5022_v59  ;;  %v8889_v23 = vld [vmem:[#allocation2 + $0x16c] sm:$0xf] }
 0x264   :  { %v11377_v3 = vsel %vm10053_vm14, %v5133_v46, %v5134_v33  ;;  %v7985_v37 = vrot.slane %v4846_v9, 9  ;;  %v7993_v17 = vcombine.low %v4964_v50, %v4967_v27  ;;  %v5076_v25 = vsel %vm10053_vm14, %v7976_v20, %v5075_v39  ;;  %v8890_v46 = vld [vmem:[#allocation2 + $0x38] sm:$0x1]  ;;  %v8891_v39 = vld [vmem:[#allocation2 + $0x110] sm:$0x1] }
 0x265   :  { %v11383_v2 = vsel %vm10053_vm14, %v7969_v26, %v5026_v12  ;;  %v5138_v32 = vrot.slane %v8889_v23, 5  ;;  %v5079_v1 = vsel %vm10053_vm14, %v5077_v42, %v5078_v48  ;;  %v11389_v59 = vsel %vm10053_vm14, %v5028_v0, %v5029_v7  ;;  %v8892_v9 = vld [vmem:[#allocation2 + $0x170] sm:$0x1]  ;;  %v4831_v27 = vld [vmem:[#allocation2 + $0x9c] sm:$0xe] }
 0x266   :  { %v7961_v33 = vrot.slane %v4822_v51, 9  ;;  %v7977_v29 = vrot.slane %v4838_v54, 9  ;;  %v4972_v45 = vrot.slane %v4970_v52, 4  ;;  %v4973_v50 = vrot.slane %v8890_v46, 5  ;;  %v8893_v42 = vld [vmem:[#allocation2 + $0xa0] sm:$0xf] }
 0x267   :  { %v5084_v41 = vrot.slane %v5082_v47, 4  ;;  %v5085_v20 = vrot.slane %v8891_v39, 5  ;;  %v8001_v12 = vcombine.low %v11347_v62, %v11373_v57  ;;  %v8017_v26 = vcombine.low %v11360_v49, %v11377_v3  ;;  %v4847_v21 = vld [vmem:[#allocation2 + $0x174] sm:$0xe]  ;;  %v4823_v54 = vld [vmem:[#allocation2 + $0x3c] sm:$0xe] }
 0x268   :  { %v5141_v48 = vrot.slane %v8892_v9, 5  ;;  %v5033_v0 = vrot.slane %v8893_v42, 5  ;;  %v11396_v7 = vsel %vm2077_vm10, %v7993_v17, 0  ;;  %v8009_v51 = vcombine.low %v5076_v25, %v5079_v1  ;;  %v8894_v13 = vld [vmem:[#allocation2 + $0x40] sm:$0xf]  ;;  %v11398_v46 = vld [vmem:[#allocation6 + $0x28] sm:$0xff]   ;;  %8323 = vmatmul.mubr.msk.bf16.vlgmr.msra.gmra.mrb[0].mxu0 %vm2077_vm10, %v11037_v38 }
 0x269   :  { %v5140_v5 = vrot.slane %v5138_v32, 4  ;;  %v4977_v23 = vrot.slane %v8894_v13, 5  ;;  %v8002_v39 = vcombine.low %v11383_v2, %v11389_v59  ;;  %v11406_v9 = vsel %vm10053_vm14, %v7985_v37, %v5138_v32  ;;  %8343 = vmatpush3.bf16.xpose.msra.mxu0 %v11324_v60  ;;  %v8895_v60 = vld [vmem:[#allocation2 + $0xa4] sm:$0x1]  ;;  %8358 = vmatprep.mubr.msk.bf16.mxu0 %vm2077_vm10, %v11398_v46  ;;  %v4848_v13 = vld [vmem:[#allocation2 + $0x180] sm:$0xe] }
 0x26a   :  { %v11410_v17 = vsel %vm10053_vm14, %v7961_v33, %v4970_v52  ;;  %v11414_v25 = vsel %vm10053_vm14, %v7977_v29, %v5082_v47  ;;  %8339 = vmatpush3.bf16.xpose.msra.mxu1 %v11311_v44  ;;  %v11420_v1 = vsel %vm10053_vm14, %v4972_v45, %v4973_v50  ;;  %v11424_v37 = vsel %vm10053_vm14, %v5084_v41, %v5085_v20  ;;  %v8896_v47 = vld [vmem:[#allocation2 + $0x178] sm:$0xf]  ;;  %v8897_v15 = vld [vmem:[#allocation2 + $0x44] sm:$0x1]  ;;  %v4839_v41 = vld [vmem:[#allocation2 + $0x114] sm:$0xe] }
 0x26b   :  { %v7970_v32 = vrot.slane %v4831_v27, 9  ;;  %v7986_v42 = vrot.slane %v4847_v21, 9  ;;  %8638 = vmatprep.subr.msk.bf16.mxu1 %vm2077_vm10, %v8015_v30  ;;  %8631 = vmatprep.subr.msk.bf16.mxu0 %vm2077_vm10, %v8000_v55  ;;  %v5035_v44 = vrot.slane %v5033_v0, 4  ;;  %v5036_v52 = vrot.slane %v8895_v60, 5  ;;  %v8898_v55 = vld [vmem:[#allocation2 + $0x17c] sm:$0x1] }
 0x26c   :  { %v5145_v33 = vrot.slane %v8896_v47, 5  ;;  %v7962_v29 = vrot.slane %v4823_v54, 9  ;;  %v11435_v45 = vsel %vm2077_vm10, %v8009_v51, 0  ;;  %v11439_v50 = vsel %vm10053_vm14, %v5140_v5, %v5141_v48  ;;  %v8899_v27 = vld [vmem:[#allocation2 + $0x118] sm:$0xf] }
 0x26d   :  { %v4979_v34 = vrot.slane %v4977_v23, 4  ;;  %v4980_v30 = vrot.slane %v8897_v15, 5  ;;  %v7994_v43 = vcombine.low %v11410_v17, %v11420_v1  ;;  %v8010_v61 = vcombine.low %v11414_v25, %v11424_v37  ;;  %v4832_v51 = vld [vmem:[#allocation2 + $0xa8] sm:$0xe]  ;;  %v4842_v1 = vld [vmem:[#allocation2 + $0x138] sm:$0xe] }
 0x26e   :  { %v5148_v20 = vrot.slane %v8898_v55, 5  ;;  %v5089_v21 = vrot.slane %v8899_v27, 5  ;;  %v11449_v48 = vsel %vm10053_vm14, %v7970_v32, %v5033_v0  ;;  %v11453_v5 = vsel %vm10053_vm14, %v7986_v42, %v5145_v33  ;;  %v4840_v62 = vld [vmem:[#allocation2 + $0x120] sm:$0xe] }
 0x26f   :  { %v5040_v54 = vrot.slane %v10915_v10, 5  ;;  %v5152_v17 = vrot.slane %v10966_v35, 5  ;;  %v11459_v25 = vsel %vm10053_vm14, %v5035_v44, %v5036_v52  ;;  %v5147_v37 = vrot.slane %v5145_v33, 4  ;;  %v12800_v10 = vld [vmem:[#allocation16_spill] sm:$0xff] }
 0x270   :  { %v4978_v60 = vsel %vm10053_vm14, %v7962_v29, %v4977_v23  ;;  %v7978_v0 = vrot.slane %v4839_v41, 9  ;;  %v4981_v32 = vsel %vm10053_vm14, %v4979_v34, %v4980_v30  ;;  %v5092_v42 = vrot.slane %v10881_v4, 5  ;;  %v12801_v29 = vld [vmem:[#allocation17_spill] sm:$0xff]  ;;  %v12802_v30 = vld [vmem:[#allocation26_spill] sm:$0xff] }
 0x271   :  { %v7971_v47 = vrot.slane %v4832_v51, 9  ;;  %v5043_v15 = vrot.slane %v12800_v10, 5  ;;  %8341 = vmatmul.mubr.msk.bf16.vlgmr.msra.gmra.mrb[0].mxu1 %vm2077_vm10, %v11037_v38  ;;  %v5091_v35 = vrot.slane %v5089_v21, 4  ;;  %v7987_v55 = vrot.slane %v4848_v13, 9  ;;  %8345 = vmatpush3.bf16.xpose.msra.mxu0 %v11356_v19  ;;  %v4824_v4 = vld [vmem:[#allocation2 + $0x48] sm:$0xe] }
 0x272   :  { %v7981_v44 = vrot.slane %v4842_v1, 9  ;;  %v5110_v52 = vrot.slane %v11175_v56, 5  ;;  %8361 = vmatpush3.bf16.xpose.msra.mxu1 %v11327_v22  ;;  %v5042_v23 = vrot.slane %v5040_v54, 4  ;;  %v5154_v33 = vrot.slane %v5152_v17, 4  ;;  %8632 = vmatprep.subr.msk.bf16.mxu0 %vm2077_vm10, %v8001_v12  ;;  %v12803_v38 = vld [vmem:[#allocation18_spill] sm:$0xff]  ;;  %v12804_v13 = vld [vmem:[#allocation19_spill] sm:$0xff] }
 0x273   :  { %v5155_v34 = vrot.slane %v12801_v29, 5  ;;  %v4984_v41 = vrot.slane %v12802_v30, 5  ;;  %8639 = vmatprep.subr.msk.bf16.mxu1 %vm2077_vm10, %v8016_v36  ;;  %v5096_v56 = vrot.slane %v12803_v38, 5  ;;  %v5113_v27 = vrot.slane %v11201_v14, 5  ;;  %8376 = vmatprep.mubr.msk.bf16.mxu1 %vm2077_vm10, %v11398_v46  ;;  %v4834_v38 = vld [vmem:[#allocation2 + $0xc0] sm:$0xe] }
 0x274   :  { %v11485_v22 = vsel %vm10053_vm14, %v7981_v44, %v5110_v52  ;;  %v5112_v19 = vrot.slane %v5110_v52, 4  ;;  %v11490_v51 = vsel %vm10053_vm14, %v5147_v37, %v5148_v20  ;;  %v7995_v58 = vcombine.low %v4978_v60, %v4981_v32  ;;  %v12805_v32 = vld [vmem:[#allocation24_spill] sm:$0xff] }
 0x275   :  { %v11494_v16 = vsel %vm10053_vm14, %v7978_v0, %v5089_v21  ;;  %v11498_v36 = vsel %vm10053_vm14, %v7971_v47, %v5040_v54  ;;  %v11504_v14 = vsel %vm10053_vm14, %v5091_v35, %v5092_v42  ;;  %v11508_v57 = vsel %vm10053_vm14, %v7987_v55, %v5152_v17 }
 0x276   :  { %v7963_v12 = vrot.slane %v4824_v4, 9  ;;  %v11512_v20 = vsel %vm10053_vm14, %v5112_v19, %v5113_v27  ;;  %v11516_v21 = vsel %vm10053_vm14, %v5042_v23, %v5043_v15  ;;  %v11520_v54 = vsel %vm10053_vm14, %v5154_v33, %v5155_v34  ;;  %v4841_v34 = vld [vmem:[#allocation2 + $0x12c] sm:$0xe]  ;;  %v12807_v4 = vld [vmem:[#allocation23_spill] sm:$0xff]  ;;  %v12809_v19 = vld [vmem:[#allocation20_spill] sm:$0xff] }
 0x277   :  { %v4987_v1 = vrot.slane %v12804_v13, 5  ;;  %v8014_v37 = vcombine.low %v11485_v22, %v11512_v20  ;;  %v4986_v17 = vrot.slane %v4984_v41, 4  ;;  %v7979_v60 = vrot.slane %v4840_v62, 9  ;;  %v8745_v22 = vld [vmem:[#allocation2 + $0x78] sm:$0xff]  }
 0x278   :  { %v5098_v0 = vrot.slane %v5096_v56, 4  ;;  %v5099_v42 = vrot.slane %v12805_v32, 5  ;;  %v8018_v47 = vcombine.low %v11406_v9, %v11439_v50  ;;  %v5288_v10 = vsel %vm2077_vm10, %v7994_v43, 0  ;;  %v4825_v9 = vld [vmem:[#allocation2 + $0x54] sm:$0xe] }
 0x279   :  { %v11530_v15 = vsel %vm2077_vm10, %v8010_v61, 0  ;;  %v4991_v35 = vrot.slane %v11080_v8, 5  ;;  %v8003_v55 = vcombine.low %v11449_v48, %v11459_v25  ;;  %v8019_v44 = vcombine.low %v11453_v5, %v11490_v51  ;;  %8347 = vmatpush3.bf16.xpose.msra.mxu0 %v11396_v7  ;;  %v4833_v61 = vld [vmem:[#allocation2 + $0xb4] sm:$0xe]  ;;  %v4849_v48 = vld [vmem:[#allocation2 + $0x18c] sm:$0xe] }
 0x27a   :  { %v11538_v52 = vsel %vm2077_vm10, %v7995_v58, 0  ;;  %v8011_v23 = vcombine.low %v11494_v16, %v11504_v14  ;;  %8363 = vmatpush3.bf16.xpose.msra.mxu1 %v11369_v6  ;;  %v8004_v8 = vcombine.low %v11498_v36, %v11516_v21  ;;  %v8020_v50 = vcombine.low %v11508_v57, %v11520_v54  ;;  %8633 = vmatprep.subr.msk.bf16.mxu0 %vm2077_vm10, %v8002_v39  ;;  %v12808_v39 = vld [vmem:[#allocation13_spill] sm:$0xff]  ;;  %v4850_v14 = vld [vmem:[#allocation2 + $0x198] sm:$0xe]  ;;  %v8759_v5 = vld [vmem:[#allocation2 + $0x3c] sm:$0xff]  }
 0x27b   :  { %v11550_v43 = vsel %vm10053_vm14, %v7963_v12, %v4984_v41  ;;  %v5103_v25 = vrot.slane %v11085_v31, 5  ;;  %8640 = vmatprep.subr.msk.bf16.mxu1 %vm2077_vm10, %v8017_v26  ;;  %v4988_v6 = vsel %vm10053_vm14, %v4986_v17, %v4987_v1  ;;  %v5097_v7 = vsel %vm10053_vm14, %v7979_v60, %v5096_v56  ;;  %v12806_v31 = vld [vmem:[#allocation14_spill] sm:$0xff]  ;;  %v12810_v16 = vld [vmem:[#allocation29_spill] sm:$0xff] }
 0x27c   :  { %v5100_v33 = vsel %vm10053_vm14, %v5098_v0, %v5099_v42  ;;  %v5047_v29 = vrot.slane %v12806_v31, 5  ;;  %v5159_v49 = vrot.slane %v11062_v53, 5  ;;  %v7964_v3 = vrot.slane %v4825_v9, 9  ;;  %v12811_v12 = vld [vmem:[#allocation22_spill] sm:$0xff]  ;;  %v12812_v60 = vld [vmem:[#allocation21_spill] sm:$0xff] }
 0x27d   :  { %v4993_v26 = vrot.slane %v4991_v35, 4  ;;  %v4994_v2 = vrot.slane %v12807_v4, 5  ;;  %v7972_v59 = vrot.slane %v4833_v61, 9  ;;  %v5050_v30 = vrot.slane %v12808_v39, 5  ;;  %v4826_v4 = vld [vmem:[#allocation2 + $0x60] sm:$0xe] }
 0x27e   :  { %v7988_v41 = vrot.slane %v4849_v48, 9  ;;  %v5054_v27 = vrot.slane %v12809_v19, 5  ;;  %v7980_v56 = vrot.slane %v4841_v34, 9  ;;  %v5105_v58 = vrot.slane %v5103_v25, 4  ;;  %v8760_v51 = vld [vmem:[#allocation2 + $0x114] sm:$0xff]  }
 0x27f   :  { %v5106_v62 = vrot.slane %v12810_v16, 5  ;;  %v5166_v13 = vrot.slane %v12811_v12, 5  ;;  %v7996_v53 = vcombine.low %v11550_v43, %v4988_v6  ;;  %v8012_v1 = vcombine.low %v5097_v7, %v5100_v33  ;;  %v5919_v33 = vld [vmem:[#allocation2 + $0x7c] sm:$0xf] }
 0x280   :  { %v5049_v17 = vrot.slane %v5047_v29, 4  ;;  %v5162_v0 = vrot.slane %v12812_v60, 5  ;;  %v5161_v32 = vrot.slane %v5159_v49, 4  ;;  %v4992_v42 = vsel %vm10053_vm14, %v7964_v3, %v4991_v35 }
 0x281   :  { %v4995_v9 = vsel %vm10053_vm14, %v4993_v26, %v4994_v2  ;;  %v7973_v61 = vrot.slane %v4834_v38, 9  ;;  %v5056_v48 = vrot.slane %v5054_v27, 4  ;;  %v5057_v31 = vrot.slane %v11164_v40, 5  ;;  %8349 = vmatpush3.bf16.xpose.msra.mxu0 %v5288_v10 }
 0x282   :  { %v7989_v34 = vrot.slane %v4850_v14, 9  ;;  %v4998_v39 = vrot.slane %v11150_v11, 5  ;;  %8365 = vmatpush3.bf16.xpose.msra.mxu1 %v11435_v45  ;;  %v5104_v43 = vsel %vm10053_vm14, %v7980_v56, %v5103_v25  ;;  %v5107_v35 = vsel %vm10053_vm14, %v5105_v58, %v5106_v62  ;;  %8634 = vmatprep.subr.msk.bf16.mxu0 %vm2077_vm10, %v8003_v55 }
 0x283   :  { %v5168_v6 = vrot.slane %v5166_v13, 4  ;;  %v5169_v7 = vrot.slane %v11171_v63, 5  ;;  %8641 = vmatprep.subr.msk.bf16.mxu1 %vm2077_vm10, %v8018_v47  ;;  %v11591_v40 = vsel %vm2077_vm10, %v8011_v23, 0  ;;  %v11595_v11 = vsel %vm10053_vm14, %v7972_v59, %v5047_v29  ;;  %v5918_v63 = vld [vmem:[#allocation2 + $0x78] sm:$0xf] }
 0x284   :  { %v11599_v45 = vsel %vm10053_vm14, %v5049_v17, %v5050_v30  ;;  %v11603_v10 = vsel %vm10053_vm14, %v7988_v41, %v5159_v49  ;;  %v11607_v47 = vsel %vm10053_vm14, %v5161_v32, %v5162_v0  ;;  %v7997_v55 = vcombine.low %v4992_v42, %v4995_v9  ;;  %v8747_v30 = vld [vmem:[#allocation2 + $0x18] sm:$0xff]   ;;  %v5967_v17 = vld [vmem:[#allocation2 + $0x154] sm:$0xf] }
 0x285   :  { %v11611_v23 = vsel %vm10053_vm14, %v7973_v61, %v5054_v27  ;;  %v7965_v25 = vrot.slane %v4826_v4, 9  ;;  %v8013_v29 = vcombine.low %v5104_v43, %v5107_v35  ;;  %v11615_v3 = vsel %vm10053_vm14, %v5056_v48, %v5057_v31  ;;  %v8752_v42 = vld [vmem:[#allocation2 + $0xfc] sm:$0xff]   ;;  %v8755_v9 = vld [vmem:[#allocation2 + $0x30] sm:$0xff]   ;;  %v5894_v61 = vld [vmem:[#allocation2 + $0x18] sm:$0xf] }
 0x286   :  { %v5000_v26 = vrot.slane %v4998_v39, 4  ;;  %v5001_v49 = vrot.slane %v11180_v28, 5  ;;  %v11620_v2 = vsel %vm10053_vm14, %v7989_v34, %v5166_v13  ;;  %v11624_v59 = vsel %vm10053_vm14, %v5168_v6, %v5169_v7  ;;  %v5966_v28 = vld [vmem:[#allocation2 + $0x150] sm:$0xf]  ;;  %v8756_v48 = vld [vmem:[#allocation2 + $0x108] sm:$0xff]  }
 0x287   :  { %v6183_v41 = vshrl.u32 %v5918_v63, 16  ;;  %v6186_v38 = vshll.u32 %v5918_v63, 16  ;;  %v11627_v19 = vsel %vm2077_vm10, %v7996_v53, 0  ;;  %v11630_v27 = vsel %vm2077_vm10, %v8012_v1, 0  ;;  %v8748_v13 = vld [vmem:[#allocation2 + $0xf0] sm:$0xff]   ;;  %v8751_v53 = vld [vmem:[#allocation2 + $0x24] sm:$0xff]  }
 0x288   :  { %v6192_v56 = vshll.u32 %v5919_v33, 16  ;;  %v6196_v58 = vshrl.u32 %v5919_v33, 16  ;;  %v8005_v16 = vcombine.low %v11595_v11, %v11599_v45  ;;  %v11637_v14 = vsel %vm2077_vm10, %v7997_v55, 0  ;;  %v8763_v33 = vld [vmem:[#allocation2 + $0x48] sm:$0xff]  }
 0x289   :  { %v11642_v1 = vsel %vm2077_vm10, %v8013_v29, 0  ;;  %v4999_v0 = vsel %vm10053_vm14, %v7965_v25, %v4998_v39  ;;  %v5002_v32 = vsel %vm10053_vm14, %v5000_v26, %v5001_v49  ;;  %8351 = vmatpush3.bf16.xpose.msra.mxu0 %v11538_v52  ;;  %v6185_v31 = vrot.slane %v6183_v41, 4  ;;  %v5920_v39 = vld [vmem:[#allocation2 + $0x80] sm:$0x1]  ;;  %v5895_v29 = vld [vmem:[#allocation2 + $0x1c] sm:$0xf] }
 0x28a   :  { %8367 = vmatpush3.bf16.xpose.msra.mxu1 %v11530_v15  ;;  %v6188_v34 = vrot.slane %v6186_v38, 5  ;;  %v6567_v4 = vshrl.u32 %v5966_v28, 16  ;;  %v6570_v43 = vshll.u32 %v5966_v28, 16  ;;  %8635 = vmatprep.subr.msk.bf16.mxu0 %vm2077_vm10, %v8004_v8  ;;  %v11660_v35 = vrot.slane %v6192_v56, 5  ;;  %v8764_v49 = vld [vmem:[#allocation2 + $0x120] sm:$0xff]  }
 0x28b   :  { %8642 = vmatprep.subr.msk.bf16.mxu1 %vm2077_vm10, %v8019_v44  ;;  %v6198_v15 = vrot.slane %v6196_v58, 4  ;;  %v6576_v52 = vshll.u32 %v5967_v17, 16  ;;  %v6580_v6 = vshrl.u32 %v5967_v17, 16  ;;  %v11663_v7 = vsel %vm2077_vm10, %v8747_v30, 0  ;;  %v8767_v30 = vld [vmem:[#allocation2 + $0x54] sm:$0xff]  }
 0x28c   :  { %v11666_v63 = vsel %vm2077_vm10, %v8748_v13, 0  ;;  %v5991_v44 = vshrl.u32 %v5894_v61, 16  ;;  %v5994_v55 = vshll.u32 %v5894_v61, 16  ;;  %v7998_v25 = vcombine.low %v4999_v0, %v5002_v32  ;;  %v5968_v13 = vld [vmem:[#allocation2 + $0x158] sm:$0x1]  ;;  %v8768_v0 = vld [vmem:[#allocation2 + $0x12c] sm:$0xff]  }
 0x28d   :  { %v11669_v36 = vsel %vm2077_vm10, %v8751_v53, 0  ;;  %v11672_v21 = vsel %vm2077_vm10, %v8752_v42, 0  ;;  %v11675_v8 = vsel %vm2077_vm10, %v8755_v9, 0  ;;  %v11678_v26 = vsel %vm2077_vm10, %v8756_v48, 0  ;;  %v8771_v32 = vld [vmem:[#allocation2 + $0x60] sm:$0xff]   ;;  %v8772_v42 = vld [vmem:[#allocation2 + $0x138] sm:$0xff]  }
 0x28e   :  { %v6202_v41 = vshll.u32 %v5920_v39, 16  ;;  %v6569_v38 = vrot.slane %v6567_v4, 4  ;;  %v6572_v56 = vrot.slane %v6570_v43, 5  ;;  %v6189_v58 = vor.u32 %v6188_v34, %v6185_v31  ;;  %v5896_v9 = vld [vmem:[#allocation2 + $0x20] sm:$0x1] }
 0x28f   :  { %v6199_v28 = vor.u32 %v6198_v15, %v11660_v35  ;;  %v11681_v53 = vrot.slane %v6576_v52, 5  ;;  %v6582_v17 = vrot.slane %v6580_v6, 4  ;;  %v5993_v61 = vrot.slane %v5991_v44, 4  ;;  %v5942_v43 = vld [vmem:[#allocation2 + $0xf0] sm:$0xf] }
 0x290   :  { %v5996_v60 = vrot.slane %v5994_v55, 5  ;;  %v6000_v48 = vshll.u32 %v5895_v29, 16  ;;  %v6004_v12 = vshrl.u32 %v5895_v29, 16  ;;  %v11684_v62 = vsel %vm2077_vm10, %v7998_v25, 0 }
 0x291   :  { %v11687_v4 = vsel %vm2077_vm10, %v8759_v5, 0  ;;  %v11690_v31 = vsel %vm2077_vm10, %v8760_v51, 0  ;;  %v11693_v34 = vsel %vm2077_vm10, %v8763_v33, 0  ;;  %8353 = vmatpush3.bf16.xpose.msra.mxu0 %v11627_v19  ;;  %v11698_v39 = vsel %vm2077_vm10, %v8764_v49, 0  ;;  %v5943_v5 = vld [vmem:[#allocation2 + $0xf4] sm:$0xf] }
 0x292   :  { %8369 = vmatpush3.bf16.xpose.msra.mxu1 %v11591_v40  ;;  %v11701_v15 = vsel %vm2077_vm10, %v8767_v30, 0  ;;  %v11703_v52 = vrot.slane %v6202_v41, 5  ;;  %v6586_v6 = vshll.u32 %v5968_v13, 16  ;;  %8636 = vmatprep.subr.msk.bf16.mxu0 %vm2077_vm10, %v8005_v16  ;;  %v11713_v40 = vrot.slane %v6189_v58, 4  ;;  %v5944_v41 = vld [vmem:[#allocation2 + $0xf8] sm:$0x1] }
 0x293   :  { %8643 = vmatprep.subr.msk.bf16.mxu1 %vm2077_vm10, %v8020_v50  ;;  %v11715_v19 = vrot.slane %v6199_v28, 4  ;;  %v6573_v51 = vor.u32 %v6572_v56, %v6569_v38  ;;  %v6583_v44 = vor.u32 %v6582_v17, %v11681_v53  ;;  %v5997_v55 = vor.u32 %v5996_v60, %v5993_v61  ;;  %v5922_v38 = vld [vmem:[#allocation2 + $0x88] sm:$0xf]  ;;  %v5969_v56 = vld [vmem:[#allocation2 + $0x15c] sm:$0xf] }
 0x294   :  { %v11718_v25 = vrot.slane %v6000_v48, 5  ;;  %v6006_v33 = vrot.slane %v6004_v12, 4  ;;  %v6010_v29 = vshll.u32 %v5896_v9, 16  ;;  %v6375_v57 = vshrl.u32 %v5942_v43, 16  ;;  %v5921_v12 = vld [vmem:[#allocation2 + $0x84] sm:$0xf] }
 0x295   :  { %v6378_v54 = vshll.u32 %v5942_v43, 16  ;;  %v6384_v50 = vshll.u32 %v5943_v5, 16  ;;  %v6388_v49 = vshrl.u32 %v5943_v5, 16  ;;  %v11724_v11 = vsel %vm2077_vm10, %v8014_v37, 0  ;;  %v5897_v48 = vld [vmem:[#allocation2 + $0x24] sm:$0xf] }
 0x296   :  { %v11727_v45 = vsel %vm2077_vm10, %v8768_v0, 0  ;;  %v11730_v16 = vsel %vm2077_vm10, %v8771_v32, 0  ;;  %v11733_v60 = vsel %vm2077_vm10, %v8772_v42, 0  ;;  %v11743_v20 = vrot.slane %v6573_v51, 4  ;;  %v5970_v0 = vld [vmem:[#allocation2 + $0x160] sm:$0xf] }
 0x297   :  { %12813 = vst [vmem:[#allocation25_spill] sm:$0xff] %v11730_v16  ;;  %12814 = vst [vmem:[#allocation30_spill] sm:$0xff] %v11733_v60  ;;  %v11745_v37 = vrot.slane %v6586_v6, 5  ;;  %v11747_v58 = vrot.slane %v6583_v44, 4  ;;  %v11749_v28 = vrot.slane %v5997_v55, 4  ;;  %v6007_v13 = vor.u32 %v6006_v33, %v11718_v25 }
 0x298   :  { %v11752_v17 = vrot.slane %v6010_v29, 5  ;;  %v6377_v32 = vrot.slane %v6375_v57, 4  ;;  %v6380_v42 = vrot.slane %v6378_v54, 5  ;;  %v11754_v9 = vrot.slane %v6384_v50, 5  ;;  %v5898_v44 = vld [vmem:[#allocation2 + $0x28] sm:$0xf] }
 0x299   :  { %v6390_v61 = vrot.slane %v6388_v49, 4  ;;  %8355 = vmatpush3.bf16.xpose.msra.mxu0 %v11637_v14  ;;  %v6207_v43 = vshrl.u32 %v5921_v12, 16  ;;  %v6210_v6 = vshll.u32 %v5921_v12, 16  ;;  %v6216_v5 = vshll.u32 %v5922_v38, 16  ;;  %v5971_v16 = vld [vmem:[#allocation2 + $0x164] sm:$0x1] }
 0x29a   :  { %8371 = vmatpush3.bf16.xpose.msra.mxu1 %v11630_v27  ;;  %v6220_v51 = vshrl.u32 %v5922_v38, 16  ;;  %v12815_v55 = vcombine.low %v11603_v10, %v11607_v47  ;;  %v12816_v33 = vcombine.low %v11611_v23, %v11615_v3  ;;  %v6591_v29 = vshrl.u32 %v5969_v56, 16 }
 0x29b   :  { %v6594_v57 = vshll.u32 %v5969_v56, 16  ;;  %v6600_v27 = vshll.u32 %v5970_v0, 16  ;;  %v6604_v54 = vshrl.u32 %v5970_v0, 16  ;;  %v11766_v14 = vrot.slane %v6007_v13, 4  ;;  %v5923_v56 = vld [vmem:[#allocation2 + $0x8c] sm:$0x1] }
 0x29c   :  { %8644 = vmatprep.subr.msk.bf16.mxu1 %vm2077_vm10, %v12815_v55  ;;  %8637 = vmatprep.subr.msk.bf16.mxu0 %vm2077_vm10, %v12816_v33  ;;  %v6394_v50 = vshll.u32 %v5944_v41, 16  ;;  %v6015_v49 = vshrl.u32 %v5897_v48, 16  ;;  %v6018_v12 = vshll.u32 %v5897_v48, 16  ;;  %v6381_v38 = vor.u32 %v6380_v42, %v6377_v32  ;;  %v5945_v55 = vld [vmem:[#allocation2 + $0xfc] sm:$0xf] }
 0x29d   :  { %v6391_v30 = vor.u32 %v6390_v61, %v11754_v9  ;;  %v6024_v10 = vshll.u32 %v5898_v44, 16  ;;  %v6028_v47 = vshrl.u32 %v5898_v44, 16  ;;  %v6209_v18 = vrot.slane %v6207_v43, 4 }
 0x29e   :  { %v6212_v23 = vrot.slane %v6210_v6, 5  ;;  %v11769_v3 = vrot.slane %v6216_v5, 5  ;;  %v6222_v33 = vrot.slane %v6220_v51, 4  ;;  %v6593_v60 = vrot.slane %v6591_v29, 4  ;;  %v5899_v5 = vld [vmem:[#allocation2 + $0x2c] sm:$0x1] }
 0x29f   :  { %v6596_v0 = vrot.slane %v6594_v57, 5  ;;  %v11771_v13 = vrot.slane %v6600_v27, 5  ;;  %v6606_v41 = vrot.slane %v6604_v54, 4  ;;  %v6017_v48 = vrot.slane %v6015_v49, 4  ;;  %v5946_v49 = vld [vmem:[#allocation2 + $0x100] sm:$0xf] }
 0x2a0   :  { %v6020_v32 = vrot.slane %v6018_v12, 5  ;;  %v6399_v42 = vshrl.u32 %v5945_v55, 16  ;;  %v6402_v61 = vshll.u32 %v5945_v55, 16  ;;  %v6003_v43 = vsel %vm9364_vm11, %v11749_v28, %v11718_v25 }
 0x2a1   :  { %v6396_v6 = vrot.slane %v6394_v50, 5  ;;  %v11777_v44 = vrot.slane %v6024_v10, 5  ;;  %v6030_v51 = vrot.slane %v6028_v47, 4  ;;  %8357 = vmatpush3.bf16.xpose.msra.mxu0 %v11684_v62  ;;  %v6382_v29 = vrot.slane %v6381_v38, 4 }
 0x2a2   :  { %8373 = vmatpush3.bf16.xpose.msra.mxu1 %v11642_v1  ;;  %v6392_v57 = vrot.slane %v6391_v30, 4  ;;  %v6213_v27 = vor.u32 %v6212_v23, %v6209_v18  ;;  %v6226_v54 = vshll.u32 %v5923_v56, 16  ;;  %v12817_v12 = vcombine.low %v11620_v2, %v11624_v59  ;;  %8646 = vmatprep.subr.msk.bf16.mxu0 %vm2077_vm10, %v8745_v22  ;;  %v8775_v22 = vld [vmem:[#allocation2 + $0x6c] sm:$0xff]  }
 0x2a3   :  { %v6223_v25 = vor.u32 %v6222_v33, %v11769_v3  ;;  %v6597_v28 = vor.u32 %v6596_v0, %v6593_v60  ;;  %v6607_v50 = vor.u32 %v6606_v41, %v11771_v13  ;;  %v6610_v1 = vshll.u32 %v5971_v16, 16  ;;  %v8746_v33 = vld [vmem:[#allocation2 + $0x150] sm:$0xff]  }
 0x2a4   :  { %8645 = vmatprep.subr.msk.bf16.mxu1 %vm2077_vm10, %v12817_v12  ;;  %v6013_v18 = vsel %vm9364_vm11, %v11766_v14, %v11752_v17  ;;  %v6021_v62 = vor.u32 %v6020_v32, %v6017_v48  ;;  %v6401_v30 = vrot.slane %v6399_v42, 4  ;;  %v6404_v38 = vrot.slane %v6402_v61, 5  ;;  %v8749_v17 = vld [vmem:[#allocation2 + $0x84] sm:$0xff]  }
 0x2a5   :  { %v6031_v2 = vor.u32 %v6030_v51, %v11777_v44  ;;  %v6034_v59 = vshll.u32 %v5899_v5, 16  ;;  %v6408_v10 = vshll.u32 %v5946_v49, 16  ;;  %v6412_v47 = vshrl.u32 %v5946_v49, 16  ;;  %v11798_v48 = vld [vmem:[#allocation6 + $0x30] sm:$0xff]   ;;  %v5925_v49 = vld [vmem:[#allocation2 + $0x94] sm:$0xf] }
 0x2a6   :  { %v6387_v60 = vsel %vm9364_vm11, %v6382_v29, %v11754_v9  ;;  %v6397_v16 = vsel %vm9364_vm11, %v6392_v57, %v6396_v6  ;;  %v6214_v55 = vrot.slane %v6213_v27, 4  ;;  %v6228_v23 = vrot.slane %v6226_v54, 5  ;;  %v5947_v61 = vld [vmem:[#allocation2 + $0x104] sm:$0x1]  ;;  %v5924_v27 = vld [vmem:[#allocation2 + $0x90] sm:$0xf] }
 0x2a7   :  { %v6224_v14 = vrot.slane %v6223_v25, 4  ;;  %v6598_v56 = vrot.slane %v6597_v28, 4  ;;  %v6608_v0 = vrot.slane %v6607_v50, 4  ;;  %v6612_v41 = vrot.slane %v6610_v1, 5  ;;  %v5926_v25 = vld [vmem:[#allocation2 + $0x98] sm:$0x1] }
 0x2a8   :  { %v6579_v32 = vsel %vm9364_vm11, %v11743_v20, %v11681_v53  ;;  %v6589_v9 = vsel %vm9364_vm11, %v11747_v58, %v11745_v37  ;;  %v6022_v42 = vrot.slane %v6021_v62, 4  ;;  %v6405_v6 = vor.u32 %v6404_v38, %v6401_v30  ;;  %8359 = vmatmul.mubr.msk.bf16.vlgmr.msra.gmra.mrb[0].mxu0 %vm2077_vm10, %v11398_v46  ;;  %v8776_v20 = vld [vmem:[#allocation2 + $0x144] sm:$0xff]   ;;  %v8750_v38 = vld [vmem:[#allocation2 + $0x15c] sm:$0xff]  }
 0x2a9   :  { %v6032_v5 = vrot.slane %v6031_v2, 4  ;;  %v6036_v51 = vrot.slane %v6034_v59, 5  ;;  %v11810_v29 = vrot.slane %v6408_v10, 5  ;;  %v6414_v57 = vrot.slane %v6412_v47, 4  ;;  %8379 = vmatpush3.bf16.xpose.msra.mxu0 %v11663_v7  ;;  %8394 = vmatprep.mubr.msk.bf16.mxu0 %vm2077_vm10, %v11798_v48  ;;  %v8753_v2 = vld [vmem:[#allocation2 + $0x90] sm:$0xff]  }
 0x2aa   :  { %8375 = vmatpush3.bf16.xpose.msra.mxu1 %v11724_v11  ;;  %v11815_v53 = vsel %vm2077_vm10, %v8775_v22, 0  ;;  %v8061_v37 = vcombine.low %v6003_v43, %v6013_v18  ;;  %v8077_v58 = vcombine.low %v6387_v60, %v6397_v16  ;;  %v6219_v54 = vsel %vm9364_vm11, %v6214_v55, %v11769_v3  ;;  %8647 = vmatprep.subr.msk.bf16.mxu0 %vm2077_vm10, %v8749_v17  ;;  %v5972_v16 = vld [vmem:[#allocation2 + $0x168] sm:$0xf]  ;;  %v5901_v17 = vld [vmem:[#allocation2 + $0x34] sm:$0xf] }
 0x2ab   :  { %8654 = vmatprep.subr.msk.bf16.mxu1 %vm2077_vm10, %v8746_v33  ;;  %v6229_v11 = vsel %vm9364_vm11, %v6224_v14, %v6228_v23  ;;  %v6603_v7 = vsel %vm9364_vm11, %v6598_v56, %v11771_v13  ;;  %v6613_v43 = vsel %vm9364_vm11, %v6608_v0, %v6612_v41  ;;  %v6418_v12 = vshll.u32 %v5947_v61, 16  ;;  %v5948_v0 = vld [vmem:[#allocation2 + $0x108] sm:$0xf]  ;;  %v5949_v61 = vld [vmem:[#allocation2 + $0x10c] sm:$0xf] }
 0x2ac   :  { %v6027_v3 = vsel %vm9364_vm11, %v6022_v42, %v11777_v44  ;;  %v11834_v28 = vrot.slane %v6405_v6, 4  ;;  %v6231_v50 = vshrl.u32 %v5924_v27, 16  ;;  %v6234_v1 = vshll.u32 %v5924_v27, 16 }
 0x2ad   :  { %v6037_v18 = vsel %vm9364_vm11, %v6032_v5, %v6036_v51  ;;  %v6415_v13 = vor.u32 %v6414_v57, %v11810_v29  ;;  %v6240_v62 = vshll.u32 %v5925_v49, 16  ;;  %v6244_v30 = vshrl.u32 %v5925_v49, 16  ;;  %v5973_v5 = vld [vmem:[#allocation2 + $0x16c] sm:$0xf] }
 0x2ae   :  { %v11840_v59 = vsel %vm2077_vm10, %v8776_v20, 0  ;;  %v12818_v44 = vsel %vm9364_vm11, %v11715_v19, %v11703_v52  ;;  %v12819_v10 = vsel %vm9364_vm11, %v11713_v40, %v11660_v35  ;;  %v11854_v22 = vcombine.low %v6579_v32, %v6589_v9  ;;  %v5900_v19 = vld [vmem:[#allocation2 + $0x30] sm:$0xf] }
 0x2af   :  { %v11852_v47 = vcombine.low %v12819_v10, %v12818_v44  ;;  %v6250_v60 = vshll.u32 %v5926_v25, 16  ;;  %v11857_v55 = vsel %vm2077_vm10, %v8061_v37, 0  ;;  %v11860_v23 = vsel %vm2077_vm10, %v8077_v58, 0  ;;  %v5974_v25 = vld [vmem:[#allocation2 + $0x170] sm:$0x1] }
 0x2b0   :  { %v11862_v33 = vcombine.low %v6219_v54, %v6229_v11  ;;  %v11864_v52 = vcombine.low %v6603_v7, %v6613_v43  ;;  %v8062_v14 = vcombine.low %v6027_v3, %v6037_v18  ;;  %v11866_v35 = vrot.slane %v6418_v12, 5  ;;  %v8754_v11 = vld [vmem:[#allocation2 + $0x168] sm:$0xff]   ;;  %v8757_v7 = vld [vmem:[#allocation2 + $0x9c] sm:$0xff]  }
 0x2b1   :  { %v6233_v40 = vrot.slane %v6231_v50, 4  ;;  %v6236_v56 = vrot.slane %v6234_v1, 5  ;;  %8377 = vmatmul.mubr.msk.bf16.vlgmr.msra.gmra.mrb[0].mxu1 %vm2077_vm10, %v11398_v46  ;;  %v11874_v32 = vrot.slane %v6415_v13, 4  ;;  %v11876_v9 = vrot.slane %v6240_v62, 5  ;;  %8381 = vmatpush3.bf16.xpose.msra.mxu0 %v11669_v36  ;;  %v5927_v1 = vld [vmem:[#allocation2 + $0x9c] sm:$0xf] }
 0x2b2   :  { %12820 = vst [vmem:[#allocation31_spill] sm:$0xff] %v11864_v52  ;;  %v11878_v42 = vrot.slane %v6244_v30, 4  ;;  %8397 = vmatpush3.bf16.xpose.msra.mxu1 %v11666_v63  ;;  %v11882_v6 = vrot.slane %v6250_v60, 5  ;;  %v6615_v46 = vshrl.u32 %v5972_v16, 16  ;;  %v6039_v51 = vshrl.u32 %v5900_v19, 16  ;;  %8648 = vmatprep.subr.msk.bf16.mxu0 %vm2077_vm10, %v8753_v2 }
 0x2b3   :  { %v6042_v57 = vshll.u32 %v5900_v19, 16  ;;  %8655 = vmatprep.subr.msk.bf16.mxu1 %vm2077_vm10, %v8750_v38  ;;  %v6048_v27 = vshll.u32 %v5901_v17, 16  ;;  %v6052_v20 = vshrl.u32 %v5901_v17, 16  ;;  %v6423_v37 = vshrl.u32 %v5948_v0, 16  ;;  %8412 = vmatprep.mubr.msk.bf16.mxu1 %vm2077_vm10, %v11798_v48  ;;  %v5928_v38 = vld [vmem:[#allocation2 + $0xa0] sm:$0xf] }
 0x2b4   :  { %v6426_v58 = vshll.u32 %v5948_v0, 16  ;;  %v11889_v63 = vsel %vm2077_vm10, %v8062_v14, 0  ;;  %v6237_v36 = vor.u32 %v6236_v56, %v6233_v40  ;;  %v6432_v54 = vshll.u32 %v5949_v61, 16  ;;  %v5902_v2 = vld [vmem:[#allocation2 + $0x38] sm:$0x1] }
 0x2b5   :  { %v6436_v49 = vshrl.u32 %v5949_v61, 16  ;;  %v6247_v12 = vor.u32 %v11878_v42, %v11876_v9  ;;  %v6618_v3 = vshll.u32 %v5972_v16, 16  ;;  %v6624_v50 = vshll.u32 %v5973_v5, 16  ;;  %v5950_v17 = vld [vmem:[#allocation2 + $0x110] sm:$0x1] }
 0x2b6   :  { %v11897_v18 = vrot.slane %v6615_v46, 4  ;;  %v6628_v13 = vshrl.u32 %v5973_v5, 16  ;;  %v6041_v62 = vrot.slane %v6039_v51, 4  ;;  %v6044_v30 = vrot.slane %v6042_v57, 5  ;;  %v5975_v46 = vld [vmem:[#allocation2 + $0x174] sm:$0xf] }
 0x2b7   :  { %v11899_v44 = vrot.slane %v6048_v27, 5  ;;  %v6054_v10 = vrot.slane %v6052_v20, 4  ;;  %v6425_v60 = vrot.slane %v6423_v37, 4  ;;  %v6428_v19 = vrot.slane %v6426_v58, 5 }
 0x2b8   :  { %v11901_v14 = vrot.slane %v6432_v54, 5  ;;  %v6438_v40 = vrot.slane %v6436_v49, 4  ;;  %v6255_v56 = vshrl.u32 %v5927_v1, 16  ;;  %v6258_v16 = vshll.u32 %v5927_v1, 16 }
 0x2b9   :  { %v11903_v0 = vrot.slane %v6237_v36, 4  ;;  %v6620_v42 = vrot.slane %v6618_v3, 5  ;;  %v6264_v61 = vshll.u32 %v5928_v38, 16  ;;  %v6268_v5 = vshrl.u32 %v5928_v38, 16  ;;  %8383 = vmatpush3.bf16.xpose.msra.mxu0 %v11675_v8 }
 0x2ba   :  { %8399 = vmatpush3.bf16.xpose.msra.mxu1 %v11672_v21  ;;  %v11907_v51 = vrot.slane %v6624_v50, 5  ;;  %v6630_v57 = vrot.slane %v6628_v13, 4  ;;  %v6634_v27 = vshll.u32 %v5974_v25, 16  ;;  %v6058_v20 = vshll.u32 %v5902_v2, 16  ;;  %8649 = vmatprep.subr.msk.bf16.mxu0 %vm2077_vm10, %v8757_v7  ;;  %v5929_v50 = vld [vmem:[#allocation2 + $0xa4] sm:$0x1] }
 0x2bb   :  { %8656 = vmatprep.subr.msk.bf16.mxu1 %vm2077_vm10, %v8754_v11  ;;  %v6045_v37 = vor.u32 %v6044_v30, %v6041_v62  ;;  %v6055_v58 = vor.u32 %v6054_v10, %v11899_v44  ;;  %v6429_v36 = vor.u32 %v6428_v19, %v6425_v60  ;;  %v6442_v54 = vshll.u32 %v5950_v17, 16  ;;  %v8758_v11 = vld [vmem:[#allocation2 + $0x174] sm:$0xff]   ;;  %v8761_v2 = vld [vmem:[#allocation2 + $0xa8] sm:$0xff]  }
 0x2bc   :  { %v6439_v49 = vor.u32 %v6438_v40, %v11901_v14  ;;  %v6257_v3 = vrot.slane %v6255_v56, 4  ;;  %v6260_v21 = vrot.slane %v6258_v16, 5  ;;  %v6639_v1 = vshrl.u32 %v5975_v46, 16  ;;  %v5976_v60 = vld [vmem:[#allocation2 + $0x178] sm:$0xf] }
 0x2bd   :  { %v11913_v8 = vrot.slane %v6247_v12, 4  ;;  %v11915_v13 = vrot.slane %v6264_v61, 5  ;;  %v6270_v25 = vrot.slane %v6268_v5, 4  ;;  %v6642_v38 = vshll.u32 %v5975_v46, 16  ;;  %v5903_v56 = vld [vmem:[#allocation2 + $0x3c] sm:$0xf] }
 0x2be   :  { %v6621_v7 = vor.u32 %v6620_v42, %v11897_v18  ;;  %v6631_v62 = vor.u32 %v6630_v57, %v11907_v51  ;;  %v11919_v30 = vrot.slane %v6634_v27, 5  ;;  %v6060_v10 = vrot.slane %v6058_v20, 5  ;;  %v5904_v46 = vld [vmem:[#allocation2 + $0x40] sm:$0xf] }
 0x2bf   :  { %v6046_v19 = vrot.slane %v6045_v37, 4  ;;  %v6056_v17 = vrot.slane %v6055_v58, 4  ;;  %v6430_v40 = vrot.slane %v6429_v36, 4  ;;  %v6444_v12 = vrot.slane %v6442_v54, 5 }
 0x2c0   :  { %v6440_v16 = vrot.slane %v6439_v49, 4  ;;  %v6261_v61 = vor.u32 %v6260_v21, %v6257_v3  ;;  %v6274_v41 = vshll.u32 %v5929_v50, 16  ;;  %v6641_v5 = vrot.slane %v6639_v1, 4  ;;  %v5977_v50 = vld [vmem:[#allocation2 + $0x17c] sm:$0x1] }
 0x2c1   :  { %v6271_v43 = vor.u32 %v6270_v25, %v11915_v13  ;;  %v6644_v52 = vrot.slane %v6642_v38, 5  ;;  %v6648_v18 = vshll.u32 %v5976_v60, 16  ;;  %v6652_v42 = vshrl.u32 %v5976_v60, 16  ;;  %8385 = vmatpush3.bf16.xpose.msra.mxu0 %v11687_v4 }
 0x2c2   :  { %8401 = vmatpush3.bf16.xpose.msra.mxu1 %v11678_v26  ;;  %v6622_v57 = vrot.slane %v6621_v7, 4  ;;  %v6632_v27 = vrot.slane %v6631_v62, 4  ;;  %v6063_v20 = vshrl.u32 %v5903_v56, 16  ;;  %v6066_v37 = vshll.u32 %v5903_v56, 16  ;;  %8650 = vmatprep.subr.msk.bf16.mxu0 %vm2077_vm10, %v8761_v2  ;;  %v8765_v2 = vld [vmem:[#allocation2 + $0xb4] sm:$0xff]  }
 0x2c3   :  { %8657 = vmatprep.subr.msk.bf16.mxu1 %vm2077_vm10, %v8758_v11  ;;  %v6051_v58 = vsel %vm9364_vm11, %v6046_v19, %v11899_v44  ;;  %v6061_v36 = vsel %vm9364_vm11, %v6056_v17, %v6060_v10  ;;  %v6072_v54 = vshll.u32 %v5904_v46, 16  ;;  %v6076_v49 = vshrl.u32 %v5904_v46, 16  ;;  %v8762_v11 = vld [vmem:[#allocation2 + $0x180] sm:$0xff]  }
 0x2c4   :  { %v6435_v26 = vsel %vm9364_vm11, %v6430_v40, %v11901_v14  ;;  %v6445_v4 = vsel %vm9364_vm11, %v6440_v16, %v6444_v12  ;;  %v6262_v3 = vrot.slane %v6261_v61, 4  ;;  %v6276_v21 = vrot.slane %v6274_v41, 5  ;;  %v5952_v40 = vld [vmem:[#allocation2 + $0x118] sm:$0xf] }
 0x2c5   :  { %v6272_v1 = vrot.slane %v6271_v43, 4  ;;  %v6645_v25 = vor.u32 %v6644_v52, %v6641_v5  ;;  %v11936_v38 = vrot.slane %v6648_v18, 5  ;;  %v6654_v44 = vrot.slane %v6652_v42, 4  ;;  %v5953_v18 = vld [vmem:[#allocation2 + $0x11c] sm:$0x1] }
 0x2c6   :  { %v12821_v7 = vsel %vm9364_vm11, %v11874_v32, %v11866_v35  ;;  %v12822_v14 = vsel %vm9364_vm11, %v11834_v28, %v11810_v29  ;;  %v6243_v52 = vsel %vm9364_vm11, %v11903_v0, %v11876_v9  ;;  %v6065_v41 = vrot.slane %v6063_v20, 4  ;;  %v5905_v32 = vld [vmem:[#allocation2 + $0x44] sm:$0x1]  ;;  %v5951_v28 = vld [vmem:[#allocation2 + $0x114] sm:$0xf] }
 0x2c7   :  { %v8078_v62 = vcombine.low %v12822_v14, %v12821_v7  ;;  %v6068_v43 = vrot.slane %v6066_v37, 5  ;;  %v6253_v10 = vsel %vm9364_vm11, %v11913_v8, %v11882_v6  ;;  %v6627_v35 = vsel %vm9364_vm11, %v6622_v57, %v11907_v51  ;;  %v5930_v20 = vld [vmem:[#allocation2 + $0xa8] sm:$0xf]  ;;  %v8766_v37 = vld [vmem:[#allocation2 + $0x18c] sm:$0xff]  }
 0x2c8   :  { %v11959_v60 = vrot.slane %v6072_v54, 5  ;;  %v6078_v29 = vrot.slane %v6076_v49, 4  ;;  %v6637_v9 = vsel %vm9364_vm11, %v6632_v27, %v11919_v30  ;;  %v8063_v0 = vcombine.low %v6051_v58, %v6061_v36  ;;  %v8769_v58 = vld [vmem:[#allocation2 + $0xc0] sm:$0xff]  }
 0x2c9   :  { %v8079_v19 = vcombine.low %v6435_v26, %v6445_v4  ;;  %v6658_v17 = vshll.u32 %v5977_v50, 16  ;;  %v6267_v6 = vsel %vm9364_vm11, %v6262_v3, %v11915_v13  ;;  %v6277_v51 = vsel %vm9364_vm11, %v6272_v1, %v6276_v21  ;;  %8387 = vmatpush3.bf16.xpose.msra.mxu0 %v11693_v34  ;;  %v5931_v4 = vld [vmem:[#allocation2 + $0xac] sm:$0xf]  ;;  %v5978_v3 = vld [vmem:[#allocation2 + $0x180] sm:$0xf] }
 0x2ca   :  { %v11969_v8 = vrot.slane %v6645_v25, 4  ;;  %v6655_v12 = vor.u32 %v6654_v44, %v11936_v38  ;;  %8403 = vmatpush3.bf16.xpose.msra.mxu1 %v11690_v31  ;;  %v6069_v30 = vor.u32 %v6068_v43, %v6065_v41  ;;  %v6082_v56 = vshll.u32 %v5905_v32, 16  ;;  %8651 = vmatprep.subr.msk.bf16.mxu0 %vm2077_vm10, %v8765_v2  ;;  %v5979_v44 = vld [vmem:[#allocation2 + $0x184] sm:$0xf] }
 0x2cb   :  { %v6447_v16 = vshrl.u32 %v5951_v28, 16  ;;  %v6450_v61 = vshll.u32 %v5951_v28, 16  ;;  %8658 = vmatprep.subr.msk.bf16.mxu1 %vm2077_vm10, %v8762_v11  ;;  %v11977_v13 = vsel %vm2077_vm10, %v8078_v62, 0  ;;  %v11979_v5 = vcombine.low %v6243_v52, %v6253_v10  ;;  %v5906_v62 = vld [vmem:[#allocation2 + $0x48] sm:$0xf] }
 0x2cc   :  { %v6079_v46 = vor.u32 %v6078_v29, %v11959_v60  ;;  %v6456_v42 = vshll.u32 %v5952_v40, 16  ;;  %v11982_v31 = vcombine.low %v6627_v35, %v6637_v9  ;;  %v11985_v34 = vsel %vm2077_vm10, %v8063_v0, 0  ;;  %v5907_v35 = vld [vmem:[#allocation2 + $0x4c] sm:$0xf] }
 0x2cd   :  { %v11987_v57 = vrot.slane %v6658_v17, 5  ;;  %v6460_v27 = vshrl.u32 %v5952_v40, 16  ;;  %v11990_v36 = vsel %vm2077_vm10, %v8079_v19, 0  ;;  %v11992_v54 = vcombine.low %v6267_v6, %v6277_v51 }
 0x2ce   :  { %v11998_v26 = vrot.slane %v6655_v12, 4  ;;  %v12000_v21 = vrot.slane %v6069_v30, 4  ;;  %v12002_v1 = vrot.slane %v6082_v56, 5  ;;  %v6449_v50 = vrot.slane %v6447_v16, 4 }
 0x2cf   :  { %v6452_v25 = vrot.slane %v6450_v61, 5  ;;  %v12004_v11 = vrot.slane %v6079_v46, 4  ;;  %v12006_v2 = vrot.slane %v6456_v42, 5  ;;  %v6466_v7 = vshll.u32 %v5953_v18, 16  ;;  %v5955_v46 = vld [vmem:[#allocation2 + $0x124] sm:$0xf] }
 0x2d0   :  { %v6279_v14 = vshrl.u32 %v5930_v20, 16  ;;  %v6462_v52 = vrot.slane %v6460_v27, 4  ;;  %v6282_v41 = vshll.u32 %v5930_v20, 16  ;;  %v6288_v43 = vshll.u32 %v5931_v4, 16  ;;  %v8770_v18 = vld [vmem:[#allocation2 + $0x198] sm:$0xff]   ;;  %v8773_v42 = vld [vmem:[#allocation2 + $0xcc] sm:$0xff]  }
 0x2d1   :  { %v6292_v10 = vshrl.u32 %v5931_v4, 16  ;;  %v6663_v32 = vshrl.u32 %v5978_v3, 16  ;;  %v6666_v29 = vshll.u32 %v5978_v3, 16  ;;  %v6672_v28 = vshll.u32 %v5979_v44, 16  ;;  %8389 = vmatpush3.bf16.xpose.msra.mxu0 %v11701_v15  ;;  %v12021_v27 = vld [vmem:[#allocation2 + $0xb0] sm:$0x1] }
 0x2d2   :  { %v6676_v9 = vshrl.u32 %v5979_v44, 16  ;;  %8405 = vmatpush3.bf16.xpose.msra.mxu1 %v11698_v39  ;;  %v6075_v0 = vsel %vm9364_vm11, %v12000_v21, %v11959_v60  ;;  %v6453_v19 = vor.u32 %v6452_v25, %v6449_v50  ;;  %v6087_v17 = vshrl.u32 %v5906_v62, 16  ;;  %8652 = vmatprep.subr.msk.bf16.mxu0 %vm2077_vm10, %v8769_v58  ;;  %v5954_v39 = vld [vmem:[#allocation2 + $0x120] sm:$0xf]  ;;  %v5980_v3 = vld [vmem:[#allocation2 + $0x188] sm:$0x1] }
 0x2d3   :  { %v6090_v40 = vshll.u32 %v5906_v62, 16  ;;  %8659 = vmatprep.subr.msk.bf16.mxu1 %vm2077_vm10, %v8766_v37  ;;  %v12016_v6 = vrot.slane %v6466_v7, 5  ;;  %v6281_v51 = vrot.slane %v6279_v14, 4  ;;  %v6096_v12 = vshll.u32 %v5907_v35, 16  ;;  %v5908_v14 = vld [vmem:[#allocation2 + $0x50] sm:$0x1] }
 0x2d4   :  { %v6100_v30 = vshrl.u32 %v5907_v35, 16  ;;  %v6463_v15 = vor.u32 %v6462_v52, %v12006_v2  ;;  %v6284_v56 = vrot.slane %v6282_v41, 5  ;;  %v12019_v16 = vrot.slane %v6288_v43, 5  ;;  %v12824_v60 = vld [vmem:[#allocation30_spill] sm:$0xff] }
 0x2d5   :  { %v6294_v61 = vrot.slane %v6292_v10, 4  ;;  %v6665_v20 = vrot.slane %v6663_v32, 4  ;;  %v6668_v37 = vrot.slane %v6666_v29, 5  ;;  %v12023_v58 = vrot.slane %v6672_v28, 5 }
 0x2d6   :  { %v6678_v4 = vrot.slane %v6676_v9, 4  ;;  %v6089_v50 = vrot.slane %v6087_v17, 4  ;;  %v6092_v25 = vrot.slane %v6090_v40, 5  ;;  %v6471_v44 = vshrl.u32 %v5954_v39, 16  ;;  %v12823_v40 = vld [vmem:[#allocation25_spill] sm:$0xff] }
 0x2d7   :  { %v6474_v7 = vshll.u32 %v5954_v39, 16  ;;  %v12025_v62 = vrot.slane %v6096_v12, 5  ;;  %v6102_v52 = vrot.slane %v6100_v30, 4  ;;  %v6480_v41 = vshll.u32 %v5955_v46, 16 }
 0x2d8   :  { %v6484_v43 = vshrl.u32 %v5955_v46, 16  ;;  %v6454_v10 = vrot.slane %v6453_v19, 4  ;;  %v6464_v35 = vrot.slane %v6463_v15, 4  ;;  %v6285_v49 = vor.u32 %v6284_v56, %v6281_v51 }
 0x2d9   :  { %v6298_v32 = vshll.u32 %v12021_v27, 16  ;;  %v6295_v29 = vor.u32 %v6294_v61, %v12019_v16  ;;  %v6669_v28 = vor.u32 %v6668_v37, %v6665_v20  ;;  %v6679_v9 = vor.u32 %v6678_v4, %v12023_v58  ;;  %8391 = vmatpush3.bf16.xpose.msra.mxu0 %v12823_v40  ;;  %v5933_v61 = vld [vmem:[#allocation2 + $0xb4] sm:$0xf]  ;;  %v5981_v40 = vld [vmem:[#allocation2 + $0x18c] sm:$0xf] }
 0x2da   :  { %v6682_v17 = vshll.u32 %v5980_v3, 16  ;;  %8407 = vmatpush3.bf16.xpose.msra.mxu1 %v11727_v45  ;;  %v6085_v12 = vsel %vm9364_vm11, %v12004_v11, %v12002_v1  ;;  %v6106_v19 = vshll.u32 %v5908_v14, 16  ;;  %v6473_v30 = vrot.slane %v6471_v44, 4  ;;  %8653 = vmatprep.subr.msk.bf16.mxu0 %vm2077_vm10, %v8773_v42  ;;  %v12047_v44 = vld [vmem:[#allocation2 + $0xb8] sm:$0xf] }
 0x2db   :  { %v6476_v51 = vrot.slane %v6474_v7, 5  ;;  %8660 = vmatprep.subr.msk.bf16.mxu1 %vm2077_vm10, %v8770_v18  ;;  %v6093_v39 = vor.u32 %v6092_v25, %v6089_v50  ;;  %v6103_v15 = vor.u32 %v6102_v52, %v12025_v62  ;;  %v12039_v56 = vrot.slane %v6480_v41, 5  ;;  %v5956_v18 = vld [vmem:[#allocation2 + $0x128] sm:$0x1] }
 0x2dc   :  { %v6486_v45 = vrot.slane %v6484_v43, 4  ;;  %v6459_v46 = vsel %vm9364_vm11, %v6454_v10, %v12006_v2  ;;  %v6469_v1 = vsel %vm9364_vm11, %v6464_v35, %v12016_v6  ;;  %v6286_v11 = vrot.slane %v6285_v49, 4  ;;  %v8774_v52 = vld [vmem:[#allocation2 + $0x1a4] sm:$0xff]  }
 0x2dd   :  { %v6300_v20 = vrot.slane %v6298_v32, 5  ;;  %v6296_v37 = vrot.slane %v6295_v29, 4  ;;  %v6670_v42 = vrot.slane %v6669_v28, 4  ;;  %v6680_v4 = vrot.slane %v6679_v9, 4  ;;  %v12067_v9 = vld [vmem:[#allocation2 + $0xbc] sm:$0x1] }
 0x2de   :  { %v6684_v3 = vrot.slane %v6682_v17, 5  ;;  %v6108_v50 = vrot.slane %v6106_v19, 5  ;;  %v6477_v25 = vor.u32 %v6476_v51, %v6473_v30  ;;  %v6303_v7 = vshrl.u32 %v5933_v61, 16 }
 0x2df   :  { %v6306_v14 = vshll.u32 %v5933_v61, 16  ;;  %v6094_v41 = vrot.slane %v6093_v39, 4  ;;  %v6104_v2 = vrot.slane %v6103_v15, 4  ;;  %v6487_v43 = vor.u32 %v6486_v45, %v12039_v56  ;;  %v12098_v45 = vld [vmem:[#allocation2 + $0x58] sm:$0xf] }
 0x2e0   :  { %v6490_v10 = vshll.u32 %v5956_v18, 16  ;;  %v6661_v49 = vsel %vm9364_vm11, %v11998_v26, %v11987_v57  ;;  %v8064_v6 = vcombine.low %v6075_v0, %v6085_v12  ;;  %v8080_v35 = vcombine.low %v6459_v46, %v6469_v1 }
 0x2e1   :  { %v6291_v32 = vsel %vm9364_vm11, %v6286_v11, %v12019_v16  ;;  %v6301_v29 = vsel %vm9364_vm11, %v6296_v37, %v6300_v20  ;;  %v6675_v28 = vsel %vm9364_vm11, %v6670_v42, %v12023_v58  ;;  %v6312_v57 = vshll.u32 %v12047_v44, 16  ;;  %8393 = vmatpush3.bf16.xpose.msra.mxu0 %v11815_v53  ;;  %v12110_v42 = vld [vmem:[#allocation2 + $0x130] sm:$0xf] }
 0x2e2   :  { %v6316_v26 = vshrl.u32 %v12047_v44, 16  ;;  %8409 = vmatpush3.bf16.xpose.msra.mxu1 %v12824_v60  ;;  %v6685_v21 = vsel %vm9364_vm11, %v6680_v4, %v6684_v3  ;;  %v6478_v0 = vrot.slane %v6477_v25, 4  ;;  %v6305_v16 = vrot.slane %v6303_v7, 4  ;;  %8662 = vmatprep.subr.msk.bf16.mxu0 %vm2077_vm10, %v11852_v47  ;;  %v12114_v3 = vld [vmem:[#allocation2 + $0x190] sm:$0xf] }
 0x2e3   :  { %v6308_v17 = vrot.slane %v6306_v14, 5  ;;  %8661 = vmatprep.subr.msk.bf16.mxu1 %vm2077_vm10, %v8774_v52  ;;  %v6099_v58 = vsel %vm9364_vm11, %v6094_v41, %v12025_v62  ;;  %v6109_v12 = vsel %vm9364_vm11, %v6104_v2, %v6108_v50  ;;  %v6488_v53 = vrot.slane %v6487_v43, 4  ;;  %v5909_v62 = vld [vmem:[#allocation2 + $0x54] sm:$0xf] }
 0x2e4   :  { %v6492_v19 = vrot.slane %v6490_v10, 5  ;;  %v12825_v30 = vsel %vm9364_vm11, %v11969_v8, %v11936_v38  ;;  %v12091_v39 = vsel %vm2077_vm10, %v8064_v6, 0  ;;  %v12094_v47 = vsel %vm2077_vm10, %v8080_v35, 0  ;;  %v5957_v38 = vld [vmem:[#allocation2 + $0x12c] sm:$0xf] }
 0x2e5   :  { %v12088_v51 = vcombine.low %v12825_v30, %v6661_v49  ;;  %v12096_v15 = vcombine.low %v6291_v32, %v6301_v29  ;;  %v12100_v61 = vrot.slane %v6312_v57, 5  ;;  %v6318_v46 = vrot.slane %v6316_v26, 4  ;;  %v12117_v14 = vld [vmem:[#allocation2 + $0x194] sm:$0x1]  ;;  %v5936_v32 = vld [vmem:[#allocation2 + $0xc0] sm:$0xf] }
 0x2e6   :  { %v6322_v1 = vshll.u32 %v12067_v9, 16  ;;  %v6687_v11 = vshrl.u32 %v5981_v40, 16  ;;  %v12103_v8 = vcombine.low %v6675_v28, %v6685_v21  ;;  %v12105_v20 = vcombine.low %v6099_v58, %v6109_v12  ;;  %v12137_v26 = vld [vmem:[#allocation2 + $0x5c] sm:$0x1] }
 0x2e7   :  { %v6483_v18 = vsel %vm9364_vm11, %v6478_v0, %v12039_v56  ;;  %v6309_v37 = vor.u32 %v6308_v17, %v6305_v16  ;;  %v6493_v4 = vsel %vm9364_vm11, %v6488_v53, %v6492_v19  ;;  %v6111_v50 = vshrl.u32 %v5909_v62, 16  ;;  %v12120_v56 = vld [vmem:[#allocation6 + $0x38] sm:$0xff]   ;;  %v12147_v16 = vld [vmem:[#allocation2 + $0xc4] sm:$0xf] }
 0x2e8   :  { %v6114_v25 = vshll.u32 %v5909_v62, 16  ;;  %v6120_v7 = vshll.u32 %v12098_v45, 16  ;;  %v6690_v52 = vshll.u32 %v5981_v40, 16  ;;  %v6124_v41 = vshrl.u32 %v12098_v45, 16  ;;  %8395 = vmatmul.mubr.msk.bf16.vlgmr.msra.gmra.mrb[0].mxu0 %vm2077_vm10, %v11798_v48  ;;  %v12149_v40 = vld [vmem:[#allocation2 + $0x134] sm:$0x1] }
 0x2e9   :  { %v6495_v2 = vshrl.u32 %v5957_v38, 16  ;;  %v6498_v43 = vshll.u32 %v5957_v38, 16  ;;  %v6319_v10 = vor.u32 %v6318_v46, %v12100_v61  ;;  %v12125_v49 = vrot.slane %v6322_v1, 5  ;;  %8415 = vmatpush3.bf16.xpose.msra.mxu0 %v11857_v55  ;;  %8430 = vmatprep.mubr.msk.bf16.mxu0 %vm2077_vm10, %v12120_v56  ;;  %v5984_v62 = vld [vmem:[#allocation2 + $0x198] sm:$0xf] }
 0x2ea   :  { %v12127_v6 = vrot.slane %v6687_v11, 4  ;;  %v6504_v35 = vshll.u32 %v12110_v42, 16  ;;  %8411 = vmatpush3.bf16.xpose.msra.mxu1 %v11840_v59  ;;  %v12132_v29 = vcombine.low %v6483_v18, %v6493_v4  ;;  %v12134_v28 = vrot.slane %v6309_v37, 4  ;;  %8663 = vmatprep.subr.msk.bf16.mxu0 %vm2077_vm10, %v11862_v33  ;;  %v12160_v18 = vld [vmem:[#allocation2 + $0x19c] sm:$0xf] }
 0x2eb   :  { %v6696_v57 = vshll.u32 %v12114_v3, 16  ;;  %v6508_v60 = vshrl.u32 %v12110_v42, 16  ;;  %8670 = vmatprep.subr.msk.bf16.mxu1 %vm2077_vm10, %v11854_v22  ;;  %v6700_v59 = vshrl.u32 %v12114_v3, 16  ;;  %v6113_v21 = vrot.slane %v6111_v50, 4 }
 0x2ec   :  { %v6116_v55 = vrot.slane %v6114_v25, 5  ;;  %v12145_v0 = vrot.slane %v6120_v7, 5  ;;  %v6126_v17 = vrot.slane %v6124_v41, 4  ;;  %v6497_v58 = vrot.slane %v6495_v2, 4 }
 0x2ed   :  { %v6500_v12 = vrot.slane %v6498_v43, 5  ;;  %v6327_v53 = vshrl.u32 %v5936_v32, 16  ;;  %v12153_v22 = vrot.slane %v6319_v10, 4  ;;  %v6692_v33 = vrot.slane %v6690_v52, 5 }
 0x2ee   :  { %v6706_v19 = vshll.u32 %v12117_v14, 16  ;;  %v12156_v30 = vrot.slane %v6504_v35, 5  ;;  %v6510_v46 = vrot.slane %v6508_v60, 4  ;;  %v6330_v1 = vshll.u32 %v5936_v32, 16 }
 0x2ef   :  { %v6336_v11 = vshll.u32 %v12147_v16, 16  ;;  %v6340_v38 = vshrl.u32 %v12147_v16, 16  ;;  %v12162_v37 = vrot.slane %v6696_v57, 5  ;;  %v6702_v4 = vrot.slane %v6700_v59, 4  ;;  %v7704_v57 = vld [vmem:[#allocation8] sm:$0xff] }
 0x2f0   :  { %v6117_v50 = vor.u32 %v6116_v55, %v6113_v21  ;;  %v6130_v25 = vshll.u32 %v12137_v26, 16  ;;  %v6127_v7 = vor.u32 %v6126_v17, %v12145_v0  ;;  %v6501_v52 = vor.u32 %v6500_v12, %v6497_v58  ;;  %v12826_v17 = vld [vmem:[#allocation31_spill] sm:$0xff]  ;;  %v12186_v12 = vld [vmem:[#allocation2 + $0xc8] sm:$0x1]  ;;  %7708 = vperm.xlu0 %8705, %v7704_v57  }
 0x2f1   :  { %v6514_v41 = vshll.u32 %v12149_v40, 16  ;;  %v6329_v2 = vrot.slane %v6327_v53, 4  ;;  %8413 = vmatmul.mubr.msk.bf16.vlgmr.msra.gmra.mrb[0].mxu1 %vm2077_vm10, %v11798_v48  ;;  %v6711_v43 = vshrl.u32 %v5984_v62, 16  ;;  %v6714_v10 = vshll.u32 %v5984_v62, 16  ;;  %8417 = vmatpush3.bf16.xpose.msra.mxu0 %v11889_v63 }
 0x2f2   :  { %v6720_v35 = vshll.u32 %v12160_v18, 16  ;;  %v6724_v32 = vshrl.u32 %v12160_v18, 16  ;;  %8433 = vmatpush3.bf16.xpose.msra.mxu1 %v11860_v23  ;;  %v6511_v60 = vor.u32 %v6510_v46, %v12156_v30  ;;  %v6332_v59 = vrot.slane %v6330_v1, 5  ;;  %8664 = vmatprep.subr.msk.bf16.mxu0 %vm2077_vm10, %v11979_v5 }
 0x2f3   :  { %v12174_v21 = vrot.slane %v6336_v11, 5  ;;  %v6342_v55 = vrot.slane %v6340_v38, 4  ;;  %8671 = vmatprep.subr.msk.bf16.mxu1 %vm2077_vm10, %v12826_v17  ;;  %v6315_v48 = vsel %vm9364_vm11, %v12134_v28, %v12100_v61  ;;  %v6693_v23 = vor.u32 %v6692_v33, %v12127_v6  ;;  %v5912_v11 = vld [vmem:[#allocation2 + $0x60] sm:$0xf]  ;;  %8448 = vmatprep.mubr.msk.bf16.mxu1 %vm2077_vm10, %v12120_v56 }
 0x2f4   :  { %v6703_v63 = vor.u32 %v6702_v4, %v12162_v37  ;;  %v6132_v58 = vrot.slane %v6130_v25, 5  ;;  %v6118_v53 = vrot.slane %v6117_v50, 4  ;;  %v6128_v62 = vrot.slane %v6127_v7, 4  ;;  %v7705_v6 = vld [vmem:[#allocation8 + $0x8] sm:$0xff] }
 0x2f5   :  { %v6502_v46 = vrot.slane %v6501_v52, 4  ;;  %v6516_v1 = vrot.slane %v6514_v41, 5  ;;  %v6713_v5 = vrot.slane %v6711_v43, 4  ;;  %v6716_v38 = vrot.slane %v6714_v10, 5  ;;  %v12194_v25 = vld [vmem:[#allocation2 + $0x1a0] sm:$0x1]  ;;  %7713 = vperm.xlu0 %8705, %v7705_v6  }
 0x2f6   :  { %v12190_v17 = vrot.slane %v6720_v35, 5  ;;  %v6726_v61 = vrot.slane %v6724_v32, 4  ;;  %v6512_v28 = vrot.slane %v6511_v60, 4  ;;  %v6333_v33 = vor.u32 %v6332_v59, %v6329_v2 }
 0x2f7   :  { %v6343_v4 = vor.u32 %v6342_v55, %v12174_v21  ;;  %v6346_v50 = vshll.u32 %v12186_v12, 16  ;;  %v6325_v7 = vsel %vm9364_vm11, %v12153_v22, %v12125_v49  ;;  %v6694_v52 = vrot.slane %v6693_v23, 4 }
 0x2f8   :  { %v6704_v41 = vrot.slane %v6703_v63, 4  ;;  %v6708_v43 = vrot.slane %v6706_v19, 5  ;;  %v6123_v10 = vsel %vm9364_vm11, %v6118_v53, %v12145_v0  ;;  %v6133_v2 = vsel %vm9364_vm11, %v6128_v62, %v6132_v58  ;;  %v12210_v19 = vld [vmem:[#allocation2 + $0x64] sm:$0xf]  ;;  %v12229_v58 = vld [vmem:[#allocation2 + $0x68] sm:$0x1] }
 0x2f9   :  { %v6135_v35 = vshrl.u32 %v5912_v11, 16  ;;  %v6138_v32 = vshll.u32 %v5912_v11, 16  ;;  %v6507_v57 = vsel %vm9364_vm11, %v6502_v46, %v12156_v30  ;;  %v6717_v60 = vor.u32 %v6716_v38, %v6713_v5  ;;  %8419 = vmatpush3.bf16.xpose.msra.mxu0 %v11985_v34  ;;  %v5960_v46 = vld [vmem:[#allocation2 + $0x138] sm:$0xf] }
 0x2fa   :  { %v6727_v49 = vor.u32 %v6726_v61, %v12190_v17  ;;  %v6730_v22 = vshll.u32 %v12194_v25, 16  ;;  %8435 = vmatpush3.bf16.xpose.msra.mxu1 %v11977_v13  ;;  %v6517_v0 = vsel %vm9364_vm11, %v6512_v28, %v6516_v1  ;;  %v6334_v59 = vrot.slane %v6333_v33, 4  ;;  %8665 = vmatprep.subr.msk.bf16.mxu0 %vm2077_vm10, %v11992_v54 }
 0x2fb   :  { %v6344_v55 = vrot.slane %v6343_v4, 4  ;;  %v6348_v23 = vrot.slane %v6346_v50, 5  ;;  %8672 = vmatprep.subr.msk.bf16.mxu1 %vm2077_vm10, %v11982_v31  ;;  %v12222_v30 = vsel %vm2077_vm10, %v12105_v20, 0  ;;  %v6699_v13 = vsel %vm9364_vm11, %v6694_v52, %v12162_v37  ;;  %v12250_v50 = vld [vmem:[#allocation2 + $0x13c] sm:$0xf] }
 0x2fc   :  { %v6709_v34 = vsel %vm9364_vm11, %v6704_v41, %v6708_v43  ;;  %v8066_v63 = vcombine.low %v6123_v10, %v6133_v2  ;;  %v6137_v53 = vrot.slane %v6135_v35, 4  ;;  %v6140_v62 = vrot.slane %v6138_v32, 5  ;;  %v5939_v52 = vld [vmem:[#allocation2 + $0xcc] sm:$0xf]  ;;  %v12254_v2 = vld [vmem:[#allocation2 + $0xd0] sm:$0xf] }
 0x2fd   :  { %v6144_v31 = vshll.u32 %v12210_v19, 16  ;;  %v6148_v54 = vshrl.u32 %v12210_v19, 16  ;;  %v8082_v1 = vcombine.low %v6507_v57, %v6517_v0  ;;  %v6718_v20 = vrot.slane %v6717_v60, 4  ;;  %v5915_v57 = vld [vmem:[#allocation2 + $0x6c] sm:$0xf] }
 0x2fe   :  { %v6728_v11 = vrot.slane %v6727_v49, 4  ;;  %v6732_v5 = vrot.slane %v6730_v22, 5  ;;  %v12235_v37 = vsel %vm2077_vm10, %v12132_v29, 0  ;;  %v6339_v38 = vsel %vm9364_vm11, %v6334_v59, %v12174_v21  ;;  %v12272_v59 = vld [vmem:[#allocation2 + $0x70] sm:$0xf] }
 0x2ff   :  { %v6349_v61 = vsel %vm9364_vm11, %v6344_v55, %v6348_v23  ;;  %v6154_v6 = vshll.u32 %v12229_v58, 16  ;;  %v12243_v28 = vcombine.low %v6315_v48, %v6325_v7  ;;  %v12245_v33 = vcombine.low %v6699_v13, %v6709_v34  ;;  %12827 = vst [vmem:[#allocation32_spill] sm:$0xff] %v12272_v59 }
 0x300   :  { %v12248_v4 = vsel %vm2077_vm10, %v8066_v63, 0  ;;  %v6519_v29 = vshrl.u32 %v5960_v46, 16  ;;  %v6141_v41 = vor.u32 %v6140_v62, %v6137_v53  ;;  %v12252_v43 = vrot.slane %v6144_v31, 5  ;;  %v5987_v62 = vld [vmem:[#allocation2 + $0x1a4] sm:$0xf] }
 0x301   :  { %v6150_v21 = vrot.slane %v6148_v54, 4  ;;  %v6522_v10 = vshll.u32 %v5960_v46, 16  ;;  %v12257_v35 = vsel %vm2077_vm10, %v8082_v1, 0  ;;  %v12259_v48 = vcombine.low %v6339_v38, %v6349_v61  ;;  %8421 = vmatpush3.bf16.xpose.msra.mxu0 %v12091_v39 }
 0x302   :  { %v6723_v7 = vsel %vm9364_vm11, %v6718_v20, %v12190_v17  ;;  %v6733_v32 = vsel %vm9364_vm11, %v6728_v11, %v6732_v5  ;;  %8437 = vmatpush3.bf16.xpose.msra.mxu1 %v11990_v36  ;;  %v12268_v60 = vrot.slane %v6154_v6, 5  ;;  %v6528_v49 = vshll.u32 %v12250_v50, 16  ;;  %8666 = vmatprep.subr.msk.bf16.mxu0 %vm2077_vm10, %v12096_v15  ;;  %v12278_v17 = vld [vmem:[#allocation2 + $0x140] sm:$0x1] }
 0x303   :  { %v6532_v22 = vshrl.u32 %v12250_v50, 16  ;;  %v6351_v0 = vshrl.u32 %v5939_v52, 16  ;;  %8673 = vmatprep.subr.msk.bf16.mxu1 %vm2077_vm10, %v12088_v51  ;;  %12828 = vst [vmem:[#allocation27_spill] sm:$0xff] %v12278_v17  ;;  %v6521_v36 = vrot.slane %v6519_v29, 4  ;;  %v6354_v55 = vshll.u32 %v5939_v52, 16 }
 0x304   :  { %v6360_v39 = vshll.u32 %v12254_v2, 16  ;;  %v6364_v23 = vshrl.u32 %v12254_v2, 16  ;;  %v12282_v13 = vcombine.low %v6723_v7, %v6733_v32  ;;  %v12284_v34 = vrot.slane %v6141_v41, 4  ;;  %v12287_v51 = vld [vmem:[#allocation2 + $0x1a8] sm:$0xf] }
 0x305   :  { %v6151_v63 = vor.u32 %v6150_v21, %v12252_v43  ;;  %v6524_v53 = vrot.slane %v6522_v10, 5  ;;  %12829 = vst [vmem:[#allocation15_spill] sm:$0xff] %v12287_v51  ;;  %v6159_v31 = vshrl.u32 %v5915_v57, 16  ;;  %v6162_v15 = vshll.u32 %v5915_v57, 16  ;;  %v12300_v41 = vld [vmem:[#allocation2 + $0xd4] sm:$0x1] }
 0x306   :  { %v6168_v54 = vshll.u32 %v12272_v59, 16  ;;  %v6172_v46 = vshrl.u32 %v12272_v59, 16  ;;  %v12291_v1 = vrot.slane %v6528_v49, 5  ;;  %v6534_v20 = vrot.slane %v6532_v22, 4  ;;  %v12304_v32 = vld [vmem:[#allocation2 + $0x74] sm:$0x1] }
 0x307   :  { %v6538_v11 = vshll.u32 %v12278_v17, 16  ;;  %v6353_v5 = vrot.slane %v6351_v0, 4  ;;  %v6356_v38 = vrot.slane %v6354_v55, 5  ;;  %v12294_v61 = vrot.slane %v6360_v39, 5  ;;  %12830 = vst [vmem:[#allocation33_spill] sm:$0xff] %v12304_v32 }
 0x308   :  { %v6366_v6 = vrot.slane %v6364_v23, 4  ;;  %v6735_v29 = vshrl.u32 %v5987_v62, 16  ;;  %v6147_v52 = vsel %vm9364_vm11, %v12284_v34, %v12252_v43  ;;  %v6738_v21 = vshll.u32 %v5987_v62, 16  ;;  %v5963_v34 = vld [vmem:[#allocation2 + $0x144] sm:$0xf] }
 0x309   :  { %v6744_v10 = vshll.u32 %v12287_v51, 16  ;;  %v6748_v7 = vshrl.u32 %v12287_v51, 16  ;;  %v6161_v57 = vrot.slane %v6159_v31, 4  ;;  %v6164_v49 = vrot.slane %v6162_v15, 5  ;;  %8423 = vmatpush3.bf16.xpose.msra.mxu0 %v12222_v30  ;;  %v12319_v30 = vld [vmem:[#allocation2 + $0x148] sm:$0xf] }
 0x30a   :  { %v12306_v22 = vrot.slane %v6168_v54, 5  ;;  %v6174_v0 = vrot.slane %v6172_v46, 4  ;;  %8439 = vmatpush3.bf16.xpose.msra.mxu1 %v12094_v47  ;;  %v6152_v55 = vrot.slane %v6151_v63, 4  ;;  %v6525_v43 = vor.u32 %v6524_v53, %v6521_v36  ;;  %8667 = vmatprep.subr.msk.bf16.mxu0 %vm2077_vm10, %v12243_v28  ;;  %v12321_v36 = vld [vmem:[#allocation2 + $0x1ac] sm:$0x1] }
 0x30b   :  { %v6535_v39 = vor.u32 %v6534_v20, %v12291_v1  ;;  %v12311_v23 = vrot.slane %v6538_v11, 5  ;;  %8674 = vmatprep.subr.msk.bf16.mxu1 %vm2077_vm10, %v12103_v8  ;;  %v6357_v62 = vor.u32 %v6356_v38, %v6353_v5  ;;  %v6367_v31 = vor.u32 %v6366_v6, %v12294_v61  ;;  %v12334_v59 = vld [vmem:[#allocation2 + $0x14c] sm:$0x1] }
 0x30c   :  { %v6370_v47 = vshll.u32 %v12300_v41, 16  ;;  %v6737_v15 = vrot.slane %v6735_v29, 4  ;;  %v6740_v63 = vrot.slane %v6738_v21, 5  ;;  %v12323_v53 = vrot.slane %v6744_v10, 5 }
 0x30d   :  { %v6750_v54 = vrot.slane %v6748_v7, 4  ;;  %v6178_v46 = vshll.u32 %v12304_v32, 16  ;;  %v6165_v8 = vor.u32 %v6164_v49, %v6161_v57  ;;  %v6175_v20 = vor.u32 %v6174_v0, %v12306_v22 }
 0x30e   :  { %v6543_v28 = vshrl.u32 %v5963_v34, 16  ;;  %v6546_v11 = vshll.u32 %v5963_v34, 16  ;;  %v6157_v5 = vsel %vm9364_vm11, %v6152_v55, %v12268_v60  ;;  %v6526_v38 = vrot.slane %v6525_v43, 4 }
 0x30f   :  { %v6552_v6 = vshll.u32 %v12319_v30, 16  ;;  %v6556_v29 = vshrl.u32 %v12319_v30, 16  ;;  %v6536_v21 = vrot.slane %v6535_v39, 4  ;;  %v6358_v10 = vrot.slane %v6357_v62, 4 }
 0x310   :  { %v6372_v51 = vrot.slane %v6370_v47, 5  ;;  %v6754_v7 = vshll.u32 %v12321_v36, 16  ;;  %v6368_v32 = vrot.slane %v6367_v31, 4  ;;  %v6741_v57 = vor.u32 %v6740_v63, %v6737_v15  ;;  %v7063_v47 = vld [vmem:[#allocation2 + $0x78] sm:$0xe] }
 0x311   :  { %v6751_v49 = vor.u32 %v6750_v54, %v12323_v53  ;;  %v6180_v0 = vrot.slane %v6178_v46, 5  ;;  %v6166_v34 = vrot.slane %v6165_v8, 4  ;;  %v6176_v17 = vrot.slane %v6175_v20, 4  ;;  %8425 = vmatpush3.bf16.xpose.msra.mxu0 %v12248_v4  ;;  %v8900_v31 = vld [vmem:[#allocation2 + $0x7c] sm:$0xf] }
 0x312   :  { %v6545_v60 = vrot.slane %v6543_v28, 4  ;;  %v6548_v55 = vrot.slane %v6546_v11, 5  ;;  %8441 = vmatpush3.bf16.xpose.msra.mxu1 %v12235_v37  ;;  %v8067_v43 = vcombine.low %v6147_v52, %v6157_v5  ;;  %v12338_v39 = vrot.slane %v6552_v6, 5  ;;  %8668 = vmatprep.subr.msk.bf16.mxu0 %vm2077_vm10, %v12259_v48  ;;  %v7079_v28 = vld [vmem:[#allocation2 + $0x150] sm:$0xe] }
 0x313   :  { %v6558_v62 = vrot.slane %v6556_v29, 4  ;;  %v7241_v15 = vrot.slane %v8900_v31, 5  ;;  %8675 = vmatprep.subr.msk.bf16.mxu1 %vm2077_vm10, %v12245_v33  ;;  %v6531_v63 = vsel %vm9364_vm11, %v6526_v38, %v12291_v1  ;;  %v6541_v37 = vsel %vm9364_vm11, %v6536_v21, %v12311_v23  ;;  %v8901_v5 = vld [vmem:[#allocation2 + $0x80] sm:$0x1]  ;;  %v7055_v6 = vld [vmem:[#allocation2 + $0x18] sm:$0xe] }
 0x314   :  { %v6363_v4 = vsel %vm9364_vm11, %v6358_v10, %v12294_v61  ;;  %v6756_v52 = vrot.slane %v6754_v7, 5  ;;  %v6373_v54 = vsel %vm9364_vm11, %v6368_v32, %v6372_v51  ;;  %v6742_v33 = vrot.slane %v6741_v57, 4  ;;  %v8902_v51 = vld [vmem:[#allocation2 + $0x154] sm:$0xf]  ;;  %v8903_v7 = vld [vmem:[#allocation2 + $0x1c] sm:$0xf] }
 0x315   :  { %v6752_v46 = vrot.slane %v6751_v49, 4  ;;  %v6562_v48 = vshll.u32 %v12334_v59, 16  ;;  %v6171_v1 = vsel %vm9364_vm11, %v6166_v34, %v12306_v22  ;;  %v6181_v8 = vsel %vm9364_vm11, %v6176_v17, %v6180_v0 }
 0x316   :  { %v6549_v23 = vor.u32 %v6548_v55, %v6545_v60  ;;  %v8103_v20 = vrot.slane %v7063_v47, 9  ;;  %v6559_v61 = vor.u32 %v6558_v62, %v12338_v39  ;;  %v7243_v11 = vrot.slane %v7241_v15, 4 }
 0x317   :  { %v7244_v38 = vrot.slane %v8901_v5, 5  ;;  %v7353_v32 = vrot.slane %v8902_v51, 5  ;;  %v6884_v29 = vsel %vm2077_vm10, %v8067_v43, 0  ;;  %v8083_v21 = vcombine.low %v6531_v63, %v6541_v37 }
 0x318   :  { %v8076_v10 = vcombine.low %v6363_v4, %v6373_v54  ;;  %v7185_v22 = vrot.slane %v8903_v7, 5  ;;  %v6747_v17 = vsel %vm9364_vm11, %v6742_v33, %v12323_v53  ;;  %v6757_v57 = vsel %vm9364_vm11, %v6752_v46, %v6756_v52  ;;  %v8904_v53 = vld [vmem:[#allocation2 + $0x158] sm:$0x1]  ;;  %v8905_v52 = vld [vmem:[#allocation2 + $0x20] sm:$0x1] }
 0x319   :  { %v8068_v49 = vcombine.low %v6171_v1, %v6181_v8  ;;  %v6564_v0 = vrot.slane %v6562_v48, 5  ;;  %v6550_v34 = vrot.slane %v6549_v23, 4  ;;  %v7242_v55 = vsel %vm10053_vm14, %v8103_v20, %v7241_v15  ;;  %8427 = vmatpush3.bf16.xpose.msra.mxu0 %v6884_v29  ;;  %v7071_v54 = vld [vmem:[#allocation2 + $0xf0] sm:$0xe]  ;;  %v8906_v33 = vld [vmem:[#allocation2 + $0xf4] sm:$0xf] }
 0x31a   :  { %v8119_v62 = vrot.slane %v7079_v28, 9  ;;  %v8095_v47 = vrot.slane %v7055_v6, 9  ;;  %8443 = vmatpush3.bf16.xpose.msra.mxu1 %v12257_v35  ;;  %v6560_v43 = vrot.slane %v6559_v61, 4  ;;  %v7245_v31 = vsel %vm10053_vm14, %v7243_v11, %v7244_v38  ;;  %8669 = vmatprep.subr.msk.bf16.mxu0 %vm2077_vm10, %v8076_v10  ;;  %v7064_v8 = vld [vmem:[#allocation2 + $0x84] sm:$0xe] }
 0x31b   :  { %v7355_v63 = vrot.slane %v7353_v32, 4  ;;  %v7356_v37 = vrot.slane %v8904_v53, 5  ;;  %8676 = vmatprep.subr.msk.bf16.mxu1 %vm2077_vm10, %v12282_v13  ;;  %v7187_v4 = vrot.slane %v7185_v22, 4  ;;  %v7188_v15 = vrot.slane %v8905_v52, 5  ;;  %v8907_v23 = vld [vmem:[#allocation2 + $0x88] sm:$0xf] }
 0x31c   :  { %v7297_v46 = vrot.slane %v8906_v33, 5  ;;  %v6932_v35 = vsel %vm2077_vm10, %v8083_v21, 0  ;;  %v8092_v48 = vcombine.low %v6747_v17, %v6757_v57  ;;  %v6887_v1 = vsel %vm2077_vm10, %v8068_v49, 0  ;;  %v7056_v6 = vld [vmem:[#allocation2 + $0x24] sm:$0xe] }
 0x31d   :  { %v7248_v20 = vrot.slane %v8907_v23, 5  ;;  %v6555_v13 = vsel %vm9364_vm11, %v6550_v34, %v12338_v39  ;;  %v8136_v28 = vcombine.low %v7242_v55, %v7245_v31  ;;  %v12383_v61 = vsel %vm10053_vm14, %v8119_v62, %v7353_v32  ;;  %v8908_v29 = vld [vmem:[#allocation2 + $0x28] sm:$0xf]  ;;  %v8909_v32 = vld [vmem:[#allocation2 + $0xf8] sm:$0x1] }
 0x31e   :  { %v7186_v11 = vsel %vm10053_vm14, %v8095_v47, %v7185_v22  ;;  %v6565_v5 = vsel %vm9364_vm11, %v6560_v43, %v6564_v0  ;;  %v12391_v38 = vsel %vm10053_vm14, %v7355_v63, %v7356_v37  ;;  %v8111_v51 = vrot.slane %v7071_v54, 9  ;;  %v8910_v22 = vld [vmem:[#allocation2 + $0x8c] sm:$0x1]  ;;  %v8911_v0 = vld [vmem:[#allocation2 + $0x160] sm:$0xf] }
 0x31f   :  { %v7192_v21 = vrot.slane %v8908_v29, 5  ;;  %v7189_v39 = vsel %vm10053_vm14, %v7187_v4, %v7188_v15  ;;  %v7299_v10 = vrot.slane %v7297_v46, 4  ;;  %v7300_v7 = vrot.slane %v8909_v32, 5  ;;  %v7072_v43 = vld [vmem:[#allocation2 + $0xfc] sm:$0xe] }
 0x320   :  { %v8104_v17 = vrot.slane %v7064_v8, 9  ;;  %v7250_v57 = vrot.slane %v7248_v20, 4  ;;  %v7251_v49 = vrot.slane %v8910_v22, 5  ;;  %v7360_v34 = vrot.slane %v8911_v0, 5  ;;  %v8912_v31 = vld [vmem:[#allocation2 + $0x100] sm:$0xf] }
 0x321   :  { %v8084_v55 = vcombine.low %v6555_v13, %v6565_v5  ;;  %v8152_v62 = vcombine.low %v12383_v61, %v12391_v38  ;;  %v8096_v47 = vrot.slane %v7056_v6, 9  ;;  %v7304_v63 = vrot.slane %v8912_v31, 5  ;;  %8429 = vmatpush3.bf16.xpose.msra.mxu0 %v6887_v1  ;;  %v8913_v4 = vld [vmem:[#allocation2 + $0x2c] sm:$0x1]  ;;  %v7065_v15 = vld [vmem:[#allocation2 + $0x90] sm:$0xe] }
 0x322   :  { %8445 = vmatpush3.bf16.xpose.msra.mxu1 %v6932_v35  ;;  %v8128_v53 = vcombine.low %v7186_v11, %v7189_v39  ;;  %v7194_v37 = vrot.slane %v7192_v21, 4  ;;  %v7195_v52 = vrot.slane %v8913_v4, 5  ;;  %v8914_v54 = vld [vmem:[#allocation2 + $0x94] sm:$0xf]  ;;  %8678 = vmatprep.subr.msk.bf16.mxu0 %vm2077_vm10, %v8136_v28  ;;  %v7298_v8 = vsel %vm10053_vm14, %v8111_v51, %v7297_v46  ;;  %v8915_v11 = vld [vmem:[#allocation2 + $0x164] sm:$0x1] }
 0x323   :  { %v7255_v33 = vrot.slane %v8914_v54, 5  ;;  %8677 = vmatprep.subr.msk.bf16.mxu1 %vm2077_vm10, %v8092_v48  ;;  %v7301_v23 = vsel %vm10053_vm14, %v7299_v10, %v7300_v7  ;;  %v7249_v35 = vsel %vm10053_vm14, %v8104_v17, %v7248_v20  ;;  %v8120_v1 = vrot.slane %v7080_v24, 9  ;;  %v8916_v6 = vld [vmem:[#allocation2 + $0x104] sm:$0x1]  ;;  %v8917_v20 = vld [vmem:[#allocation2 + $0x98] sm:$0x1] }
 0x324   :  { %v7252_v13 = vsel %vm10053_vm14, %v7250_v57, %v7251_v49  ;;  %v7362_v61 = vrot.slane %v7360_v34, 4  ;;  %v7363_v5 = vrot.slane %v8915_v11, 5  ;;  %v8112_v38 = vrot.slane %v7072_v43, 9  ;;  %v7081_v32 = vld [vmem:[#allocation2 + $0x168] sm:$0xe]  ;;  %v12423_v4 = vld [vmem:[#allocation6 + $0x40] sm:$0xff]  }
 0x325   :  { %v7193_v48 = vsel %vm10053_vm14, %v8096_v47, %v7192_v21  ;;  %v7306_v28 = vrot.slane %v7304_v63, 4  ;;  %v7307_v46 = vrot.slane %v8916_v6, 5  ;;  %v8105_v51 = vrot.slane %v7065_v15, 9  ;;  %v8918_v7 = vld [vmem:[#allocation2 + $0x34] sm:$0xf] }
 0x326   :  { %v7196_v29 = vsel %vm10053_vm14, %v7194_v37, %v7195_v52  ;;  %v7257_v39 = vrot.slane %v7255_v33, 4  ;;  %v7258_v10 = vrot.slane %v8917_v20, 5  ;;  %v7199_v17 = vrot.slane %v8918_v7, 5  ;;  %v8919_v24 = vld [vmem:[#allocation2 + $0x16c] sm:$0xf] }
 0x327   :  { %v6935_v57 = vsel %vm2077_vm10, %v8084_v55, 0  ;;  %v7515_v22 = vsel %vm2077_vm10, %v8128_v53, 0  ;;  %v8137_v49 = vcombine.low %v7249_v35, %v7252_v13  ;;  %v7367_v21 = vrot.slane %v8919_v24, 5  ;;  %v7057_v0 = vld [vmem:[#allocation2 + $0x30] sm:$0xe] }
 0x328   :  { %v8144_v47 = vcombine.low %v7298_v8, %v7301_v23  ;;  %v12415_v43 = vsel %vm10053_vm14, %v8120_v1, %v7360_v34  ;;  %v12419_v31 = vsel %vm10053_vm14, %v7362_v61, %v7363_v5  ;;  %v7305_v37 = vsel %vm10053_vm14, %v8112_v38, %v7304_v63  ;;  %8431 = vmatmul.mubr.msk.bf16.vlgmr.msra.gmra.mrb[0].mxu0 %vm2077_vm10, %v12120_v56  ;;  %v8920_v8 = vld [vmem:[#allocation2 + $0x38] sm:$0x1]  ;;  %v8921_v1 = vld [vmem:[#allocation2 + $0x170] sm:$0x1]  ;;  %v7073_v61 = vld [vmem:[#allocation2 + $0x108] sm:$0xe] }
 0x329   :  { %v8129_v55 = vcombine.low %v7193_v48, %v7196_v29  ;;  %v7308_v53 = vsel %vm10053_vm14, %v7306_v28, %v7307_v46  ;;  %v7256_v34 = vsel %vm10053_vm14, %v8105_v51, %v7255_v33  ;;  %v8121_v52 = vrot.slane %v7081_v32, 9  ;;  %8451 = vmatpush3.bf16.xpose.msra.mxu0 %v7515_v22  ;;  %v8922_v11 = vld [vmem:[#allocation2 + $0x10c] sm:$0xf]  ;;  %v7066_v48 = vld [vmem:[#allocation2 + $0x9c] sm:$0xe]  ;;  %8466 = vmatprep.mubr.msk.bf16.mxu0 %vm2077_vm10, %v12423_v4 }
 0x32a   :  { %8447 = vmatpush3.bf16.xpose.msra.mxu1 %v6935_v57  ;;  %v7259_v15 = vsel %vm10053_vm14, %v7257_v39, %v7258_v10  ;;  %v8097_v54 = vrot.slane %v7057_v0, 9  ;;  %v7201_v63 = vrot.slane %v7199_v17, 4  ;;  %v7202_v23 = vrot.slane %v8920_v8, 5  ;;  %8679 = vmatprep.subr.msk.bf16.mxu0 %vm2077_vm10, %v8137_v49  ;;  %v8923_v28 = vld [vmem:[#allocation2 + $0xa0] sm:$0xf] }
 0x32b   :  { %8686 = vmatprep.subr.msk.bf16.mxu1 %vm2077_vm10, %v8152_v62  ;;  %v7369_v35 = vrot.slane %v7367_v21, 4  ;;  %v7370_v13 = vrot.slane %v8921_v1, 5  ;;  %v7311_v33 = vrot.slane %v8922_v11, 5  ;;  %v7563_v5 = vsel %vm2077_vm10, %v8144_v47, 0  ;;  %v8924_v32 = vld [vmem:[#allocation2 + $0x40] sm:$0xf] }
 0x32c   :  { %v8153_v38 = vcombine.low %v12415_v43, %v12419_v31  ;;  %v7262_v6 = vrot.slane %v8923_v28, 5  ;;  %v7518_v62 = vsel %vm2077_vm10, %v8129_v55, 0  ;;  %v8145_v46 = vcombine.low %v7305_v37, %v7308_v53  ;;  %v8925_v49 = vld [vmem:[#allocation2 + $0x110] sm:$0x1]  ;;  %v7058_v47 = vld [vmem:[#allocation2 + $0x3c] sm:$0xe] }
 0x32d   :  { %v8138_v51 = vcombine.low %v7256_v34, %v7259_v15  ;;  %v12443_v29 = vsel %vm10053_vm14, %v8121_v52, %v7367_v21  ;;  %v7200_v39 = vsel %vm10053_vm14, %v8097_v54, %v7199_v17  ;;  %v7203_v20 = vsel %vm10053_vm14, %v7201_v63, %v7202_v23  ;;  %v8926_v43 = vld [vmem:[#allocation2 + $0xa4] sm:$0x1]  ;;  %v8927_v37 = vld [vmem:[#allocation2 + $0x178] sm:$0xf]  ;;  %v7082_v34 = vld [vmem:[#allocation2 + $0x174] sm:$0xe] }
 0x32e   :  { %v8113_v10 = vrot.slane %v7073_v61, 9  ;;  %v7206_v7 = vrot.slane %v8924_v32, 5  ;;  %v12451_v57 = vsel %vm10053_vm14, %v7369_v35, %v7370_v13  ;;  %v7313_v22 = vrot.slane %v7311_v33, 4  ;;  %v8928_v52 = vld [vmem:[#allocation2 + $0x118] sm:$0xf] }
 0x32f   :  { %v7314_v24 = vrot.slane %v8925_v49, 5  ;;  %v8106_v0 = vrot.slane %v7066_v48, 9  ;;  %v7264_v21 = vrot.slane %v7262_v6, 4  ;;  %v7265_v31 = vrot.slane %v8926_v43, 5  ;;  %v8929_v23 = vld [vmem:[#allocation2 + $0x44] sm:$0x1] }
 0x330   :  { %v7374_v17 = vrot.slane %v8927_v37, 5  ;;  %v7566_v55 = vsel %vm2077_vm10, %v8145_v46, 0  ;;  %v8130_v53 = vcombine.low %v7200_v39, %v7203_v20  ;;  %v7318_v15 = vrot.slane %v8928_v52, 5  ;;  %v7074_v1 = vld [vmem:[#allocation2 + $0x114] sm:$0xe] }
 0x331   :  { %8449 = vmatmul.mubr.msk.bf16.vlgmr.msra.gmra.mrb[0].mxu1 %vm2077_vm10, %v12120_v56  ;;  %8453 = vmatpush3.bf16.xpose.msra.mxu0 %v7518_v62  ;;  %v8154_v54 = vcombine.low %v12443_v29, %v12451_v57  ;;  %v8098_v63 = vrot.slane %v7058_v47, 9  ;;  %v7208_v8 = vrot.slane %v7206_v7, 4  ;;  %v7209_v35 = vrot.slane %v8929_v23, 5  ;;  %v8930_v11 = vld [vmem:[#allocation2 + $0xac] sm:$0xf] }
 0x332   :  { %8469 = vmatpush3.bf16.xpose.msra.mxu1 %v7563_v5  ;;  %8680 = vmatprep.subr.msk.bf16.mxu0 %vm2077_vm10, %v8138_v51  ;;  %v7312_v56 = vsel %vm10053_vm14, %v8113_v10, %v7311_v33  ;;  %v7315_v13 = vsel %vm10053_vm14, %v7313_v22, %v7314_v24  ;;  %v7263_v61 = vsel %vm10053_vm14, %v8106_v0, %v7262_v6  ;;  %v7269_v5 = vrot.slane %v8930_v11, 5  ;;  %v8931_v46 = vld [vmem:[#allocation2 + $0x17c] sm:$0x1]  ;;  %v7067_v29 = vld [vmem:[#allocation2 + $0xa8] sm:$0xe] }
 0x333   :  { %8687 = vmatprep.subr.msk.bf16.mxu1 %vm2077_vm10, %v8153_v38  ;;  %v7266_v48 = vsel %vm10053_vm14, %v7264_v21, %v7265_v31  ;;  %v8122_v28 = vrot.slane %v7082_v34, 9  ;;  %v7376_v62 = vrot.slane %v7374_v17, 4  ;;  %v7377_v38 = vrot.slane %v8931_v46, 5  ;;  %8484 = vmatprep.mubr.msk.bf16.mxu1 %vm2077_vm10, %v12423_v4  ;;  %v8932_v20 = vld [vmem:[#allocation2 + $0x11c] sm:$0x1] }
 0x334   :  { %v7521_v33 = vsel %vm2077_vm10, %v8130_v53, 0  ;;  %v8114_v51 = vrot.slane %v7074_v1, 9  ;;  %v7320_v39 = vrot.slane %v7318_v15, 4  ;;  %v7321_v10 = vrot.slane %v8932_v20, 5  ;;  %v8933_v22 = vld [vmem:[#allocation2 + $0x4c] sm:$0xf] }
 0x335   :  { %v8146_v6 = vcombine.low %v7312_v56, %v7315_v13  ;;  %v7207_v32 = vsel %vm10053_vm14, %v8098_v63, %v7206_v7  ;;  %v7210_v57 = vsel %vm10053_vm14, %v7208_v8, %v7209_v35  ;;  %v7213_v49 = vrot.slane %v8933_v22, 5  ;;  %v7059_v43 = vld [vmem:[#allocation2 + $0x48] sm:$0xe]  ;;  %v7083_v52 = vld [vmem:[#allocation2 + $0x180] sm:$0xe] }
 0x336   :  { %v8139_v24 = vcombine.low %v7263_v61, %v7266_v48  ;;  %v8107_v0 = vrot.slane %v7067_v29, 9  ;;  %v7271_v47 = vrot.slane %v7269_v5, 4  ;;  %v7272_v21 = vrot.slane %v12021_v27, 5  ;;  %v8934_v63 = vld [vmem:[#allocation2 + $0x184] sm:$0xf] }
 0x337   :  { %v7375_v31 = vsel %vm10053_vm14, %v8122_v28, %v7374_v17  ;;  %v7378_v37 = vsel %vm10053_vm14, %v7376_v62, %v7377_v38  ;;  %v8131_v53 = vcombine.low %v7207_v32, %v7210_v57  ;;  %v7319_v7 = vsel %vm10053_vm14, %v8114_v51, %v7318_v15  ;;  %v8935_v35 = vld [vmem:[#allocation2 + $0x50] sm:$0x1]  ;;  %v7078_v17 = vld [vmem:[#allocation2 + $0x144] sm:$0xe]  ;;  %v8936_v48 = vld [vmem:[#allocation2 + $0x188] sm:$0x1] }
 0x338   :  { %v7322_v34 = vsel %vm10053_vm14, %v7320_v39, %v7321_v10  ;;  %v7381_v8 = vrot.slane %v8934_v63, 5  ;;  %v8099_v27 = vrot.slane %v7059_v43, 9  ;;  %v7215_v23 = vrot.slane %v7213_v49, 4  ;;  %v7068_v38 = vld [vmem:[#allocation2 + $0xb4] sm:$0xe] }
 0x339   :  { %8455 = vmatpush3.bf16.xpose.msra.mxu0 %v7521_v33  ;;  %v7216_v1 = vrot.slane %v8935_v35, 5  ;;  %v7569_v56 = vsel %vm2077_vm10, %v8146_v6, 0  ;;  %v8155_v15 = vcombine.low %v7375_v31, %v7378_v37  ;;  %v7270_v13 = vsel %vm10053_vm14, %v8107_v0, %v7269_v5  ;;  %v7075_v20 = vld [vmem:[#allocation2 + $0x120] sm:$0xe]  ;;  %v8937_v10 = vld [vmem:[#allocation2 + $0x124] sm:$0xf] }
 0x33a   :  { %8471 = vmatpush3.bf16.xpose.msra.mxu1 %v7566_v55  ;;  %8681 = vmatprep.subr.msk.bf16.mxu0 %vm2077_vm10, %v8139_v24  ;;  %v7273_v61 = vsel %vm10053_vm14, %v7271_v47, %v7272_v21  ;;  %v8147_v55 = vcombine.low %v7319_v7, %v7322_v34  ;;  %v8123_v11 = vrot.slane %v7083_v52, 9  ;;  %v7384_v28 = vrot.slane %v8936_v48, 5  ;;  %v7060_v47 = vld [vmem:[#allocation2 + $0x54] sm:$0xe]  ;;  %v7084_v34 = vld [vmem:[#allocation2 + $0x18c] sm:$0xe] }
 0x33b   :  { %8688 = vmatprep.subr.msk.bf16.mxu1 %vm2077_vm10, %v8154_v54  ;;  %v7276_v62 = vrot.slane %v12047_v44, 5  ;;  %v7524_v46 = vsel %vm2077_vm10, %v8131_v53, 0  ;;  %v7383_v54 = vrot.slane %v7381_v8, 4  ;;  %v8118_v29 = vrot.slane %v7078_v17, 9  ;;  %v8938_v53 = vld [vmem:[#allocation2 + $0x128] sm:$0x1] }
 0x33c   :  { %v7346_v33 = vrot.slane %v12319_v30, 5  ;;  %v8140_v51 = vcombine.low %v7270_v13, %v7273_v61  ;;  %v7214_v5 = vsel %vm10053_vm14, %v8099_v27, %v7213_v49  ;;  %v7217_v39 = vsel %vm10053_vm14, %v7215_v23, %v7216_v1  ;;  %v7069_v35 = vld [vmem:[#allocation2 + $0xc0] sm:$0xe] }
 0x33d   :  { %v7325_v6 = vrot.slane %v8937_v10, 5  ;;  %v7220_v32 = vrot.slane %v12098_v45, 5  ;;  %v7349_v22 = vrot.slane %v12334_v59, 5  ;;  %v7382_v30 = vsel %vm10053_vm14, %v8123_v11, %v7381_v8  ;;  %v7076_v11 = vld [vmem:[#allocation2 + $0x12c] sm:$0xe] }
 0x33e   :  { %v12501_v44 = vsel %vm10053_vm14, %v8118_v29, %v7346_v33  ;;  %v7348_v57 = vrot.slane %v7346_v33, 4  ;;  %v8108_v24 = vrot.slane %v7068_v38, 9  ;;  %v7278_v49 = vrot.slane %v7276_v62, 4  ;;  %v7061_v38 = vld [vmem:[#allocation2 + $0x60] sm:$0xe] }
 0x33f   :  { %v7279_v0 = vrot.slane %v12067_v9, 5  ;;  %v7385_v21 = vsel %vm10053_vm14, %v7383_v54, %v7384_v28  ;;  %v8115_v43 = vrot.slane %v7075_v20, 9  ;;  %v7388_v45 = vrot.slane %v12114_v3, 5 }
 0x340   :  { %v12512_v31 = vsel %vm10053_vm14, %v7348_v57, %v7349_v22  ;;  %v8132_v59 = vcombine.low %v7214_v5, %v7217_v39  ;;  %v7327_v37 = vrot.slane %v7325_v6, 4  ;;  %v7328_v7 = vrot.slane %v8938_v53, 5 }
 0x341   :  { %8457 = vmatpush3.bf16.xpose.msra.mxu0 %v7524_v46  ;;  %v8151_v9 = vcombine.low %v12501_v44, %v12512_v31  ;;  %v8100_v52 = vrot.slane %v7060_v47, 9  ;;  %v7222_v3 = vrot.slane %v7220_v32, 4  ;;  %v7223_v63 = vrot.slane %v12137_v26, 5 }
 0x342   :  { %8473 = vmatpush3.bf16.xpose.msra.mxu1 %v7569_v56  ;;  %8682 = vmatprep.subr.msk.bf16.mxu0 %vm2077_vm10, %v8140_v51  ;;  %v7572_v8 = vsel %vm2077_vm10, %v8147_v55, 0  ;;  %v7277_v27 = vsel %vm10053_vm14, %v8108_v24, %v7276_v62  ;;  %v7280_v23 = vsel %vm10053_vm14, %v7278_v49, %v7279_v0  ;;  %v7283_v1 = vrot.slane %v12147_v16, 5  ;;  %v7070_v24 = vld [vmem:[#allocation2 + $0xcc] sm:$0xe] }
 0x343   :  { %8689 = vmatprep.subr.msk.bf16.mxu1 %vm2077_vm10, %v8155_v15  ;;  %v8156_v17 = vcombine.low %v7382_v30, %v7385_v21  ;;  %v8124_v56 = vrot.slane %v7084_v34, 9  ;;  %v7390_v15 = vrot.slane %v7388_v45, 4  ;;  %v7391_v13 = vrot.slane %v12117_v14, 5 }
 0x344   :  { %v7527_v61 = vsel %vm2077_vm10, %v8132_v59, 0  ;;  %v7326_v26 = vsel %vm10053_vm14, %v8115_v43, %v7325_v6  ;;  %v7329_v55 = vsel %vm10053_vm14, %v7327_v37, %v7328_v7  ;;  %v7332_v48 = vrot.slane %v12110_v42, 5  ;;  %v7085_v6 = vld [vmem:[#allocation2 + $0x198] sm:$0xe] }
 0x345   :  { %v8141_v28 = vcombine.low %v7277_v27, %v7280_v23  ;;  %v7221_v16 = vsel %vm10053_vm14, %v8100_v52, %v7220_v32  ;;  %v7224_v62 = vsel %vm10053_vm14, %v7222_v3, %v7223_v63  ;;  %v8109_v46 = vrot.slane %v7069_v35, 9  ;;  %v12832_v63 = vld [vmem:[#allocation32_spill] sm:$0xff]  ;;  %v7062_v23 = vld [vmem:[#allocation2 + $0x6c] sm:$0xe] }
 0x346   :  { %v7285_v14 = vrot.slane %v7283_v1, 4  ;;  %v7286_v54 = vrot.slane %v12186_v12, 5  ;;  %v7227_v29 = vrot.slane %v12210_v19, 5  ;;  %v8148_v33 = vcombine.low %v7326_v26, %v7329_v55 }
 0x347   :  { %v7389_v51 = vsel %vm10053_vm14, %v8124_v56, %v7388_v45  ;;  %v7392_v42 = vsel %vm10053_vm14, %v7390_v15, %v7391_v13  ;;  %v8116_v5 = vrot.slane %v7076_v11, 9  ;;  %v8133_v39 = vcombine.low %v7221_v16, %v7224_v62  ;;  %v7086_v13 = vld [vmem:[#allocation2 + $0x1a4] sm:$0xe] }
 0x348   :  { %v7334_v20 = vrot.slane %v7332_v48, 4  ;;  %v7335_v10 = vrot.slane %v12149_v40, 5  ;;  %v7395_v12 = vrot.slane %v12160_v18, 5  ;;  %v7284_v19 = vsel %vm10053_vm14, %v8109_v46, %v7283_v1  ;;  %v12833_v1 = vld [vmem:[#allocation27_spill] sm:$0xff] }
 0x349   :  { %8459 = vmatpush3.bf16.xpose.msra.mxu0 %v7527_v61  ;;  %v8101_v32 = vrot.slane %v7061_v38, 9  ;;  %v7287_v57 = vsel %vm10053_vm14, %v7285_v14, %v7286_v54  ;;  %v7229_v22 = vrot.slane %v7227_v29, 4  ;;  %v7230_v30 = vrot.slane %v12229_v58, 5  ;;  %v12834_v61 = vld [vmem:[#allocation15_spill] sm:$0xff] }
 0x34a   :  { %8475 = vmatpush3.bf16.xpose.msra.mxu1 %v7572_v8  ;;  %8683 = vmatprep.subr.msk.bf16.mxu0 %vm2077_vm10, %v8141_v28  ;;  %v7290_v40 = vrot.slane %v12254_v2, 5  ;;  %v7575_v49 = vsel %vm2077_vm10, %v8148_v33, 0  ;;  %v8157_v18 = vcombine.low %v7389_v51, %v7392_v42  ;;  %v7333_v0 = vsel %vm10053_vm14, %v8116_v5, %v7332_v48  ;;  %v7077_v2 = vld [vmem:[#allocation2 + $0x138] sm:$0xe]  ;;  %v12835_v28 = vld [vmem:[#allocation33_spill] sm:$0xff] }
 0x34b   :  { %8690 = vmatprep.subr.msk.bf16.mxu1 %vm2077_vm10, %v8156_v17  ;;  %v8125_v47 = vrot.slane %v7085_v6, 9  ;;  %v7530_v21 = vsel %vm2077_vm10, %v8133_v39, 0  ;;  %v7336_v43 = vsel %vm10053_vm14, %v7334_v20, %v7335_v10  ;;  %v7397_v45 = vrot.slane %v7395_v12, 4 }
 0x34c   :  { %v7398_v59 = vrot.slane %v12194_v25, 5  ;;  %v8142_v37 = vcombine.low %v7284_v19, %v7287_v57  ;;  %v7228_v58 = vsel %vm10053_vm14, %v8101_v32, %v7227_v29  ;;  %v7339_v53 = vrot.slane %v12250_v50, 5 }
 0x34d   :  { %v8110_v7 = vrot.slane %v7070_v24, 9  ;;  %v7231_v34 = vsel %vm10053_vm14, %v7229_v22, %v7230_v30  ;;  %v7292_v52 = vrot.slane %v7290_v40, 4  ;;  %v7293_v3 = vrot.slane %v12300_v41, 5 }
 0x34e   :  { %v7234_v8 = vrot.slane %v12832_v63, 5  ;;  %v8149_v27 = vcombine.low %v7333_v0, %v7336_v43  ;;  %v7396_v25 = vsel %vm10053_vm14, %v8125_v47, %v7395_v12  ;;  %v7399_v35 = vsel %vm10053_vm14, %v7397_v45, %v7398_v59 }
 0x34f   :  { %v8117_v50 = vrot.slane %v7077_v2, 9  ;;  %v7342_v17 = vrot.slane %v12833_v1, 5  ;;  %v8134_v41 = vcombine.low %v7228_v58, %v7231_v34  ;;  %v7341_v56 = vrot.slane %v7339_v53, 4 }
 0x350   :  { %v7291_v15 = vsel %vm10053_vm14, %v8110_v7, %v7290_v40  ;;  %v7402_v26 = vrot.slane %v12834_v61, 5  ;;  %v7294_v55 = vsel %vm10053_vm14, %v7292_v52, %v7293_v3  ;;  %v8102_v11 = vrot.slane %v7062_v23, 9 }
 0x351   :  { %8461 = vmatpush3.bf16.xpose.msra.mxu0 %v7530_v21  ;;  %v7236_v48 = vrot.slane %v7234_v8, 4  ;;  %v7237_v16 = vrot.slane %v12835_v28, 5  ;;  %v7578_v62 = vsel %vm2077_vm10, %v8149_v27, 0  ;;  %v8158_v46 = vcombine.low %v7396_v25, %v7399_v35 }
 0x352   :  { %8477 = vmatpush3.bf16.xpose.msra.mxu1 %v7575_v49  ;;  %8684 = vmatprep.subr.msk.bf16.mxu0 %vm2077_vm10, %v8142_v37  ;;  %v8126_v14 = vrot.slane %v7086_v13, 9  ;;  %v7533_v54 = vsel %vm2077_vm10, %v8134_v41, 0  ;;  %v7340_v38 = vsel %vm10053_vm14, %v8117_v50, %v7339_v53  ;;  %v8143_v29 = vcombine.low %v7291_v15, %v7294_v55 }
 0x353   :  { %8691 = vmatprep.subr.msk.bf16.mxu1 %vm2077_vm10, %v8157_v18  ;;  %v7405_v33 = vrot.slane %v12321_v36, 5  ;;  %v7343_v51 = vsel %vm10053_vm14, %v7341_v56, %v7342_v17  ;;  %v7404_v42 = vrot.slane %v7402_v26, 4  ;;  %v7235_v5 = vsel %vm10053_vm14, %v8102_v11, %v7234_v8 }
 0x354   :  { %v7238_v39 = vsel %vm10053_vm14, %v7236_v48, %v7237_v16  ;;  %v8150_v20 = vcombine.low %v7340_v38, %v7343_v51  ;;  %v7403_v36 = vsel %vm10053_vm14, %v8126_v14, %v7402_v26  ;;  %v7584_v57 = vsel %vm2077_vm10, %v8151_v9, 0 }
 0x355   :  { %v8135_v10 = vcombine.low %v7235_v5, %v7238_v39  ;;  %v7406_v6 = vsel %vm10053_vm14, %v7404_v42, %v7405_v33 }
 0x356   :  { %v7581_v12 = vsel %vm2077_vm10, %v8150_v20, 0  ;;  %v8159_v19 = vcombine.low %v7403_v36, %v7406_v6 }
 0x357   :  { %v7536_v32 = vsel %vm2077_vm10, %v8135_v10, 0 }
 0x359   :  { %8463 = vmatpush3.bf16.xpose.msra.mxu0 %v7533_v54 }
 0x35a   :  { %8479 = vmatpush3.bf16.xpose.msra.mxu1 %v7578_v62  ;;  %8685 = vmatprep.subr.msk.bf16.mxu0 %vm2077_vm10, %v8143_v29 }
 0x35b   :  { %8692 = vmatprep.subr.msk.bf16.mxu1 %vm2077_vm10, %v8158_v46 }
 0x361   :  { %8465 = vmatpush3.bf16.xpose.msra.mxu0 %v7536_v32 }
 0x362   :  { %8481 = vmatpush3.bf16.xpose.msra.mxu1 %v7581_v12 }
 0x363   :  { %8693 = vmatprep.subr.msk.bf16.mxu1 %vm2077_vm10, %v8159_v19 }
 0x368   :  { %8467 = vmatmul.mubr.msk.bf16.vlgmr.msra.gmra.mrb[0].mxu0 %vm2077_vm10, %v12423_v4 }
 0x36a   :  { %8483 = vmatpush3.bf16.xpose.msra.mxu1 %v7584_v57 }
 0x36f   :  { %v7709_v60 = vpop.permute.xlu0 %7708 }
 0x371   :  { %8485 = vmatmul.mubr.msk.bf16.vlgmr.msra.gmra.mrb[0].mxu1 %vm2077_vm10, %v12423_v4 }
 0x374   :  { %v7714_v40 = vpop.permute.xlu0 %7713 }
 0x43b   :  { %v7644_v22 = vpop.f32.mrb[0].mxu0 }
 0x43c   :  { %v7716_v30 = vadd.f32 %v7709_v60, %v7644_v22  ;;  %v7646_v24 = vpop.f32.mrb[1].mxu0 }
 0x43d   :  { %v7717_v49 = vadd.f32 %v7709_v60, %v7646_v24  ;;  %v7648_v18 = vpop.f32.mrb[2].mxu0 }
 0x43e   :  { %7724 = vst [vmem:[#allocation9] sm:$0xff] %v7716_v30  ;;  %v7720_v0 = vadd.f32 %v7714_v40, %v7648_v18  ;;  %v7650_v47 = vpop.f32.mrb[3].mxu0 }
 0x43f   :  { %7725 = vst [vmem:[#allocation9 + $0x8] sm:$0xff] %v7717_v49  ;;  %v7721_v44 = vadd.f32 %v7714_v40, %v7650_v47 }
 0x440   :  { %7726 = vst [vmem:[#allocation9 + $0x10] sm:$0xff] %v7720_v0 }
 0x441   :  { %7727 = vst [vmem:[#allocation9 + $0x18] sm:$0xff] %v7721_v44 }
 0x444   :  { %v7687_v31 = vpop.f32.mrb[0].mxu1 }
 0x445   :  { %v7718_v9 = vadd.f32 %v7709_v60, %v7687_v31  ;;  %v7689_v21 = vpop.f32.mrb[1].mxu1 }
 0x446   :  { %v7719_v4 = vadd.f32 %v7709_v60, %v7689_v21  ;;  %v7691_v43 = vpop.f32.mrb[2].mxu1 }
 0x447   :  { %7729 = vst [vmem:[#allocation9 + $0x20] sm:$0xff] %v7718_v9  ;;  %v7722_v45 = vadd.f32 %v7714_v40, %v7691_v43  ;;  %v7693_v59 = vpop.f32.mrb[3].mxu1 }
 0x448   :  { %7730 = vst [vmem:[#allocation9 + $0x28] sm:$0xff] %v7719_v4  ;;  %v7723_v37 = vadd.f32 %v7714_v40, %v7693_v59 }
 0x449   :  { %7731 = vst [vmem:[#allocation9 + $0x30] sm:$0xff] %v7722_v45 }
 0x44a   :  { %7732 = vst [vmem:[#allocation9 + $0x38] sm:$0xff] %v7723_v37 }
 0x44b   :  { %9016 = shalt.err (!%p9013_p0)
}
 0x44c   :  { %s9017_s27 = scalar_lea.hbm %s12622_s3, 1024 }
 0x44d   :  { %p9018_p1 = scmp.ne.s32.totalorder %s12622_s3, %s9017_s27  ;;  %p9021_p2 = scmp.lt.u32.totalorder %s9017_s27, %s12622_s3 }
 0x44f   :  { %p9023_p3 = pnand %p9021_p2, %p9018_p1 }
 0x451   :  { %9026 = shalt.err (!%p9023_p3)
}
 0x452   :  { %s9042_s5 = smov 256   ;;  %s9043_s6 = smov 16  }
 0x453   :  { %7744 = dma.vmem_to_hbm [thread:$0]  %s7739_s23, 1024, %s12622_s3, [#allocation5], %s9042_s5, %s9042_s5, %s9043_s6  }
 0x454   :  { %9031 = dma.done.wait [#allocation5], 1024  }
 0x455   :  { %9032 = vsyncadd [#allocation5], 4294966272 }
 0x456   :  { %7748 = vsyncpa [#allocation4], 1 }
 0x457   :  { %7749 = vsyncpa [#allocation7], 1 }
 0x458   :  { %7750 = vsyncpa [#allocation5], 1 }

</bundles_post_ra>
